<compile_context>
chip_gen: v7x
topology: tpu7x:2x2x1
jax: 0.10.0
libtpu: 0.0.40
codegen_flags: <defaults>
</compile_context>

<pallas_src>
import functools

import jax
import jax.numpy as jnp
from jax.experimental import pallas as pl
from jax.experimental.pallas import tpu as pltpu

_COMPUTE_DTYPE = jnp.bfloat16


# ----------------------------------------------------------------------------
# small helpers
# ----------------------------------------------------------------------------
def _round_up(x, m):
    return (x + m - 1) // m * m


def _pick_tile(padded_dim, target, quantum):
    """Largest multiple of `quantum` that divides `padded_dim` and is <= target."""
    best = quantum
    t = quantum
    limit = min(target, padded_dim)
    while t <= limit:
        if padded_dim % t == 0:
            best = t
        t += quantum
    return best


@functools.lru_cache()
def _tile_defaults():
    """(tm, tn, tk) targets per TPU generation."""
    try:
        kind = jax.devices()[0].device_kind.lower()
    except Exception:
        kind = ""
    if "v5 lite" in kind or "v5e" in kind or "v5lite" in kind:
        return 128, 128, 256          # v5e: 4x128x128 MXU, 16 MiB scoped default
    if "v6" in kind:
        return 512, 256, 256          # v6e: big tm for memory-bound im2col layers
    return 256, 256, 256              # v7x (64 MiB VMEM / 2 TCs) and others


def _pad_and_tiles(M, K, N):
    tm_t, tn_t, tk_t = _tile_defaults()
    Mp = _round_up(M, 8)
    Kp = _round_up(K, 128)
    Np = _round_up(N, 128)
    tm = _pick_tile(Mp, tm_t, 8)
    tk = _pick_tile(Kp, tk_t, 128)
    tn = _pick_tile(Np, tn_t, 128)
    return (Mp, Kp, Np), (tm, tk, tn)


# ----------------------------------------------------------------------------
# Pallas kernels
# ----------------------------------------------------------------------------
def _conv_bn_kernel(p_ref, w_ref, s_ref, b_ref, *rest, relu, has_res):
    """Tiled (patches @ W) with fused BatchNorm, optional residual and ReLU.

    Grid = (M/tm, N/tn, K/tk); K ("arbitrary") is innermost so the f32 VMEM
    accumulator is zeroed at k==0 and flushed at k==last for every (i, j) tile.
    """
    if has_res:
        r_ref, o_ref, acc_ref = rest
    else:
        o_ref, acc_ref = rest
    k = pl.program_id(2)

    @pl.when(k == 0)
    def _init():
        acc_ref[...] = jnp.zeros_like(acc_ref)

    acc_ref[...] += jnp.dot(p_ref[...], w_ref[...],
                            preferred_element_type=jnp.float32)

    @pl.when(k == pl.num_programs(2) - 1)
    def _finalize():
        out = acc_ref[...] * s_ref[...] + b_ref[...]
        if has_res:
            out = out + r_ref[...].astype(jnp.float32)
        if relu:
            out = jnp.maximum(out, 0.0)
        o_ref[...] = out.astype(o_ref.dtype)


def _conv_bn_dual_kernel(p_ref, w1_ref, s1_ref, b1_ref, w2_ref, s2_ref, b2_ref,
                         o1_ref, o2_ref, acc1_ref, acc2_ref):
    """Two conv+BN heads sharing one im2col patch stream.

    Head 1 = 3x3 conv1 (+ReLU); head 2 = 1x1 downsample embedded at the centre
    tap (no ReLU).  Saves a second HBM pass over the shared input patches and a
    second kernel launch at the stage-entry blocks.
    """
    k = pl.program_id(2)

    @pl.when(k == 0)
    def _init():
        acc1_ref[...] = jnp.zeros_like(acc1_ref)
        acc2_ref[...] = jnp.zeros_like(acc2_ref)

    p = p_ref[...]
    acc1_ref[...] += jnp.dot(p, w1_ref[...], preferred_element_type=jnp.float32)
    acc2_ref[...] += jnp.dot(p, w2_ref[...], preferred_element_type=jnp.float32)

    @pl.when(k == pl.num_programs(2) - 1)
    def _finalize():
        o1 = acc1_ref[...] * s1_ref[...] + b1_ref[...]
        o1_ref[...] = jnp.maximum(o1, 0.0).astype(o1_ref.dtype)
        o2 = acc2_ref[...] * s2_ref[...] + b2_ref[...]
        o2_ref[...] = o2.astype(o2_ref.dtype)


def _maxpool_kernel(p_ref, o_ref):
    # p_ref: [k*k, tr, tc] -> max over the window axis (lane-dense last dim).
    o_ref[...] = jnp.max(p_ref[...], axis=0)


# ----------------------------------------------------------------------------
# pallas_call wrappers
# ----------------------------------------------------------------------------
def conv_bn_pallas(patches, w_mat, scale, bias, residual=None, relu=True):
    """Tiled MXU matmul with fused BN (+residual, +ReLU) epilogue."""
    M, K = patches.shape
    N = w_mat.shape[1]
    (Mp, Kp, Np), (tm, tk, tn) = _pad_and_tiles(M, K, N)

    p = jnp.pad(patches.astype(_COMPUTE_DTYPE), ((0, Mp - M), (0, Kp - K)))
    w = jnp.pad(w_mat.astype(_COMPUTE_DTYPE), ((0, Kp - K), (0, Np - N)))
    s = jnp.pad(scale.astype(jnp.float32), (0, Np - N)).reshape(1, Np)
    b = jnp.pad(bias.astype(jnp.float32), (0, Np - N)).reshape(1, Np)

    args = [p, w, s, b]
    in_specs = [
        pl.BlockSpec((tm, tk), lambda i, j, k: (i, k)),
        pl.BlockSpec((tk, tn), lambda i, j, k: (k, j)),
        pl.BlockSpec((1, tn), lambda i, j, k: (0, j)),
        pl.BlockSpec((1, tn), lambda i, j, k: (0, j)),
    ]
    has_res = residual is not None
    if has_res:
        r = jnp.pad(residual.astype(_COMPUTE_DTYPE), ((0, Mp - M), (0, Np - N)))
        args.append(r)
        in_specs.append(pl.BlockSpec((tm, tn), lambda i, j, k: (i, j)))

    grid = (Mp // tm, Np // tn, Kp // tk)
    out = pl.pallas_call(
        functools.partial(_conv_bn_kernel, relu=relu, has_res=has_res),
        out_shape=jax.ShapeDtypeStruct((Mp, Np), _COMPUTE_DTYPE),
        grid=grid,
        in_specs=in_specs,
        out_specs=pl.BlockSpec((tm, tn), lambda i, j, k: (i, j)),
        scratch_shapes=[pltpu.VMEM((tm, tn), jnp.float32)],
        compiler_params=pltpu.CompilerParams(
            dimension_semantics=("parallel", "parallel", "arbitrary")),
        cost_estimate=pl.CostEstimate(
            flops=2 * Mp * Np * Kp,
            transcendentals=0,
            bytes_accessed=2 * (Mp * Kp + Kp * Np + 2 * Mp * Np)),
    )(*args)
    return out[:M, :N]


def conv_bn_dual_pallas(patches, w1, s1, b1, w2, s2, b2):
    """conv1 (3x3, +ReLU) and downsample (1x1 embedded at centre tap, no ReLU)
    sharing the same im2col patches, in a single tiled pallas_call."""
    M, K = patches.shape
    N = w1.shape[1]
    (Mp, Kp, Np), (tm, tk, tn) = _pad_and_tiles(M, K, N)

    p = jnp.pad(patches.astype(_COMPUTE_DTYPE), ((0, Mp - M), (0, Kp - K)))
    w1p = jnp.pad(w1.astype(_COMPUTE_DTYPE), ((0, Kp - K), (0, Np - N)))
    w2p = jnp.pad(w2.astype(_COMPUTE_DTYPE), ((0, Kp - K), (0, Np - N)))
    s1p = jnp.pad(s1.astype(jnp.float32), (0, Np - N)).reshape(1, Np)
    b1p = jnp.pad(b1.astype(jnp.float32), (0, Np - N)).reshape(1, Np)
    s2p = jnp.pad(s2.astype(jnp.float32), (0, Np - N)).reshape(1, Np)
    b2p = jnp.pad(b2.astype(jnp.float32), (0, Np - N)).reshape(1, Np)

    grid = (Mp // tm, Np // tn, Kp // tk)
    pk_spec = pl.BlockSpec((tm, tk), lambda i, j, k: (i, k))
    w_spec = pl.BlockSpec((tk, tn), lambda i, j, k: (k, j))
    v_spec = pl.BlockSpec((1, tn), lambda i, j, k: (0, j))
    o_spec = pl.BlockSpec((tm, tn), lambda i, j, k: (i, j))
    o1, o2 = pl.pallas_call(
        _conv_bn_dual_kernel,
        out_shape=(jax.ShapeDtypeStruct((Mp, Np), _COMPUTE_DTYPE),
                   jax.ShapeDtypeStruct((Mp, Np), _COMPUTE_DTYPE)),
        grid=grid,
        in_specs=[pk_spec, w_spec, v_spec, v_spec, w_spec, v_spec, v_spec],
        out_specs=(o_spec, o_spec),
        scratch_shapes=[pltpu.VMEM((tm, tn), jnp.float32),
                        pltpu.VMEM((tm, tn), jnp.float32)],
        compiler_params=pltpu.CompilerParams(
            dimension_semantics=("parallel", "parallel", "arbitrary")),
        cost_estimate=pl.CostEstimate(
            flops=4 * Mp * Np * Kp,
            transcendentals=0,
            bytes_accessed=2 * (Mp * Kp + 2 * Kp * Np + 2 * Mp * Np)),
    )(p, w1p, s1p, b1p, w2p, s2p, b2p)
    return o1[:M, :N], o2[:M, :N]


# ----------------------------------------------------------------------------
# conv / pooling glue (im2col in JAX, matmul / reduction in Pallas)
# ----------------------------------------------------------------------------
def _im2col(x_nhwc, kh, kw, stride, pad, pad_value=0.0):
    B, H, W, C = x_nhwc.shape
    xp = jnp.pad(x_nhwc, ((0, 0), (pad, pad), (pad, pad), (0, 0)),
                 constant_values=pad_value)
    Hp, Wp = H + 2 * pad, W + 2 * pad
    Ho = (Hp - kh) // stride + 1
    Wo = (Wp - kw) // stride + 1
    cols = []
    for i in range(kh):
        for j in range(kw):
            cols.append(xp[:, i:i + stride * (Ho - 1) + 1:stride,
                           j:j + stride * (Wo - 1) + 1:stride, :])
    p = jnp.stack(cols, axis=3)                       # [B, Ho, Wo, kh*kw, C]
    return p.reshape(B * Ho * Wo, kh * kw * C), (B, Ho, Wo)


def _fold_bn(gamma, beta, mean, var, eps=1e-5):
    scale = gamma / jnp.sqrt(var + eps)
    bias = beta - mean * scale
    return scale, bias


def _w_to_mat(w):
    # PyTorch weight [Cout, Cin, kh, kw] -> [kh*kw*Cin, Cout] matching patch order.
    cout, cin, kh, kw = w.shape
    return jnp.transpose(w, (2, 3, 1, 0)).reshape(kh * kw * cin, cout)


def conv_bn(x_nhwc, params, stride, pad, relu=True, residual=None):
    """Conv2d (bias=False) + BatchNorm (eval stats) [+ residual] [+ ReLU]."""
    w, gamma, beta, mean, var = params
    cout = w.shape[0]
    kh, kw = w.shape[2], w.shape[3]
    patches, (B, Ho, Wo) = _im2col(x_nhwc, kh, kw, stride, pad)
    scale, bias = _fold_bn(gamma, beta, mean, var)
    res = None if residual is None else residual.reshape(B * Ho * Wo, cout)
    out = conv_bn_pallas(patches, _w_to_mat(w), scale, bias, res, relu)
    return out.reshape(B, Ho, Wo, cout)


def conv1_and_downsample(x_nhwc, conv1_params, ds_params, stride):
    """Fuse conv1 (3x3) and downsample (1x1) of a stage-entry block: the 1x1 weight
    is embedded at the centre tap of the 3x3 im2col columns so both heads consume
    the same patch stream."""
    w1 = conv1_params[0]
    w2 = ds_params[0]
    if w1.shape[0] != w2.shape[0]:        # different Cout -> run separately
        out = conv_bn(x_nhwc, conv1_params, stride=stride, pad=1, relu=True)
        identity = conv_bn(x_nhwc, ds_params, stride=stride, pad=0, relu=False)
        return out, identity
    cout, cin = w1.shape[0], w1.shape[1]
    patches, (B, Ho, Wo) = _im2col(x_nhwc, 3, 3, stride, 1)
    w1_mat = _w_to_mat(w1)                                  # [9*cin, cout]
    w2_small = _w_to_mat(w2)                                # [cin, cout]
    w2_mat = jnp.zeros((9 * cin, cout), w2_small.dtype)
    w2_mat = w2_mat.at[4 * cin:5 * cin].set(w2_small)       # centre tap (i=1, j=1)
    s1, b1 = _fold_bn(*conv1_params[1:])
    s2, b2 = _fold_bn(*ds_params[1:])
    o1, o2 = conv_bn_dual_pallas(patches, w1_mat, s1, b1, w2_mat, s2, b2)
    return o1.reshape(B, Ho, Wo, cout), o2.reshape(B, Ho, Wo, cout)


def maxpool_pallas(x_nhwc, ksize=3, stride=2, pad=1):
    B, H, W, C = x_nhwc.shape
    xp = jnp.pad(x_nhwc, ((0, 0), (pad, pad), (pad, pad), (0, 0)),
                 constant_values=-jnp.inf)
    Hp, Wp = H + 2 * pad, W + 2 * pad
    Ho = (Hp - ksize) // stride + 1
    Wo = (Wp - ksize) // stride + 1
    cols = []
    for i in range(ksize):
        for j in range(ksize):
            sl = xp[:, i:i + stride * (Ho - 1) + 1:stride,
                    j:j + stride * (Wo - 1) + 1:stride, :]
            cols.append(sl.reshape(B * Ho, Wo * C))          # lane-dense last dim
    p = jnp.stack(cols, axis=0)                              # [k*k, B*Ho, Wo*C]
    R, WC = B * Ho, Wo * C
    Rp = _round_up(R, 8)
    WCp = _round_up(WC, 128)
    if Rp != R or WCp != WC:
        p = jnp.pad(p, ((0, 0), (0, Rp - R), (0, WCp - WC)))
    tr = _pick_tile(Rp, 64, 8)
    tc = _pick_tile(WCp, 1024, 128)      # bound VMEM per tile (9*tr*tc*2B input)
    out = pl.pallas_call(
        _maxpool_kernel,
        out_shape=jax.ShapeDtypeStruct((Rp, WCp), x_nhwc.dtype),
        grid=(Rp // tr, WCp // tc),
        in_specs=[pl.BlockSpec((ksize * ksize, tr, tc), lambda r, c: (0, r, c))],
        out_specs=pl.BlockSpec((tr, tc), lambda r, c: (r, c)),
        compiler_params=pltpu.CompilerParams(
            dimension_semantics=("parallel", "parallel")),
    )(p)
    return out[:R, :WC].reshape(B, Ho, Wo, C)


# ----------------------------------------------------------------------------
# Parameter construction (deterministic, matches KW_ResNet(depth=18) shapes)
# ----------------------------------------------------------------------------
def _make_conv_bn_params(key, cin, cout, k):
    std = (2.0 / (cout * k * k)) ** 0.5      # kaiming_normal_, fan_out, relu
    w = jax.random.normal(key, (cout, cin, k, k), jnp.float32) * std
    gamma = jnp.ones((cout,), jnp.float32)   # nn.init.constant_(bn.weight, 1)
    beta = jnp.zeros((cout,), jnp.float32)   # nn.init.constant_(bn.bias, 0)
    mean = jnp.zeros((cout,), jnp.float32)   # running_mean init
    var = jnp.ones((cout,), jnp.float32)     # running_var init
    return (w, gamma, beta, mean, var)


def build_params(key, depth=18):
    layers = {18: (2, 2, 2, 2), 34: (3, 4, 6, 3)}[depth]
    keys = iter(jax.random.split(key, 128))
    params = {"stem": _make_conv_bn_params(next(keys), 3, 64, 7)}
    inplanes = 64
    for stage, (planes, nblocks) in enumerate(zip((64, 128, 256, 512), layers)):
        stage_stride = 1 if stage == 0 else 2
        blocks = []
        for b in range(nblocks):
            s = stage_stride if b == 0 else 1
            blk = {
                "stride": s,
                "conv1": _make_conv_bn_params(next(keys), inplanes, planes, 3),
                "conv2": _make_conv_bn_params(next(keys), planes, planes, 3),
            }
            if s != 1 or inplanes != planes:          # BasicBlock.expansion == 1
                blk["downsample"] = _make_conv_bn_params(next(keys), inplanes, planes, 1)
            blocks.append(blk)
            inplanes = planes
        params[f"layer{stage + 1}"] = blocks
    return params


# ----------------------------------------------------------------------------
# Forward (matches KW_ResNet._forward_impl, out_indices=(0,1,2,3))
# ----------------------------------------------------------------------------
def _basic_block(x, blk):
    s = blk["stride"]
    if "downsample" in blk:
        out, identity = conv1_and_downsample(x, blk["conv1"], blk["downsample"], s)
    else:
        out = conv_bn(x, blk["conv1"], stride=s, pad=1, relu=True)
        identity = x
    # conv2 + bn2 + (identity + out) + ReLU fused in a single kernel epilogue.
    return conv_bn(out, blk["conv2"], stride=1, pad=1, relu=True, residual=identity)


def kw_resnet_forward(params, x_nchw, out_indices=(0, 1, 2, 3)):
    x = jnp.transpose(x_nchw, (0, 2, 3, 1)).astype(_COMPUTE_DTYPE)  # NCHW -> NHWC bf16
    x = conv_bn(x, params["stem"], stride=2, pad=3, relu=True)
    x = maxpool_pallas(x, ksize=3, stride=2, pad=1)
    outs = []
    for idx in range(4):
        for blk in params[f"layer{idx + 1}"]:
            x = _basic_block(x, blk)
        if idx in out_indices:
            outs.append(jnp.transpose(x, (0, 3, 1, 2)).astype(jnp.float32))
    return tuple(outs)


# ----------------------------------------------------------------------------
if __name__ == "__main__":
    key = jax.random.PRNGKey(0)
    pkey, xkey = jax.random.split(key)
    params = build_params(pkey, depth=18)
    x = jax.random.normal(xkey, (2, 3, 64, 64), jnp.float32)  # small NCHW input

    fwd = jax.jit(lambda inp: kw_resnet_forward(params, inp))
    outs = jax.block_until_ready(fwd(x))

    expected = [(2, 64, 16, 16), (2, 128, 8, 8), (2, 256, 4, 4), (2, 512, 2, 2)]
    for o, e in zip(outs, expected):
        assert o.shape == e, (o.shape, e)
        assert bool(jnp.all(jnp.isfinite(o)))
    print("KERNEL_OK")
</pallas_src>

<mosaic_0001>
module attributes {stable_mosaic.version = 11 : i64} {
  func.func @_conv_bn_kernel(%arg0: i32, %arg1: i32, %arg2: i32, %arg3: memref<256x256xbf16, #tpu.memory_space<vmem>>, %arg4: memref<256x128xbf16, #tpu.memory_space<vmem>>, %arg5: memref<1x128xf32, #tpu.memory_space<vmem>>, %arg6: memref<1x128xf32, #tpu.memory_space<vmem>>, %arg7: memref<256x128xbf16, #tpu.memory_space<vmem>>, %arg8: memref<256x128xf32, #tpu.memory_space<vmem>>) attributes {dimension_semantics = [#tpu.dimension_semantics<parallel>, #tpu.dimension_semantics<parallel>, #tpu.dimension_semantics<arbitrary>], iteration_bounds = array<i64: 8, 1, 1>, scalar_prefetch = 0 : i64, scratch_operands = 1 : i64, tpu.core_type = #tpu.core_type<tc>, window_params = [{transform_indices = @transform_0, window_bounds = array<i64: 256, 256>}, {transform_indices = @transform_1, window_bounds = array<i64: 256, 128>}, {transform_indices = @transform_2, window_bounds = array<i64: 1, 128>}, {transform_indices = @transform_3, window_bounds = array<i64: 1, 128>}, {transform_indices = @transform_4, window_bounds = array<i64: 256, 128>}]} {
    %c0_i32 = arith.constant 0 : i32
    %0 = arith.cmpi eq, %arg2, %c0_i32 : i32
    %1 = arith.extui %0 : i1 to i32
    %c0_i32_0 = arith.constant 0 : i32
    %2 = arith.cmpi ne, %1, %c0_i32_0 : i32
    scf.if %2 {
      %cst_10 = arith.constant 0.000000e+00 : f32
      %12 = vector.broadcast %cst_10 : f32 to vector<256x128xf32>
      %c0_11 = arith.constant 0 : index
      %c0_12 = arith.constant 0 : index
      %13 = vector.load %arg8[%c0_11, %c0_12] : memref<256x128xf32, #tpu.memory_space<vmem>>, vector<256x128xf32>
      tpu.vector_store %arg8[%c0_11, %c0_12], %12 {strides = array<i32>} : memref<256x128xf32, #tpu.memory_space<vmem>>, vector<256x128xf32>,
    } else {
    }
    %c0 = arith.constant 0 : index
    %c0_1 = arith.constant 0 : index
    %3 = vector.load %arg8[%c0, %c0_1] : memref<256x128xf32, #tpu.memory_space<vmem>>, vector<256x128xf32>
    %c0_2 = arith.constant 0 : index
    %c0_3 = arith.constant 0 : index
    %4 = vector.load %arg3[%c0_2, %c0_3] : memref<256x256xbf16, #tpu.memory_space<vmem>>, vector<256x256xbf16>
    %c0_4 = arith.constant 0 : index
    %c0_5 = arith.constant 0 : index
    %5 = vector.load %arg4[%c0_4, %c0_5] : memref<256x128xbf16, #tpu.memory_space<vmem>>, vector<256x128xbf16>
    %cst = arith.constant dense<0.000000e+00> : vector<256x128xf32>
    %6 = tpu.matmul %4, %5, %cst {dimension_numbers = #tpu.dot_dimension_numbers<[1], [0], [0], [1], [0, 0, 1, 1], [], []>} : vector<256x256xbf16>, vector<256x128xbf16>, vector<256x128xf32> -> vector<256x128xf32>
    %7 = arith.addf %3, %6 : vector<256x128xf32>
    %c0_6 = arith.constant 0 : index
    %c0_7 = arith.constant 0 : index
    %8 = vector.load %arg8[%c0_6, %c0_7] : memref<256x128xf32, #tpu.memory_space<vmem>>, vector<256x128xf32>
    tpu.vector_store %arg8[%c0_6, %c0_7], %7 {strides = array<i32>} : memref<256x128xf32, #tpu.memory_space<vmem>>, vector<256x128xf32>,
    %c0_i32_8 = arith.constant 0 : i32
    %9 = arith.cmpi eq, %arg2, %c0_i32_8 : i32
    %10 = arith.extui %9 : i1 to i32
    %c0_i32_9 = arith.constant 0 : i32
    %11 = arith.cmpi ne, %10, %c0_i32_9 : i32
    scf.if %11 {
      %c0_10 = arith.constant 0 : index
      %c0_11 = arith.constant 0 : index
      %12 = vector.load %arg8[%c0_10, %c0_11] : memref<256x128xf32, #tpu.memory_space<vmem>>, vector<256x128xf32>
      %c0_12 = arith.constant 0 : index
      %c0_13 = arith.constant 0 : index
      %13 = vector.load %arg5[%c0_12, %c0_13] : memref<1x128xf32, #tpu.memory_space<vmem>>, vector<1x128xf32>
      %14 = vector.broadcast %13 : vector<1x128xf32> to vector<256x128xf32>
      %15 = arith.mulf %12, %14 : vector<256x128xf32>
      %c0_14 = arith.constant 0 : index
      %c0_15 = arith.constant 0 : index
      %16 = vector.load %arg6[%c0_14, %c0_15] : memref<1x128xf32, #tpu.memory_space<vmem>>, vector<1x128xf32>
      %17 = vector.broadcast %16 : vector<1x128xf32> to vector<256x128xf32>
      %18 = arith.addf %15, %17 : vector<256x128xf32>
      %cst_16 = arith.constant 0.000000e+00 : f32
      %19 = vector.broadcast %cst_16 : f32 to vector<256x128xf32>
      %20 = arith.maximumf %18, %19 : vector<256x128xf32>
      %21 = arith.truncf %20 : vector<256x128xf32> to vector<256x128xbf16>
      %c0_17 = arith.constant 0 : index
      %c0_18 = arith.constant 0 : index
      %22 = vector.load %arg7[%c0_17, %c0_18] : memref<256x128xbf16, #tpu.memory_space<vmem>>, vector<256x128xbf16>
      tpu.vector_store %arg7[%c0_17, %c0_18], %21 {strides = array<i32>} : memref<256x128xbf16, #tpu.memory_space<vmem>>, vector<256x128xbf16>,
    } else {
    }
    return
  }
  func.func @transform_0(%arg0: i32, %arg1: i32, %arg2: i32) -> (i32, i32) {
    %c0_i32 = arith.constant 0 : i32
    return %arg0, %arg2 : i32, i32
  }
  func.func @transform_1(%arg0: i32, %arg1: i32, %arg2: i32) -> (i32, i32) {
    %c0_i32 = arith.constant 0 : i32
    return %arg2, %arg1 : i32, i32
  }
  func.func @transform_2(%arg0: i32, %arg1: i32, %arg2: i32) -> (i32, i32) {
    %c0_i32 = arith.constant 0 : i32
    %c0_i32_0 = arith.constant 0 : i32
    return %c0_i32, %arg1 : i32, i32
  }
  func.func @transform_3(%arg0: i32, %arg1: i32, %arg2: i32) -> (i32, i32) {
    %c0_i32 = arith.constant 0 : i32
    %c0_i32_0 = arith.constant 0 : i32
    return %c0_i32, %arg1 : i32, i32
  }
  func.func @transform_4(%arg0: i32, %arg1: i32, %arg2: i32) -> (i32, i32) {
    %c0_i32 = arith.constant 0 : i32
    return %arg0, %arg1 : i32, i32
  }
}

module attributes {stable_mosaic.version = 11 : i64} {
  func.func @_maxpool_kernel(%arg0: i32, %arg1: i32, %arg2: memref<9x32x1024xbf16, #tpu.memory_space<vmem>>, %arg3: memref<32x1024xbf16, #tpu.memory_space<vmem>>) attributes {dimension_semantics = [#tpu.dimension_semantics<parallel>, #tpu.dimension_semantics<parallel>], iteration_bounds = array<i64: 1, 1>, scalar_prefetch = 0 : i64, scratch_operands = 0 : i64, tpu.core_type = #tpu.core_type<tc>, window_params = [{transform_indices = @transform_0, window_bounds = array<i64: 9, 32, 1024>}, {transform_indices = @transform_1, window_bounds = array<i64: 32, 1024>}]} {
    %c0 = arith.constant 0 : index
    %c0_0 = arith.constant 0 : index
    %c0_1 = arith.constant 0 : index
    %0 = vector.load %arg2[%c0, %c0_0, %c0_1] : memref<9x32x1024xbf16, #tpu.memory_space<vmem>>, vector<9x32x1024xbf16>
    %cst = arith.constant dense<0xFF80> : vector<32x1024xbf16>
    %1 = vector.multi_reduction <maximumf>, %0, %cst [0] : vector<9x32x1024xbf16> to vector<32x1024xbf16>
    %c0_2 = arith.constant 0 : index
    %c0_3 = arith.constant 0 : index
    %2 = vector.load %arg3[%c0_2, %c0_3] : memref<32x1024xbf16, #tpu.memory_space<vmem>>, vector<32x1024xbf16>
    tpu.vector_store %arg3[%c0_2, %c0_3], %1 {strides = array<i32>} : memref<32x1024xbf16, #tpu.memory_space<vmem>>, vector<32x1024xbf16>,
    return
  }
  func.func @transform_0(%arg0: i32, %arg1: i32) -> (i32, i32, i32) {
    %c0_i32 = arith.constant 0 : i32
    %c0_i32_0 = arith.constant 0 : i32
    return %c0_i32, %arg0, %arg1 : i32, i32, i32
  }
  func.func @transform_1(%arg0: i32, %arg1: i32) -> (i32, i32) {
    %c0_i32 = arith.constant 0 : i32
    return %arg0, %arg1 : i32, i32
  }
}

module attributes {stable_mosaic.version = 11 : i64} {
  func.func @_conv_bn_kernel(%arg0: i32, %arg1: i32, %arg2: i32, %arg3: memref<256x128xbf16, #tpu.memory_space<vmem>>, %arg4: memref<128x128xbf16, #tpu.memory_space<vmem>>, %arg5: memref<1x128xf32, #tpu.memory_space<vmem>>, %arg6: memref<1x128xf32, #tpu.memory_space<vmem>>, %arg7: memref<256x128xbf16, #tpu.memory_space<vmem>>, %arg8: memref<256x128xf32, #tpu.memory_space<vmem>>) attributes {dimension_semantics = [#tpu.dimension_semantics<parallel>, #tpu.dimension_semantics<parallel>, #tpu.dimension_semantics<arbitrary>], iteration_bounds = array<i64: 2, 1, 5>, scalar_prefetch = 0 : i64, scratch_operands = 1 : i64, tpu.core_type = #tpu.core_type<tc>, window_params = [{transform_indices = @transform_0, window_bounds = array<i64: 256, 128>}, {transform_indices = @transform_1, window_bounds = array<i64: 128, 128>}, {transform_indices = @transform_2, window_bounds = array<i64: 1, 128>}, {transform_indices = @transform_3, window_bounds = array<i64: 1, 128>}, {transform_indices = @transform_4, window_bounds = array<i64: 256, 128>}]} {
    %c0_i32 = arith.constant 0 : i32
    %0 = arith.cmpi eq, %arg2, %c0_i32 : i32
    %1 = arith.extui %0 : i1 to i32
    %c0_i32_0 = arith.constant 0 : i32
    %2 = arith.cmpi ne, %1, %c0_i32_0 : i32
    scf.if %2 {
      %cst_9 = arith.constant 0.000000e+00 : f32
      %12 = vector.broadcast %cst_9 : f32 to vector<256x128xf32>
      %c0_10 = arith.constant 0 : index
      %c0_11 = arith.constant 0 : index
      %13 = vector.load %arg8[%c0_10, %c0_11] : memref<256x128xf32, #tpu.memory_space<vmem>>, vector<256x128xf32>
      tpu.vector_store %arg8[%c0_10, %c0_11], %12 {strides = array<i32>} : memref<256x128xf32, #tpu.memory_space<vmem>>, vector<256x128xf32>,
    } else {
    }
    %c0 = arith.constant 0 : index
    %c0_1 = arith.constant 0 : index
    %3 = vector.load %arg8[%c0, %c0_1] : memref<256x128xf32, #tpu.memory_space<vmem>>, vector<256x128xf32>
    %c0_2 = arith.constant 0 : index
    %c0_3 = arith.constant 0 : index
    %4 = vector.load %arg3[%c0_2, %c0_3] : memref<256x128xbf16, #tpu.memory_space<vmem>>, vector<256x128xbf16>
    %c0_4 = arith.constant 0 : index
    %c0_5 = arith.constant 0 : index
    %5 = vector.load %arg4[%c0_4, %c0_5] : memref<128x128xbf16, #tpu.memory_space<vmem>>, vector<128x128xbf16>
    %cst = arith.constant dense<0.000000e+00> : vector<256x128xf32>
    %6 = tpu.matmul %4, %5, %cst {dimension_numbers = #tpu.dot_dimension_numbers<[1], [0], [0], [1], [0, 0, 1, 1], [], []>} : vector<256x128xbf16>, vector<128x128xbf16>, vector<256x128xf32> -> vector<256x128xf32>
    %7 = arith.addf %3, %6 : vector<256x128xf32>
    %c0_6 = arith.constant 0 : index
    %c0_7 = arith.constant 0 : index
    %8 = vector.load %arg8[%c0_6, %c0_7] : memref<256x128xf32, #tpu.memory_space<vmem>>, vector<256x128xf32>
    tpu.vector_store %arg8[%c0_6, %c0_7], %7 {strides = array<i32>} : memref<256x128xf32, #tpu.memory_space<vmem>>, vector<256x128xf32>,
    %c4_i32 = arith.constant 4 : i32
    %9 = arith.cmpi eq, %arg2, %c4_i32 : i32
    %10 = arith.extui %9 : i1 to i32
    %c0_i32_8 = arith.constant 0 : i32
    %11 = arith.cmpi ne, %10, %c0_i32_8 : i32
    scf.if %11 {
      %c0_9 = arith.constant 0 : index
      %c0_10 = arith.constant 0 : index
      %12 = vector.load %arg8[%c0_9, %c0_10] : memref<256x128xf32, #tpu.memory_space<vmem>>, vector<256x128xf32>
      %c0_11 = arith.constant 0 : index
      %c0_12 = arith.constant 0 : index
      %13 = vector.load %arg5[%c0_11, %c0_12] : memref<1x128xf32, #tpu.memory_space<vmem>>, vector<1x128xf32>
      %14 = vector.broadcast %13 : vector<1x128xf32> to vector<256x128xf32>
      %15 = arith.mulf %12, %14 : vector<256x128xf32>
      %c0_13 = arith.constant 0 : index
      %c0_14 = arith.constant 0 : index
      %16 = vector.load %arg6[%c0_13, %c0_14] : memref<1x128xf32, #tpu.memory_space<vmem>>, vector<1x128xf32>
      %17 = vector.broadcast %16 : vector<1x128xf32> to vector<256x128xf32>
      %18 = arith.addf %15, %17 : vector<256x128xf32>
      %cst_15 = arith.constant 0.000000e+00 : f32
      %19 = vector.broadcast %cst_15 : f32 to vector<256x128xf32>
      %20 = arith.maximumf %18, %19 : vector<256x128xf32>
      %21 = arith.truncf %20 : vector<256x128xf32> to vector<256x128xbf16>
      %c0_16 = arith.constant 0 : index
      %c0_17 = arith.constant 0 : index
      %22 = vector.load %arg7[%c0_16, %c0_17] : memref<256x128xbf16, #tpu.memory_space<vmem>>, vector<256x128xbf16>
      tpu.vector_store %arg7[%c0_16, %c0_17], %21 {strides = array<i32>} : memref<256x128xbf16, #tpu.memory_space<vmem>>, vector<256x128xbf16>,
    } else {
    }
    return
  }
  func.func @transform_0(%arg0: i32, %arg1: i32, %arg2: i32) -> (i32, i32) {
    %c0_i32 = arith.constant 0 : i32
    return %arg0, %arg2 : i32, i32
  }
  func.func @transform_1(%arg0: i32, %arg1: i32, %arg2: i32) -> (i32, i32) {
    %c0_i32 = arith.constant 0 : i32
    return %arg2, %arg1 : i32, i32
  }
  func.func @transform_2(%arg0: i32, %arg1: i32, %arg2: i32) -> (i32, i32) {
    %c0_i32 = arith.constant 0 : i32
    %c0_i32_0 = arith.constant 0 : i32
    return %c0_i32, %arg1 : i32, i32
  }
  func.func @transform_3(%arg0: i32, %arg1: i32, %arg2: i32) -> (i32, i32) {
    %c0_i32 = arith.constant 0 : i32
    %c0_i32_0 = arith.constant 0 : i32
    return %c0_i32, %arg1 : i32, i32
  }
  func.func @transform_4(%arg0: i32, %arg1: i32, %arg2: i32) -> (i32, i32) {
    %c0_i32 = arith.constant 0 : i32
    return %arg0, %arg1 : i32, i32
  }
}

module attributes {stable_mosaic.version = 11 : i64} {
  func.func @_conv_bn_kernel(%arg0: i32, %arg1: i32, %arg2: i32, %arg3: memref<256x128xbf16, #tpu.memory_space<vmem>>, %arg4: memref<128x128xbf16, #tpu.memory_space<vmem>>, %arg5: memref<1x128xf32, #tpu.memory_space<vmem>>, %arg6: memref<1x128xf32, #tpu.memory_space<vmem>>, %arg7: memref<256x128xbf16, #tpu.memory_space<vmem>>, %arg8: memref<256x128xbf16, #tpu.memory_space<vmem>>, %arg9: memref<256x128xf32, #tpu.memory_space<vmem>>) attributes {dimension_semantics = [#tpu.dimension_semantics<parallel>, #tpu.dimension_semantics<parallel>, #tpu.dimension_semantics<arbitrary>], iteration_bounds = array<i64: 2, 1, 5>, scalar_prefetch = 0 : i64, scratch_operands = 1 : i64, tpu.core_type = #tpu.core_type<tc>, window_params = [{transform_indices = @transform_0, window_bounds = array<i64: 256, 128>}, {transform_indices = @transform_1, window_bounds = array<i64: 128, 128>}, {transform_indices = @transform_2, window_bounds = array<i64: 1, 128>}, {transform_indices = @transform_3, window_bounds = array<i64: 1, 128>}, {transform_indices = @transform_4, window_bounds = array<i64: 256, 128>}, {transform_indices = @transform_5, window_bounds = array<i64: 256, 128>}]} {
    %c0_i32 = arith.constant 0 : i32
    %0 = arith.cmpi eq, %arg2, %c0_i32 : i32
    %1 = arith.extui %0 : i1 to i32
    %c0_i32_0 = arith.constant 0 : i32
    %2 = arith.cmpi ne, %1, %c0_i32_0 : i32
    scf.if %2 {
      %cst_9 = arith.constant 0.000000e+00 : f32
      %12 = vector.broadcast %cst_9 : f32 to vector<256x128xf32>
      %c0_10 = arith.constant 0 : index
      %c0_11 = arith.constant 0 : index
      %13 = vector.load %arg9[%c0_10, %c0_11] : memref<256x128xf32, #tpu.memory_space<vmem>>, vector<256x128xf32>
      tpu.vector_store %arg9[%c0_10, %c0_11], %12 {strides = array<i32>} : memref<256x128xf32, #tpu.memory_space<vmem>>, vector<256x128xf32>,
    } else {
    }
    %c0 = arith.constant 0 : index
    %c0_1 = arith.constant 0 : index
    %3 = vector.load %arg9[%c0, %c0_1] : memref<256x128xf32, #tpu.memory_space<vmem>>, vector<256x128xf32>
    %c0_2 = arith.constant 0 : index
    %c0_3 = arith.constant 0 : index
    %4 = vector.load %arg3[%c0_2, %c0_3] : memref<256x128xbf16, #tpu.memory_space<vmem>>, vector<256x128xbf16>
    %c0_4 = arith.constant 0 : index
    %c0_5 = arith.constant 0 : index
    %5 = vector.load %arg4[%c0_4, %c0_5] : memref<128x128xbf16, #tpu.memory_space<vmem>>, vector<128x128xbf16>
    %cst = arith.constant dense<0.000000e+00> : vector<256x128xf32>
    %6 = tpu.matmul %4, %5, %cst {dimension_numbers = #tpu.dot_dimension_numbers<[1], [0], [0], [1], [0, 0, 1, 1], [], []>} : vector<256x128xbf16>, vector<128x128xbf16>, vector<256x128xf32> -> vector<256x128xf32>
    %7 = arith.addf %3, %6 : vector<256x128xf32>
    %c0_6 = arith.constant 0 : index
    %c0_7 = arith.constant 0 : index
    %8 = vector.load %arg9[%c0_6, %c0_7] : memref<256x128xf32, #tpu.memory_space<vmem>>, vector<256x128xf32>
    tpu.vector_store %arg9[%c0_6, %c0_7], %7 {strides = array<i32>} : memref<256x128xf32, #tpu.memory_space<vmem>>, vector<256x128xf32>,
    %c4_i32 = arith.constant 4 : i32
    %9 = arith.cmpi eq, %arg2, %c4_i32 : i32
    %10 = arith.extui %9 : i1 to i32
    %c0_i32_8 = arith.constant 0 : i32
    %11 = arith.cmpi ne, %10, %c0_i32_8 : i32
    scf.if %11 {
      %c0_9 = arith.constant 0 : index
      %c0_10 = arith.constant 0 : index
      %12 = vector.load %arg9[%c0_9, %c0_10] : memref<256x128xf32, #tpu.memory_space<vmem>>, vector<256x128xf32>
      %c0_11 = arith.constant 0 : index
      %c0_12 = arith.constant 0 : index
      %13 = vector.load %arg5[%c0_11, %c0_12] : memref<1x128xf32, #tpu.memory_space<vmem>>, vector<1x128xf32>
      %14 = vector.broadcast %13 : vector<1x128xf32> to vector<256x128xf32>
      %15 = arith.mulf %12, %14 : vector<256x128xf32>
      %c0_13 = arith.constant 0 : index
      %c0_14 = arith.constant 0 : index
      %16 = vector.load %arg6[%c0_13, %c0_14] : memref<1x128xf32, #tpu.memory_space<vmem>>, vector<1x128xf32>
      %17 = vector.broadcast %16 : vector<1x128xf32> to vector<256x128xf32>
      %18 = arith.addf %15, %17 : vector<256x128xf32>
      %c0_15 = arith.constant 0 : index
      %c0_16 = arith.constant 0 : index
      %19 = vector.load %arg7[%c0_15, %c0_16] : memref<256x128xbf16, #tpu.memory_space<vmem>>, vector<256x128xbf16>
      %20 = arith.extf %19 : vector<256x128xbf16> to vector<256x128xf32>
      %21 = arith.addf %18, %20 : vector<256x128xf32>
      %cst_17 = arith.constant 0.000000e+00 : f32
      %22 = vector.broadcast %cst_17 : f32 to vector<256x128xf32>
      %23 = arith.maximumf %21, %22 : vector<256x128xf32>
      %24 = arith.truncf %23 : vector<256x128xf32> to vector<256x128xbf16>
      %c0_18 = arith.constant 0 : index
      %c0_19 = arith.constant 0 : index
      %25 = vector.load %arg8[%c0_18, %c0_19] : memref<256x128xbf16, #tpu.memory_space<vmem>>, vector<256x128xbf16>
      tpu.vector_store %arg8[%c0_18, %c0_19], %24 {strides = array<i32>} : memref<256x128xbf16, #tpu.memory_space<vmem>>, vector<256x128xbf16>,
    } else {
    }
    return
  }
  func.func @transform_0(%arg0: i32, %arg1: i32, %arg2: i32) -> (i32, i32) {
    %c0_i32 = arith.constant 0 : i32
    return %arg0, %arg2 : i32, i32
  }
  func.func @transform_1(%arg0: i32, %arg1: i32, %arg2: i32) -> (i32, i32) {
    %c0_i32 = arith.constant 0 : i32
    return %arg2, %arg1 : i32, i32
  }
  func.func @transform_2(%arg0: i32, %arg1: i32, %arg2: i32) -> (i32, i32) {
    %c0_i32 = arith.constant 0 : i32
    %c0_i32_0 = arith.constant 0 : i32
    return %c0_i32, %arg1 : i32, i32
  }
  func.func @transform_3(%arg0: i32, %arg1: i32, %arg2: i32) -> (i32, i32) {
    %c0_i32 = arith.constant 0 : i32
    %c0_i32_0 = arith.constant 0 : i32
    return %c0_i32, %arg1 : i32, i32
  }
  func.func @transform_4(%arg0: i32, %arg1: i32, %arg2: i32) -> (i32, i32) {
    %c0_i32 = arith.constant 0 : i32
    return %arg0, %arg1 : i32, i32
  }
  func.func @transform_5(%arg0: i32, %arg1: i32, %arg2: i32) -> (i32, i32) {
    %c0_i32 = arith.constant 0 : i32
    return %arg0, %arg1 : i32, i32
  }
}

module attributes {stable_mosaic.version = 11 : i64} {
  func.func @_conv_bn_dual_kernel(%arg0: i32, %arg1: i32, %arg2: i32, %arg3: memref<128x128xbf16, #tpu.memory_space<vmem>>, %arg4: memref<128x128xbf16, #tpu.memory_space<vmem>>, %arg5: memref<1x128xf32, #tpu.memory_space<vmem>>, %arg6: memref<1x128xf32, #tpu.memory_space<vmem>>, %arg7: memref<128x128xbf16, #tpu.memory_space<vmem>>, %arg8: memref<1x128xf32, #tpu.memory_space<vmem>>, %arg9: memref<1x128xf32, #tpu.memory_space<vmem>>, %arg10: memref<128x128xbf16, #tpu.memory_space<vmem>>, %arg11: memref<128x128xbf16, #tpu.memory_space<vmem>>, %arg12: memref<128x128xf32, #tpu.memory_space<vmem>>, %arg13: memref<128x128xf32, #tpu.memory_space<vmem>>) attributes {dimension_semantics = [#tpu.dimension_semantics<parallel>, #tpu.dimension_semantics<parallel>, #tpu.dimension_semantics<arbitrary>], iteration_bounds = array<i64: 1, 1, 5>, scalar_prefetch = 0 : i64, scratch_operands = 2 : i64, tpu.core_type = #tpu.core_type<tc>, window_params = [{transform_indices = @transform_0, window_bounds = array<i64: 128, 128>}, {transform_indices = @transform_1, window_bounds = array<i64: 128, 128>}, {transform_indices = @transform_2, window_bounds = array<i64: 1, 128>}, {transform_indices = @transform_3, window_bounds = array<i64: 1, 128>}, {transform_indices = @transform_4, window_bounds = array<i64: 128, 128>}, {transform_indices = @transform_5, window_bounds = array<i64: 1, 128>}, {transform_indices = @transform_6, window_bounds = array<i64: 1, 128>}, {transform_indices = @transform_7, window_bounds = array<i64: 128, 128>}, {transform_indices = @transform_8, window_bounds = array<i64: 128, 128>}]} {
    %c0_i32 = arith.constant 0 : i32
    %0 = arith.cmpi eq, %arg2, %c0_i32 : i32
    %1 = arith.extui %0 : i1 to i32
    %c0_i32_0 = arith.constant 0 : i32
    %2 = arith.cmpi ne, %1, %c0_i32_0 : i32
    scf.if %2 {
      %cst_16 = arith.constant 0.000000e+00 : f32
      %17 = vector.broadcast %cst_16 : f32 to vector<128x128xf32>
      %c0_17 = arith.constant 0 : index
      %c0_18 = arith.constant 0 : index
      %18 = vector.load %arg12[%c0_17, %c0_18] : memref<128x128xf32, #tpu.memory_space<vmem>>, vector<128x128xf32>
      tpu.vector_store %arg12[%c0_17, %c0_18], %17 {strides = array<i32>} : memref<128x128xf32, #tpu.memory_space<vmem>>, vector<128x128xf32>,
      %cst_19 = arith.constant 0.000000e+00 : f32
      %19 = vector.broadcast %cst_19 : f32 to vector<128x128xf32>
      %c0_20 = arith.constant 0 : index
      %c0_21 = arith.constant 0 : index
      %20 = vector.load %arg13[%c0_20, %c0_21] : memref<128x128xf32, #tpu.memory_space<vmem>>, vector<128x128xf32>
      tpu.vector_store %arg13[%c0_20, %c0_21], %19 {strides = array<i32>} : memref<128x128xf32, #tpu.memory_space<vmem>>, vector<128x128xf32>,
    } else {
    }
    %c0 = arith.constant 0 : index
    %c0_1 = arith.constant 0 : index
    %3 = vector.load %arg3[%c0, %c0_1] : memref<128x128xbf16, #tpu.memory_space<vmem>>, vector<128x128xbf16>
    %c0_2 = arith.constant 0 : index
    %c0_3 = arith.constant 0 : index
    %4 = vector.load %arg12[%c0_2, %c0_3] : memref<128x128xf32, #tpu.memory_space<vmem>>, vector<128x128xf32>
    %c0_4 = arith.constant 0 : index
    %c0_5 = arith.constant 0 : index
    %5 = vector.load %arg4[%c0_4, %c0_5] : memref<128x128xbf16, #tpu.memory_space<vmem>>, vector<128x128xbf16>
    %cst = arith.constant dense<0.000000e+00> : vector<128x128xf32>
    %6 = tpu.matmul %3, %5, %cst {dimension_numbers = #tpu.dot_dimension_numbers<[1], [0], [0], [1], [0, 0, 1, 1], [], []>} : vector<128x128xbf16>, vector<128x128xbf16>, vector<128x128xf32> -> vector<128x128xf32>
    %7 = arith.addf %4, %6 : vector<128x128xf32>
    %c0_6 = arith.constant 0 : index
    %c0_7 = arith.constant 0 : index
    %8 = vector.load %arg12[%c0_6, %c0_7] : memref<128x128xf32, #tpu.memory_space<vmem>>, vector<128x128xf32>
    tpu.vector_store %arg12[%c0_6, %c0_7], %7 {strides = array<i32>} : memref<128x128xf32, #tpu.memory_space<vmem>>, vector<128x128xf32>,
    %c0_8 = arith.constant 0 : index
    %c0_9 = arith.constant 0 : index
    %9 = vector.load %arg13[%c0_8, %c0_9] : memref<128x128xf32, #tpu.memory_space<vmem>>, vector<128x128xf32>
    %c0_10 = arith.constant 0 : index
    %c0_11 = arith.constant 0 : index
    %10 = vector.load %arg7[%c0_10, %c0_11] : memref<128x128xbf16, #tpu.memory_space<vmem>>, vector<128x128xbf16>
    %cst_12 = arith.constant dense<0.000000e+00> : vector<128x128xf32>
    %11 = tpu.matmul %3, %10, %cst_12 {dimension_numbers = #tpu.dot_dimension_numbers<[1], [0], [0], [1], [0, 0, 1, 1], [], []>} : vector<128x128xbf16>, vector<128x128xbf16>, vector<128x128xf32> -> vector<128x128xf32>
    %12 = arith.addf %9, %11 : vector<128x128xf32>
    %c0_13 = arith.constant 0 : index
    %c0_14 = arith.constant 0 : index
    %13 = vector.load %arg13[%c0_13, %c0_14] : memref<128x128xf32, #tpu.memory_space<vmem>>, vector<128x128xf32>
    tpu.vector_store %arg13[%c0_13, %c0_14], %12 {strides = array<i32>} : memref<128x128xf32, #tpu.memory_space<vmem>>, vector<128x128xf32>,
    %c4_i32 = arith.constant 4 : i32
    %14 = arith.cmpi eq, %arg2, %c4_i32 : i32
    %15 = arith.extui %14 : i1 to i32
    %c0_i32_15 = arith.constant 0 : i32
    %16 = arith.cmpi ne, %15, %c0_i32_15 : i32
    scf.if %16 {
      %c0_16 = arith.constant 0 : index
      %c0_17 = arith.constant 0 : index
      %17 = vector.load %arg12[%c0_16, %c0_17] : memref<128x128xf32, #tpu.memory_space<vmem>>, vector<128x128xf32>
      %c0_18 = arith.constant 0 : index
      %c0_19 = arith.constant 0 : index
      %18 = vector.load %arg5[%c0_18, %c0_19] : memref<1x128xf32, #tpu.memory_space<vmem>>, vector<1x128xf32>
      %19 = vector.broadcast %18 : vector<1x128xf32> to vector<128x128xf32>
      %20 = arith.mulf %17, %19 : vector<128x128xf32>
      %c0_20 = arith.constant 0 : index
      %c0_21 = arith.constant 0 : index
      %21 = vector.load %arg6[%c0_20, %c0_21] : memref<1x128xf32, #tpu.memory_space<vmem>>, vector<1x128xf32>
      %22 = vector.broadcast %21 : vector<1x128xf32> to vector<128x128xf32>
      %23 = arith.addf %20, %22 : vector<128x128xf32>
      %cst_22 = arith.constant 0.000000e+00 : f32
      %24 = vector.broadcast %cst_22 : f32 to vector<128x128xf32>
      %25 = arith.maximumf %23, %24 : vector<128x128xf32>
      %26 = arith.truncf %25 : vector<128x128xf32> to vector<128x128xbf16>
      %c0_23 = arith.constant 0 : index
      %c0_24 = arith.constant 0 : index
      %27 = vector.load %arg10[%c0_23, %c0_24] : memref<128x128xbf16, #tpu.memory_space<vmem>>, vector<128x128xbf16>
      tpu.vector_store %arg10[%c0_23, %c0_24], %26 {strides = array<i32>} : memref<128x128xbf16, #tpu.memory_space<vmem>>, vector<128x128xbf16>,
      %c0_25 = arith.constant 0 : index
      %c0_26 = arith.constant 0 : index
      %28 = vector.load %arg13[%c0_25, %c0_26] : memref<128x128xf32, #tpu.memory_space<vmem>>, vector<128x128xf32>
      %c0_27 = arith.constant 0 : index
      %c0_28 = arith.constant 0 : index
      %29 = vector.load %arg8[%c0_27, %c0_28] : memref<1x128xf32, #tpu.memory_space<vmem>>, vector<1x128xf32>
      %30 = vector.broadcast %29 : vector<1x128xf32> to vector<128x128xf32>
      %31 = arith.mulf %28, %30 : vector<128x128xf32>
      %c0_29 = arith.constant 0 : index
      %c0_30 = arith.constant 0 : index
      %32 = vector.load %arg9[%c0_29, %c0_30] : memref<1x128xf32, #tpu.memory_space<vmem>>, vector<1x128xf32>
      %33 = vector.broadcast %32 : vector<1x128xf32> to vector<128x128xf32>
      %34 = arith.addf %31, %33 : vector<128x128xf32>
      %35 = arith.truncf %34 : vector<128x128xf32> to vector<128x128xbf16>
      %c0_31 = arith.constant 0 : index
      %c0_32 = arith.constant 0 : index
      %36 = vector.load %arg11[%c0_31, %c0_32] : memref<128x128xbf16, #tpu.memory_space<vmem>>, vector<128x128xbf16>
      tpu.vector_store %arg11[%c0_31, %c0_32], %35 {strides = array<i32>} : memref<128x128xbf16, #tpu.memory_space<vmem>>, vector<128x128xbf16>,
    } else {
    }
    return
  }
  func.func @transform_0(%arg0: i32, %arg1: i32, %arg2: i32) -> (i32, i32) {
    %c0_i32 = arith.constant 0 : i32
    return %arg0, %arg2 : i32, i32
  }
  func.func @transform_1(%arg0: i32, %arg1: i32, %arg2: i32) -> (i32, i32) {
    %c0_i32 = arith.constant 0 : i32
    return %arg2, %arg1 : i32, i32
  }
  func.func @transform_2(%arg0: i32, %arg1: i32, %arg2: i32) -> (i32, i32) {
    %c0_i32 = arith.constant 0 : i32
    %c0_i32_0 = arith.constant 0 : i32
    return %c0_i32, %arg1 : i32, i32
  }
  func.func @transform_3(%arg0: i32, %arg1: i32, %arg2: i32) -> (i32, i32) {
    %c0_i32 = arith.constant 0 : i32
    %c0_i32_0 = arith.constant 0 : i32
    return %c0_i32, %arg1 : i32, i32
  }
  func.func @transform_4(%arg0: i32, %arg1: i32, %arg2: i32) -> (i32, i32) {
    %c0_i32 = arith.constant 0 : i32
    return %arg2, %arg1 : i32, i32
  }
  func.func @transform_5(%arg0: i32, %arg1: i32, %arg2: i32) -> (i32, i32) {
    %c0_i32 = arith.constant 0 : i32
    %c0_i32_0 = arith.constant 0 : i32
    return %c0_i32, %arg1 : i32, i32
  }
  func.func @transform_6(%arg0: i32, %arg1: i32, %arg2: i32) -> (i32, i32) {
    %c0_i32 = arith.constant 0 : i32
    %c0_i32_0 = arith.constant 0 : i32
    return %c0_i32, %arg1 : i32, i32
  }
  func.func @transform_7(%arg0: i32, %arg1: i32, %arg2: i32) -> (i32, i32) {
    %c0_i32 = arith.constant 0 : i32
    return %arg0, %arg1 : i32, i32
  }
  func.func @transform_8(%arg0: i32, %arg1: i32, %arg2: i32) -> (i32, i32) {
    %c0_i32 = arith.constant 0 : i32
    return %arg0, %arg1 : i32, i32
  }
}

module attributes {stable_mosaic.version = 11 : i64} {
  func.func @_conv_bn_kernel(%arg0: i32, %arg1: i32, %arg2: i32, %arg3: memref<128x128xbf16, #tpu.memory_space<vmem>>, %arg4: memref<128x128xbf16, #tpu.memory_space<vmem>>, %arg5: memref<1x128xf32, #tpu.memory_space<vmem>>, %arg6: memref<1x128xf32, #tpu.memory_space<vmem>>, %arg7: memref<128x128xbf16, #tpu.memory_space<vmem>>, %arg8: memref<128x128xf32, #tpu.memory_space<vmem>>) attributes {dimension_semantics = [#tpu.dimension_semantics<parallel>, #tpu.dimension_semantics<parallel>, #tpu.dimension_semantics<arbitrary>], iteration_bounds = array<i64: 1, 1, 9>, scalar_prefetch = 0 : i64, scratch_operands = 1 : i64, tpu.core_type = #tpu.core_type<tc>, window_params = [{transform_indices = @transform_0, window_bounds = array<i64: 128, 128>}, {transform_indices = @transform_1, window_bounds = array<i64: 128, 128>}, {transform_indices = @transform_2, window_bounds = array<i64: 1, 128>}, {transform_indices = @transform_3, window_bounds = array<i64: 1, 128>}, {transform_indices = @transform_4, window_bounds = array<i64: 128, 128>}]} {
    %c0_i32 = arith.constant 0 : i32
    %0 = arith.cmpi eq, %arg2, %c0_i32 : i32
    %1 = arith.extui %0 : i1 to i32
    %c0_i32_0 = arith.constant 0 : i32
    %2 = arith.cmpi ne, %1, %c0_i32_0 : i32
    scf.if %2 {
      %cst_9 = arith.constant 0.000000e+00 : f32
      %12 = vector.broadcast %cst_9 : f32 to vector<128x128xf32>
      %c0_10 = arith.constant 0 : index
      %c0_11 = arith.constant 0 : index
      %13 = vector.load %arg8[%c0_10, %c0_11] : memref<128x128xf32, #tpu.memory_space<vmem>>, vector<128x128xf32>
      tpu.vector_store %arg8[%c0_10, %c0_11], %12 {strides = array<i32>} : memref<128x128xf32, #tpu.memory_space<vmem>>, vector<128x128xf32>,
    } else {
    }
    %c0 = arith.constant 0 : index
    %c0_1 = arith.constant 0 : index
    %3 = vector.load %arg8[%c0, %c0_1] : memref<128x128xf32, #tpu.memory_space<vmem>>, vector<128x128xf32>
    %c0_2 = arith.constant 0 : index
    %c0_3 = arith.constant 0 : index
    %4 = vector.load %arg3[%c0_2, %c0_3] : memref<128x128xbf16, #tpu.memory_space<vmem>>, vector<128x128xbf16>
    %c0_4 = arith.constant 0 : index
    %c0_5 = arith.constant 0 : index
    %5 = vector.load %arg4[%c0_4, %c0_5] : memref<128x128xbf16, #tpu.memory_space<vmem>>, vector<128x128xbf16>
    %cst = arith.constant dense<0.000000e+00> : vector<128x128xf32>
    %6 = tpu.matmul %4, %5, %cst {dimension_numbers = #tpu.dot_dimension_numbers<[1], [0], [0], [1], [0, 0, 1, 1], [], []>} : vector<128x128xbf16>, vector<128x128xbf16>, vector<128x128xf32> -> vector<128x128xf32>
    %7 = arith.addf %3, %6 : vector<128x128xf32>
    %c0_6 = arith.constant 0 : index
    %c0_7 = arith.constant 0 : index
    %8 = vector.load %arg8[%c0_6, %c0_7] : memref<128x128xf32, #tpu.memory_space<vmem>>, vector<128x128xf32>
    tpu.vector_store %arg8[%c0_6, %c0_7], %7 {strides = array<i32>} : memref<128x128xf32, #tpu.memory_space<vmem>>, vector<128x128xf32>,
    %c8_i32 = arith.constant 8 : i32
    %9 = arith.cmpi eq, %arg2, %c8_i32 : i32
    %10 = arith.extui %9 : i1 to i32
    %c0_i32_8 = arith.constant 0 : i32
    %11 = arith.cmpi ne, %10, %c0_i32_8 : i32
    scf.if %11 {
      %c0_9 = arith.constant 0 : index
      %c0_10 = arith.constant 0 : index
      %12 = vector.load %arg8[%c0_9, %c0_10] : memref<128x128xf32, #tpu.memory_space<vmem>>, vector<128x128xf32>
      %c0_11 = arith.constant 0 : index
      %c0_12 = arith.constant 0 : index
      %13 = vector.load %arg5[%c0_11, %c0_12] : memref<1x128xf32, #tpu.memory_space<vmem>>, vector<1x128xf32>
      %14 = vector.broadcast %13 : vector<1x128xf32> to vector<128x128xf32>
      %15 = arith.mulf %12, %14 : vector<128x128xf32>
      %c0_13 = arith.constant 0 : index
      %c0_14 = arith.constant 0 : index
      %16 = vector.load %arg6[%c0_13, %c0_14] : memref<1x128xf32, #tpu.memory_space<vmem>>, vector<1x128xf32>
      %17 = vector.broadcast %16 : vector<1x128xf32> to vector<128x128xf32>
      %18 = arith.addf %15, %17 : vector<128x128xf32>
      %cst_15 = arith.constant 0.000000e+00 : f32
      %19 = vector.broadcast %cst_15 : f32 to vector<128x128xf32>
      %20 = arith.maximumf %18, %19 : vector<128x128xf32>
      %21 = arith.truncf %20 : vector<128x128xf32> to vector<128x128xbf16>
      %c0_16 = arith.constant 0 : index
      %c0_17 = arith.constant 0 : index
      %22 = vector.load %arg7[%c0_16, %c0_17] : memref<128x128xbf16, #tpu.memory_space<vmem>>, vector<128x128xbf16>
      tpu.vector_store %arg7[%c0_16, %c0_17], %21 {strides = array<i32>} : memref<128x128xbf16, #tpu.memory_space<vmem>>, vector<128x128xbf16>,
    } else {
    }
    return
  }
  func.func @transform_0(%arg0: i32, %arg1: i32, %arg2: i32) -> (i32, i32) {
    %c0_i32 = arith.constant 0 : i32
    return %arg0, %arg2 : i32, i32
  }
  func.func @transform_1(%arg0: i32, %arg1: i32, %arg2: i32) -> (i32, i32) {
    %c0_i32 = arith.constant 0 : i32
    return %arg2, %arg1 : i32, i32
  }
  func.func @transform_2(%arg0: i32, %arg1: i32, %arg2: i32) -> (i32, i32) {
    %c0_i32 = arith.constant 0 : i32
    %c0_i32_0 = arith.constant 0 : i32
    return %c0_i32, %arg1 : i32, i32
  }
  func.func @transform_3(%arg0: i32, %arg1: i32, %arg2: i32) -> (i32, i32) {
    %c0_i32 = arith.constant 0 : i32
    %c0_i32_0 = arith.constant 0 : i32
    return %c0_i32, %arg1 : i32, i32
  }
  func.func @transform_4(%arg0: i32, %arg1: i32, %arg2: i32) -> (i32, i32) {
    %c0_i32 = arith.constant 0 : i32
    return %arg0, %arg1 : i32, i32
  }
}

module attributes {stable_mosaic.version = 11 : i64} {
  func.func @_conv_bn_kernel(%arg0: i32, %arg1: i32, %arg2: i32, %arg3: memref<128x128xbf16, #tpu.memory_space<vmem>>, %arg4: memref<128x128xbf16, #tpu.memory_space<vmem>>, %arg5: memref<1x128xf32, #tpu.memory_space<vmem>>, %arg6: memref<1x128xf32, #tpu.memory_space<vmem>>, %arg7: memref<128x128xbf16, #tpu.memory_space<vmem>>, %arg8: memref<128x128xbf16, #tpu.memory_space<vmem>>, %arg9: memref<128x128xf32, #tpu.memory_space<vmem>>) attributes {dimension_semantics = [#tpu.dimension_semantics<parallel>, #tpu.dimension_semantics<parallel>, #tpu.dimension_semantics<arbitrary>], iteration_bounds = array<i64: 1, 1, 9>, scalar_prefetch = 0 : i64, scratch_operands = 1 : i64, tpu.core_type = #tpu.core_type<tc>, window_params = [{transform_indices = @transform_0, window_bounds = array<i64: 128, 128>}, {transform_indices = @transform_1, window_bounds = array<i64: 128, 128>}, {transform_indices = @transform_2, window_bounds = array<i64: 1, 128>}, {transform_indices = @transform_3, window_bounds = array<i64: 1, 128>}, {transform_indices = @transform_4, window_bounds = array<i64: 128, 128>}, {transform_indices = @transform_5, window_bounds = array<i64: 128, 128>}]} {
    %c0_i32 = arith.constant 0 : i32
    %0 = arith.cmpi eq, %arg2, %c0_i32 : i32
    %1 = arith.extui %0 : i1 to i32
    %c0_i32_0 = arith.constant 0 : i32
    %2 = arith.cmpi ne, %1, %c0_i32_0 : i32
    scf.if %2 {
      %cst_9 = arith.constant 0.000000e+00 : f32
      %12 = vector.broadcast %cst_9 : f32 to vector<128x128xf32>
      %c0_10 = arith.constant 0 : index
      %c0_11 = arith.constant 0 : index
      %13 = vector.load %arg9[%c0_10, %c0_11] : memref<128x128xf32, #tpu.memory_space<vmem>>, vector<128x128xf32>
      tpu.vector_store %arg9[%c0_10, %c0_11], %12 {strides = array<i32>} : memref<128x128xf32, #tpu.memory_space<vmem>>, vector<128x128xf32>,
    } else {
    }
    %c0 = arith.constant 0 : index
    %c0_1 = arith.constant 0 : index
    %3 = vector.load %arg9[%c0, %c0_1] : memref<128x128xf32, #tpu.memory_space<vmem>>, vector<128x128xf32>
    %c0_2 = arith.constant 0 : index
    %c0_3 = arith.constant 0 : index
    %4 = vector.load %arg3[%c0_2, %c0_3] : memref<128x128xbf16, #tpu.memory_space<vmem>>, vector<128x128xbf16>
    %c0_4 = arith.constant 0 : index
    %c0_5 = arith.constant 0 : index
    %5 = vector.load %arg4[%c0_4, %c0_5] : memref<128x128xbf16, #tpu.memory_space<vmem>>, vector<128x128xbf16>
    %cst = arith.constant dense<0.000000e+00> : vector<128x128xf32>
    %6 = tpu.matmul %4, %5, %cst {dimension_numbers = #tpu.dot_dimension_numbers<[1], [0], [0], [1], [0, 0, 1, 1], [], []>} : vector<128x128xbf16>, vector<128x128xbf16>, vector<128x128xf32> -> vector<128x128xf32>
    %7 = arith.addf %3, %6 : vector<128x128xf32>
    %c0_6 = arith.constant 0 : index
    %c0_7 = arith.constant 0 : index
    %8 = vector.load %arg9[%c0_6, %c0_7] : memref<128x128xf32, #tpu.memory_space<vmem>>, vector<128x128xf32>
    tpu.vector_store %arg9[%c0_6, %c0_7], %7 {strides = array<i32>} : memref<128x128xf32, #tpu.memory_space<vmem>>, vector<128x128xf32>,
    %c8_i32 = arith.constant 8 : i32
    %9 = arith.cmpi eq, %arg2, %c8_i32 : i32
    %10 = arith.extui %9 : i1 to i32
    %c0_i32_8 = arith.constant 0 : i32
    %11 = arith.cmpi ne, %10, %c0_i32_8 : i32
    scf.if %11 {
      %c0_9 = arith.constant 0 : index
      %c0_10 = arith.constant 0 : index
      %12 = vector.load %arg9[%c0_9, %c0_10] : memref<128x128xf32, #tpu.memory_space<vmem>>, vector<128x128xf32>
      %c0_11 = arith.constant 0 : index
      %c0_12 = arith.constant 0 : index
      %13 = vector.load %arg5[%c0_11, %c0_12] : memref<1x128xf32, #tpu.memory_space<vmem>>, vector<1x128xf32>
      %14 = vector.broadcast %13 : vector<1x128xf32> to vector<128x128xf32>
      %15 = arith.mulf %12, %14 : vector<128x128xf32>
      %c0_13 = arith.constant 0 : index
      %c0_14 = arith.constant 0 : index
      %16 = vector.load %arg6[%c0_13, %c0_14] : memref<1x128xf32, #tpu.memory_space<vmem>>, vector<1x128xf32>
      %17 = vector.broadcast %16 : vector<1x128xf32> to vector<128x128xf32>
      %18 = arith.addf %15, %17 : vector<128x128xf32>
      %c0_15 = arith.constant 0 : index
      %c0_16 = arith.constant 0 : index
      %19 = vector.load %arg7[%c0_15, %c0_16] : memref<128x128xbf16, #tpu.memory_space<vmem>>, vector<128x128xbf16>
      %20 = arith.extf %19 : vector<128x128xbf16> to vector<128x128xf32>
      %21 = arith.addf %18, %20 : vector<128x128xf32>
      %cst_17 = arith.constant 0.000000e+00 : f32
      %22 = vector.broadcast %cst_17 : f32 to vector<128x128xf32>
      %23 = arith.maximumf %21, %22 : vector<128x128xf32>
      %24 = arith.truncf %23 : vector<128x128xf32> to vector<128x128xbf16>
      %c0_18 = arith.constant 0 : index
      %c0_19 = arith.constant 0 : index
      %25 = vector.load %arg8[%c0_18, %c0_19] : memref<128x128xbf16, #tpu.memory_space<vmem>>, vector<128x128xbf16>
      tpu.vector_store %arg8[%c0_18, %c0_19], %24 {strides = array<i32>} : memref<128x128xbf16, #tpu.memory_space<vmem>>, vector<128x128xbf16>,
    } else {
    }
    return
  }
  func.func @transform_0(%arg0: i32, %arg1: i32, %arg2: i32) -> (i32, i32) {
    %c0_i32 = arith.constant 0 : i32
    return %arg0, %arg2 : i32, i32
  }
  func.func @transform_1(%arg0: i32, %arg1: i32, %arg2: i32) -> (i32, i32) {
    %c0_i32 = arith.constant 0 : i32
    return %arg2, %arg1 : i32, i32
  }
  func.func @transform_2(%arg0: i32, %arg1: i32, %arg2: i32) -> (i32, i32) {
    %c0_i32 = arith.constant 0 : i32
    %c0_i32_0 = arith.constant 0 : i32
    return %c0_i32, %arg1 : i32, i32
  }
  func.func @transform_3(%arg0: i32, %arg1: i32, %arg2: i32) -> (i32, i32) {
    %c0_i32 = arith.constant 0 : i32
    %c0_i32_0 = arith.constant 0 : i32
    return %c0_i32, %arg1 : i32, i32
  }
  func.func @transform_4(%arg0: i32, %arg1: i32, %arg2: i32) -> (i32, i32) {
    %c0_i32 = arith.constant 0 : i32
    return %arg0, %arg1 : i32, i32
  }
  func.func @transform_5(%arg0: i32, %arg1: i32, %arg2: i32) -> (i32, i32) {
    %c0_i32 = arith.constant 0 : i32
    return %arg0, %arg1 : i32, i32
  }
}

module attributes {stable_mosaic.version = 11 : i64} {
  func.func @_conv_bn_dual_kernel(%arg0: i32, %arg1: i32, %arg2: i32, %arg3: memref<32x128xbf16, #tpu.memory_space<vmem>>, %arg4: memref<128x256xbf16, #tpu.memory_space<vmem>>, %arg5: memref<1x256xf32, #tpu.memory_space<vmem>>, %arg6: memref<1x256xf32, #tpu.memory_space<vmem>>, %arg7: memref<128x256xbf16, #tpu.memory_space<vmem>>, %arg8: memref<1x256xf32, #tpu.memory_space<vmem>>, %arg9: memref<1x256xf32, #tpu.memory_space<vmem>>, %arg10: memref<32x256xbf16, #tpu.memory_space<vmem>>, %arg11: memref<32x256xbf16, #tpu.memory_space<vmem>>, %arg12: memref<32x256xf32, #tpu.memory_space<vmem>>, %arg13: memref<32x256xf32, #tpu.memory_space<vmem>>) attributes {dimension_semantics = [#tpu.dimension_semantics<parallel>, #tpu.dimension_semantics<parallel>, #tpu.dimension_semantics<arbitrary>], iteration_bounds = array<i64: 1, 1, 9>, scalar_prefetch = 0 : i64, scratch_operands = 2 : i64, tpu.core_type = #tpu.core_type<tc>, window_params = [{transform_indices = @transform_0, window_bounds = array<i64: 32, 128>}, {transform_indices = @transform_1, window_bounds = array<i64: 128, 256>}, {transform_indices = @transform_2, window_bounds = array<i64: 1, 256>}, {transform_indices = @transform_3, window_bounds = array<i64: 1, 256>}, {transform_indices = @transform_4, window_bounds = array<i64: 128, 256>}, {transform_indices = @transform_5, window_bounds = array<i64: 1, 256>}, {transform_indices = @transform_6, window_bounds = array<i64: 1, 256>}, {transform_indices = @transform_7, window_bounds = array<i64: 32, 256>}, {transform_indices = @transform_8, window_bounds = array<i64: 32, 256>}]} {
    %c0_i32 = arith.constant 0 : i32
    %0 = arith.cmpi eq, %arg2, %c0_i32 : i32
    %1 = arith.extui %0 : i1 to i32
    %c0_i32_0 = arith.constant 0 : i32
    %2 = arith.cmpi ne, %1, %c0_i32_0 : i32
    scf.if %2 {
      %cst_16 = arith.constant 0.000000e+00 : f32
      %17 = vector.broadcast %cst_16 : f32 to vector<32x256xf32>
      %c0_17 = arith.constant 0 : index
      %c0_18 = arith.constant 0 : index
      %18 = vector.load %arg12[%c0_17, %c0_18] : memref<32x256xf32, #tpu.memory_space<vmem>>, vector<32x256xf32>
      tpu.vector_store %arg12[%c0_17, %c0_18], %17 {strides = array<i32>} : memref<32x256xf32, #tpu.memory_space<vmem>>, vector<32x256xf32>,
      %cst_19 = arith.constant 0.000000e+00 : f32
      %19 = vector.broadcast %cst_19 : f32 to vector<32x256xf32>
      %c0_20 = arith.constant 0 : index
      %c0_21 = arith.constant 0 : index
      %20 = vector.load %arg13[%c0_20, %c0_21] : memref<32x256xf32, #tpu.memory_space<vmem>>, vector<32x256xf32>
      tpu.vector_store %arg13[%c0_20, %c0_21], %19 {strides = array<i32>} : memref<32x256xf32, #tpu.memory_space<vmem>>, vector<32x256xf32>,
    } else {
    }
    %c0 = arith.constant 0 : index
    %c0_1 = arith.constant 0 : index
    %3 = vector.load %arg3[%c0, %c0_1] : memref<32x128xbf16, #tpu.memory_space<vmem>>, vector<32x128xbf16>
    %c0_2 = arith.constant 0 : index
    %c0_3 = arith.constant 0 : index
    %4 = vector.load %arg12[%c0_2, %c0_3] : memref<32x256xf32, #tpu.memory_space<vmem>>, vector<32x256xf32>
    %c0_4 = arith.constant 0 : index
    %c0_5 = arith.constant 0 : index
    %5 = vector.load %arg4[%c0_4, %c0_5] : memref<128x256xbf16, #tpu.memory_space<vmem>>, vector<128x256xbf16>
    %cst = arith.constant dense<0.000000e+00> : vector<32x256xf32>
    %6 = tpu.matmul %3, %5, %cst {dimension_numbers = #tpu.dot_dimension_numbers<[1], [0], [0], [1], [0, 0, 1, 1], [], []>} : vector<32x128xbf16>, vector<128x256xbf16>, vector<32x256xf32> -> vector<32x256xf32>
    %7 = arith.addf %4, %6 : vector<32x256xf32>
    %c0_6 = arith.constant 0 : index
    %c0_7 = arith.constant 0 : index
    %8 = vector.load %arg12[%c0_6, %c0_7] : memref<32x256xf32, #tpu.memory_space<vmem>>, vector<32x256xf32>
    tpu.vector_store %arg12[%c0_6, %c0_7], %7 {strides = array<i32>} : memref<32x256xf32, #tpu.memory_space<vmem>>, vector<32x256xf32>,
    %c0_8 = arith.constant 0 : index
    %c0_9 = arith.constant 0 : index
    %9 = vector.load %arg13[%c0_8, %c0_9] : memref<32x256xf32, #tpu.memory_space<vmem>>, vector<32x256xf32>
    %c0_10 = arith.constant 0 : index
    %c0_11 = arith.constant 0 : index
    %10 = vector.load %arg7[%c0_10, %c0_11] : memref<128x256xbf16, #tpu.memory_space<vmem>>, vector<128x256xbf16>
    %cst_12 = arith.constant dense<0.000000e+00> : vector<32x256xf32>
    %11 = tpu.matmul %3, %10, %cst_12 {dimension_numbers = #tpu.dot_dimension_numbers<[1], [0], [0], [1], [0, 0, 1, 1], [], []>} : vector<32x128xbf16>, vector<128x256xbf16>, vector<32x256xf32> -> vector<32x256xf32>
    %12 = arith.addf %9, %11 : vector<32x256xf32>
    %c0_13 = arith.constant 0 : index
    %c0_14 = arith.constant 0 : index
    %13 = vector.load %arg13[%c0_13, %c0_14] : memref<32x256xf32, #tpu.memory_space<vmem>>, vector<32x256xf32>
    tpu.vector_store %arg13[%c0_13, %c0_14], %12 {strides = array<i32>} : memref<32x256xf32, #tpu.memory_space<vmem>>, vector<32x256xf32>,
    %c8_i32 = arith.constant 8 : i32
    %14 = arith.cmpi eq, %arg2, %c8_i32 : i32
    %15 = arith.extui %14 : i1 to i32
    %c0_i32_15 = arith.constant 0 : i32
    %16 = arith.cmpi ne, %15, %c0_i32_15 : i32
    scf.if %16 {
      %c0_16 = arith.constant 0 : index
      %c0_17 = arith.constant 0 : index
      %17 = vector.load %arg12[%c0_16, %c0_17] : memref<32x256xf32, #tpu.memory_space<vmem>>, vector<32x256xf32>
      %c0_18 = arith.constant 0 : index
      %c0_19 = arith.constant 0 : index
      %18 = vector.load %arg5[%c0_18, %c0_19] : memref<1x256xf32, #tpu.memory_space<vmem>>, vector<1x256xf32>
      %19 = vector.broadcast %18 : vector<1x256xf32> to vector<32x256xf32>
      %20 = arith.mulf %17, %19 : vector<32x256xf32>
      %c0_20 = arith.constant 0 : index
      %c0_21 = arith.constant 0 : index
      %21 = vector.load %arg6[%c0_20, %c0_21] : memref<1x256xf32, #tpu.memory_space<vmem>>, vector<1x256xf32>
      %22 = vector.broadcast %21 : vector<1x256xf32> to vector<32x256xf32>
      %23 = arith.addf %20, %22 : vector<32x256xf32>
      %cst_22 = arith.constant 0.000000e+00 : f32
      %24 = vector.broadcast %cst_22 : f32 to vector<32x256xf32>
      %25 = arith.maximumf %23, %24 : vector<32x256xf32>
      %26 = arith.truncf %25 : vector<32x256xf32> to vector<32x256xbf16>
      %c0_23 = arith.constant 0 : index
      %c0_24 = arith.constant 0 : index
      %27 = vector.load %arg10[%c0_23, %c0_24] : memref<32x256xbf16, #tpu.memory_space<vmem>>, vector<32x256xbf16>
      tpu.vector_store %arg10[%c0_23, %c0_24], %26 {strides = array<i32>} : memref<32x256xbf16, #tpu.memory_space<vmem>>, vector<32x256xbf16>,
      %c0_25 = arith.constant 0 : index
      %c0_26 = arith.constant 0 : index
      %28 = vector.load %arg13[%c0_25, %c0_26] : memref<32x256xf32, #tpu.memory_space<vmem>>, vector<32x256xf32>
      %c0_27 = arith.constant 0 : index
      %c0_28 = arith.constant 0 : index
      %29 = vector.load %arg8[%c0_27, %c0_28] : memref<1x256xf32, #tpu.memory_space<vmem>>, vector<1x256xf32>
      %30 = vector.broadcast %29 : vector<1x256xf32> to vector<32x256xf32>
      %31 = arith.mulf %28, %30 : vector<32x256xf32>
      %c0_29 = arith.constant 0 : index
      %c0_30 = arith.constant 0 : index
      %32 = vector.load %arg9[%c0_29, %c0_30] : memref<1x256xf32, #tpu.memory_space<vmem>>, vector<1x256xf32>
      %33 = vector.broadcast %32 : vector<1x256xf32> to vector<32x256xf32>
      %34 = arith.addf %31, %33 : vector<32x256xf32>
      %35 = arith.truncf %34 : vector<32x256xf32> to vector<32x256xbf16>
      %c0_31 = arith.constant 0 : index
      %c0_32 = arith.constant 0 : index
      %36 = vector.load %arg11[%c0_31, %c0_32] : memref<32x256xbf16, #tpu.memory_space<vmem>>, vector<32x256xbf16>
      tpu.vector_store %arg11[%c0_31, %c0_32], %35 {strides = array<i32>} : memref<32x256xbf16, #tpu.memory_space<vmem>>, vector<32x256xbf16>,
    } else {
    }
    return
  }
  func.func @transform_0(%arg0: i32, %arg1: i32, %arg2: i32) -> (i32, i32) {
    %c0_i32 = arith.constant 0 : i32
    return %arg0, %arg2 : i32, i32
  }
  func.func @transform_1(%arg0: i32, %arg1: i32, %arg2: i32) -> (i32, i32) {
    %c0_i32 = arith.constant 0 : i32
    return %arg2, %arg1 : i32, i32
  }
  func.func @transform_2(%arg0: i32, %arg1: i32, %arg2: i32) -> (i32, i32) {
    %c0_i32 = arith.constant 0 : i32
    %c0_i32_0 = arith.constant 0 : i32
    return %c0_i32, %arg1 : i32, i32
  }
  func.func @transform_3(%arg0: i32, %arg1: i32, %arg2: i32) -> (i32, i32) {
    %c0_i32 = arith.constant 0 : i32
    %c0_i32_0 = arith.constant 0 : i32
    return %c0_i32, %arg1 : i32, i32
  }
  func.func @transform_4(%arg0: i32, %arg1: i32, %arg2: i32) -> (i32, i32) {
    %c0_i32 = arith.constant 0 : i32
    return %arg2, %arg1 : i32, i32
  }
  func.func @transform_5(%arg0: i32, %arg1: i32, %arg2: i32) -> (i32, i32) {
    %c0_i32 = arith.constant 0 : i32
    %c0_i32_0 = arith.constant 0 : i32
    return %c0_i32, %arg1 : i32, i32
  }
  func.func @transform_6(%arg0: i32, %arg1: i32, %arg2: i32) -> (i32, i32) {
    %c0_i32 = arith.constant 0 : i32
    %c0_i32_0 = arith.constant 0 : i32
    return %c0_i32, %arg1 : i32, i32
  }
  func.func @transform_7(%arg0: i32, %arg1: i32, %arg2: i32) -> (i32, i32) {
    %c0_i32 = arith.constant 0 : i32
    return %arg0, %arg1 : i32, i32
  }
  func.func @transform_8(%arg0: i32, %arg1: i32, %arg2: i32) -> (i32, i32) {
    %c0_i32 = arith.constant 0 : i32
    return %arg0, %arg1 : i32, i32
  }
}

module attributes {stable_mosaic.version = 11 : i64} {
  func.func @_conv_bn_kernel(%arg0: i32, %arg1: i32, %arg2: i32, %arg3: memref<32x256xbf16, #tpu.memory_space<vmem>>, %arg4: memref<256x256xbf16, #tpu.memory_space<vmem>>, %arg5: memref<1x256xf32, #tpu.memory_space<vmem>>, %arg6: memref<1x256xf32, #tpu.memory_space<vmem>>, %arg7: memref<32x256xbf16, #tpu.memory_space<vmem>>, %arg8: memref<32x256xbf16, #tpu.memory_space<vmem>>, %arg9: memref<32x256xf32, #tpu.memory_space<vmem>>) attributes {dimension_semantics = [#tpu.dimension_semantics<parallel>, #tpu.dimension_semantics<parallel>, #tpu.dimension_semantics<arbitrary>], iteration_bounds = array<i64: 1, 1, 9>, scalar_prefetch = 0 : i64, scratch_operands = 1 : i64, tpu.core_type = #tpu.core_type<tc>, window_params = [{transform_indices = @transform_0, window_bounds = array<i64: 32, 256>}, {transform_indices = @transform_1, window_bounds = array<i64: 256, 256>}, {transform_indices = @transform_2, window_bounds = array<i64: 1, 256>}, {transform_indices = @transform_3, window_bounds = array<i64: 1, 256>}, {transform_indices = @transform_4, window_bounds = array<i64: 32, 256>}, {transform_indices = @transform_5, window_bounds = array<i64: 32, 256>}]} {
    %c0_i32 = arith.constant 0 : i32
    %0 = arith.cmpi eq, %arg2, %c0_i32 : i32
    %1 = arith.extui %0 : i1 to i32
    %c0_i32_0 = arith.constant 0 : i32
    %2 = arith.cmpi ne, %1, %c0_i32_0 : i32
    scf.if %2 {
      %cst_9 = arith.constant 0.000000e+00 : f32
      %12 = vector.broadcast %cst_9 : f32 to vector<32x256xf32>
      %c0_10 = arith.constant 0 : index
      %c0_11 = arith.constant 0 : index
      %13 = vector.load %arg9[%c0_10, %c0_11] : memref<32x256xf32, #tpu.memory_space<vmem>>, vector<32x256xf32>
      tpu.vector_store %arg9[%c0_10, %c0_11], %12 {strides = array<i32>} : memref<32x256xf32, #tpu.memory_space<vmem>>, vector<32x256xf32>,
    } else {
    }
    %c0 = arith.constant 0 : index
    %c0_1 = arith.constant 0 : index
    %3 = vector.load %arg9[%c0, %c0_1] : memref<32x256xf32, #tpu.memory_space<vmem>>, vector<32x256xf32>
    %c0_2 = arith.constant 0 : index
    %c0_3 = arith.constant 0 : index
    %4 = vector.load %arg3[%c0_2, %c0_3] : memref<32x256xbf16, #tpu.memory_space<vmem>>, vector<32x256xbf16>
    %c0_4 = arith.constant 0 : index
    %c0_5 = arith.constant 0 : index
    %5 = vector.load %arg4[%c0_4, %c0_5] : memref<256x256xbf16, #tpu.memory_space<vmem>>, vector<256x256xbf16>
    %cst = arith.constant dense<0.000000e+00> : vector<32x256xf32>
    %6 = tpu.matmul %4, %5, %cst {dimension_numbers = #tpu.dot_dimension_numbers<[1], [0], [0], [1], [0, 0, 1, 1], [], []>} : vector<32x256xbf16>, vector<256x256xbf16>, vector<32x256xf32> -> vector<32x256xf32>
    %7 = arith.addf %3, %6 : vector<32x256xf32>
    %c0_6 = arith.constant 0 : index
    %c0_7 = arith.constant 0 : index
    %8 = vector.load %arg9[%c0_6, %c0_7] : memref<32x256xf32, #tpu.memory_space<vmem>>, vector<32x256xf32>
    tpu.vector_store %arg9[%c0_6, %c0_7], %7 {strides = array<i32>} : memref<32x256xf32, #tpu.memory_space<vmem>>, vector<32x256xf32>,
    %c8_i32 = arith.constant 8 : i32
    %9 = arith.cmpi eq, %arg2, %c8_i32 : i32
    %10 = arith.extui %9 : i1 to i32
    %c0_i32_8 = arith.constant 0 : i32
    %11 = arith.cmpi ne, %10, %c0_i32_8 : i32
    scf.if %11 {
      %c0_9 = arith.constant 0 : index
      %c0_10 = arith.constant 0 : index
      %12 = vector.load %arg9[%c0_9, %c0_10] : memref<32x256xf32, #tpu.memory_space<vmem>>, vector<32x256xf32>
      %c0_11 = arith.constant 0 : index
      %c0_12 = arith.constant 0 : index
      %13 = vector.load %arg5[%c0_11, %c0_12] : memref<1x256xf32, #tpu.memory_space<vmem>>, vector<1x256xf32>
      %14 = vector.broadcast %13 : vector<1x256xf32> to vector<32x256xf32>
      %15 = arith.mulf %12, %14 : vector<32x256xf32>
      %c0_13 = arith.constant 0 : index
      %c0_14 = arith.constant 0 : index
      %16 = vector.load %arg6[%c0_13, %c0_14] : memref<1x256xf32, #tpu.memory_space<vmem>>, vector<1x256xf32>
      %17 = vector.broadcast %16 : vector<1x256xf32> to vector<32x256xf32>
      %18 = arith.addf %15, %17 : vector<32x256xf32>
      %c0_15 = arith.constant 0 : index
      %c0_16 = arith.constant 0 : index
      %19 = vector.load %arg7[%c0_15, %c0_16] : memref<32x256xbf16, #tpu.memory_space<vmem>>, vector<32x256xbf16>
      %20 = arith.extf %19 : vector<32x256xbf16> to vector<32x256xf32>
      %21 = arith.addf %18, %20 : vector<32x256xf32>
      %cst_17 = arith.constant 0.000000e+00 : f32
      %22 = vector.broadcast %cst_17 : f32 to vector<32x256xf32>
      %23 = arith.maximumf %21, %22 : vector<32x256xf32>
      %24 = arith.truncf %23 : vector<32x256xf32> to vector<32x256xbf16>
      %c0_18 = arith.constant 0 : index
      %c0_19 = arith.constant 0 : index
      %25 = vector.load %arg8[%c0_18, %c0_19] : memref<32x256xbf16, #tpu.memory_space<vmem>>, vector<32x256xbf16>
      tpu.vector_store %arg8[%c0_18, %c0_19], %24 {strides = array<i32>} : memref<32x256xbf16, #tpu.memory_space<vmem>>, vector<32x256xbf16>,
    } else {
    }
    return
  }
  func.func @transform_0(%arg0: i32, %arg1: i32, %arg2: i32) -> (i32, i32) {
    %c0_i32 = arith.constant 0 : i32
    return %arg0, %arg2 : i32, i32
  }
  func.func @transform_1(%arg0: i32, %arg1: i32, %arg2: i32) -> (i32, i32) {
    %c0_i32 = arith.constant 0 : i32
    return %arg2, %arg1 : i32, i32
  }
  func.func @transform_2(%arg0: i32, %arg1: i32, %arg2: i32) -> (i32, i32) {
    %c0_i32 = arith.constant 0 : i32
    %c0_i32_0 = arith.constant 0 : i32
    return %c0_i32, %arg1 : i32, i32
  }
  func.func @transform_3(%arg0: i32, %arg1: i32, %arg2: i32) -> (i32, i32) {
    %c0_i32 = arith.constant 0 : i32
    %c0_i32_0 = arith.constant 0 : i32
    return %c0_i32, %arg1 : i32, i32
  }
  func.func @transform_4(%arg0: i32, %arg1: i32, %arg2: i32) -> (i32, i32) {
    %c0_i32 = arith.constant 0 : i32
    return %arg0, %arg1 : i32, i32
  }
  func.func @transform_5(%arg0: i32, %arg1: i32, %arg2: i32) -> (i32, i32) {
    %c0_i32 = arith.constant 0 : i32
    return %arg0, %arg1 : i32, i32
  }
}

module attributes {stable_mosaic.version = 11 : i64} {
  func.func @_conv_bn_kernel(%arg0: i32, %arg1: i32, %arg2: i32, %arg3: memref<32x256xbf16, #tpu.memory_space<vmem>>, %arg4: memref<256x256xbf16, #tpu.memory_space<vmem>>, %arg5: memref<1x256xf32, #tpu.memory_space<vmem>>, %arg6: memref<1x256xf32, #tpu.memory_space<vmem>>, %arg7: memref<32x256xbf16, #tpu.memory_space<vmem>>, %arg8: memref<32x256xf32, #tpu.memory_space<vmem>>) attributes {dimension_semantics = [#tpu.dimension_semantics<parallel>, #tpu.dimension_semantics<parallel>, #tpu.dimension_semantics<arbitrary>], iteration_bounds = array<i64: 1, 1, 9>, scalar_prefetch = 0 : i64, scratch_operands = 1 : i64, tpu.core_type = #tpu.core_type<tc>, window_params = [{transform_indices = @transform_0, window_bounds = array<i64: 32, 256>}, {transform_indices = @transform_1, window_bounds = array<i64: 256, 256>}, {transform_indices = @transform_2, window_bounds = array<i64: 1, 256>}, {transform_indices = @transform_3, window_bounds = array<i64: 1, 256>}, {transform_indices = @transform_4, window_bounds = array<i64: 32, 256>}]} {
    %c0_i32 = arith.constant 0 : i32
    %0 = arith.cmpi eq, %arg2, %c0_i32 : i32
    %1 = arith.extui %0 : i1 to i32
    %c0_i32_0 = arith.constant 0 : i32
    %2 = arith.cmpi ne, %1, %c0_i32_0 : i32
    scf.if %2 {
      %cst_9 = arith.constant 0.000000e+00 : f32
      %12 = vector.broadcast %cst_9 : f32 to vector<32x256xf32>
      %c0_10 = arith.constant 0 : index
      %c0_11 = arith.constant 0 : index
      %13 = vector.load %arg8[%c0_10, %c0_11] : memref<32x256xf32, #tpu.memory_space<vmem>>, vector<32x256xf32>
      tpu.vector_store %arg8[%c0_10, %c0_11], %12 {strides = array<i32>} : memref<32x256xf32, #tpu.memory_space<vmem>>, vector<32x256xf32>,
    } else {
    }
    %c0 = arith.constant 0 : index
    %c0_1 = arith.constant 0 : index
    %3 = vector.load %arg8[%c0, %c0_1] : memref<32x256xf32, #tpu.memory_space<vmem>>, vector<32x256xf32>
    %c0_2 = arith.constant 0 : index
    %c0_3 = arith.constant 0 : index
    %4 = vector.load %arg3[%c0_2, %c0_3] : memref<32x256xbf16, #tpu.memory_space<vmem>>, vector<32x256xbf16>
    %c0_4 = arith.constant 0 : index
    %c0_5 = arith.constant 0 : index
    %5 = vector.load %arg4[%c0_4, %c0_5] : memref<256x256xbf16, #tpu.memory_space<vmem>>, vector<256x256xbf16>
    %cst = arith.constant dense<0.000000e+00> : vector<32x256xf32>
    %6 = tpu.matmul %4, %5, %cst {dimension_numbers = #tpu.dot_dimension_numbers<[1], [0], [0], [1], [0, 0, 1, 1], [], []>} : vector<32x256xbf16>, vector<256x256xbf16>, vector<32x256xf32> -> vector<32x256xf32>
    %7 = arith.addf %3, %6 : vector<32x256xf32>
    %c0_6 = arith.constant 0 : index
    %c0_7 = arith.constant 0 : index
    %8 = vector.load %arg8[%c0_6, %c0_7] : memref<32x256xf32, #tpu.memory_space<vmem>>, vector<32x256xf32>
    tpu.vector_store %arg8[%c0_6, %c0_7], %7 {strides = array<i32>} : memref<32x256xf32, #tpu.memory_space<vmem>>, vector<32x256xf32>,
    %c8_i32 = arith.constant 8 : i32
    %9 = arith.cmpi eq, %arg2, %c8_i32 : i32
    %10 = arith.extui %9 : i1 to i32
    %c0_i32_8 = arith.constant 0 : i32
    %11 = arith.cmpi ne, %10, %c0_i32_8 : i32
    scf.if %11 {
      %c0_9 = arith.constant 0 : index
      %c0_10 = arith.constant 0 : index
      %12 = vector.load %arg8[%c0_9, %c0_10] : memref<32x256xf32, #tpu.memory_space<vmem>>, vector<32x256xf32>
      %c0_11 = arith.constant 0 : index
      %c0_12 = arith.constant 0 : index
      %13 = vector.load %arg5[%c0_11, %c0_12] : memref<1x256xf32, #tpu.memory_space<vmem>>, vector<1x256xf32>
      %14 = vector.broadcast %13 : vector<1x256xf32> to vector<32x256xf32>
      %15 = arith.mulf %12, %14 : vector<32x256xf32>
      %c0_13 = arith.constant 0 : index
      %c0_14 = arith.constant 0 : index
      %16 = vector.load %arg6[%c0_13, %c0_14] : memref<1x256xf32, #tpu.memory_space<vmem>>, vector<1x256xf32>
      %17 = vector.broadcast %16 : vector<1x256xf32> to vector<32x256xf32>
      %18 = arith.addf %15, %17 : vector<32x256xf32>
      %cst_15 = arith.constant 0.000000e+00 : f32
      %19 = vector.broadcast %cst_15 : f32 to vector<32x256xf32>
      %20 = arith.maximumf %18, %19 : vector<32x256xf32>
      %21 = arith.truncf %20 : vector<32x256xf32> to vector<32x256xbf16>
      %c0_16 = arith.constant 0 : index
      %c0_17 = arith.constant 0 : index
      %22 = vector.load %arg7[%c0_16, %c0_17] : memref<32x256xbf16, #tpu.memory_space<vmem>>, vector<32x256xbf16>
      tpu.vector_store %arg7[%c0_16, %c0_17], %21 {strides = array<i32>} : memref<32x256xbf16, #tpu.memory_space<vmem>>, vector<32x256xbf16>,
    } else {
    }
    return
  }
  func.func @transform_0(%arg0: i32, %arg1: i32, %arg2: i32) -> (i32, i32) {
    %c0_i32 = arith.constant 0 : i32
    return %arg0, %arg2 : i32, i32
  }
  func.func @transform_1(%arg0: i32, %arg1: i32, %arg2: i32) -> (i32, i32) {
    %c0_i32 = arith.constant 0 : i32
    return %arg2, %arg1 : i32, i32
  }
  func.func @transform_2(%arg0: i32, %arg1: i32, %arg2: i32) -> (i32, i32) {
    %c0_i32 = arith.constant 0 : i32
    %c0_i32_0 = arith.constant 0 : i32
    return %c0_i32, %arg1 : i32, i32
  }
  func.func @transform_3(%arg0: i32, %arg1: i32, %arg2: i32) -> (i32, i32) {
    %c0_i32 = arith.constant 0 : i32
    %c0_i32_0 = arith.constant 0 : i32
    return %c0_i32, %arg1 : i32, i32
  }
  func.func @transform_4(%arg0: i32, %arg1: i32, %arg2: i32) -> (i32, i32) {
    %c0_i32 = arith.constant 0 : i32
    return %arg0, %arg1 : i32, i32
  }
}

module attributes {stable_mosaic.version = 11 : i64} {
  func.func @_conv_bn_dual_kernel(%arg0: i32, %arg1: i32, %arg2: i32, %arg3: memref<8x256xbf16, #tpu.memory_space<vmem>>, %arg4: memref<256x256xbf16, #tpu.memory_space<vmem>>, %arg5: memref<1x256xf32, #tpu.memory_space<vmem>>, %arg6: memref<1x256xf32, #tpu.memory_space<vmem>>, %arg7: memref<256x256xbf16, #tpu.memory_space<vmem>>, %arg8: memref<1x256xf32, #tpu.memory_space<vmem>>, %arg9: memref<1x256xf32, #tpu.memory_space<vmem>>, %arg10: memref<8x256xbf16, #tpu.memory_space<vmem>>, %arg11: memref<8x256xbf16, #tpu.memory_space<vmem>>, %arg12: memref<8x256xf32, #tpu.memory_space<vmem>>, %arg13: memref<8x256xf32, #tpu.memory_space<vmem>>) attributes {dimension_semantics = [#tpu.dimension_semantics<parallel>, #tpu.dimension_semantics<parallel>, #tpu.dimension_semantics<arbitrary>], iteration_bounds = array<i64: 1, 2, 9>, scalar_prefetch = 0 : i64, scratch_operands = 2 : i64, tpu.core_type = #tpu.core_type<tc>, window_params = [{transform_indices = @transform_0, window_bounds = array<i64: 8, 256>}, {transform_indices = @transform_1, window_bounds = array<i64: 256, 256>}, {transform_indices = @transform_2, window_bounds = array<i64: 1, 256>}, {transform_indices = @transform_3, window_bounds = array<i64: 1, 256>}, {transform_indices = @transform_4, window_bounds = array<i64: 256, 256>}, {transform_indices = @transform_5, window_bounds = array<i64: 1, 256>}, {transform_indices = @transform_6, window_bounds = array<i64: 1, 256>}, {transform_indices = @transform_7, window_bounds = array<i64: 8, 256>}, {transform_indices = @transform_8, window_bounds = array<i64: 8, 256>}]} {
    %c0_i32 = arith.constant 0 : i32
    %0 = arith.cmpi eq, %arg2, %c0_i32 : i32
    %1 = arith.extui %0 : i1 to i32
    %c0_i32_0 = arith.constant 0 : i32
    %2 = arith.cmpi ne, %1, %c0_i32_0 : i32
    scf.if %2 {
      %cst_16 = arith.constant 0.000000e+00 : f32
      %17 = vector.broadcast %cst_16 : f32 to vector<8x256xf32>
      %c0_17 = arith.constant 0 : index
      %c0_18 = arith.constant 0 : index
      %18 = vector.load %arg12[%c0_17, %c0_18] : memref<8x256xf32, #tpu.memory_space<vmem>>, vector<8x256xf32>
      tpu.vector_store %arg12[%c0_17, %c0_18], %17 {strides = array<i32>} : memref<8x256xf32, #tpu.memory_space<vmem>>, vector<8x256xf32>,
      %cst_19 = arith.constant 0.000000e+00 : f32
      %19 = vector.broadcast %cst_19 : f32 to vector<8x256xf32>
      %c0_20 = arith.constant 0 : index
      %c0_21 = arith.constant 0 : index
      %20 = vector.load %arg13[%c0_20, %c0_21] : memref<8x256xf32, #tpu.memory_space<vmem>>, vector<8x256xf32>
      tpu.vector_store %arg13[%c0_20, %c0_21], %19 {strides = array<i32>} : memref<8x256xf32, #tpu.memory_space<vmem>>, vector<8x256xf32>,
    } else {
    }
    %c0 = arith.constant 0 : index
    %c0_1 = arith.constant 0 : index
    %3 = vector.load %arg3[%c0, %c0_1] : memref<8x256xbf16, #tpu.memory_space<vmem>>, vector<8x256xbf16>
    %c0_2 = arith.constant 0 : index
    %c0_3 = arith.constant 0 : index
    %4 = vector.load %arg12[%c0_2, %c0_3] : memref<8x256xf32, #tpu.memory_space<vmem>>, vector<8x256xf32>
    %c0_4 = arith.constant 0 : index
    %c0_5 = arith.constant 0 : index
    %5 = vector.load %arg4[%c0_4, %c0_5] : memref<256x256xbf16, #tpu.memory_space<vmem>>, vector<256x256xbf16>
    %cst = arith.constant dense<0.000000e+00> : vector<8x256xf32>
    %6 = tpu.matmul %3, %5, %cst {dimension_numbers = #tpu.dot_dimension_numbers<[1], [0], [0], [1], [0, 0, 1, 1], [], []>} : vector<8x256xbf16>, vector<256x256xbf16>, vector<8x256xf32> -> vector<8x256xf32>
    %7 = arith.addf %4, %6 : vector<8x256xf32>
    %c0_6 = arith.constant 0 : index
    %c0_7 = arith.constant 0 : index
    %8 = vector.load %arg12[%c0_6, %c0_7] : memref<8x256xf32, #tpu.memory_space<vmem>>, vector<8x256xf32>
    tpu.vector_store %arg12[%c0_6, %c0_7], %7 {strides = array<i32>} : memref<8x256xf32, #tpu.memory_space<vmem>>, vector<8x256xf32>,
    %c0_8 = arith.constant 0 : index
    %c0_9 = arith.constant 0 : index
    %9 = vector.load %arg13[%c0_8, %c0_9] : memref<8x256xf32, #tpu.memory_space<vmem>>, vector<8x256xf32>
    %c0_10 = arith.constant 0 : index
    %c0_11 = arith.constant 0 : index
    %10 = vector.load %arg7[%c0_10, %c0_11] : memref<256x256xbf16, #tpu.memory_space<vmem>>, vector<256x256xbf16>
    %cst_12 = arith.constant dense<0.000000e+00> : vector<8x256xf32>
    %11 = tpu.matmul %3, %10, %cst_12 {dimension_numbers = #tpu.dot_dimension_numbers<[1], [0], [0], [1], [0, 0, 1, 1], [], []>} : vector<8x256xbf16>, vector<256x256xbf16>, vector<8x256xf32> -> vector<8x256xf32>
    %12 = arith.addf %9, %11 : vector<8x256xf32>
    %c0_13 = arith.constant 0 : index
    %c0_14 = arith.constant 0 : index
    %13 = vector.load %arg13[%c0_13, %c0_14] : memref<8x256xf32, #tpu.memory_space<vmem>>, vector<8x256xf32>
    tpu.vector_store %arg13[%c0_13, %c0_14], %12 {strides = array<i32>} : memref<8x256xf32, #tpu.memory_space<vmem>>, vector<8x256xf32>,
    %c8_i32 = arith.constant 8 : i32
    %14 = arith.cmpi eq, %arg2, %c8_i32 : i32
    %15 = arith.extui %14 : i1 to i32
    %c0_i32_15 = arith.constant 0 : i32
    %16 = arith.cmpi ne, %15, %c0_i32_15 : i32
    scf.if %16 {
      %c0_16 = arith.constant 0 : index
      %c0_17 = arith.constant 0 : index
      %17 = vector.load %arg12[%c0_16, %c0_17] : memref<8x256xf32, #tpu.memory_space<vmem>>, vector<8x256xf32>
      %c0_18 = arith.constant 0 : index
      %c0_19 = arith.constant 0 : index
      %18 = vector.load %arg5[%c0_18, %c0_19] : memref<1x256xf32, #tpu.memory_space<vmem>>, vector<1x256xf32>
      %19 = vector.broadcast %18 : vector<1x256xf32> to vector<8x256xf32>
      %20 = arith.mulf %17, %19 : vector<8x256xf32>
      %c0_20 = arith.constant 0 : index
      %c0_21 = arith.constant 0 : index
      %21 = vector.load %arg6[%c0_20, %c0_21] : memref<1x256xf32, #tpu.memory_space<vmem>>, vector<1x256xf32>
      %22 = vector.broadcast %21 : vector<1x256xf32> to vector<8x256xf32>
      %23 = arith.addf %20, %22 : vector<8x256xf32>
      %cst_22 = arith.constant 0.000000e+00 : f32
      %24 = vector.broadcast %cst_22 : f32 to vector<8x256xf32>
      %25 = arith.maximumf %23, %24 : vector<8x256xf32>
      %26 = arith.truncf %25 : vector<8x256xf32> to vector<8x256xbf16>
      %c0_23 = arith.constant 0 : index
      %c0_24 = arith.constant 0 : index
      %27 = vector.load %arg10[%c0_23, %c0_24] : memref<8x256xbf16, #tpu.memory_space<vmem>>, vector<8x256xbf16>
      tpu.vector_store %arg10[%c0_23, %c0_24], %26 {strides = array<i32>} : memref<8x256xbf16, #tpu.memory_space<vmem>>, vector<8x256xbf16>,
      %c0_25 = arith.constant 0 : index
      %c0_26 = arith.constant 0 : index
      %28 = vector.load %arg13[%c0_25, %c0_26] : memref<8x256xf32, #tpu.memory_space<vmem>>, vector<8x256xf32>
      %c0_27 = arith.constant 0 : index
      %c0_28 = arith.constant 0 : index
      %29 = vector.load %arg8[%c0_27, %c0_28] : memref<1x256xf32, #tpu.memory_space<vmem>>, vector<1x256xf32>
      %30 = vector.broadcast %29 : vector<1x256xf32> to vector<8x256xf32>
      %31 = arith.mulf %28, %30 : vector<8x256xf32>
      %c0_29 = arith.constant 0 : index
      %c0_30 = arith.constant 0 : index
      %32 = vector.load %arg9[%c0_29, %c0_30] : memref<1x256xf32, #tpu.memory_space<vmem>>, vector<1x256xf32>
      %33 = vector.broadcast %32 : vector<1x256xf32> to vector<8x256xf32>
      %34 = arith.addf %31, %33 : vector<8x256xf32>
      %35 = arith.truncf %34 : vector<8x256xf32> to vector<8x256xbf16>
      %c0_31 = arith.constant 0 : index
      %c0_32 = arith.constant 0 : index
      %36 = vector.load %arg11[%c0_31, %c0_32] : memref<8x256xbf16, #tpu.memory_space<vmem>>, vector<8x256xbf16>
      tpu.vector_store %arg11[%c0_31, %c0_32], %35 {strides = array<i32>} : memref<8x256xbf16, #tpu.memory_space<vmem>>, vector<8x256xbf16>,
    } else {
    }
    return
  }
  func.func @transform_0(%arg0: i32, %arg1: i32, %arg2: i32) -> (i32, i32) {
    %c0_i32 = arith.constant 0 : i32
    return %arg0, %arg2 : i32, i32
  }
  func.func @transform_1(%arg0: i32, %arg1: i32, %arg2: i32) -> (i32, i32) {
    %c0_i32 = arith.constant 0 : i32
    return %arg2, %arg1 : i32, i32
  }
  func.func @transform_2(%arg0: i32, %arg1: i32, %arg2: i32) -> (i32, i32) {
    %c0_i32 = arith.constant 0 : i32
    %c0_i32_0 = arith.constant 0 : i32
    return %c0_i32, %arg1 : i32, i32
  }
  func.func @transform_3(%arg0: i32, %arg1: i32, %arg2: i32) -> (i32, i32) {
    %c0_i32 = arith.constant 0 : i32
    %c0_i32_0 = arith.constant 0 : i32
    return %c0_i32, %arg1 : i32, i32
  }
  func.func @transform_4(%arg0: i32, %arg1: i32, %arg2: i32) -> (i32, i32) {
    %c0_i32 = arith.constant 0 : i32
    return %arg2, %arg1 : i32, i32
  }
  func.func @transform_5(%arg0: i32, %arg1: i32, %arg2: i32) -> (i32, i32) {
    %c0_i32 = arith.constant 0 : i32
    %c0_i32_0 = arith.constant 0 : i32
    return %c0_i32, %arg1 : i32, i32
  }
  func.func @transform_6(%arg0: i32, %arg1: i32, %arg2: i32) -> (i32, i32) {
    %c0_i32 = arith.constant 0 : i32
    %c0_i32_0 = arith.constant 0 : i32
    return %c0_i32, %arg1 : i32, i32
  }
  func.func @transform_7(%arg0: i32, %arg1: i32, %arg2: i32) -> (i32, i32) {
    %c0_i32 = arith.constant 0 : i32
    return %arg0, %arg1 : i32, i32
  }
  func.func @transform_8(%arg0: i32, %arg1: i32, %arg2: i32) -> (i32, i32) {
    %c0_i32 = arith.constant 0 : i32
    return %arg0, %arg1 : i32, i32
  }
}

module attributes {stable_mosaic.version = 11 : i64} {
  func.func @_conv_bn_kernel(%arg0: i32, %arg1: i32, %arg2: i32, %arg3: memref<8x256xbf16, #tpu.memory_space<vmem>>, %arg4: memref<256x256xbf16, #tpu.memory_space<vmem>>, %arg5: memref<1x256xf32, #tpu.memory_space<vmem>>, %arg6: memref<1x256xf32, #tpu.memory_space<vmem>>, %arg7: memref<8x256xbf16, #tpu.memory_space<vmem>>, %arg8: memref<8x256xbf16, #tpu.memory_space<vmem>>, %arg9: memref<8x256xf32, #tpu.memory_space<vmem>>) attributes {dimension_semantics = [#tpu.dimension_semantics<parallel>, #tpu.dimension_semantics<parallel>, #tpu.dimension_semantics<arbitrary>], iteration_bounds = array<i64: 1, 2, 18>, scalar_prefetch = 0 : i64, scratch_operands = 1 : i64, tpu.core_type = #tpu.core_type<tc>, window_params = [{transform_indices = @transform_0, window_bounds = array<i64: 8, 256>}, {transform_indices = @transform_1, window_bounds = array<i64: 256, 256>}, {transform_indices = @transform_2, window_bounds = array<i64: 1, 256>}, {transform_indices = @transform_3, window_bounds = array<i64: 1, 256>}, {transform_indices = @transform_4, window_bounds = array<i64: 8, 256>}, {transform_indices = @transform_5, window_bounds = array<i64: 8, 256>}]} {
    %c0_i32 = arith.constant 0 : i32
    %0 = arith.cmpi eq, %arg2, %c0_i32 : i32
    %1 = arith.extui %0 : i1 to i32
    %c0_i32_0 = arith.constant 0 : i32
    %2 = arith.cmpi ne, %1, %c0_i32_0 : i32
    scf.if %2 {
      %cst_9 = arith.constant 0.000000e+00 : f32
      %12 = vector.broadcast %cst_9 : f32 to vector<8x256xf32>
      %c0_10 = arith.constant 0 : index
      %c0_11 = arith.constant 0 : index
      %13 = vector.load %arg9[%c0_10, %c0_11] : memref<8x256xf32, #tpu.memory_space<vmem>>, vector<8x256xf32>
      tpu.vector_store %arg9[%c0_10, %c0_11], %12 {strides = array<i32>} : memref<8x256xf32, #tpu.memory_space<vmem>>, vector<8x256xf32>,
    } else {
    }
    %c0 = arith.constant 0 : index
    %c0_1 = arith.constant 0 : index
    %3 = vector.load %arg9[%c0, %c0_1] : memref<8x256xf32, #tpu.memory_space<vmem>>, vector<8x256xf32>
    %c0_2 = arith.constant 0 : index
    %c0_3 = arith.constant 0 : index
    %4 = vector.load %arg3[%c0_2, %c0_3] : memref<8x256xbf16, #tpu.memory_space<vmem>>, vector<8x256xbf16>
    %c0_4 = arith.constant 0 : index
    %c0_5 = arith.constant 0 : index
    %5 = vector.load %arg4[%c0_4, %c0_5] : memref<256x256xbf16, #tpu.memory_space<vmem>>, vector<256x256xbf16>
    %cst = arith.constant dense<0.000000e+00> : vector<8x256xf32>
    %6 = tpu.matmul %4, %5, %cst {dimension_numbers = #tpu.dot_dimension_numbers<[1], [0], [0], [1], [0, 0, 1, 1], [], []>} : vector<8x256xbf16>, vector<256x256xbf16>, vector<8x256xf32> -> vector<8x256xf32>
    %7 = arith.addf %3, %6 : vector<8x256xf32>
    %c0_6 = arith.constant 0 : index
    %c0_7 = arith.constant 0 : index
    %8 = vector.load %arg9[%c0_6, %c0_7] : memref<8x256xf32, #tpu.memory_space<vmem>>, vector<8x256xf32>
    tpu.vector_store %arg9[%c0_6, %c0_7], %7 {strides = array<i32>} : memref<8x256xf32, #tpu.memory_space<vmem>>, vector<8x256xf32>,
    %c17_i32 = arith.constant 17 : i32
    %9 = arith.cmpi eq, %arg2, %c17_i32 : i32
    %10 = arith.extui %9 : i1 to i32
    %c0_i32_8 = arith.constant 0 : i32
    %11 = arith.cmpi ne, %10, %c0_i32_8 : i32
    scf.if %11 {
      %c0_9 = arith.constant 0 : index
      %c0_10 = arith.constant 0 : index
      %12 = vector.load %arg9[%c0_9, %c0_10] : memref<8x256xf32, #tpu.memory_space<vmem>>, vector<8x256xf32>
      %c0_11 = arith.constant 0 : index
      %c0_12 = arith.constant 0 : index
      %13 = vector.load %arg5[%c0_11, %c0_12] : memref<1x256xf32, #tpu.memory_space<vmem>>, vector<1x256xf32>
      %14 = vector.broadcast %13 : vector<1x256xf32> to vector<8x256xf32>
      %15 = arith.mulf %12, %14 : vector<8x256xf32>
      %c0_13 = arith.constant 0 : index
      %c0_14 = arith.constant 0 : index
      %16 = vector.load %arg6[%c0_13, %c0_14] : memref<1x256xf32, #tpu.memory_space<vmem>>, vector<1x256xf32>
      %17 = vector.broadcast %16 : vector<1x256xf32> to vector<8x256xf32>
      %18 = arith.addf %15, %17 : vector<8x256xf32>
      %c0_15 = arith.constant 0 : index
      %c0_16 = arith.constant 0 : index
      %19 = vector.load %arg7[%c0_15, %c0_16] : memref<8x256xbf16, #tpu.memory_space<vmem>>, vector<8x256xbf16>
      %20 = arith.extf %19 : vector<8x256xbf16> to vector<8x256xf32>
      %21 = arith.addf %18, %20 : vector<8x256xf32>
      %cst_17 = arith.constant 0.000000e+00 : f32
      %22 = vector.broadcast %cst_17 : f32 to vector<8x256xf32>
      %23 = arith.maximumf %21, %22 : vector<8x256xf32>
      %24 = arith.truncf %23 : vector<8x256xf32> to vector<8x256xbf16>
      %c0_18 = arith.constant 0 : index
      %c0_19 = arith.constant 0 : index
      %25 = vector.load %arg8[%c0_18, %c0_19] : memref<8x256xbf16, #tpu.memory_space<vmem>>, vector<8x256xbf16>
      tpu.vector_store %arg8[%c0_18, %c0_19], %24 {strides = array<i32>} : memref<8x256xbf16, #tpu.memory_space<vmem>>, vector<8x256xbf16>,
    } else {
    }
    return
  }
  func.func @transform_0(%arg0: i32, %arg1: i32, %arg2: i32) -> (i32, i32) {
    %c0_i32 = arith.constant 0 : i32
    return %arg0, %arg2 : i32, i32
  }
  func.func @transform_1(%arg0: i32, %arg1: i32, %arg2: i32) -> (i32, i32) {
    %c0_i32 = arith.constant 0 : i32
    return %arg2, %arg1 : i32, i32
  }
  func.func @transform_2(%arg0: i32, %arg1: i32, %arg2: i32) -> (i32, i32) {
    %c0_i32 = arith.constant 0 : i32
    %c0_i32_0 = arith.constant 0 : i32
    return %c0_i32, %arg1 : i32, i32
  }
  func.func @transform_3(%arg0: i32, %arg1: i32, %arg2: i32) -> (i32, i32) {
    %c0_i32 = arith.constant 0 : i32
    %c0_i32_0 = arith.constant 0 : i32
    return %c0_i32, %arg1 : i32, i32
  }
  func.func @transform_4(%arg0: i32, %arg1: i32, %arg2: i32) -> (i32, i32) {
    %c0_i32 = arith.constant 0 : i32
    return %arg0, %arg1 : i32, i32
  }
  func.func @transform_5(%arg0: i32, %arg1: i32, %arg2: i32) -> (i32, i32) {
    %c0_i32 = arith.constant 0 : i32
    return %arg0, %arg1 : i32, i32
  }
}

module attributes {stable_mosaic.version = 11 : i64} {
  func.func @_conv_bn_kernel(%arg0: i32, %arg1: i32, %arg2: i32, %arg3: memref<8x256xbf16, #tpu.memory_space<vmem>>, %arg4: memref<256x256xbf16, #tpu.memory_space<vmem>>, %arg5: memref<1x256xf32, #tpu.memory_space<vmem>>, %arg6: memref<1x256xf32, #tpu.memory_space<vmem>>, %arg7: memref<8x256xbf16, #tpu.memory_space<vmem>>, %arg8: memref<8x256xf32, #tpu.memory_space<vmem>>) attributes {dimension_semantics = [#tpu.dimension_semantics<parallel>, #tpu.dimension_semantics<parallel>, #tpu.dimension_semantics<arbitrary>], iteration_bounds = array<i64: 1, 2, 18>, scalar_prefetch = 0 : i64, scratch_operands = 1 : i64, tpu.core_type = #tpu.core_type<tc>, window_params = [{transform_indices = @transform_0, window_bounds = array<i64: 8, 256>}, {transform_indices = @transform_1, window_bounds = array<i64: 256, 256>}, {transform_indices = @transform_2, window_bounds = array<i64: 1, 256>}, {transform_indices = @transform_3, window_bounds = array<i64: 1, 256>}, {transform_indices = @transform_4, window_bounds = array<i64: 8, 256>}]} {
    %c0_i32 = arith.constant 0 : i32
    %0 = arith.cmpi eq, %arg2, %c0_i32 : i32
    %1 = arith.extui %0 : i1 to i32
    %c0_i32_0 = arith.constant 0 : i32
    %2 = arith.cmpi ne, %1, %c0_i32_0 : i32
    scf.if %2 {
      %cst_9 = arith.constant 0.000000e+00 : f32
      %12 = vector.broadcast %cst_9 : f32 to vector<8x256xf32>
      %c0_10 = arith.constant 0 : index
      %c0_11 = arith.constant 0 : index
      %13 = vector.load %arg8[%c0_10, %c0_11] : memref<8x256xf32, #tpu.memory_space<vmem>>, vector<8x256xf32>
      tpu.vector_store %arg8[%c0_10, %c0_11], %12 {strides = array<i32>} : memref<8x256xf32, #tpu.memory_space<vmem>>, vector<8x256xf32>,
    } else {
    }
    %c0 = arith.constant 0 : index
    %c0_1 = arith.constant 0 : index
    %3 = vector.load %arg8[%c0, %c0_1] : memref<8x256xf32, #tpu.memory_space<vmem>>, vector<8x256xf32>
    %c0_2 = arith.constant 0 : index
    %c0_3 = arith.constant 0 : index
    %4 = vector.load %arg3[%c0_2, %c0_3] : memref<8x256xbf16, #tpu.memory_space<vmem>>, vector<8x256xbf16>
    %c0_4 = arith.constant 0 : index
    %c0_5 = arith.constant 0 : index
    %5 = vector.load %arg4[%c0_4, %c0_5] : memref<256x256xbf16, #tpu.memory_space<vmem>>, vector<256x256xbf16>
    %cst = arith.constant dense<0.000000e+00> : vector<8x256xf32>
    %6 = tpu.matmul %4, %5, %cst {dimension_numbers = #tpu.dot_dimension_numbers<[1], [0], [0], [1], [0, 0, 1, 1], [], []>} : vector<8x256xbf16>, vector<256x256xbf16>, vector<8x256xf32> -> vector<8x256xf32>
    %7 = arith.addf %3, %6 : vector<8x256xf32>
    %c0_6 = arith.constant 0 : index
    %c0_7 = arith.constant 0 : index
    %8 = vector.load %arg8[%c0_6, %c0_7] : memref<8x256xf32, #tpu.memory_space<vmem>>, vector<8x256xf32>
    tpu.vector_store %arg8[%c0_6, %c0_7], %7 {strides = array<i32>} : memref<8x256xf32, #tpu.memory_space<vmem>>, vector<8x256xf32>,
    %c17_i32 = arith.constant 17 : i32
    %9 = arith.cmpi eq, %arg2, %c17_i32 : i32
    %10 = arith.extui %9 : i1 to i32
    %c0_i32_8 = arith.constant 0 : i32
    %11 = arith.cmpi ne, %10, %c0_i32_8 : i32
    scf.if %11 {
      %c0_9 = arith.constant 0 : index
      %c0_10 = arith.constant 0 : index
      %12 = vector.load %arg8[%c0_9, %c0_10] : memref<8x256xf32, #tpu.memory_space<vmem>>, vector<8x256xf32>
      %c0_11 = arith.constant 0 : index
      %c0_12 = arith.constant 0 : index
      %13 = vector.load %arg5[%c0_11, %c0_12] : memref<1x256xf32, #tpu.memory_space<vmem>>, vector<1x256xf32>
      %14 = vector.broadcast %13 : vector<1x256xf32> to vector<8x256xf32>
      %15 = arith.mulf %12, %14 : vector<8x256xf32>
      %c0_13 = arith.constant 0 : index
      %c0_14 = arith.constant 0 : index
      %16 = vector.load %arg6[%c0_13, %c0_14] : memref<1x256xf32, #tpu.memory_space<vmem>>, vector<1x256xf32>
      %17 = vector.broadcast %16 : vector<1x256xf32> to vector<8x256xf32>
      %18 = arith.addf %15, %17 : vector<8x256xf32>
      %cst_15 = arith.constant 0.000000e+00 : f32
      %19 = vector.broadcast %cst_15 : f32 to vector<8x256xf32>
      %20 = arith.maximumf %18, %19 : vector<8x256xf32>
      %21 = arith.truncf %20 : vector<8x256xf32> to vector<8x256xbf16>
      %c0_16 = arith.constant 0 : index
      %c0_17 = arith.constant 0 : index
      %22 = vector.load %arg7[%c0_16, %c0_17] : memref<8x256xbf16, #tpu.memory_space<vmem>>, vector<8x256xbf16>
      tpu.vector_store %arg7[%c0_16, %c0_17], %21 {strides = array<i32>} : memref<8x256xbf16, #tpu.memory_space<vmem>>, vector<8x256xbf16>,
    } else {
    }
    return
  }
  func.func @transform_0(%arg0: i32, %arg1: i32, %arg2: i32) -> (i32, i32) {
    %c0_i32 = arith.constant 0 : i32
    return %arg0, %arg2 : i32, i32
  }
  func.func @transform_1(%arg0: i32, %arg1: i32, %arg2: i32) -> (i32, i32) {
    %c0_i32 = arith.constant 0 : i32
    return %arg2, %arg1 : i32, i32
  }
  func.func @transform_2(%arg0: i32, %arg1: i32, %arg2: i32) -> (i32, i32) {
    %c0_i32 = arith.constant 0 : i32
    %c0_i32_0 = arith.constant 0 : i32
    return %c0_i32, %arg1 : i32, i32
  }
  func.func @transform_3(%arg0: i32, %arg1: i32, %arg2: i32) -> (i32, i32) {
    %c0_i32 = arith.constant 0 : i32
    %c0_i32_0 = arith.constant 0 : i32
    return %c0_i32, %arg1 : i32, i32
  }
  func.func @transform_4(%arg0: i32, %arg1: i32, %arg2: i32) -> (i32, i32) {
    %c0_i32 = arith.constant 0 : i32
    return %arg0, %arg1 : i32, i32
  }
}

</mosaic_0001>

<bundles_post_ra>
// kernel: _lambda_.18
= control target key start
LH: loop header
LB: loop body
LE: loop exit
PB: predicated region body
PF: predicated region fallthrough
CT: control target
= control target key end

     0   :  { %s1843_s15 = smov 0   ;;  %s1845_s16 = smov 0   ;;  %s2054_s0 = inlined_call_operand.vmem [shape: bf16[2048,256], index: 0, kind: input, shape index: {}]   ;;  %s2055_s1 = inlined_call_operand.vmem [shape: bf16[256,128], index: 1, kind: input, shape index: {}]   ;;  %s2056_s2 = inlined_call_operand.vmem [shape: f32[1,128], index: 2, kind: input, shape index: {}]   ;;  %s2057_s3 = inlined_call_operand.vmem [shape: f32[1,128], index: 3, kind: input, shape index: {}]   ;;  %s2058_s4 = inlined_call_operand.vmem [shape: bf16[2048,128], index: 4, kind: output, shape index: {}]  }
   0x1   :  { %s1847_s17 = smov 0  }
   0x2 LB: > { %s33_s18 = sadd.s32 1, %s1812_s16  ;;  %p1360_p0 = scmp.ge.s32.totalorder %s1816_s17, 1  ;;  %s1816_s17 = sphi %s1847_s17, %s14_s17   ;;  %s1812_s16 = sphi %s1845_s16, %s2060_s16   ;;  %s1808_s15 = sphi %s1843_s15, %s2059_s15  }
   0x3   : > { %p35_p1 = scmp.ge.s32.totalorder %s33_s18, 8  ;;  %p224_p2 = scmp.lt.s32.totalorder %s1816_s17, 9 }
   0x5   : > { %s2062_s18 = smov (%p35_p1, %s33_s18), 0  ;;  %p225_p3 = pnand %p1360_p0, %p224_p2 }
   0x6   : > { %v1730_v0 = vld [vmem:[%s2055_s1 + $0x40] sm:$0xff] (!%p225_p3)   ;;  %s1361_s21 = sshll.u32 (!%p225_p3), %s1808_s15, 5  ;;  %v1732_v2 = vld [vmem:[%s2055_s1 + $0x48] sm:$0xff] (!%p225_p3)   ;;  %v1734_v4 = vld [vmem:[%s2055_s1 + $0x50] sm:$0xff] (!%p225_p3)  }
   0x7   : > { %228 = sbr.rel (%p225_p3) target bundleno = 322 (0x142), region = 36  ;;  %v1731_v1 = vld [vmem:[%s2055_s1] sm:$0xff] (!%p225_p3)   ;;  %1578 = vmatprep.subr.bf16.mxu0 (!%p225_p3), %v1730_v0  ;;  %1690 = vmatprep.subr.bf16.mxu1 (!%p225_p3), %v1730_v0  ;;  %v1733_v3 = vld [vmem:[%s2055_s1 + $0x8] sm:$0xff] (!%p225_p3)   ;;  %p274_p4 = scmp.lt.s32.totalorder (!%p225_p3), %s1361_s21, 255  ;;  %v1735_v5 = vld [vmem:[%s2055_s1 + $0x10] sm:$0xff] (!%p225_p3)  }
   0x8   : > { %1579 = vmatpush3.bf16.msra.mxu0 (!%p225_p3), %v1731_v1  ;;  %1698 = vmatpush3.bf16.msra.mxu1 (!%p225_p3), %v1731_v1  ;;  %v1736_v6 = vld [vmem:[%s2055_s1 + $0x58] sm:$0xff] (!%p225_p3)   ;;  %v1738_v8 = vld [vmem:[%s2055_s1 + $0x60] sm:$0xff] (!%p225_p3)   ;;  %v1740_v10 = vld [vmem:[%s2055_s1 + $0x68] sm:$0xff] (!%p225_p3)  }
   0x9   : > { %1580 = vmatprep.subr.bf16.mxu0 (!%p225_p3), %v1732_v2  ;;  %1691 = vmatprep.subr.bf16.mxu1 (!%p225_p3), %v1732_v2  ;;  %v1737_v7 = vld [vmem:[%s2055_s1 + $0x18] sm:$0xff] (!%p225_p3)   ;;  %v1739_v9 = vld [vmem:[%s2055_s1 + $0x20] sm:$0xff] (!%p225_p3)   ;;  %v1741_v13 = vld [vmem:[%s2055_s1 + $0x28] sm:$0xff] (!%p225_p3)  }
   0xa   : > { %v1742_v14 = vld [vmem:[%s2055_s1 + $0x70] sm:$0xff] (!%p225_p3)   ;;  %v1744_v16 = vld [vmem:[%s2055_s1 + $0x78] sm:$0xff] (!%p225_p3)   ;;  %v1952_v51 = vld [vmem:[%s2056_s2] ss:$0 sm:$0xff] (!%p225_p3) }
   0xb   : > { %v1743_v15 = vld [vmem:[%s2055_s1 + $0x30] sm:$0xff] (!%p225_p3)   ;;  %v1745_v17 = vld [vmem:[%s2055_s1 + $0x38] sm:$0xff] (!%p225_p3)   ;;  %v1957_v57 = vld [vmem:[%s2057_s3] ss:$0 sm:$0xff] (!%p225_p3) }
   0xc   : > { %1581 = vmatpush3.bf16.msra.mxu0 (!%p225_p3), %v1733_v3  ;;  %1699 = vmatpush3.bf16.msra.mxu1 (!%p225_p3), %v1733_v3 }
   0xd   : > { %1582 = vmatprep.subr.bf16.mxu0 (!%p225_p3), %v1734_v4  ;;  %1692 = vmatprep.subr.bf16.mxu1 (!%p225_p3), %v1734_v4 }
   0xe   : > { %s2064_s21 = smov (!%p274_p4, %s1361_s21), 255 }
   0xf   : > { %s1450_s10 = sshll.u32 %s2064_s21, 3  ;;  %s1365_s12 = sshll.u32 %s2064_s21, 2 }
  0x10   : > { %1583 = vmatpush3.bf16.msra.mxu0 %v1735_v5  ;;  %1700 = vmatpush3.bf16.msra.mxu1 %v1735_v5  ;;  %s1894_s15 = scalar_lea.vmem %s2054_s0, %s1450_s10  ;;  %s1971_s21 = scalar_lea.vmem %s2058_s4, %s1365_s12 }
  0x11   : > { %1584 = vmatprep.subr.bf16.mxu0 %v1736_v6  ;;  %1693 = vmatprep.subr.bf16.mxu1 %v1736_v6  ;;  %v1748_v11 = vld [vmem:[%s1894_s15 + $0x4] ss:$8 sps:$4 sm:$0xff]   ;;  %v1746_v18 = vld [vmem:[%s1894_s15] ss:$8 sps:$4 sm:$0xff]   ;;  %v1752_v20 = vld [vmem:[%s1894_s15 + $0x14] ss:$8 sps:$4 sm:$0xff]  }
  0x12   : > { %v1751_v12 = vld [vmem:[%s1894_s15 + $0x84] ss:$8 sps:$4 sm:$0xff]   ;;  %729 = vmatprep.mubr.bf16.mxu0 %v1748_v11  ;;  %v1749_v19 = vld [vmem:[%s1894_s15 + $0x80] ss:$8 sps:$4 sm:$0xff]   ;;  %v1754_v21 = vld [vmem:[%s1894_s15 + $0x94] ss:$8 sps:$4 sm:$0xff]  }
  0x13   : > { %793 = vmatprep.mubr.bf16.mxu1 %v1751_v12  ;;  %v1756_v22 = vld [vmem:[%s1894_s15 + $0x10] ss:$8 sps:$4 sm:$0xff]   ;;  %v1758_v24 = vld [vmem:[%s1894_s15 + $0x24] ss:$8 sps:$4 sm:$0xff]   ;;  %v1762_v26 = vld [vmem:[%s1894_s15 + $0x20] ss:$8 sps:$4 sm:$0xff]  }
  0x14   : > { %1585 = vmatpush3.bf16.msra.mxu0 %v1737_v7  ;;  %1701 = vmatpush3.bf16.msra.mxu1 %v1737_v7  ;;  %v1757_v23 = vld [vmem:[%s1894_s15 + $0x90] ss:$8 sps:$4 sm:$0xff]   ;;  %v1760_v25 = vld [vmem:[%s1894_s15 + $0xa4] ss:$8 sps:$4 sm:$0xff]   ;;  %v1763_v27 = vld [vmem:[%s1894_s15 + $0xa0] ss:$8 sps:$4 sm:$0xff]  }
  0x15   : > { %1586 = vmatprep.subr.bf16.mxu0 %v1738_v8  ;;  %1694 = vmatprep.subr.bf16.mxu1 %v1738_v8  ;;  %v1764_v28 = vld [vmem:[%s1894_s15 + $0x34] ss:$8 sps:$4 sm:$0xff]   ;;  %v1768_v30 = vld [vmem:[%s1894_s15 + $0x30] ss:$8 sps:$4 sm:$0xff]   ;;  %v1770_v32 = vld [vmem:[%s1894_s15 + $0x44] ss:$8 sps:$4 sm:$0xff]  }
  0x16   : > { %v1766_v29 = vld [vmem:[%s1894_s15 + $0xb4] ss:$8 sps:$4 sm:$0xff]   ;;  %v1769_v31 = vld [vmem:[%s1894_s15 + $0xb0] ss:$8 sps:$4 sm:$0xff]   ;;  %v1772_v33 = vld [vmem:[%s1894_s15 + $0xc4] ss:$8 sps:$4 sm:$0xff]  }
  0x17   : > { %v1774_v34 = vld [vmem:[%s1894_s15 + $0x40] ss:$8 sps:$4 sm:$0xff]   ;;  %v1776_v36 = vld [vmem:[%s1894_s15 + $0x54] ss:$8 sps:$4 sm:$0xff]   ;;  %v1780_v38 = vld [vmem:[%s1894_s15 + $0x50] ss:$8 sps:$4 sm:$0xff]  }
  0x18   : > { %1587 = vmatpush3.bf16.msra.mxu0 %v1739_v9  ;;  %1702 = vmatpush3.bf16.msra.mxu1 %v1739_v9  ;;  %v1775_v35 = vld [vmem:[%s1894_s15 + $0xc0] ss:$8 sps:$4 sm:$0xff]   ;;  %v1778_v37 = vld [vmem:[%s1894_s15 + $0xd4] ss:$8 sps:$4 sm:$0xff]   ;;  %v1781_v39 = vld [vmem:[%s1894_s15 + $0xd0] ss:$8 sps:$4 sm:$0xff]  }
  0x19   : > { %1588 = vmatprep.subr.bf16.mxu0 %v1740_v10  ;;  %1695 = vmatprep.subr.bf16.mxu1 %v1740_v10  ;;  %v1782_v40 = vld [vmem:[%s1894_s15 + $0x64] ss:$8 sps:$4 sm:$0xff]   ;;  %v1786_v42 = vld [vmem:[%s1894_s15 + $0x60] ss:$8 sps:$4 sm:$0xff]   ;;  %v1788_v44 = vld [vmem:[%s1894_s15 + $0x74] ss:$8 sps:$4 sm:$0xff]  }
  0x1a   : > { %v1784_v41 = vld [vmem:[%s1894_s15 + $0xe4] ss:$8 sps:$4 sm:$0xff]   ;;  %v1787_v43 = vld [vmem:[%s1894_s15 + $0xe0] ss:$8 sps:$4 sm:$0xff]   ;;  %v1790_v45 = vld [vmem:[%s1894_s15 + $0xf4] ss:$8 sps:$4 sm:$0xff]  }
  0x1b   : > { %v1792_v46 = vld [vmem:[%s1894_s15 + $0x70] ss:$8 sps:$4 sm:$0xff]  }
  0x1c   : > { %1589 = vmatpush3.bf16.msra.mxu0 %v1741_v13  ;;  %1703 = vmatpush3.bf16.msra.mxu1 %v1741_v13  ;;  %v1793_v47 = vld [vmem:[%s1894_s15 + $0xf0] ss:$8 sps:$4 sm:$0xff]  }
  0x1d   : > { %1590 = vmatprep.subr.bf16.mxu0 %v1742_v14  ;;  %1696 = vmatprep.subr.bf16.mxu1 %v1742_v14 }
  0x20   : > { %1591 = vmatpush3.bf16.msra.mxu0 %v1743_v15  ;;  %1704 = vmatpush3.bf16.msra.mxu1 %v1743_v15 }
  0x21   : > { %1592 = vmatprep.subr.bf16.mxu0 %v1744_v16  ;;  %1697 = vmatprep.subr.bf16.mxu1 %v1744_v16 }
  0x24   : > { %1593 = vmatpush3.bf16.msra.mxu0 %v1745_v17  ;;  %1705 = vmatpush3.bf16.msra.mxu1 %v1745_v17 }
  0x27   : > { %730 = vmatmul.mubr.bf16.vlgmr.msra.gmra.mrb[0].mxu0 %v1746_v18  ;;  %794 = vmatmul.mubr.bf16.vlgmr.msra.gmra.mrb[0].mxu1 %v1749_v19 }
  0x28   : > { %737 = vmatprep.mubr.bf16.mxu0 %v1752_v20  ;;  %801 = vmatprep.mubr.bf16.mxu1 %v1754_v21 }
  0x2f   : > { %738 = vmatmul.mubr.bf16.gmra.mrb[4].mxu0 %v1756_v22  ;;  %802 = vmatmul.mubr.bf16.gmra.mrb[4].mxu1 %v1757_v23 }
  0x30   : > { %745 = vmatprep.mubr.bf16.mxu0 %v1758_v24  ;;  %809 = vmatprep.mubr.bf16.mxu1 %v1760_v25 }
  0x37   : > { %746 = vmatmul.mubr.bf16.gmra.mrb[8].mxu0 %v1762_v26  ;;  %810 = vmatmul.mubr.bf16.gmra.mrb[8].mxu1 %v1763_v27 }
  0x38   : > { %753 = vmatprep.mubr.bf16.mxu0 %v1764_v28  ;;  %817 = vmatprep.mubr.bf16.mxu1 %v1766_v29 }
  0x3f   : > { %754 = vmatmul.mubr.bf16.gmra.mrb[12].mxu0 %v1768_v30  ;;  %818 = vmatmul.mubr.bf16.gmra.mrb[12].mxu1 %v1769_v31 }
  0x40   : > { %761 = vmatprep.mubr.bf16.mxu0 %v1770_v32  ;;  %825 = vmatprep.mubr.bf16.mxu1 %v1772_v33 }
  0x47   : > { %762 = vmatmul.mubr.bf16.gmra.mrb[16].mxu0 %v1774_v34  ;;  %826 = vmatmul.mubr.bf16.gmra.mrb[16].mxu1 %v1775_v35 }
  0x48   : > { %769 = vmatprep.mubr.bf16.mxu0 %v1776_v36  ;;  %833 = vmatprep.mubr.bf16.mxu1 %v1778_v37 }
  0x4f   : > { %770 = vmatmul.mubr.bf16.gmra.mrb[20].mxu0 %v1780_v38  ;;  %834 = vmatmul.mubr.bf16.gmra.mrb[20].mxu1 %v1781_v39 }
  0x50   : > { %777 = vmatprep.mubr.bf16.mxu0 %v1782_v40  ;;  %841 = vmatprep.mubr.bf16.mxu1 %v1784_v41 }
  0x57   : > { %778 = vmatmul.mubr.bf16.gmra.mrb[24].mxu0 %v1786_v42  ;;  %842 = vmatmul.mubr.bf16.gmra.mrb[24].mxu1 %v1787_v43 }
  0x58   : > { %785 = vmatprep.mubr.bf16.mxu0 %v1788_v44  ;;  %849 = vmatprep.mubr.bf16.mxu1 %v1790_v45 }
  0x5f   : > { %786 = vmatmul.mubr.bf16.gmra.mrb[28].mxu0 %v1792_v46  ;;  %850 = vmatmul.mubr.bf16.gmra.mrb[28].mxu1 %v1793_v47 }
  0xfa   : > { %v1594_v48 = vpop.f32.mrb[0].mxu0  ;;  %v1642_v49 = vpop.f32.mrb[0].mxu1 }
  0xfb   : > { %v1595_v50 = vpop.f32.mrb[1].mxu0  ;;  %v1643_v52 = vpop.f32.mrb[1].mxu1 }
  0xfc   : > { %v1596_v53 = vadd.f32 %v1595_v50, %v1594_v48  ;;  %v1644_v54 = vadd.f32 %v1643_v52, %v1642_v49  ;;  %v1597_v55 = vpop.f32.mrb[2].mxu0  ;;  %v1645_v56 = vpop.f32.mrb[2].mxu1 }
  0xfd   : > { %v1598_v58 = vpop.f32.mrb[3].mxu0  ;;  %v1646_v59 = vpop.f32.mrb[3].mxu1 }
  0xfe   : > { %v964_v60 = vmul.f32 %v1596_v53, %v1952_v51  ;;  %v980_v61 = vmul.f32 %v1644_v54, %v1952_v51  ;;  %v1599_v62 = vadd.f32 %v1598_v58, %v1597_v55  ;;  %v1647_v63 = vadd.f32 %v1646_v59, %v1645_v56 }
 0x100   : > { %v1003_v0 = vadd.f32 %v1957_v57, %v964_v60  ;;  %v1019_v1 = vadd.f32 %v1957_v57, %v980_v61  ;;  %v965_v2 = vmul.f32 %v1599_v62, %v1952_v51  ;;  %v981_v3 = vmul.f32 %v1647_v63, %v1952_v51 }
 0x102   : > { %v1004_v4 = vadd.f32 %v1957_v57, %v965_v2  ;;  %v1020_v5 = vadd.f32 %v1957_v57, %v981_v3  ;;  %v1600_v6 = vpop.f32.mrb[4].mxu0  ;;  %v1648_v7 = vpop.f32.mrb[4].mxu1  ;;  %v1035_v8 = vmax.f32 %v1003_v0, 0.0  ;;  %v1051_v9 = vmax.f32 %v1019_v1, 0.0 }
 0x103   : > { %v1601_v10 = vpop.f32.mrb[5].mxu0  ;;  %v1649_v11 = vpop.f32.mrb[5].mxu1 }
 0x104   : > { %v1036_v12 = vmax.f32 %v1004_v4, 0.0  ;;  %v1052_v13 = vmax.f32 %v1020_v5, 0.0  ;;  %v1602_v14 = vadd.f32 %v1601_v10, %v1600_v6  ;;  %v1650_v15 = vadd.f32 %v1649_v11, %v1648_v7  ;;  %v1603_v16 = vpop.f32.mrb[6].mxu0  ;;  %v1651_v17 = vpop.f32.mrb[6].mxu1 }
 0x105   : > { %v1604_v18 = vpop.f32.mrb[7].mxu0  ;;  %v1652_v19 = vpop.f32.mrb[7].mxu1 }
 0x106   : > { %v1486_v20 = vpack.c.bf16 %v1036_v12, %v1035_v8  ;;  %v1526_v21 = vpack.c.bf16 %v1052_v13, %v1051_v9  ;;  %v966_v22 = vmul.f32 %v1602_v14, %v1952_v51  ;;  %v982_v23 = vmul.f32 %v1650_v15, %v1952_v51 }
 0x107   : > { %v1605_v24 = vadd.f32 %v1604_v18, %v1603_v16  ;;  %v1653_v25 = vadd.f32 %v1652_v19, %v1651_v17 }
 0x108   : > { %1487 = vst [vmem:[%s1971_s21] sm:$0xff] %v1486_v20   ;;  %1570 = vst [vmem:[%s1971_s21 + $0x40] sm:$0xff] %v1526_v21   ;;  %v1005_v26 = vadd.f32 %v1957_v57, %v966_v22  ;;  %v1021_v27 = vadd.f32 %v1957_v57, %v982_v23 }
 0x109   : > { %v967_v28 = vmul.f32 %v1605_v24, %v1952_v51  ;;  %v983_v29 = vmul.f32 %v1653_v25, %v1952_v51 }
 0x10a   : > { %v1606_v30 = vpop.f32.mrb[8].mxu0  ;;  %v1654_v31 = vpop.f32.mrb[8].mxu1  ;;  %v1037_v40 = vmax.f32 %v1005_v26, 0.0  ;;  %v1053_v41 = vmax.f32 %v1021_v27, 0.0 }
 0x10b   : > { %v1006_v32 = vadd.f32 %v1957_v57, %v967_v28  ;;  %v1022_v33 = vadd.f32 %v1957_v57, %v983_v29  ;;  %v1607_v34 = vpop.f32.mrb[9].mxu0  ;;  %v1655_v35 = vpop.f32.mrb[9].mxu1 }
 0x10c   : > { %v1608_v36 = vadd.f32 %v1607_v34, %v1606_v30  ;;  %v1656_v37 = vadd.f32 %v1655_v35, %v1654_v31  ;;  %v1609_v38 = vpop.f32.mrb[10].mxu0  ;;  %v1657_v39 = vpop.f32.mrb[10].mxu1 }
 0x10d   : > { %v1038_v42 = vmax.f32 %v1006_v32, 0.0  ;;  %v1054_v43 = vmax.f32 %v1022_v33, 0.0  ;;  %v1610_v44 = vpop.f32.mrb[11].mxu0  ;;  %v1658_v45 = vpop.f32.mrb[11].mxu1 }
 0x10e   : > { %v968_v46 = vmul.f32 %v1608_v36, %v1952_v51  ;;  %v984_v47 = vmul.f32 %v1656_v37, %v1952_v51  ;;  %v1611_v48 = vadd.f32 %v1610_v44, %v1609_v38  ;;  %v1659_v49 = vadd.f32 %v1658_v45, %v1657_v39 }
 0x10f   : > { %v1491_v50 = vpack.c.bf16 %v1038_v42, %v1037_v40  ;;  %v1531_v52 = vpack.c.bf16 %v1054_v43, %v1053_v41 }
 0x110   : > { %v1007_v53 = vadd.f32 %v1957_v57, %v968_v46  ;;  %v1023_v54 = vadd.f32 %v1957_v57, %v984_v47  ;;  %v969_v55 = vmul.f32 %v1611_v48, %v1952_v51  ;;  %v985_v56 = vmul.f32 %v1659_v49, %v1952_v51 }
 0x111   : > { %1563 = vst [vmem:[%s1971_s21 + $0x8] sm:$0xff] %v1491_v50   ;;  %1571 = vst [vmem:[%s1971_s21 + $0x48] sm:$0xff] %v1531_v52  }
 0x112   : > { %v1008_v58 = vadd.f32 %v1957_v57, %v969_v55  ;;  %v1024_v59 = vadd.f32 %v1957_v57, %v985_v56  ;;  %v1612_v60 = vpop.f32.mrb[12].mxu0  ;;  %v1660_v61 = vpop.f32.mrb[12].mxu1  ;;  %v1039_v62 = vmax.f32 %v1007_v53, 0.0  ;;  %v1055_v63 = vmax.f32 %v1023_v54, 0.0 }
 0x113   : > { %v1613_v0 = vpop.f32.mrb[13].mxu0  ;;  %v1661_v1 = vpop.f32.mrb[13].mxu1 }
 0x114   : > { %v1040_v2 = vmax.f32 %v1008_v58, 0.0  ;;  %v1056_v3 = vmax.f32 %v1024_v59, 0.0  ;;  %v1614_v4 = vadd.f32 %v1613_v0, %v1612_v60  ;;  %v1662_v5 = vadd.f32 %v1661_v1, %v1660_v61  ;;  %v1615_v6 = vpop.f32.mrb[14].mxu0  ;;  %v1663_v7 = vpop.f32.mrb[14].mxu1 }
 0x115   : > { %v1616_v8 = vpop.f32.mrb[15].mxu0  ;;  %v1664_v9 = vpop.f32.mrb[15].mxu1 }
 0x116   : > { %v1496_v10 = vpack.c.bf16 %v1040_v2, %v1039_v62  ;;  %v1536_v11 = vpack.c.bf16 %v1056_v3, %v1055_v63  ;;  %v970_v12 = vmul.f32 %v1614_v4, %v1952_v51  ;;  %v986_v13 = vmul.f32 %v1662_v5, %v1952_v51 }
 0x117   : > { %v1617_v14 = vadd.f32 %v1616_v8, %v1615_v6  ;;  %v1665_v15 = vadd.f32 %v1664_v9, %v1663_v7 }
 0x118   : > { %1564 = vst [vmem:[%s1971_s21 + $0x10] sm:$0xff] %v1496_v10   ;;  %1572 = vst [vmem:[%s1971_s21 + $0x50] sm:$0xff] %v1536_v11   ;;  %v1009_v16 = vadd.f32 %v1957_v57, %v970_v12  ;;  %v1025_v17 = vadd.f32 %v1957_v57, %v986_v13 }
 0x119   : > { %v971_v18 = vmul.f32 %v1617_v14, %v1952_v51  ;;  %v987_v19 = vmul.f32 %v1665_v15, %v1952_v51 }
 0x11a   : > { %v1618_v20 = vpop.f32.mrb[16].mxu0  ;;  %v1666_v21 = vpop.f32.mrb[16].mxu1  ;;  %v1041_v30 = vmax.f32 %v1009_v16, 0.0  ;;  %v1057_v31 = vmax.f32 %v1025_v17, 0.0 }
 0x11b   : > { %v1010_v22 = vadd.f32 %v1957_v57, %v971_v18  ;;  %v1026_v23 = vadd.f32 %v1957_v57, %v987_v19  ;;  %v1619_v24 = vpop.f32.mrb[17].mxu0  ;;  %v1667_v25 = vpop.f32.mrb[17].mxu1 }
 0x11c   : > { %v1620_v26 = vadd.f32 %v1619_v24, %v1618_v20  ;;  %v1668_v27 = vadd.f32 %v1667_v25, %v1666_v21  ;;  %v1621_v28 = vpop.f32.mrb[18].mxu0  ;;  %v1669_v29 = vpop.f32.mrb[18].mxu1 }
 0x11d   : > { %v1042_v32 = vmax.f32 %v1010_v22, 0.0  ;;  %v1058_v33 = vmax.f32 %v1026_v23, 0.0  ;;  %v1622_v34 = vpop.f32.mrb[19].mxu0  ;;  %v1670_v35 = vpop.f32.mrb[19].mxu1 }
 0x11e   : > { %v972_v36 = vmul.f32 %v1620_v26, %v1952_v51  ;;  %v988_v37 = vmul.f32 %v1668_v27, %v1952_v51  ;;  %v1623_v38 = vadd.f32 %v1622_v34, %v1621_v28  ;;  %v1671_v39 = vadd.f32 %v1670_v35, %v1669_v29 }
 0x11f   : > { %v1501_v40 = vpack.c.bf16 %v1042_v32, %v1041_v30  ;;  %v1541_v41 = vpack.c.bf16 %v1058_v33, %v1057_v31 }
 0x120   : > { %v1011_v42 = vadd.f32 %v1957_v57, %v972_v36  ;;  %v1027_v43 = vadd.f32 %v1957_v57, %v988_v37  ;;  %v973_v44 = vmul.f32 %v1623_v38, %v1952_v51  ;;  %v989_v45 = vmul.f32 %v1671_v39, %v1952_v51 }
 0x121   : > { %1565 = vst [vmem:[%s1971_s21 + $0x18] sm:$0xff] %v1501_v40   ;;  %1573 = vst [vmem:[%s1971_s21 + $0x58] sm:$0xff] %v1541_v41  }
 0x122   : > { %v1012_v46 = vadd.f32 %v1957_v57, %v973_v44  ;;  %v1028_v47 = vadd.f32 %v1957_v57, %v989_v45  ;;  %v1624_v48 = vpop.f32.mrb[20].mxu0  ;;  %v1672_v49 = vpop.f32.mrb[20].mxu1  ;;  %v1043_v50 = vmax.f32 %v1011_v42, 0.0  ;;  %v1059_v52 = vmax.f32 %v1027_v43, 0.0 }
 0x123   : > { %v1625_v53 = vpop.f32.mrb[21].mxu0  ;;  %v1673_v54 = vpop.f32.mrb[21].mxu1 }
 0x124   : > { %v1044_v55 = vmax.f32 %v1012_v46, 0.0  ;;  %v1060_v56 = vmax.f32 %v1028_v47, 0.0  ;;  %v1626_v58 = vadd.f32 %v1625_v53, %v1624_v48  ;;  %v1674_v59 = vadd.f32 %v1673_v54, %v1672_v49  ;;  %v1627_v60 = vpop.f32.mrb[22].mxu0  ;;  %v1675_v61 = vpop.f32.mrb[22].mxu1 }
 0x125   : > { %v1628_v62 = vpop.f32.mrb[23].mxu0  ;;  %v1676_v63 = vpop.f32.mrb[23].mxu1 }
 0x126   : > { %v1506_v0 = vpack.c.bf16 %v1044_v55, %v1043_v50  ;;  %v1546_v1 = vpack.c.bf16 %v1060_v56, %v1059_v52  ;;  %v974_v2 = vmul.f32 %v1626_v58, %v1952_v51  ;;  %v990_v3 = vmul.f32 %v1674_v59, %v1952_v51 }
 0x127   : > { %v1629_v4 = vadd.f32 %v1628_v62, %v1627_v60  ;;  %v1677_v5 = vadd.f32 %v1676_v63, %v1675_v61 }
 0x128   : > { %1566 = vst [vmem:[%s1971_s21 + $0x20] sm:$0xff] %v1506_v0   ;;  %1574 = vst [vmem:[%s1971_s21 + $0x60] sm:$0xff] %v1546_v1   ;;  %v1013_v6 = vadd.f32 %v1957_v57, %v974_v2  ;;  %v1029_v7 = vadd.f32 %v1957_v57, %v990_v3 }
 0x129   : > { %v975_v8 = vmul.f32 %v1629_v4, %v1952_v51  ;;  %v991_v9 = vmul.f32 %v1677_v5, %v1952_v51 }
 0x12a   : > { %v1630_v10 = vpop.f32.mrb[24].mxu0  ;;  %v1678_v11 = vpop.f32.mrb[24].mxu1  ;;  %v1045_v20 = vmax.f32 %v1013_v6, 0.0  ;;  %v1061_v21 = vmax.f32 %v1029_v7, 0.0 }
 0x12b   : > { %v1014_v12 = vadd.f32 %v1957_v57, %v975_v8  ;;  %v1030_v13 = vadd.f32 %v1957_v57, %v991_v9  ;;  %v1631_v14 = vpop.f32.mrb[25].mxu0  ;;  %v1679_v15 = vpop.f32.mrb[25].mxu1 }
 0x12c   : > { %v1632_v16 = vadd.f32 %v1631_v14, %v1630_v10  ;;  %v1680_v17 = vadd.f32 %v1679_v15, %v1678_v11  ;;  %v1633_v18 = vpop.f32.mrb[26].mxu0  ;;  %v1681_v19 = vpop.f32.mrb[26].mxu1 }
 0x12d   : > { %v1046_v22 = vmax.f32 %v1014_v12, 0.0  ;;  %v1062_v23 = vmax.f32 %v1030_v13, 0.0  ;;  %v1634_v24 = vpop.f32.mrb[27].mxu0  ;;  %v1682_v25 = vpop.f32.mrb[27].mxu1 }
 0x12e   : > { %v976_v26 = vmul.f32 %v1632_v16, %v1952_v51  ;;  %v992_v27 = vmul.f32 %v1680_v17, %v1952_v51  ;;  %v1635_v28 = vadd.f32 %v1634_v24, %v1633_v18  ;;  %v1683_v29 = vadd.f32 %v1682_v25, %v1681_v19 }
 0x12f   : > { %v1511_v30 = vpack.c.bf16 %v1046_v22, %v1045_v20  ;;  %v1551_v31 = vpack.c.bf16 %v1062_v23, %v1061_v21 }
 0x130   : > { %v1015_v32 = vadd.f32 %v1957_v57, %v976_v26  ;;  %v1031_v33 = vadd.f32 %v1957_v57, %v992_v27  ;;  %v977_v34 = vmul.f32 %v1635_v28, %v1952_v51  ;;  %v993_v35 = vmul.f32 %v1683_v29, %v1952_v51 }
 0x131   : > { %1567 = vst [vmem:[%s1971_s21 + $0x28] sm:$0xff] %v1511_v30   ;;  %1575 = vst [vmem:[%s1971_s21 + $0x68] sm:$0xff] %v1551_v31  }
 0x132   : > { %v1016_v36 = vadd.f32 %v1957_v57, %v977_v34  ;;  %v1032_v37 = vadd.f32 %v1957_v57, %v993_v35  ;;  %v1636_v38 = vpop.f32.mrb[28].mxu0  ;;  %v1684_v39 = vpop.f32.mrb[28].mxu1  ;;  %v1047_v40 = vmax.f32 %v1015_v32, 0.0  ;;  %v1063_v41 = vmax.f32 %v1031_v33, 0.0 }
 0x133   : > { %v1637_v42 = vpop.f32.mrb[29].mxu0  ;;  %v1685_v43 = vpop.f32.mrb[29].mxu1 }
 0x134   : > { %v1048_v44 = vmax.f32 %v1016_v36, 0.0  ;;  %v1064_v45 = vmax.f32 %v1032_v37, 0.0  ;;  %v1638_v46 = vadd.f32 %v1637_v42, %v1636_v38  ;;  %v1686_v47 = vadd.f32 %v1685_v43, %v1684_v39  ;;  %v1639_v48 = vpop.f32.mrb[30].mxu0  ;;  %v1687_v49 = vpop.f32.mrb[30].mxu1 }
 0x135   : > { %v1640_v50 = vpop.f32.mrb[31].mxu0  ;;  %v1688_v52 = vpop.f32.mrb[31].mxu1 }
 0x136   : > { %v1516_v53 = vpack.c.bf16 %v1048_v44, %v1047_v40  ;;  %v1556_v54 = vpack.c.bf16 %v1064_v45, %v1063_v41  ;;  %v978_v55 = vmul.f32 %v1638_v46, %v1952_v51  ;;  %v994_v56 = vmul.f32 %v1686_v47, %v1952_v51 }
 0x137   : > { %v1641_v58 = vadd.f32 %v1640_v50, %v1639_v48  ;;  %v1689_v59 = vadd.f32 %v1688_v52, %v1687_v49 }
 0x138   : > { %1568 = vst [vmem:[%s1971_s21 + $0x30] sm:$0xff] %v1516_v53   ;;  %1576 = vst [vmem:[%s1971_s21 + $0x70] sm:$0xff] %v1556_v54   ;;  %v1017_v60 = vadd.f32 %v1957_v57, %v978_v55  ;;  %v1033_v61 = vadd.f32 %v1957_v57, %v994_v56 }
 0x139   : > { %v979_v62 = vmul.f32 %v1641_v58, %v1952_v51  ;;  %v995_v63 = vmul.f32 %v1689_v59, %v1952_v51 }
 0x13a   : > { %v1049_v2 = vmax.f32 %v1017_v60, 0.0  ;;  %v1065_v3 = vmax.f32 %v1033_v61, 0.0 }
 0x13b   : > { %v1018_v0 = vadd.f32 %v1957_v57, %v979_v62  ;;  %v1034_v1 = vadd.f32 %v1957_v57, %v995_v63 }
 0x13d   : > { %v1050_v4 = vmax.f32 %v1018_v0, 0.0  ;;  %v1066_v5 = vmax.f32 %v1034_v1, 0.0 }
 0x13f   : > { %v1521_v6 = vpack.c.bf16 %v1050_v4, %v1049_v2  ;;  %v1561_v7 = vpack.c.bf16 %v1066_v5, %v1065_v3 }
 0x141   : > { %1569 = vst [vmem:[%s1971_s21 + $0x38] sm:$0xff] %v1521_v6   ;;  %1577 = vst [vmem:[%s1971_s21 + $0x78] sm:$0xff] %v1561_v7  }
 0x142 PF: > { %s14_s17 = sadd.s32 1, %s1816_s17   ;;  %s2059_s15 = smov %s1812_s16 }
 0x143   : > { %p11_p5 = scmp.ge.s32.totalorder %s14_s17, 10   ;;  %s2060_s16 = smov %s2062_s18 }
 0x145   :  { %13 = sbr.rel (!%p11_p5) target bundleno = 2 (0x2), region = 83 }

// kernel: _lambda_.19
= control target key start
LH: loop header
LB: loop body
LE: loop exit
PB: predicated region body
PF: predicated region fallthrough
CT: control target
= control target key end

     0   :  { %s790_s0 = inlined_call_operand.vmem [shape: bf16[9,32,1024], index: 0, kind: input, shape index: {}]   ;;  %s791_s1 = inlined_call_operand.vmem [shape: bf16[32,1024], index: 1, kind: output, shape index: {}]  }
   0x1   :  { %v8_v0 = vld [vmem:[%s790_s0] sm:$0xff]  ;;  %v9_v6 = vld [vmem:[%s790_s0 + $0x8] sm:$0xff]  ;;  %v10_v15 = vld [vmem:[%s790_s0 + $0x10] sm:$0xff] }
   0x2   :  { %v24_v1 = vld [vmem:[%s790_s0 + $0x80] sm:$0xff]  ;;  %v25_v7 = vld [vmem:[%s790_s0 + $0x88] sm:$0xff]  ;;  %v26_v16 = vld [vmem:[%s790_s0 + $0x90] sm:$0xff] }
   0x3   :  { %v40_v2 = vld [vmem:[%s790_s0 + $0x100] sm:$0xff]  ;;  %v152_v3 = vmax.bf16 %v24_v1, %v8_v0  ;;  %v41_v8 = vld [vmem:[%s790_s0 + $0x108] sm:$0xff]  ;;  %v160_v10 = vmax.bf16 %v25_v7, %v9_v6  ;;  %v42_v17 = vld [vmem:[%s790_s0 + $0x110] sm:$0xff]  ;;  %v168_v20 = vmax.bf16 %v26_v16, %v10_v15 }
   0x4   :  { %v56_v4 = vld [vmem:[%s790_s0 + $0x180] sm:$0xff]  ;;  %v57_v13 = vld [vmem:[%s790_s0 + $0x188] sm:$0xff]  ;;  %v58_v24 = vld [vmem:[%s790_s0 + $0x190] sm:$0xff] }
   0x5   :  { %v153_v5 = vmax.bf16 %v152_v3, %v40_v2  ;;  %v72_v9 = vld [vmem:[%s790_s0 + $0x200] sm:$0xff]  ;;  %v161_v14 = vmax.bf16 %v160_v10, %v41_v8  ;;  %v73_v19 = vld [vmem:[%s790_s0 + $0x208] sm:$0xff]  ;;  %v169_v26 = vmax.bf16 %v168_v20, %v42_v17  ;;  %v11_v27 = vld [vmem:[%s790_s0 + $0x18] sm:$0xff] }
   0x6   :  { %v88_v11 = vld [vmem:[%s790_s0 + $0x280] sm:$0xff]  ;;  %v89_v22 = vld [vmem:[%s790_s0 + $0x288] sm:$0xff]  ;;  %v27_v28 = vld [vmem:[%s790_s0 + $0x98] sm:$0xff] }
   0x7   :  { %v154_v12 = vmax.bf16 %v153_v5, %v56_v4  ;;  %v104_v21 = vld [vmem:[%s790_s0 + $0x300] sm:$0xff]  ;;  %v162_v23 = vmax.bf16 %v161_v14, %v57_v13  ;;  %v43_v29 = vld [vmem:[%s790_s0 + $0x118] sm:$0xff]  ;;  %v74_v33 = vld [vmem:[%s790_s0 + $0x210] sm:$0xff]  ;;  %v176_v34 = vmax.bf16 %v27_v28, %v11_v27  ;;  %v170_v38 = vmax.bf16 %v169_v26, %v58_v24 }
   0x8   :  { %v120_v30 = vld [vmem:[%s790_s0 + $0x380] sm:$0xff]  ;;  %v105_v36 = vld [vmem:[%s790_s0 + $0x308] sm:$0xff]  ;;  %v90_v37 = vld [vmem:[%s790_s0 + $0x290] sm:$0xff] }
   0x9   :  { %v155_v18 = vmax.bf16 %v154_v12, %v72_v9  ;;  %v136_v31 = vld [vmem:[%s790_s0 + $0x400] sm:$0xff]  ;;  %v163_v32 = vmax.bf16 %v162_v23, %v73_v19  ;;  %v59_v39 = vld [vmem:[%s790_s0 + $0x198] sm:$0xff]  ;;  %v177_v41 = vmax.bf16 %v176_v34, %v43_v29  ;;  %v121_v46 = vld [vmem:[%s790_s0 + $0x388] sm:$0xff]  ;;  %v171_v48 = vmax.bf16 %v170_v38, %v74_v33 }
   0xa   :  { %v12_v42 = vld [vmem:[%s790_s0 + $0x20] sm:$0xff]  ;;  %v137_v47 = vld [vmem:[%s790_s0 + $0x408] sm:$0xff]  ;;  %v75_v49 = vld [vmem:[%s790_s0 + $0x218] sm:$0xff] }
   0xb   :  { %v156_v25 = vmax.bf16 %v155_v18, %v88_v11  ;;  %v164_v40 = vmax.bf16 %v163_v32, %v89_v22  ;;  %v28_v43 = vld [vmem:[%s790_s0 + $0xa0] sm:$0xff]  ;;  %v106_v52 = vld [vmem:[%s790_s0 + $0x310] sm:$0xff]  ;;  %v91_v53 = vld [vmem:[%s790_s0 + $0x298] sm:$0xff]  ;;  %v178_v54 = vmax.bf16 %v177_v41, %v59_v39  ;;  %v172_v57 = vmax.bf16 %v171_v48, %v90_v37 }
   0xc   :  { %v44_v44 = vld [vmem:[%s790_s0 + $0x120] sm:$0xff]  ;;  %v184_v50 = vmax.bf16 %v28_v43, %v12_v42  ;;  %v13_v59 = vld [vmem:[%s790_s0 + $0x28] sm:$0xff]  ;;  %v122_v63 = vld [vmem:[%s790_s0 + $0x390] sm:$0xff] }
   0xd   :  { %v157_v35 = vmax.bf16 %v156_v25, %v104_v21  ;;  %v165_v51 = vmax.bf16 %v164_v40, %v105_v36  ;;  %v60_v55 = vld [vmem:[%s790_s0 + $0x1a0] sm:$0xff]  ;;  %v29_v60 = vld [vmem:[%s790_s0 + $0xa8] sm:$0xff]  ;;  %v138_v0 = vld [vmem:[%s790_s0 + $0x410] sm:$0xff]  ;;  %v179_v1 = vmax.bf16 %v178_v54, %v75_v49  ;;  %v173_v4 = vmax.bf16 %v172_v57, %v106_v52 }
   0xe   :  { %v185_v58 = vmax.bf16 %v184_v50, %v44_v44  ;;  %v45_v61 = vld [vmem:[%s790_s0 + $0x128] sm:$0xff]  ;;  %v76_v2 = vld [vmem:[%s790_s0 + $0x220] sm:$0xff]  ;;  %v192_v3 = vmax.bf16 %v29_v60, %v13_v59  ;;  %v107_v5 = vld [vmem:[%s790_s0 + $0x318] sm:$0xff] }
   0xf   :  { %v158_v45 = vmax.bf16 %v157_v35, %v120_v30  ;;  %v166_v62 = vmax.bf16 %v165_v51, %v121_v46  ;;  %v92_v6 = vld [vmem:[%s790_s0 + $0x2a0] sm:$0xff]  ;;  %v61_v8 = vld [vmem:[%s790_s0 + $0x1a8] sm:$0xff]  ;;  %v180_v10 = vmax.bf16 %v179_v1, %v91_v53  ;;  %v14_v12 = vld [vmem:[%s790_s0 + $0x30] sm:$0xff]  ;;  %v174_v15 = vmax.bf16 %v173_v4, %v122_v63 }
  0x10   :  { %v186_v7 = vmax.bf16 %v185_v58, %v60_v55  ;;  %v193_v11 = vmax.bf16 %v192_v3, %v45_v61  ;;  %v30_v13 = vld [vmem:[%s790_s0 + $0xb0] sm:$0xff]  ;;  %v123_v16 = vld [vmem:[%s790_s0 + $0x398] sm:$0xff]  ;;  %v77_v19 = vld [vmem:[%s790_s0 + $0x228] sm:$0xff] }
  0x11   :  { %v159_v56 = vmax.bf16 %v158_v45, %v136_v31  ;;  %v167_v9 = vmax.bf16 %v166_v62, %v137_v47  ;;  %v46_v14 = vld [vmem:[%s790_s0 + $0x130] sm:$0xff]  ;;  %v139_v17 = vld [vmem:[%s790_s0 + $0x418] sm:$0xff]  ;;  %v200_v20 = vmax.bf16 %v30_v13, %v14_v12  ;;  %v181_v21 = vmax.bf16 %v180_v10, %v107_v5  ;;  %v108_v22 = vld [vmem:[%s790_s0 + $0x320] sm:$0xff] }
  0x12   :  { %v187_v18 = vmax.bf16 %v186_v7, %v76_v2  ;;  %v93_v23 = vld [vmem:[%s790_s0 + $0x2a8] sm:$0xff]  ;;  %v194_v24 = vmax.bf16 %v193_v11, %v61_v8  ;;  %v62_v25 = vld [vmem:[%s790_s0 + $0x1b0] sm:$0xff]  ;;  %v175_v26 = vmax.bf16 %v174_v15, %v138_v0  ;;  %v15_v29 = vld [vmem:[%s790_s0 + $0x38] sm:$0xff] }
  0x13   :  { %280 = vst [vmem:[%s791_s1] sm:$0xff] %v159_v56  ;;  %281 = vst [vmem:[%s791_s1 + $0x8] sm:$0xff] %v167_v9  ;;  %v201_v28 = vmax.bf16 %v200_v20, %v46_v14  ;;  %v31_v30 = vld [vmem:[%s790_s0 + $0xb8] sm:$0xff]  ;;  %v182_v32 = vmax.bf16 %v181_v21, %v123_v16  ;;  %v124_v33 = vld [vmem:[%s790_s0 + $0x3a0] sm:$0xff] }
  0x14   :  { %v188_v27 = vmax.bf16 %v187_v18, %v92_v6  ;;  %v47_v31 = vld [vmem:[%s790_s0 + $0x138] sm:$0xff]  ;;  %v140_v34 = vld [vmem:[%s790_s0 + $0x420] sm:$0xff]  ;;  %v195_v35 = vmax.bf16 %v194_v24, %v77_v19  ;;  %v78_v36 = vld [vmem:[%s790_s0 + $0x230] sm:$0xff]  ;;  %v208_v37 = vmax.bf16 %v31_v30, %v15_v29  ;;  %282 = vst [vmem:[%s791_s1 + $0x10] sm:$0xff] %v175_v26 }
  0x15   :  { %v109_v39 = vld [vmem:[%s790_s0 + $0x328] sm:$0xff]  ;;  %v94_v40 = vld [vmem:[%s790_s0 + $0x2b0] sm:$0xff]  ;;  %v202_v41 = vmax.bf16 %v201_v28, %v62_v25  ;;  %v63_v42 = vld [vmem:[%s790_s0 + $0x1b8] sm:$0xff]  ;;  %v183_v43 = vmax.bf16 %v182_v32, %v139_v17 }
  0x16   :  { %v189_v38 = vmax.bf16 %v188_v27, %v108_v22  ;;  %v196_v44 = vmax.bf16 %v195_v35, %v93_v23  ;;  %v209_v45 = vmax.bf16 %v208_v37, %v47_v31  ;;  %v16_v46 = vld [vmem:[%s790_s0 + $0x40] sm:$0xff]  ;;  %v125_v50 = vld [vmem:[%s790_s0 + $0x3a8] sm:$0xff]  ;;  %v79_v53 = vld [vmem:[%s790_s0 + $0x238] sm:$0xff] }
  0x17   :  { %v32_v47 = vld [vmem:[%s790_s0 + $0xc0] sm:$0xff]  ;;  %v141_v51 = vld [vmem:[%s790_s0 + $0x428] sm:$0xff]  ;;  %v203_v52 = vmax.bf16 %v202_v41, %v78_v36  ;;  %283 = vst [vmem:[%s791_s1 + $0x18] sm:$0xff] %v183_v43  ;;  %v110_v56 = vld [vmem:[%s790_s0 + $0x330] sm:$0xff] }
  0x18   :  { %v48_v48 = vld [vmem:[%s790_s0 + $0x140] sm:$0xff]  ;;  %v190_v49 = vmax.bf16 %v189_v38, %v124_v33  ;;  %v216_v54 = vmax.bf16 %v32_v47, %v16_v46  ;;  %v197_v55 = vmax.bf16 %v196_v44, %v109_v39  ;;  %v95_v57 = vld [vmem:[%s790_s0 + $0x2b8] sm:$0xff]  ;;  %v210_v58 = vmax.bf16 %v209_v45, %v63_v42  ;;  %v17_v63 = vld [vmem:[%s790_s0 + $0x48] sm:$0xff] }
  0x19   :  { %v64_v59 = vld [vmem:[%s790_s0 + $0x1c0] sm:$0xff]  ;;  %v204_v61 = vmax.bf16 %v203_v52, %v94_v40  ;;  %v33_v0 = vld [vmem:[%s790_s0 + $0xc8] sm:$0xff]  ;;  %v126_v3 = vld [vmem:[%s790_s0 + $0x3b0] sm:$0xff] }
  0x1a   :  { %v191_v60 = vmax.bf16 %v190_v49, %v140_v34  ;;  %v217_v62 = vmax.bf16 %v216_v54, %v48_v48  ;;  %v49_v1 = vld [vmem:[%s790_s0 + $0x148] sm:$0xff]  ;;  %v198_v2 = vmax.bf16 %v197_v55, %v125_v50  ;;  %v142_v4 = vld [vmem:[%s790_s0 + $0x430] sm:$0xff]  ;;  %v211_v5 = vmax.bf16 %v210_v58, %v79_v53  ;;  %v80_v6 = vld [vmem:[%s790_s0 + $0x240] sm:$0xff] }
  0x1b   :  { %v224_v7 = vmax.bf16 %v33_v0, %v17_v63  ;;  %v205_v8 = vmax.bf16 %v204_v61, %v110_v56  ;;  %v111_v9 = vld [vmem:[%s790_s0 + $0x338] sm:$0xff]  ;;  %v96_v10 = vld [vmem:[%s790_s0 + $0x2c0] sm:$0xff]  ;;  %v65_v12 = vld [vmem:[%s790_s0 + $0x1c8] sm:$0xff] }
  0x1c   :  { %284 = vst [vmem:[%s791_s1 + $0x20] sm:$0xff] %v191_v60  ;;  %v218_v11 = vmax.bf16 %v217_v62, %v64_v59  ;;  %v199_v13 = vmax.bf16 %v198_v2, %v141_v51  ;;  %v212_v14 = vmax.bf16 %v211_v5, %v95_v57  ;;  %v18_v16 = vld [vmem:[%s790_s0 + $0x50] sm:$0xff]  ;;  %v127_v20 = vld [vmem:[%s790_s0 + $0x3b8] sm:$0xff]  ;;  %v81_v23 = vld [vmem:[%s790_s0 + $0x248] sm:$0xff] }
  0x1d   :  { %v225_v15 = vmax.bf16 %v224_v7, %v49_v1  ;;  %v34_v17 = vld [vmem:[%s790_s0 + $0xd0] sm:$0xff]  ;;  %v206_v19 = vmax.bf16 %v205_v8, %v126_v3  ;;  %v143_v21 = vld [vmem:[%s790_s0 + $0x438] sm:$0xff]  ;;  %v112_v26 = vld [vmem:[%s790_s0 + $0x340] sm:$0xff] }
  0x1e   :  { %v50_v18 = vld [vmem:[%s790_s0 + $0x150] sm:$0xff]  ;;  %v219_v22 = vmax.bf16 %v218_v11, %v80_v6  ;;  %v232_v24 = vmax.bf16 %v34_v17, %v18_v16  ;;  %285 = vst [vmem:[%s791_s1 + $0x28] sm:$0xff] %v199_v13  ;;  %v213_v25 = vmax.bf16 %v212_v14, %v111_v9  ;;  %v97_v27 = vld [vmem:[%s790_s0 + $0x2c8] sm:$0xff]  ;;  %v19_v33 = vld [vmem:[%s790_s0 + $0x58] sm:$0xff] }
  0x1f   :  { %v226_v28 = vmax.bf16 %v225_v15, %v65_v12  ;;  %v66_v29 = vld [vmem:[%s790_s0 + $0x1d0] sm:$0xff]  ;;  %v207_v30 = vmax.bf16 %v206_v19, %v142_v4  ;;  %v35_v34 = vld [vmem:[%s790_s0 + $0xd8] sm:$0xff]  ;;  %v128_v37 = vld [vmem:[%s790_s0 + $0x3c0] sm:$0xff] }
  0x20   :  { %v220_v31 = vmax.bf16 %v219_v22, %v96_v10  ;;  %v233_v32 = vmax.bf16 %v232_v24, %v50_v18  ;;  %v51_v35 = vld [vmem:[%s790_s0 + $0x158] sm:$0xff]  ;;  %v214_v36 = vmax.bf16 %v213_v25, %v127_v20  ;;  %v144_v38 = vld [vmem:[%s790_s0 + $0x440] sm:$0xff]  ;;  %v82_v40 = vld [vmem:[%s790_s0 + $0x250] sm:$0xff]  ;;  %v240_v41 = vmax.bf16 %v35_v34, %v19_v33 }
  0x21   :  { %v227_v39 = vmax.bf16 %v226_v28, %v81_v23  ;;  %286 = vst [vmem:[%s791_s1 + $0x30] sm:$0xff] %v207_v30  ;;  %v113_v43 = vld [vmem:[%s790_s0 + $0x348] sm:$0xff]  ;;  %v98_v44 = vld [vmem:[%s790_s0 + $0x2d0] sm:$0xff]  ;;  %v67_v46 = vld [vmem:[%s790_s0 + $0x1d8] sm:$0xff] }
  0x22   :  { %v221_v42 = vmax.bf16 %v220_v31, %v112_v26  ;;  %v234_v45 = vmax.bf16 %v233_v32, %v66_v29  ;;  %v215_v47 = vmax.bf16 %v214_v36, %v143_v21  ;;  %v241_v49 = vmax.bf16 %v240_v41, %v51_v35  ;;  %v20_v50 = vld [vmem:[%s790_s0 + $0x60] sm:$0xff]  ;;  %v129_v54 = vld [vmem:[%s790_s0 + $0x3c8] sm:$0xff]  ;;  %v83_v57 = vld [vmem:[%s790_s0 + $0x258] sm:$0xff] }
  0x23   :  { %v228_v48 = vmax.bf16 %v227_v39, %v97_v27  ;;  %v36_v51 = vld [vmem:[%s790_s0 + $0xe0] sm:$0xff]  ;;  %v145_v55 = vld [vmem:[%s790_s0 + $0x448] sm:$0xff]  ;;  %v114_v60 = vld [vmem:[%s790_s0 + $0x350] sm:$0xff] }
  0x24   :  { %v52_v52 = vld [vmem:[%s790_s0 + $0x160] sm:$0xff]  ;;  %v222_v53 = vmax.bf16 %v221_v42, %v128_v37  ;;  %v235_v56 = vmax.bf16 %v234_v45, %v82_v40  ;;  %v248_v58 = vmax.bf16 %v36_v51, %v20_v50  ;;  %287 = vst [vmem:[%s791_s1 + $0x38] sm:$0xff] %v215_v47  ;;  %v99_v61 = vld [vmem:[%s790_s0 + $0x2d8] sm:$0xff]  ;;  %v242_v62 = vmax.bf16 %v241_v49, %v67_v46  ;;  %v21_v3 = vld [vmem:[%s790_s0 + $0x68] sm:$0xff] }
  0x25   :  { %v229_v59 = vmax.bf16 %v228_v48, %v113_v43  ;;  %v68_v63 = vld [vmem:[%s790_s0 + $0x1e0] sm:$0xff]  ;;  %v37_v4 = vld [vmem:[%s790_s0 + $0xe8] sm:$0xff]  ;;  %v130_v7 = vld [vmem:[%s790_s0 + $0x3d0] sm:$0xff] }
  0x26   :  { %v223_v0 = vmax.bf16 %v222_v53, %v144_v38  ;;  %v236_v1 = vmax.bf16 %v235_v56, %v98_v44  ;;  %v249_v2 = vmax.bf16 %v248_v58, %v52_v52  ;;  %v53_v5 = vld [vmem:[%s790_s0 + $0x168] sm:$0xff]  ;;  %v146_v8 = vld [vmem:[%s790_s0 + $0x450] sm:$0xff]  ;;  %v243_v9 = vmax.bf16 %v242_v62, %v83_v57  ;;  %v84_v10 = vld [vmem:[%s790_s0 + $0x260] sm:$0xff] }
  0x27   :  { %v230_v6 = vmax.bf16 %v229_v59, %v129_v54  ;;  %v256_v11 = vmax.bf16 %v37_v4, %v21_v3  ;;  %v115_v13 = vld [vmem:[%s790_s0 + $0x358] sm:$0xff]  ;;  %v100_v14 = vld [vmem:[%s790_s0 + $0x2e0] sm:$0xff]  ;;  %v69_v16 = vld [vmem:[%s790_s0 + $0x1e8] sm:$0xff] }
  0x28   :  { %288 = vst [vmem:[%s791_s1 + $0x40] sm:$0xff] %v223_v0  ;;  %v237_v12 = vmax.bf16 %v236_v1, %v114_v60  ;;  %v250_v15 = vmax.bf16 %v249_v2, %v68_v63  ;;  %v244_v18 = vmax.bf16 %v243_v9, %v99_v61  ;;  %v22_v20 = vld [vmem:[%s790_s0 + $0x70] sm:$0xff]  ;;  %v131_v24 = vld [vmem:[%s790_s0 + $0x3d8] sm:$0xff]  ;;  %v85_v27 = vld [vmem:[%s790_s0 + $0x268] sm:$0xff] }
  0x29   :  { %v231_v17 = vmax.bf16 %v230_v6, %v145_v55  ;;  %v257_v19 = vmax.bf16 %v256_v11, %v53_v5  ;;  %v38_v21 = vld [vmem:[%s790_s0 + $0xf0] sm:$0xff]  ;;  %v147_v25 = vld [vmem:[%s790_s0 + $0x458] sm:$0xff]  ;;  %v116_v30 = vld [vmem:[%s790_s0 + $0x360] sm:$0xff] }
  0x2a   :  { %v54_v22 = vld [vmem:[%s790_s0 + $0x170] sm:$0xff]  ;;  %v238_v23 = vmax.bf16 %v237_v12, %v130_v7  ;;  %v251_v26 = vmax.bf16 %v250_v15, %v84_v10  ;;  %v264_v28 = vmax.bf16 %v38_v21, %v22_v20  ;;  %v245_v29 = vmax.bf16 %v244_v18, %v115_v13  ;;  %v101_v31 = vld [vmem:[%s790_s0 + $0x2e8] sm:$0xff]  ;;  %v23_v37 = vld [vmem:[%s790_s0 + $0x78] sm:$0xff] }
  0x2b   :  { %289 = vst [vmem:[%s791_s1 + $0x48] sm:$0xff] %v231_v17  ;;  %v258_v32 = vmax.bf16 %v257_v19, %v69_v16  ;;  %v70_v33 = vld [vmem:[%s790_s0 + $0x1f0] sm:$0xff]  ;;  %v39_v38 = vld [vmem:[%s790_s0 + $0xf8] sm:$0xff]  ;;  %v132_v41 = vld [vmem:[%s790_s0 + $0x3e0] sm:$0xff] }
  0x2c   :  { %v239_v34 = vmax.bf16 %v238_v23, %v146_v8  ;;  %v252_v35 = vmax.bf16 %v251_v26, %v100_v14  ;;  %v265_v36 = vmax.bf16 %v264_v28, %v54_v22  ;;  %v55_v39 = vld [vmem:[%s790_s0 + $0x178] sm:$0xff]  ;;  %v246_v40 = vmax.bf16 %v245_v29, %v131_v24  ;;  %v86_v43 = vld [vmem:[%s790_s0 + $0x270] sm:$0xff]  ;;  %v117_v46 = vld [vmem:[%s790_s0 + $0x368] sm:$0xff] }
  0x2d   :  { %v259_v42 = vmax.bf16 %v258_v32, %v85_v27  ;;  %v272_v44 = vmax.bf16 %v39_v38, %v23_v37  ;;  %v71_v48 = vld [vmem:[%s790_s0 + $0x1f8] sm:$0xff]  ;;  %v148_v50 = vld [vmem:[%s790_s0 + $0x460] sm:$0xff]  ;;  %v102_v52 = vld [vmem:[%s790_s0 + $0x2f0] sm:$0xff] }
  0x2e   :  { %290 = vst [vmem:[%s791_s1 + $0x50] sm:$0xff] %v239_v34  ;;  %v253_v45 = vmax.bf16 %v252_v35, %v116_v30  ;;  %v266_v47 = vmax.bf16 %v265_v36, %v70_v33  ;;  %v247_v49 = vmax.bf16 %v246_v40, %v147_v25  ;;  %v133_v55 = vld [vmem:[%s790_s0 + $0x3e8] sm:$0xff]  ;;  %v87_v57 = vld [vmem:[%s790_s0 + $0x278] sm:$0xff]  ;;  %v118_v59 = vld [vmem:[%s790_s0 + $0x370] sm:$0xff] }
  0x2f   :  { %v260_v51 = vmax.bf16 %v259_v42, %v101_v31  ;;  %v273_v53 = vmax.bf16 %v272_v44, %v55_v39  ;;  %v149_v62 = vld [vmem:[%s790_s0 + $0x468] sm:$0xff]  ;;  %v103_v0 = vld [vmem:[%s790_s0 + $0x2f8] sm:$0xff]  ;;  %v134_v2 = vld [vmem:[%s790_s0 + $0x3f0] sm:$0xff] }
  0x30   :  { %v254_v54 = vmax.bf16 %v253_v45, %v132_v41  ;;  %v267_v56 = vmax.bf16 %v266_v47, %v86_v43  ;;  %291 = vst [vmem:[%s791_s1 + $0x58] sm:$0xff] %v247_v49  ;;  %v119_v5 = vld [vmem:[%s790_s0 + $0x378] sm:$0xff]  ;;  %v150_v7 = vld [vmem:[%s790_s0 + $0x470] sm:$0xff] }
  0x31   :  { %v261_v58 = vmax.bf16 %v260_v51, %v117_v46  ;;  %v274_v60 = vmax.bf16 %v273_v53, %v71_v48  ;;  %v135_v10 = vld [vmem:[%s790_s0 + $0x3f8] sm:$0xff] }
  0x32   :  { %v255_v61 = vmax.bf16 %v254_v54, %v148_v50  ;;  %v268_v63 = vmax.bf16 %v267_v56, %v102_v52  ;;  %v151_v13 = vld [vmem:[%s790_s0 + $0x478] sm:$0xff] }
  0x33   :  { %v262_v1 = vmax.bf16 %v261_v58, %v133_v55  ;;  %v275_v3 = vmax.bf16 %v274_v60, %v87_v57 }
  0x34   :  { %292 = vst [vmem:[%s791_s1 + $0x60] sm:$0xff] %v255_v61  ;;  %v269_v4 = vmax.bf16 %v268_v63, %v118_v59 }
  0x35   :  { %v263_v6 = vmax.bf16 %v262_v1, %v149_v62  ;;  %v276_v8 = vmax.bf16 %v275_v3, %v103_v0 }
  0x36   :  { %v270_v9 = vmax.bf16 %v269_v4, %v134_v2 }
  0x37   :  { %293 = vst [vmem:[%s791_s1 + $0x68] sm:$0xff] %v263_v6  ;;  %v277_v11 = vmax.bf16 %v276_v8, %v119_v5 }
  0x38   :  { %v271_v12 = vmax.bf16 %v270_v9, %v150_v7 }
  0x39   :  { %v278_v14 = vmax.bf16 %v277_v11, %v135_v10 }
  0x3a   :  { %294 = vst [vmem:[%s791_s1 + $0x70] sm:$0xff] %v271_v12 }
  0x3b   :  { %v279_v15 = vmax.bf16 %v278_v14, %v151_v13 }
  0x3d   :  { %295 = vst [vmem:[%s791_s1 + $0x78] sm:$0xff] %v279_v15 }

// kernel: _lambda_.20
= control target key start
LH: loop header
LB: loop body
LE: loop exit
PB: predicated region body
PF: predicated region fallthrough
CT: control target
= control target key end

     0   :  { %s1835_s15 = smov 0   ;;  %s1837_s16 = smov 0   ;;  %s2117_s0 = inlined_call_operand.vmem [shape: bf16[512,640], index: 0, kind: input, shape index: {}]   ;;  %s2118_s1 = inlined_call_operand.vmem [shape: bf16[640,128], index: 1, kind: input, shape index: {}]   ;;  %s2119_s2 = inlined_call_operand.vmem [shape: f32[1,128], index: 2, kind: input, shape index: {}]   ;;  %s2120_s3 = inlined_call_operand.vmem [shape: f32[1,128], index: 3, kind: input, shape index: {}]   ;;  %s2121_s4 = inlined_call_operand.vmem [shape: bf16[512,128], index: 4, kind: output, shape index: {}]  }
   0x1   :  { %s1839_s17 = smov 0   ;;  %s1841_s18 = smov 0  }
   0x2   :  { %s1843_s19 = smov 0   ;;  %s1845_s20 = smov 0  }
   0x3   :  { %s1847_s21 = smov 0  }
   0x4 LB: > { %s26_s22 = sadd.s32 1, %s1799_s19  ;;  %s33_s23 = sadd.s32 1, %s1803_s20  ;;  %s1807_s21 = sphi %s1847_s21, %s14_s21   ;;  %s1803_s20 = sphi %s1845_s20, %s2127_s20   ;;  %s1799_s19 = sphi %s1843_s19, %s2126_s19   ;;  %s1795_s18 = sphi %s1841_s18, %s2125_s18   ;;  %s1791_s17 = sphi %s1839_s17, %s2124_s17   ;;  %s1787_s16 = sphi %s1837_s16, %s2123_s16   ;;  %s1783_s15 = sphi %s1835_s15, %s2122_s15  }
   0x5   : > { %p27_p0 = scmp.ge.s32.totalorder %s26_s22, 5  ;;  %p49_p1 = scmp.ne.s32.totalorder %s1787_s16, %s1783_s15 }
   0x6   : > { %p50_p2 = scmp.eq.s32.totalorder %s1807_s21, 0  ;;  %s42_s27 = sadd.s32 1, %s1787_s16 }
   0x7   : > { %s2129_s22 = smov (%p27_p0, %s26_s22), 0  ;;  %s2131_s23 = smov (!%p27_p0, %s33_s23), %s1803_s20 }
   0x8   : > { %p51_p3 = por %p50_p2, %p49_p1  ;;  %p35_p4 = scmp.ge.s32.totalorder %s2131_s23, 2 }
   0x9   : > { %s38_s24 = ssub.s32 %s1799_s19, %s2129_s22  ;;  %p1383_p6 = scmp.ge.s32.totalorder %s1807_s21, 10 }
   0xa   : > { %s2133_s23 = smov (%p35_p4, %s2131_s23), 0 }
   0xb   : > { %s37_s25 = ssub.s32 %s1803_s20, %s2133_s23  ;;  %195 = sbr.rel (%p1383_p6) target bundleno = 46 (0x2e), region = 24 }
   0xc   : > { %s39_s26 = sor.u32 %s38_s24, %s37_s25 }
   0xd   : > { %p40_p5 = scmp.eq.s32.totalorder %s39_s26, 0 }
   0xf   : > { %s1886_s28 = scalar_select %p40_p5, %s1787_s16, %s42_s27  }
  0x12   : > { %198 = sbr.rel (!%p51_p3) target bundleno = 46 (0x2e), region = 28  ;;  %s200_s29 = sand.u32 (%p51_p3), 1, %s1787_s16  }
  0x13   : > { %s1671_s30 = smul.u32 (%p51_p3), 160, %s1803_s20  ;;  %s1384_s5 = sshll.u32 (%p51_p3), %s200_s29, 7 }
  0x14   : > { %s1900_s11 = scalar_lea.vmem (%p51_p3), [#allocation3], %s1384_s5 }
  0x15   : > { %s205_s6 = sadd.s32 (%p51_p3), %s1799_s19, %s1671_s30 }
  0x16   : > { %s1387_s7 = sshll.u32 (%p51_p3), %s205_s6, 2 }
  0x17   : > { %s1895_s10 = scalar_lea.vmem (%p51_p3), %s2117_s0, %s1387_s7 }
  0x18   : > { %v223_v0 = vld [vmem:[%s1895_s10] sm:$0xf] (%p51_p3)  ;;  %v225_v1 = vld [vmem:[%s1895_s10 + $0x14] sm:$0xf] (%p51_p3)  ;;  %v227_v2 = vld [vmem:[%s1895_s10 + $0x28] sm:$0xf] (%p51_p3) }
  0x19   : > { %224 = vst [vmem:[%s1900_s11] sm:$0xf] %v223_v0  ;;  %226 = vst [vmem:[%s1900_s11 + $0x4] sm:$0xf] %v225_v1  ;;  %v229_v3 = vld [vmem:[%s1895_s10 + $0x3c] sm:$0xf] }
  0x1a   : > { %228 = vst [vmem:[%s1900_s11 + $0x8] sm:$0xf] %v227_v2  ;;  %v231_v4 = vld [vmem:[%s1895_s10 + $0x50] sm:$0xf]  ;;  %v233_v5 = vld [vmem:[%s1895_s10 + $0x64] sm:$0xf] }
  0x1b   : > { %230 = vst [vmem:[%s1900_s11 + $0xc] sm:$0xf] %v229_v3  ;;  %232 = vst [vmem:[%s1900_s11 + $0x10] sm:$0xf] %v231_v4  ;;  %v235_v6 = vld [vmem:[%s1895_s10 + $0x78] sm:$0xf] }
  0x1c   : > { %234 = vst [vmem:[%s1900_s11 + $0x14] sm:$0xf] %v233_v5  ;;  %v237_v7 = vld [vmem:[%s1895_s10 + $0x8c] sm:$0xf]  ;;  %v239_v8 = vld [vmem:[%s1895_s10 + $0xa0] sm:$0xf] }
  0x1d   : > { %236 = vst [vmem:[%s1900_s11 + $0x18] sm:$0xf] %v235_v6  ;;  %238 = vst [vmem:[%s1900_s11 + $0x1c] sm:$0xf] %v237_v7  ;;  %v241_v9 = vld [vmem:[%s1895_s10 + $0xb4] sm:$0xf] }
  0x1e   : > { %240 = vst [vmem:[%s1900_s11 + $0x20] sm:$0xf] %v239_v8  ;;  %v243_v10 = vld [vmem:[%s1895_s10 + $0xc8] sm:$0xf]  ;;  %v245_v11 = vld [vmem:[%s1895_s10 + $0xdc] sm:$0xf] }
  0x1f   : > { %242 = vst [vmem:[%s1900_s11 + $0x24] sm:$0xf] %v241_v9  ;;  %244 = vst [vmem:[%s1900_s11 + $0x28] sm:$0xf] %v243_v10  ;;  %v247_v12 = vld [vmem:[%s1895_s10 + $0xf0] sm:$0xf] }
  0x20   : > { %246 = vst [vmem:[%s1900_s11 + $0x2c] sm:$0xf] %v245_v11  ;;  %v249_v13 = vld [vmem:[%s1895_s10 + $0x104] sm:$0xf]  ;;  %v251_v14 = vld [vmem:[%s1895_s10 + $0x118] sm:$0xf] }
  0x21   : > { %248 = vst [vmem:[%s1900_s11 + $0x30] sm:$0xf] %v247_v12  ;;  %250 = vst [vmem:[%s1900_s11 + $0x34] sm:$0xf] %v249_v13  ;;  %v253_v15 = vld [vmem:[%s1895_s10 + $0x12c] sm:$0xf] }
  0x22   : > { %252 = vst [vmem:[%s1900_s11 + $0x38] sm:$0xf] %v251_v14  ;;  %v255_v16 = vld [vmem:[%s1895_s10 + $0x140] sm:$0xf]  ;;  %v257_v17 = vld [vmem:[%s1895_s10 + $0x154] sm:$0xf] }
  0x23   : > { %254 = vst [vmem:[%s1900_s11 + $0x3c] sm:$0xf] %v253_v15  ;;  %256 = vst [vmem:[%s1900_s11 + $0x40] sm:$0xf] %v255_v16  ;;  %v259_v18 = vld [vmem:[%s1895_s10 + $0x168] sm:$0xf] }
  0x24   : > { %258 = vst [vmem:[%s1900_s11 + $0x44] sm:$0xf] %v257_v17  ;;  %v261_v19 = vld [vmem:[%s1895_s10 + $0x17c] sm:$0xf]  ;;  %v263_v20 = vld [vmem:[%s1895_s10 + $0x190] sm:$0xf] }
  0x25   : > { %260 = vst [vmem:[%s1900_s11 + $0x48] sm:$0xf] %v259_v18  ;;  %262 = vst [vmem:[%s1900_s11 + $0x4c] sm:$0xf] %v261_v19  ;;  %v265_v21 = vld [vmem:[%s1895_s10 + $0x1a4] sm:$0xf] }
  0x26   : > { %264 = vst [vmem:[%s1900_s11 + $0x50] sm:$0xf] %v263_v20  ;;  %v267_v22 = vld [vmem:[%s1895_s10 + $0x1b8] sm:$0xf]  ;;  %v269_v23 = vld [vmem:[%s1895_s10 + $0x1cc] sm:$0xf] }
  0x27   : > { %266 = vst [vmem:[%s1900_s11 + $0x54] sm:$0xf] %v265_v21  ;;  %268 = vst [vmem:[%s1900_s11 + $0x58] sm:$0xf] %v267_v22  ;;  %v271_v24 = vld [vmem:[%s1895_s10 + $0x1e0] sm:$0xf] }
  0x28   : > { %270 = vst [vmem:[%s1900_s11 + $0x5c] sm:$0xf] %v269_v23  ;;  %v273_v25 = vld [vmem:[%s1895_s10 + $0x1f4] sm:$0xf]  ;;  %v275_v26 = vld [vmem:[%s1895_s10 + $0x208] sm:$0xf] }
  0x29   : > { %272 = vst [vmem:[%s1900_s11 + $0x60] sm:$0xf] %v271_v24  ;;  %274 = vst [vmem:[%s1900_s11 + $0x64] sm:$0xf] %v273_v25  ;;  %v277_v27 = vld [vmem:[%s1895_s10 + $0x21c] sm:$0xf] }
  0x2a   : > { %276 = vst [vmem:[%s1900_s11 + $0x68] sm:$0xf] %v275_v26  ;;  %v279_v28 = vld [vmem:[%s1895_s10 + $0x230] sm:$0xf]  ;;  %v281_v29 = vld [vmem:[%s1895_s10 + $0x244] sm:$0xf] }
  0x2b   : > { %278 = vst [vmem:[%s1900_s11 + $0x6c] sm:$0xf] %v277_v27  ;;  %280 = vst [vmem:[%s1900_s11 + $0x70] sm:$0xf] %v279_v28  ;;  %v283_v30 = vld [vmem:[%s1895_s10 + $0x258] sm:$0xf] }
  0x2c   : > { %282 = vst [vmem:[%s1900_s11 + $0x74] sm:$0xf] %v281_v29  ;;  %v285_v31 = vld [vmem:[%s1895_s10 + $0x26c] sm:$0xf]  ;;  %284 = vst [vmem:[%s1900_s11 + $0x78] sm:$0xf] %v283_v30 }
  0x2d   : > { %286 = vst [vmem:[%s1900_s11 + $0x7c] sm:$0xf] %v285_v31 }
  0x2e PF: > { %p1388_p7 = scmp.ge.s32.totalorder %s1807_s21, 1  ;;  %p384_p8 = scmp.lt.s32.totalorder %s1807_s21, 11 }
  0x30   : > { %p385_p9 = pnand %p1388_p7, %p384_p8 }
  0x31   : > { %s391_s12 = sand.u32 (!%p385_p9), 1, %s1783_s15   ;;  %s1390_s13 = sshll.u32 (!%p385_p9), %s1791_s17, 4 }
  0x32   : > { %388 = sbr.rel (%p385_p9) target bundleno = 375 (0x177), region = 73  ;;  %s1389_s14 = sshll.u32 (!%p385_p9), %s391_s12, 7 }
  0x33   : > { %p435_p10 = scmp.lt.s32.totalorder (!%p385_p9), %s1390_s13, 79  ;;  %s1392_s24 = sshll.u32 (!%p385_p9), %s1795_s18, 5 }
  0x34   : > { %p450_p11 = scmp.lt.s32.totalorder (!%p385_p9), %s1392_s24, 63  ;;  %s1978_s15 = scalar_lea.vmem (!%p385_p9), [#allocation3], %s1389_s14 }
  0x35   : > { %p1394_p12 = scmp.ne.s32.totalorder (!%p385_p9), %s1791_s17, 0 }
  0x39   : > { %s2135_s13 = smov (!%p435_p10, %s1390_s13), 79  ;;  %s2137_s24 = smov (!%p450_p11, %s1392_s24), 63 }
  0x3a   : > { %s1391_s25 = sshll.u32 %s2135_s13, 2  ;;  %s1393_s30 = sshll.u32 %s2137_s24, 2  ;;  %v1809_v32 = vmov (!%p1394_p12), 0.0  }
  0x3b   : > { %s1971_s29 = scalar_lea.vmem %s2118_s1, %s1391_s25  ;;  %s1976_s7 = scalar_lea.vmem %s2121_s4, %s1393_s30  ;;  %463 = vst [vmem:[#allocation2] sm:$0xff] (!%p1394_p12), %v1809_v32  ;;  %464 = vst [vmem:[#allocation2 + $0x8] sm:$0xff] (!%p1394_p12), %v1809_v32 }
  0x3c   : > { %462 = sbr.rel (%p1394_p12) target bundleno = 75 (0x4b), region = 81  ;;  %465 = vst [vmem:[#allocation2 + $0x10] sm:$0xff] (!%p1394_p12), %v1809_v32  ;;  %466 = vst [vmem:[#allocation2 + $0x18] sm:$0xff] (!%p1394_p12), %v1809_v32 }
  0x3d   : > { %467 = vst [vmem:[#allocation2 + $0x20] sm:$0xff] (!%p1394_p12), %v1809_v32  ;;  %468 = vst [vmem:[#allocation2 + $0x28] sm:$0xff] (!%p1394_p12), %v1809_v32 }
  0x3e   : > { %469 = vst [vmem:[#allocation2 + $0x30] sm:$0xff] (!%p1394_p12), %v1809_v32  ;;  %470 = vst [vmem:[#allocation2 + $0x38] sm:$0xff] (!%p1394_p12), %v1809_v32 }
  0x3f   : > { %471 = vst [vmem:[#allocation2 + $0x40] sm:$0xff] (!%p1394_p12), %v1809_v32  ;;  %472 = vst [vmem:[#allocation2 + $0x48] sm:$0xff] (!%p1394_p12), %v1809_v32 }
  0x40   : > { %473 = vst [vmem:[#allocation2 + $0x50] sm:$0xff] (!%p1394_p12), %v1809_v32  ;;  %474 = vst [vmem:[#allocation2 + $0x58] sm:$0xff] (!%p1394_p12), %v1809_v32 }
  0x41   : > { %475 = vst [vmem:[#allocation2 + $0x60] sm:$0xff] (!%p1394_p12), %v1809_v32  ;;  %476 = vst [vmem:[#allocation2 + $0x68] sm:$0xff] (!%p1394_p12), %v1809_v32 }
  0x42   : > { %477 = vst [vmem:[#allocation2 + $0x70] sm:$0xff] (!%p1394_p12), %v1809_v32  ;;  %478 = vst [vmem:[#allocation2 + $0x78] sm:$0xff] (!%p1394_p12), %v1809_v32 }
  0x43   : > { %479 = vst [vmem:[#allocation2 + $0x80] sm:$0xff] %v1809_v32  ;;  %480 = vst [vmem:[#allocation2 + $0x88] sm:$0xff] %v1809_v32 }
  0x44   : > { %481 = vst [vmem:[#allocation2 + $0x90] sm:$0xff] %v1809_v32  ;;  %482 = vst [vmem:[#allocation2 + $0x98] sm:$0xff] %v1809_v32 }
  0x45   : > { %483 = vst [vmem:[#allocation2 + $0xa0] sm:$0xff] %v1809_v32  ;;  %484 = vst [vmem:[#allocation2 + $0xa8] sm:$0xff] %v1809_v32 }
  0x46   : > { %485 = vst [vmem:[#allocation2 + $0xb0] sm:$0xff] %v1809_v32  ;;  %486 = vst [vmem:[#allocation2 + $0xb8] sm:$0xff] %v1809_v32 }
  0x47   : > { %487 = vst [vmem:[#allocation2 + $0xc0] sm:$0xff] %v1809_v32  ;;  %488 = vst [vmem:[#allocation2 + $0xc8] sm:$0xff] %v1809_v32 }
  0x48   : > { %489 = vst [vmem:[#allocation2 + $0xd0] sm:$0xff] %v1809_v32  ;;  %490 = vst [vmem:[#allocation2 + $0xd8] sm:$0xff] %v1809_v32 }
  0x49   : > { %491 = vst [vmem:[#allocation2 + $0xe0] sm:$0xff] %v1809_v32  ;;  %492 = vst [vmem:[#allocation2 + $0xe8] sm:$0xff] %v1809_v32 }
  0x4a   : > { %493 = vst [vmem:[#allocation2 + $0xf0] sm:$0xff] %v1809_v32  ;;  %494 = vst [vmem:[#allocation2 + $0xf8] sm:$0xff] %v1809_v32 }
  0x4b PF: > { %v1729_v33 = vld [vmem:[%s1971_s29] sm:$0xff]   ;;  %v1730_v34 = vld [vmem:[%s1971_s29 + $0x8] sm:$0xff]   ;;  %v1731_v35 = vld [vmem:[%s1971_s29 + $0x10] sm:$0xff]   ;;  %p1419_p13 = scmp.ne.s32.totalorder %s1791_s17, 4 }
  0x4c   : > { %1607 = vmatprep.subr.bf16.mxu0 %v1729_v33  ;;  %1655 = vmatprep.subr.bf16.mxu1 %v1729_v33  ;;  %v1732_v36 = vld [vmem:[%s1971_s29 + $0x18] sm:$0xff]   ;;  %v1737_v37 = vld [vmem:[%s1978_s15] sm:$0xff]   ;;  %v1734_v40 = vld [vmem:[%s1971_s29 + $0x28] sm:$0xff]  }
  0x4d   : > { %1608 = vmatpush3.bf16.msra.mxu0 %v1729_v33  ;;  %1663 = vmatpush3.bf16.msra.mxu1 %v1729_v33  ;;  %v1738_v38 = vld [vmem:[%s1978_s15 + $0x40] sm:$0xff]   ;;  %v1735_v41 = vld [vmem:[%s1971_s29 + $0x30] sm:$0xff]   ;;  %v1736_v42 = vld [vmem:[%s1971_s29 + $0x38] sm:$0xff]  }
  0x4e   : > { %1609 = vmatprep.subr.bf16.mxu0 %v1730_v34  ;;  %1656 = vmatprep.subr.bf16.mxu1 %v1730_v34  ;;  %v1733_v39 = vld [vmem:[%s1971_s29 + $0x20] sm:$0xff]   ;;  %v1739_v43 = vld [vmem:[%s1978_s15 + $0x8] sm:$0xff]   ;;  %v1741_v45 = vld [vmem:[%s1978_s15 + $0x10] sm:$0xff]  }
  0x4f   : > { %1623 = vmatprep.mubr.bf16.mxu0 %v1737_v37  ;;  %1639 = vmatprep.mubr.bf16.mxu1 %v1738_v38  ;;  %v1740_v44 = vld [vmem:[%s1978_s15 + $0x48] sm:$0xff]   ;;  %v1742_v46 = vld [vmem:[%s1978_s15 + $0x50] sm:$0xff]   ;;  %v1743_v47 = vld [vmem:[%s1978_s15 + $0x18] sm:$0xff]  }
  0x50   : > { %v1744_v48 = vld [vmem:[%s1978_s15 + $0x58] sm:$0xff]   ;;  %v1745_v49 = vld [vmem:[%s1978_s15 + $0x20] sm:$0xff]   ;;  %v1747_v51 = vld [vmem:[%s1978_s15 + $0x28] sm:$0xff]  }
  0x51   : > { %1610 = vmatpush3.bf16.msra.mxu0 %v1730_v34  ;;  %1664 = vmatpush3.bf16.msra.mxu1 %v1730_v34  ;;  %v1746_v50 = vld [vmem:[%s1978_s15 + $0x60] sm:$0xff]   ;;  %v1748_v52 = vld [vmem:[%s1978_s15 + $0x68] sm:$0xff]   ;;  %v1749_v53 = vld [vmem:[%s1978_s15 + $0x30] sm:$0xff]  }
  0x52   : > { %1611 = vmatprep.subr.bf16.mxu0 %v1731_v35  ;;  %1657 = vmatprep.subr.bf16.mxu1 %v1731_v35  ;;  %v1750_v54 = vld [vmem:[%s1978_s15 + $0x70] sm:$0xff]   ;;  %v1751_v55 = vld [vmem:[%s1978_s15 + $0x38] sm:$0xff]   ;;  %v495_v59 = vld [vmem:[#allocation2] sm:$0xff] }
  0x53   : > { %v1752_v56 = vld [vmem:[%s1978_s15 + $0x78] sm:$0xff]   ;;  %v497_v57 = vld [vmem:[#allocation2 + $0x10] sm:$0xff]  ;;  %v511_v60 = vld [vmem:[#allocation2 + $0x80] sm:$0xff] }
  0x54   : > { %v513_v58 = vld [vmem:[#allocation2 + $0x90] sm:$0xff]  ;;  %v498_v63 = vld [vmem:[#allocation2 + $0x18] sm:$0xff]  ;;  %v496_v5 = vld [vmem:[#allocation2 + $0x8] sm:$0xff] }
  0x55   : > { %1612 = vmatpush3.bf16.msra.mxu0 %v1731_v35  ;;  %1665 = vmatpush3.bf16.msra.mxu1 %v1731_v35  ;;  %v514_v0 = vld [vmem:[#allocation2 + $0x98] sm:$0xff]  ;;  %v512_v6 = vld [vmem:[#allocation2 + $0x88] sm:$0xff]  ;;  %v501_v17 = vld [vmem:[#allocation2 + $0x30] sm:$0xff] }
  0x56   : > { %1613 = vmatprep.subr.bf16.mxu0 %v1732_v36  ;;  %1658 = vmatprep.subr.bf16.mxu1 %v1732_v36  ;;  %v517_v18 = vld [vmem:[#allocation2 + $0xb0] sm:$0xff]  ;;  %v499_v19 = vld [vmem:[#allocation2 + $0x20] sm:$0xff]  ;;  %v502_v23 = vld [vmem:[#allocation2 + $0x38] sm:$0xff] }
  0x57   : > { %v515_v20 = vld [vmem:[#allocation2 + $0xa0] sm:$0xff]  ;;  %v518_v24 = vld [vmem:[#allocation2 + $0xb8] sm:$0xff]  ;;  %v500_v29 = vld [vmem:[#allocation2 + $0x28] sm:$0xff] }
  0x58   : > { %v516_v30 = vld [vmem:[#allocation2 + $0xa8] sm:$0xff] }
  0x59   : > { %1614 = vmatpush3.bf16.msra.mxu0 %v1732_v36  ;;  %1666 = vmatpush3.bf16.msra.mxu1 %v1732_v36 }
  0x5a   : > { %1615 = vmatprep.subr.bf16.mxu0 %v1733_v39  ;;  %1659 = vmatprep.subr.bf16.mxu1 %v1733_v39 }
  0x5d   : > { %1616 = vmatpush3.bf16.msra.mxu0 %v1733_v39  ;;  %1667 = vmatpush3.bf16.msra.mxu1 %v1733_v39 }
  0x5e   : > { %1617 = vmatprep.subr.bf16.mxu0 %v1734_v40  ;;  %1660 = vmatprep.subr.bf16.mxu1 %v1734_v40 }
  0x61   : > { %1618 = vmatpush3.bf16.msra.mxu0 %v1734_v40  ;;  %1668 = vmatpush3.bf16.msra.mxu1 %v1734_v40 }
  0x62   : > { %1619 = vmatprep.subr.bf16.mxu0 %v1735_v41  ;;  %1661 = vmatprep.subr.bf16.mxu1 %v1735_v41 }
  0x65   : > { %1620 = vmatpush3.bf16.msra.mxu0 %v1735_v41  ;;  %1669 = vmatpush3.bf16.msra.mxu1 %v1735_v41  ;;  %v505_v41 = vld [vmem:[#allocation2 + $0x50] sm:$0xff] }
  0x66   : > { %1621 = vmatprep.subr.bf16.mxu0 %v1736_v42  ;;  %1662 = vmatprep.subr.bf16.mxu1 %v1736_v42 }
  0x69   : > { %1622 = vmatpush3.bf16.msra.mxu0 %v1736_v42  ;;  %1670 = vmatpush3.bf16.msra.mxu1 %v1736_v42  ;;  %v521_v42 = vld [vmem:[#allocation2 + $0xd0] sm:$0xff] }
  0x6c   : > { %1624 = vmatmul.mubr.bf16.vlgmr.msra.gmra.mrb[0].mxu0 %v1739_v43  ;;  %1640 = vmatmul.mubr.bf16.vlgmr.msra.gmra.mrb[0].mxu1 %v1740_v44  ;;  %v503_v43 = vld [vmem:[#allocation2 + $0x40] sm:$0xff] }
  0x6d   : > { %1627 = vmatprep.mubr.bf16.mxu0 %v1741_v45  ;;  %1643 = vmatprep.mubr.bf16.mxu1 %v1742_v46  ;;  %v519_v44 = vld [vmem:[#allocation2 + $0xc0] sm:$0xff] }
  0x74   : > { %1628 = vmatmul.mubr.bf16.gmra.mrb[4].mxu0 %v1743_v47  ;;  %1644 = vmatmul.mubr.bf16.gmra.mrb[4].mxu1 %v1744_v48  ;;  %v506_v47 = vld [vmem:[#allocation2 + $0x58] sm:$0xff] }
  0x75   : > { %1631 = vmatprep.mubr.bf16.mxu0 %v1745_v49  ;;  %1647 = vmatprep.mubr.bf16.mxu1 %v1746_v50  ;;  %v522_v48 = vld [vmem:[#allocation2 + $0xd8] sm:$0xff] }
  0x7c   : > { %1632 = vmatmul.mubr.bf16.gmra.mrb[8].mxu0 %v1747_v51  ;;  %1648 = vmatmul.mubr.bf16.gmra.mrb[8].mxu1 %v1748_v52 }
  0x7d   : > { %1635 = vmatprep.mubr.bf16.mxu0 %v1749_v53  ;;  %1651 = vmatprep.mubr.bf16.mxu1 %v1750_v54  ;;  %v504_v53 = vld [vmem:[#allocation2 + $0x48] sm:$0xff] }
  0x7e   : > { %v520_v54 = vld [vmem:[#allocation2 + $0xc8] sm:$0xff] }
  0x84   : > { %1636 = vmatmul.mubr.bf16.gmra.mrb[12].mxu0 %v1751_v55  ;;  %1652 = vmatmul.mubr.bf16.gmra.mrb[12].mxu1 %v1752_v56 }
 0x13f   : > { %v1625_v61 = vpop.f32.mrb[0].mxu0  ;;  %v1641_v62 = vpop.f32.mrb[0].mxu1 }
 0x140   : > { %v882_v1 = vadd.f32 %v1625_v61, %v497_v57  ;;  %v898_v2 = vadd.f32 %v1641_v62, %v513_v58  ;;  %v753_v3 = vpop.f32.mrb[1].mxu0  ;;  %v817_v4 = vpop.f32.mrb[1].mxu1 }
 0x141   : > { %v880_v7 = vadd.f32 %v753_v3, %v495_v59  ;;  %v896_v8 = vadd.f32 %v817_v4, %v511_v60  ;;  %v1626_v9 = vpop.f32.mrb[2].mxu0  ;;  %v1642_v10 = vpop.f32.mrb[2].mxu1  ;;  %v507_v3 = vld [vmem:[#allocation2 + $0x60] sm:$0xff] }
 0x142   : > { %914 = vst [vmem:[#allocation2 + $0x10] sm:$0xff] %v882_v1  ;;  %930 = vst [vmem:[#allocation2 + $0x90] sm:$0xff] %v898_v2  ;;  %v883_v11 = vadd.f32 %v1626_v9, %v498_v63  ;;  %v899_v12 = vadd.f32 %v1642_v10, %v514_v0  ;;  %v756_v13 = vpop.f32.mrb[3].mxu0  ;;  %v820_v14 = vpop.f32.mrb[3].mxu1  ;;  %v509_v1 = vld [vmem:[#allocation2 + $0x70] sm:$0xff]  ;;  %v523_v4 = vld [vmem:[#allocation2 + $0xe0] sm:$0xff] }
 0x143   : > { %912 = vst [vmem:[#allocation2] sm:$0xff] %v880_v7  ;;  %928 = vst [vmem:[#allocation2 + $0x80] sm:$0xff] %v896_v8  ;;  %v881_v15 = vadd.f32 %v756_v13, %v496_v5  ;;  %v897_v16 = vadd.f32 %v820_v14, %v512_v6  ;;  %v525_v2 = vld [vmem:[#allocation2 + $0xf0] sm:$0xff]  ;;  %v510_v7 = vld [vmem:[#allocation2 + $0x78] sm:$0xff] }
 0x144   : > { %915 = vst [vmem:[#allocation2 + $0x18] sm:$0xff] %v883_v11  ;;  %931 = vst [vmem:[#allocation2 + $0x98] sm:$0xff] %v899_v12  ;;  %v526_v8 = vld [vmem:[#allocation2 + $0xf8] sm:$0xff]  ;;  %v508_v13 = vld [vmem:[#allocation2 + $0x68] sm:$0xff] }
 0x145   : > { %913 = vst [vmem:[#allocation2 + $0x8] sm:$0xff] %v881_v15  ;;  %929 = vst [vmem:[#allocation2 + $0x88] sm:$0xff] %v897_v16  ;;  %v524_v14 = vld [vmem:[#allocation2 + $0xe8] sm:$0xff] }
 0x147   : > { %v1629_v21 = vpop.f32.mrb[4].mxu0  ;;  %v1645_v22 = vpop.f32.mrb[4].mxu1 }
 0x148   : > { %v886_v25 = vadd.f32 %v1629_v21, %v501_v17  ;;  %v902_v26 = vadd.f32 %v1645_v22, %v517_v18  ;;  %v769_v27 = vpop.f32.mrb[5].mxu0  ;;  %v833_v28 = vpop.f32.mrb[5].mxu1 }
 0x149   : > { %v884_v31 = vadd.f32 %v769_v27, %v499_v19  ;;  %v900_v32 = vadd.f32 %v833_v28, %v515_v20  ;;  %v1630_v33 = vpop.f32.mrb[6].mxu0  ;;  %v1646_v34 = vpop.f32.mrb[6].mxu1  ;;  %v2009_v27 = vld [vmem:[%s2119_s2] ss:$0 sm:$0xff] (!%p1419_p13) }
 0x14a   : > { %918 = vst [vmem:[#allocation2 + $0x30] sm:$0xff] %v886_v25  ;;  %934 = vst [vmem:[#allocation2 + $0xb0] sm:$0xff] %v902_v26  ;;  %v887_v35 = vadd.f32 %v1630_v33, %v502_v23  ;;  %v903_v36 = vadd.f32 %v1646_v34, %v518_v24  ;;  %v772_v37 = vpop.f32.mrb[7].mxu0  ;;  %v836_v38 = vpop.f32.mrb[7].mxu1  ;;  %v948_v25 = vld [vmem:[#allocation2] sm:$0xff] (!%p1419_p13) }
 0x14b   : > { %916 = vst [vmem:[#allocation2 + $0x20] sm:$0xff] %v884_v31  ;;  %932 = vst [vmem:[#allocation2 + $0xa0] sm:$0xff] %v900_v32  ;;  %v885_v39 = vadd.f32 %v772_v37, %v500_v29  ;;  %v901_v40 = vadd.f32 %v836_v38, %v516_v30  ;;  %v987_v28 = vmul.f32 (!%p1419_p13), %v2009_v27, %v948_v25  ;;  %v2016_v30 = vld [vmem:[%s2120_s3] ss:$0 sm:$0xff] (!%p1419_p13)  ;;  %v950_v31 = vld [vmem:[#allocation2 + $0x10] sm:$0xff] (!%p1419_p13) }
 0x14c   : > { %919 = vst [vmem:[#allocation2 + $0x38] sm:$0xff] %v887_v35  ;;  %935 = vst [vmem:[#allocation2 + $0xb8] sm:$0xff] %v903_v36  ;;  %v949_v26 = vld [vmem:[#allocation2 + $0x8] sm:$0xff] (!%p1419_p13)  ;;  %v951_v32 = vld [vmem:[#allocation2 + $0x18] sm:$0xff] (!%p1419_p13)  ;;  %v989_v33 = vmul.f32 (!%p1419_p13), %v2009_v27, %v950_v31 }
 0x14d   : > { %917 = vst [vmem:[#allocation2 + $0x28] sm:$0xff] %v885_v39  ;;  %933 = vst [vmem:[#allocation2 + $0xa8] sm:$0xff] %v901_v40  ;;  %v988_v29 = vmul.f32 (!%p1419_p13), %v2009_v27, %v949_v26  ;;  %v990_v34 = vmul.f32 (!%p1419_p13), %v2009_v27, %v951_v32  ;;  %v1026_v38 = vadd.f32 (!%p1419_p13), %v2016_v30, %v987_v28  ;;  %v966_v31 = vld [vmem:[#allocation2 + $0x90] sm:$0xff] (!%p1419_p13)  ;;  %v967_v32 = vld [vmem:[#allocation2 + $0x98] sm:$0xff] (!%p1419_p13) }
 0x14f   : > { %v1633_v45 = vpop.f32.mrb[8].mxu0  ;;  %v1649_v46 = vpop.f32.mrb[8].mxu1  ;;  %v1027_v39 = vadd.f32 (!%p1419_p13), %v2016_v30, %v988_v29 }
 0x150   : > { %v890_v49 = vadd.f32 %v1633_v45, %v505_v41  ;;  %v906_v50 = vadd.f32 %v1649_v46, %v521_v42  ;;  %v785_v51 = vpop.f32.mrb[9].mxu0  ;;  %v849_v52 = vpop.f32.mrb[9].mxu1 }
 0x151   : > { %v888_v55 = vadd.f32 %v785_v51, %v503_v43  ;;  %v904_v56 = vadd.f32 %v849_v52, %v519_v44  ;;  %v1634_v57 = vpop.f32.mrb[10].mxu0  ;;  %v1650_v58 = vpop.f32.mrb[10].mxu1  ;;  %v954_v37 = vld [vmem:[#allocation2 + $0x30] sm:$0xff] (!%p1419_p13)  ;;  %v1028_v43 = vadd.f32 (!%p1419_p13), %v2016_v30, %v989_v33  ;;  %v1029_v44 = vadd.f32 (!%p1419_p13), %v2016_v30, %v990_v34 }
 0x152   : > { %922 = vst [vmem:[#allocation2 + $0x50] sm:$0xff] %v890_v49  ;;  %938 = vst [vmem:[#allocation2 + $0xd0] sm:$0xff] %v906_v50  ;;  %v891_v59 = vadd.f32 %v1634_v57, %v506_v47  ;;  %v907_v60 = vadd.f32 %v1650_v58, %v522_v48  ;;  %v788_v61 = vpop.f32.mrb[11].mxu0  ;;  %v852_v62 = vpop.f32.mrb[11].mxu1  ;;  %v952_v35 = vld [vmem:[#allocation2 + $0x20] sm:$0xff] (!%p1419_p13)  ;;  %v993_v45 = vmul.f32 (!%p1419_p13), %v2009_v27, %v954_v37  ;;  %v1058_v48 = vmax.f32 (!%p1419_p13), %v1026_v38, 0.0 }
 0x153   : > { %920 = vst [vmem:[#allocation2 + $0x40] sm:$0xff] %v888_v55  ;;  %936 = vst [vmem:[#allocation2 + $0xc0] sm:$0xff] %v904_v56  ;;  %v889_v63 = vadd.f32 %v788_v61, %v504_v53  ;;  %v905_v0 = vadd.f32 %v852_v62, %v520_v54  ;;  %v991_v40 = vmul.f32 (!%p1419_p13), %v2009_v27, %v952_v35  ;;  %v955_v42 = vld [vmem:[#allocation2 + $0x38] sm:$0xff] (!%p1419_p13)  ;;  %v1059_v49 = vmax.f32 (!%p1419_p13), %v1027_v39, 0.0  ;;  %v968_v37 = vld [vmem:[#allocation2 + $0xa0] sm:$0xff] (!%p1419_p13) }
 0x154   : > { %923 = vst [vmem:[#allocation2 + $0x58] sm:$0xff] %v891_v59  ;;  %939 = vst [vmem:[#allocation2 + $0xd8] sm:$0xff] %v907_v60  ;;  %v953_v36 = vld [vmem:[#allocation2 + $0x28] sm:$0xff] (!%p1419_p13)  ;;  %v994_v46 = vmul.f32 (!%p1419_p13), %v2009_v27, %v955_v42  ;;  %v1060_v53 = vmax.f32 (!%p1419_p13), %v1028_v43, 0.0  ;;  %v1061_v54 = vmax.f32 (!%p1419_p13), %v1029_v44, 0.0  ;;  %v1032_v55 = vadd.f32 (!%p1419_p13), %v2016_v30, %v993_v45  ;;  %v970_v43 = vld [vmem:[#allocation2 + $0xb0] sm:$0xff] (!%p1419_p13) }
 0x155   : > { %921 = vst [vmem:[#allocation2 + $0x48] sm:$0xff] %v889_v63  ;;  %937 = vst [vmem:[#allocation2 + $0xc8] sm:$0xff] %v905_v0  ;;  %v992_v41 = vmul.f32 (!%p1419_p13), %v2009_v27, %v953_v36  ;;  %v1030_v50 = vadd.f32 (!%p1419_p13), %v2016_v30, %v991_v40  ;;  %v1491_v59 = vpack.c.bf16 (!%p1419_p13), %v1059_v49, %v1058_v48  ;;  %v969_v38 = vld [vmem:[#allocation2 + $0xa8] sm:$0xff] (!%p1419_p13)  ;;  %v971_v48 = vld [vmem:[#allocation2 + $0xb8] sm:$0xff] (!%p1419_p13) }
 0x156   : > { %v1033_v56 = vadd.f32 (!%p1419_p13), %v2016_v30, %v994_v46  ;;  %v1005_v46 = vmul.f32 (!%p1419_p13), %v2009_v27, %v966_v31 }
 0x157   : > { %v1637_v5 = vpop.f32.mrb[12].mxu0  ;;  %v1653_v6 = vpop.f32.mrb[12].mxu1  ;;  %947 = sbr.rel (%p1419_p13) target bundleno = 375 (0x177), region = 85  ;;  %v1031_v51 = vadd.f32 (!%p1419_p13), %v2016_v30, %v992_v41  ;;  %v1062_v60 = vmax.f32 (!%p1419_p13), %v1030_v50, 0.0  ;;  %1492 = vst [vmem:[%s1976_s7] sm:$0xff] (!%p1419_p13), %v1491_v59  }
 0x158   : > { %v894_v9 = vadd.f32 %v1637_v5, %v509_v1  ;;  %v910_v10 = vadd.f32 %v1653_v6, %v525_v2  ;;  %v801_v11 = vpop.f32.mrb[13].mxu0  ;;  %v865_v12 = vpop.f32.mrb[13].mxu1  ;;  %v1496_v1 = vpack.c.bf16 (!%p1419_p13), %v1061_v54, %v1060_v53  ;;  %v1064_v2 = vmax.f32 (!%p1419_p13), %v1032_v55, 0.0 }
 0x159   : > { %v892_v15 = vadd.f32 %v801_v11, %v507_v3  ;;  %v908_v16 = vadd.f32 %v865_v12, %v523_v4  ;;  %v1638_v17 = vpop.f32.mrb[14].mxu0  ;;  %v1654_v18 = vpop.f32.mrb[14].mxu1  ;;  %v958_v57 = vld [vmem:[#allocation2 + $0x50] sm:$0xff] (!%p1419_p13)  ;;  %v1063_v61 = vmax.f32 (!%p1419_p13), %v1031_v51, 0.0  ;;  %v1065_v3 = vmax.f32 (!%p1419_p13), %v1033_v56, 0.0 }
 0x15a   : > { %926 = vst [vmem:[#allocation2 + $0x70] sm:$0xff] %v894_v9  ;;  %942 = vst [vmem:[#allocation2 + $0xf0] sm:$0xff] %v910_v10  ;;  %v895_v19 = vadd.f32 %v1638_v17, %v510_v7  ;;  %v911_v20 = vadd.f32 %v1654_v18, %v526_v8  ;;  %v804_v21 = vpop.f32.mrb[15].mxu0  ;;  %v868_v22 = vpop.f32.mrb[15].mxu1  ;;  %v956_v47 = vld [vmem:[#allocation2 + $0x40] sm:$0xff] (!%p1419_p13)  ;;  %v997_v8 = vmul.f32 (!%p1419_p13), %v2009_v27, %v958_v57 }
 0x15b   : > { %924 = vst [vmem:[#allocation2 + $0x60] sm:$0xff] %v892_v15  ;;  %940 = vst [vmem:[#allocation2 + $0xe0] sm:$0xff] %v908_v16  ;;  %v893_v23 = vadd.f32 %v804_v21, %v508_v13  ;;  %v909_v24 = vadd.f32 %v868_v22, %v524_v14  ;;  %v959_v58 = vld [vmem:[#allocation2 + $0x58] sm:$0xff] (!%p1419_p13)  ;;  %v995_v62 = vmul.f32 (!%p1419_p13), %v2009_v27, %v956_v47  ;;  %v964_v15 = vld [vmem:[#allocation2 + $0x80] sm:$0xff] (!%p1419_p13) }
 0x15c   : > { %927 = vst [vmem:[#allocation2 + $0x78] sm:$0xff] %v895_v19  ;;  %943 = vst [vmem:[#allocation2 + $0xf8] sm:$0xff] %v911_v20  ;;  %v957_v52 = vld [vmem:[#allocation2 + $0x48] sm:$0xff] (!%p1419_p13)  ;;  %v1501_v6 = vpack.c.bf16 (!%p1419_p13), %v1063_v61, %v1062_v60  ;;  %v998_v9 = vmul.f32 (!%p1419_p13), %v2009_v27, %v959_v58  ;;  %v1506_v11 = vpack.c.bf16 (!%p1419_p13), %v1065_v3, %v1064_v2  ;;  %v972_v53 = vld [vmem:[#allocation2 + $0xc0] sm:$0xff] (!%p1419_p13) }
 0x15d   : > { %925 = vst [vmem:[#allocation2 + $0x68] sm:$0xff] %v893_v23  ;;  %941 = vst [vmem:[#allocation2 + $0xe8] sm:$0xff] %v909_v24  ;;  %v996_v4 = vmul.f32 (!%p1419_p13), %v2009_v27, %v957_v52  ;;  %v1034_v7 = vadd.f32 (!%p1419_p13), %v2016_v30, %v995_v62  ;;  %v1036_v17 = vadd.f32 (!%p1419_p13), %v2016_v30, %v997_v8  ;;  %v965_v24 = vld [vmem:[#allocation2 + $0x88] sm:$0xff] (!%p1419_p13)  ;;  %v974_v3 = vld [vmem:[#allocation2 + $0xd0] sm:$0xff] (!%p1419_p13) }
 0x15e   : > { %1568 = vst [vmem:[%s1976_s7 + $0x8] sm:$0xff] %v1496_v1   ;;  %1569 = vst [vmem:[%s1976_s7 + $0x10] sm:$0xff] %v1501_v6   ;;  %v1037_v18 = vadd.f32 %v2016_v30, %v998_v9  ;;  %v1003_v29 = vmul.f32 %v2009_v27, %v964_v15  ;;  %v1004_v41 = vmul.f32 %v2009_v27, %v965_v24  ;;  %v973_v62 = vld [vmem:[#allocation2 + $0xc8] sm:$0xff] }
 0x15f   : > { %v1035_v12 = vadd.f32 %v2016_v30, %v996_v4  ;;  %v1066_v16 = vmax.f32 %v1034_v7, 0.0  ;;  %1570 = vst [vmem:[%s1976_s7 + $0x18] sm:$0xff] %v1506_v11   ;;  %v1068_v25 = vmax.f32 %v1036_v17, 0.0  ;;  %v1006_v47 = vmul.f32 %v2009_v27, %v967_v32  ;;  %v975_v4 = vld [vmem:[#allocation2 + $0xd8] sm:$0xff] }
 0x160   : > { %v1069_v26 = vmax.f32 %v1037_v18, 0.0  ;;  %v1042_v42 = vadd.f32 %v2016_v30, %v1003_v29  ;;  %v1043_v49 = vadd.f32 %v2016_v30, %v1004_v41  ;;  %v1007_v51 = vmul.f32 %v2009_v27, %v968_v37 }
 0x161   : > { %v962_v5 = vld [vmem:[#allocation2 + $0x70] sm:$0xff]  ;;  %v1067_v20 = vmax.f32 %v1035_v12, 0.0  ;;  %v1008_v52 = vmul.f32 %v2009_v27, %v969_v38  ;;  %v1044_v55 = vadd.f32 %v2016_v30, %v1005_v46  ;;  %v1045_v56 = vadd.f32 %v2016_v30, %v1006_v47 }
 0x162   : > { %v960_v63 = vld [vmem:[#allocation2 + $0x60] sm:$0xff]  ;;  %v1001_v19 = vmul.f32 %v2009_v27, %v962_v5  ;;  %v1516_v39 = vpack.c.bf16 %v1069_v26, %v1068_v25  ;;  %v1074_v50 = vmax.f32 %v1042_v42, 0.0  ;;  %v1009_v57 = vmul.f32 %v2009_v27, %v970_v43  ;;  %v978_v15 = vld [vmem:[#allocation2 + $0xf0] sm:$0xff] }
 0x163   : > { %v963_v10 = vld [vmem:[#allocation2 + $0x78] sm:$0xff]  ;;  %v999_v13 = vmul.f32 %v2009_v27, %v960_v63  ;;  %v1511_v33 = vpack.c.bf16 %v1067_v20, %v1066_v16  ;;  %v1075_v58 = vmax.f32 %v1043_v49, 0.0  ;;  %v1046_v59 = vadd.f32 %v2016_v30, %v1007_v51  ;;  %v976_v9 = vld [vmem:[#allocation2 + $0xe0] sm:$0xff] }
 0x164   : > { %v961_v0 = vld [vmem:[#allocation2 + $0x68] sm:$0xff]  ;;  %v1002_v23 = vmul.f32 %v2009_v27, %v963_v10  ;;  %v1040_v28 = vadd.f32 %v2016_v30, %v1001_v19  ;;  %1572 = vst [vmem:[%s1976_s7 + $0x28] sm:$0xff] %v1516_v39   ;;  %v1047_v60 = vadd.f32 %v2016_v30, %v1008_v52  ;;  %v1010_v61 = vmul.f32 %v2009_v27, %v971_v48  ;;  %v979_v20 = vld [vmem:[#allocation2 + $0xf8] sm:$0xff] }
 0x165   : > { %v1000_v14 = vmul.f32 %v2009_v27, %v961_v0  ;;  %v1038_v21 = vadd.f32 %v2016_v30, %v999_v13  ;;  %1571 = vst [vmem:[%s1976_s7 + $0x20] sm:$0xff] %v1511_v33   ;;  %v1076_v63 = vmax.f32 %v1044_v55, 0.0  ;;  %v1077_v0 = vmax.f32 %v1045_v56, 0.0  ;;  %v977_v10 = vld [vmem:[#allocation2 + $0xe8] sm:$0xff] }
 0x166   : > { %v1041_v36 = vadd.f32 %v2016_v30, %v1002_v23  ;;  %v1072_v40 = vmax.f32 %v1040_v28, 0.0  ;;  %v1048_v1 = vadd.f32 %v2016_v30, %v1009_v57  ;;  %v1011_v2 = vmul.f32 %v2009_v27, %v972_v53 }
 0x167   : > { %v1039_v22 = vadd.f32 %v2016_v30, %v1000_v14  ;;  %v1070_v34 = vmax.f32 %v1038_v21, 0.0  ;;  %v1531_v5 = vpack.c.bf16 %v1075_v58, %v1074_v50  ;;  %v1078_v6 = vmax.f32 %v1046_v59, 0.0 }
 0x168   : > { %v1073_v45 = vmax.f32 %v1041_v36, 0.0  ;;  %v1079_v7 = vmax.f32 %v1047_v60, 0.0  ;;  %v1049_v8 = vadd.f32 %v2016_v30, %v1010_v61  ;;  %v1536_v11 = vpack.c.bf16 %v1077_v0, %v1076_v63 }
 0x169   : > { %v1071_v35 = vmax.f32 %v1039_v22, 0.0  ;;  %v1080_v12 = vmax.f32 %v1048_v1, 0.0  ;;  %v1012_v13 = vmul.f32 %v2009_v27, %v973_v62  ;;  %v1050_v14 = vadd.f32 %v2016_v30, %v1011_v2  ;;  %1575 = vst [vmem:[%s1976_s7 + $0x40] sm:$0xff] %v1531_v5  }
 0x16a   : > { %v1526_v54 = vpack.c.bf16 %v1073_v45, %v1072_v40  ;;  %v1541_v16 = vpack.c.bf16 %v1079_v7, %v1078_v6  ;;  %v1081_v17 = vmax.f32 %v1049_v8, 0.0  ;;  %v1013_v18 = vmul.f32 %v2009_v27, %v974_v3  ;;  %1576 = vst [vmem:[%s1976_s7 + $0x48] sm:$0xff] %v1536_v11  }
 0x16b   : > { %v1521_v44 = vpack.c.bf16 %v1071_v35, %v1070_v34  ;;  %v1014_v19 = vmul.f32 %v2009_v27, %v975_v4  ;;  %v1051_v21 = vadd.f32 %v2016_v30, %v1012_v13  ;;  %v1082_v22 = vmax.f32 %v1050_v14, 0.0 }
 0x16c   : > { %1574 = vst [vmem:[%s1976_s7 + $0x38] sm:$0xff] %v1526_v54   ;;  %v1015_v23 = vmul.f32 %v2009_v27, %v976_v9  ;;  %v1016_v24 = vmul.f32 %v2009_v27, %v977_v10  ;;  %1577 = vst [vmem:[%s1976_s7 + $0x50] sm:$0xff] %v1541_v16   ;;  %v1546_v25 = vpack.c.bf16 %v1081_v17, %v1080_v12 }
 0x16d   : > { %1573 = vst [vmem:[%s1976_s7 + $0x30] sm:$0xff] %v1521_v44   ;;  %v1052_v26 = vadd.f32 %v2016_v30, %v1013_v18  ;;  %v1053_v28 = vadd.f32 %v2016_v30, %v1014_v19  ;;  %v1017_v29 = vmul.f32 %v2009_v27, %v978_v15  ;;  %v1083_v31 = vmax.f32 %v1051_v21, 0.0 }
 0x16e   : > { %v1054_v32 = vadd.f32 %v2016_v30, %v1015_v23  ;;  %v1055_v33 = vadd.f32 %v2016_v30, %v1016_v24  ;;  %v1018_v34 = vmul.f32 %v2009_v27, %v979_v20  ;;  %1578 = vst [vmem:[%s1976_s7 + $0x58] sm:$0xff] %v1546_v25  }
 0x16f   : > { %v1084_v35 = vmax.f32 %v1052_v26, 0.0  ;;  %v1085_v36 = vmax.f32 %v1053_v28, 0.0  ;;  %v1056_v37 = vadd.f32 %v2016_v30, %v1017_v29  ;;  %v1551_v38 = vpack.c.bf16 %v1083_v31, %v1082_v22 }
 0x170   : > { %v1086_v39 = vmax.f32 %v1054_v32, 0.0  ;;  %v1087_v40 = vmax.f32 %v1055_v33, 0.0  ;;  %v1057_v41 = vadd.f32 %v2016_v30, %v1018_v34 }
 0x171   : > { %v1556_v42 = vpack.c.bf16 %v1085_v36, %v1084_v35  ;;  %v1088_v43 = vmax.f32 %v1056_v37, 0.0  ;;  %1579 = vst [vmem:[%s1976_s7 + $0x60] sm:$0xff] %v1551_v38  }
 0x172   : > { %v1561_v44 = vpack.c.bf16 %v1087_v40, %v1086_v39  ;;  %v1089_v45 = vmax.f32 %v1057_v41, 0.0 }
 0x173   : > { %1580 = vst [vmem:[%s1976_s7 + $0x68] sm:$0xff] %v1556_v42  }
 0x174   : > { %1581 = vst [vmem:[%s1976_s7 + $0x70] sm:$0xff] %v1561_v44   ;;  %v1566_v46 = vpack.c.bf16 %v1089_v45, %v1088_v43 }
 0x176   : > { %1582 = vst [vmem:[%s1976_s7 + $0x78] sm:$0xff] %v1566_v46  }
 0x177 PF: > { %s14_s21 = sadd.s32 1, %s1807_s21   ;;  %s2122_s15 = smov %s1787_s16 }
 0x178   : > { %p11_p0 = scmp.ge.s32.totalorder %s14_s21, 12   ;;  %s2123_s16 = smov %s1886_s28 }
 0x179   : > { %s2124_s17 = smov %s1799_s19  ;;  %s2125_s18 = smov %s1803_s20 }
 0x17a   : > { %s2126_s19 = smov %s2129_s22  ;;  %s2127_s20 = smov %s2133_s23 }
 0x17b   :  { %13 = sbr.rel (!%p11_p0) target bundleno = 4 (0x4), region = 129 }

// kernel: _lambda_.21
= control target key start
LH: loop header
LB: loop body
LE: loop exit
PB: predicated region body
PF: predicated region fallthrough
CT: control target
= control target key end

     0   :  { %s2092_s18 = smov 0   ;;  %s2094_s19 = smov 0   ;;  %s2395_s0 = inlined_call_operand.vmem [shape: bf16[512,640], index: 0, kind: input, shape index: {}]   ;;  %s2396_s1 = inlined_call_operand.vmem [shape: bf16[640,128], index: 1, kind: input, shape index: {}]   ;;  %s2397_s2 = inlined_call_operand.vmem [shape: f32[1,128], index: 2, kind: input, shape index: {}]   ;;  %s2398_s3 = inlined_call_operand.vmem [shape: f32[1,128], index: 3, kind: input, shape index: {}]   ;;  %s2399_s4 = inlined_call_operand.vmem [shape: bf16[512,128], index: 4, kind: input, shape index: {}]   ;;  %s2400_s5 = inlined_call_operand.vmem [shape: bf16[512,128], index: 5, kind: output, shape index: {}]  }
   0x1   :  { %s2096_s20 = smov 0   ;;  %s2098_s21 = smov 0  }
   0x2   :  { %s2100_s22 = smov 0   ;;  %s2102_s23 = smov 0  }
   0x3   :  { %s2104_s24 = smov 0  }
   0x4 LB: > { %s27_s25 = sadd.s32 1, %s2051_s22  ;;  %s34_s26 = sadd.s32 1, %s2055_s23  ;;  %s2059_s24 = sphi %s2104_s24, %s15_s24   ;;  %s2055_s23 = sphi %s2102_s23, %s2406_s23   ;;  %s2051_s22 = sphi %s2100_s22, %s2405_s22   ;;  %s2047_s21 = sphi %s2098_s21, %s2404_s21   ;;  %s2043_s20 = sphi %s2096_s20, %s2403_s20   ;;  %s2039_s19 = sphi %s2094_s19, %s2402_s19   ;;  %s2035_s18 = sphi %s2092_s18, %s2401_s18  }
   0x5   : > { %p28_p0 = scmp.ge.s32.totalorder %s27_s25, 5  ;;  %p50_p1 = scmp.ne.s32.totalorder %s2039_s19, %s2035_s18 }
   0x6   : > { %p51_p2 = scmp.eq.s32.totalorder %s2059_s24, 0  ;;  %s43_s30 = sadd.s32 1, %s2039_s19 }
   0x7   : > { %s2408_s25 = smov (%p28_p0, %s27_s25), 0  ;;  %s2410_s26 = smov (!%p28_p0, %s34_s26), %s2055_s23 }
   0x8   : > { %p52_p3 = por %p51_p2, %p50_p1  ;;  %p36_p4 = scmp.ge.s32.totalorder %s2410_s26, 2 }
   0x9   : > { %s39_s27 = ssub.s32 %s2051_s22, %s2408_s25  ;;  %p1554_p6 = scmp.ge.s32.totalorder %s2059_s24, 10 }
   0xa   : > { %s2412_s26 = smov (%p36_p4, %s2410_s26), 0 }
   0xb   : > { %s38_s28 = ssub.s32 %s2055_s23, %s2412_s26  ;;  %224 = sbr.rel (%p1554_p6) target bundleno = 46 (0x2e), region = 24 }
   0xc   : > { %s40_s29 = sor.u32 %s39_s27, %s38_s28 }
   0xd   : > { %p41_p5 = scmp.eq.s32.totalorder %s40_s29, 0 }
   0xf   : > { %s2143_s6 = scalar_select %p41_p5, %s2039_s19, %s43_s30  }
  0x12   : > { %227 = sbr.rel (!%p52_p3) target bundleno = 46 (0x2e), region = 28  ;;  %s229_s7 = sand.u32 (%p52_p3), 1, %s2039_s19  }
  0x13   : > { %s1923_s8 = smul.u32 (%p52_p3), 160, %s2055_s23  ;;  %s1555_s9 = sshll.u32 (%p52_p3), %s229_s7, 7 }
  0x14   : > { %s2157_s15 = scalar_lea.vmem (%p52_p3), [#allocation3], %s1555_s9 }
  0x15   : > { %s234_s10 = sadd.s32 (%p52_p3), %s2051_s22, %s1923_s8 }
  0x16   : > { %s1558_s11 = sshll.u32 (%p52_p3), %s234_s10, 2 }
  0x17   : > { %s2152_s14 = scalar_lea.vmem (%p52_p3), %s2395_s0, %s1558_s11 }
  0x18   : > { %v252_v0 = vld [vmem:[%s2152_s14] sm:$0xf] (%p52_p3)  ;;  %v254_v1 = vld [vmem:[%s2152_s14 + $0x14] sm:$0xf] (%p52_p3)  ;;  %v256_v2 = vld [vmem:[%s2152_s14 + $0x28] sm:$0xf] (%p52_p3) }
  0x19   : > { %253 = vst [vmem:[%s2157_s15] sm:$0xf] %v252_v0  ;;  %255 = vst [vmem:[%s2157_s15 + $0x4] sm:$0xf] %v254_v1  ;;  %v258_v3 = vld [vmem:[%s2152_s14 + $0x3c] sm:$0xf] }
  0x1a   : > { %257 = vst [vmem:[%s2157_s15 + $0x8] sm:$0xf] %v256_v2  ;;  %v260_v4 = vld [vmem:[%s2152_s14 + $0x50] sm:$0xf]  ;;  %v262_v5 = vld [vmem:[%s2152_s14 + $0x64] sm:$0xf] }
  0x1b   : > { %259 = vst [vmem:[%s2157_s15 + $0xc] sm:$0xf] %v258_v3  ;;  %261 = vst [vmem:[%s2157_s15 + $0x10] sm:$0xf] %v260_v4  ;;  %v264_v6 = vld [vmem:[%s2152_s14 + $0x78] sm:$0xf] }
  0x1c   : > { %263 = vst [vmem:[%s2157_s15 + $0x14] sm:$0xf] %v262_v5  ;;  %v266_v7 = vld [vmem:[%s2152_s14 + $0x8c] sm:$0xf]  ;;  %v268_v8 = vld [vmem:[%s2152_s14 + $0xa0] sm:$0xf] }
  0x1d   : > { %265 = vst [vmem:[%s2157_s15 + $0x18] sm:$0xf] %v264_v6  ;;  %267 = vst [vmem:[%s2157_s15 + $0x1c] sm:$0xf] %v266_v7  ;;  %v270_v9 = vld [vmem:[%s2152_s14 + $0xb4] sm:$0xf] }
  0x1e   : > { %269 = vst [vmem:[%s2157_s15 + $0x20] sm:$0xf] %v268_v8  ;;  %v272_v10 = vld [vmem:[%s2152_s14 + $0xc8] sm:$0xf]  ;;  %v274_v11 = vld [vmem:[%s2152_s14 + $0xdc] sm:$0xf] }
  0x1f   : > { %271 = vst [vmem:[%s2157_s15 + $0x24] sm:$0xf] %v270_v9  ;;  %273 = vst [vmem:[%s2157_s15 + $0x28] sm:$0xf] %v272_v10  ;;  %v276_v12 = vld [vmem:[%s2152_s14 + $0xf0] sm:$0xf] }
  0x20   : > { %275 = vst [vmem:[%s2157_s15 + $0x2c] sm:$0xf] %v274_v11  ;;  %v278_v13 = vld [vmem:[%s2152_s14 + $0x104] sm:$0xf]  ;;  %v280_v14 = vld [vmem:[%s2152_s14 + $0x118] sm:$0xf] }
  0x21   : > { %277 = vst [vmem:[%s2157_s15 + $0x30] sm:$0xf] %v276_v12  ;;  %279 = vst [vmem:[%s2157_s15 + $0x34] sm:$0xf] %v278_v13  ;;  %v282_v15 = vld [vmem:[%s2152_s14 + $0x12c] sm:$0xf] }
  0x22   : > { %281 = vst [vmem:[%s2157_s15 + $0x38] sm:$0xf] %v280_v14  ;;  %v284_v16 = vld [vmem:[%s2152_s14 + $0x140] sm:$0xf]  ;;  %v286_v17 = vld [vmem:[%s2152_s14 + $0x154] sm:$0xf] }
  0x23   : > { %283 = vst [vmem:[%s2157_s15 + $0x3c] sm:$0xf] %v282_v15  ;;  %285 = vst [vmem:[%s2157_s15 + $0x40] sm:$0xf] %v284_v16  ;;  %v288_v18 = vld [vmem:[%s2152_s14 + $0x168] sm:$0xf] }
  0x24   : > { %287 = vst [vmem:[%s2157_s15 + $0x44] sm:$0xf] %v286_v17  ;;  %v290_v19 = vld [vmem:[%s2152_s14 + $0x17c] sm:$0xf]  ;;  %v292_v20 = vld [vmem:[%s2152_s14 + $0x190] sm:$0xf] }
  0x25   : > { %289 = vst [vmem:[%s2157_s15 + $0x48] sm:$0xf] %v288_v18  ;;  %291 = vst [vmem:[%s2157_s15 + $0x4c] sm:$0xf] %v290_v19  ;;  %v294_v21 = vld [vmem:[%s2152_s14 + $0x1a4] sm:$0xf] }
  0x26   : > { %293 = vst [vmem:[%s2157_s15 + $0x50] sm:$0xf] %v292_v20  ;;  %v296_v22 = vld [vmem:[%s2152_s14 + $0x1b8] sm:$0xf]  ;;  %v298_v23 = vld [vmem:[%s2152_s14 + $0x1cc] sm:$0xf] }
  0x27   : > { %295 = vst [vmem:[%s2157_s15 + $0x54] sm:$0xf] %v294_v21  ;;  %297 = vst [vmem:[%s2157_s15 + $0x58] sm:$0xf] %v296_v22  ;;  %v300_v24 = vld [vmem:[%s2152_s14 + $0x1e0] sm:$0xf] }
  0x28   : > { %299 = vst [vmem:[%s2157_s15 + $0x5c] sm:$0xf] %v298_v23  ;;  %v302_v25 = vld [vmem:[%s2152_s14 + $0x1f4] sm:$0xf]  ;;  %v304_v26 = vld [vmem:[%s2152_s14 + $0x208] sm:$0xf] }
  0x29   : > { %301 = vst [vmem:[%s2157_s15 + $0x60] sm:$0xf] %v300_v24  ;;  %303 = vst [vmem:[%s2157_s15 + $0x64] sm:$0xf] %v302_v25  ;;  %v306_v27 = vld [vmem:[%s2152_s14 + $0x21c] sm:$0xf] }
  0x2a   : > { %305 = vst [vmem:[%s2157_s15 + $0x68] sm:$0xf] %v304_v26  ;;  %v308_v28 = vld [vmem:[%s2152_s14 + $0x230] sm:$0xf]  ;;  %v310_v29 = vld [vmem:[%s2152_s14 + $0x244] sm:$0xf] }
  0x2b   : > { %307 = vst [vmem:[%s2157_s15 + $0x6c] sm:$0xf] %v306_v27  ;;  %309 = vst [vmem:[%s2157_s15 + $0x70] sm:$0xf] %v308_v28  ;;  %v312_v30 = vld [vmem:[%s2152_s14 + $0x258] sm:$0xf] }
  0x2c   : > { %311 = vst [vmem:[%s2157_s15 + $0x74] sm:$0xf] %v310_v29  ;;  %v314_v31 = vld [vmem:[%s2152_s14 + $0x26c] sm:$0xf]  ;;  %313 = vst [vmem:[%s2157_s15 + $0x78] sm:$0xf] %v312_v30 }
  0x2d   : > { %315 = vst [vmem:[%s2157_s15 + $0x7c] sm:$0xf] %v314_v31 }
  0x2e PF: > { %p1559_p7 = scmp.ge.s32.totalorder %s2059_s24, 1  ;;  %p425_p8 = scmp.lt.s32.totalorder %s2059_s24, 11 }
  0x30   : > { %p426_p9 = pnand %p1559_p7, %p425_p8 }
  0x31   : > { %s432_s16 = sand.u32 (!%p426_p9), 1, %s2035_s18   ;;  %s1561_s17 = sshll.u32 (!%p426_p9), %s2043_s20, 4 }
  0x32   : > { %429 = sbr.rel (%p426_p9) target bundleno = 390 (0x186), region = 77  ;;  %s1560_s27 = sshll.u32 (!%p426_p9), %s432_s16, 7 }
  0x33   : > { %p486_p10 = scmp.lt.s32.totalorder (!%p426_p9), %s1561_s17, 79  ;;  %s1563_s28 = sshll.u32 (!%p426_p9), %s2047_s21, 5 }
  0x34   : > { %p501_p11 = scmp.lt.s32.totalorder (!%p426_p9), %s1563_s28, 63  ;;  %s2240_s21 = scalar_lea.vmem (!%p426_p9), [#allocation3], %s1560_s27 }
  0x35   : > { %p1567_p12 = scmp.ne.s32.totalorder (!%p426_p9), %s2043_s20, 0 }
  0x39   : > { %s2414_s17 = smov (!%p486_p10, %s1561_s17), 79  ;;  %s2416_s28 = smov (!%p501_p11, %s1563_s28), 63 }
  0x3a   : > { %s1562_s29 = sshll.u32 %s2414_s17, 2  ;;  %s1564_s9 = sshll.u32 %s2416_s28, 2  ;;  %v2061_v32 = vmov (!%p1567_p12), 0.0  }
  0x3b   : > { %s2228_s8 = scalar_lea.vmem %s2396_s1, %s1562_s29  ;;  %s2233_s12 = scalar_lea.vmem %s2399_s4, %s1564_s9  ;;  %523 = vst [vmem:[#allocation2] sm:$0xff] (!%p1567_p12), %v2061_v32  ;;  %524 = vst [vmem:[#allocation2 + $0x8] sm:$0xff] (!%p1567_p12), %v2061_v32 }
  0x3c   : > { %s2238_s14 = scalar_lea.vmem %s2400_s5, %s1564_s9  ;;  %522 = sbr.rel (%p1567_p12) target bundleno = 75 (0x4b), region = 85  ;;  %525 = vst [vmem:[#allocation2 + $0x10] sm:$0xff] (!%p1567_p12), %v2061_v32  ;;  %526 = vst [vmem:[#allocation2 + $0x18] sm:$0xff] (!%p1567_p12), %v2061_v32 }
  0x3d   : > { %527 = vst [vmem:[#allocation2 + $0x20] sm:$0xff] (!%p1567_p12), %v2061_v32  ;;  %528 = vst [vmem:[#allocation2 + $0x28] sm:$0xff] (!%p1567_p12), %v2061_v32 }
  0x3e   : > { %529 = vst [vmem:[#allocation2 + $0x30] sm:$0xff] (!%p1567_p12), %v2061_v32  ;;  %530 = vst [vmem:[#allocation2 + $0x38] sm:$0xff] (!%p1567_p12), %v2061_v32 }
  0x3f   : > { %531 = vst [vmem:[#allocation2 + $0x40] sm:$0xff] (!%p1567_p12), %v2061_v32  ;;  %532 = vst [vmem:[#allocation2 + $0x48] sm:$0xff] (!%p1567_p12), %v2061_v32 }
  0x40   : > { %533 = vst [vmem:[#allocation2 + $0x50] sm:$0xff] (!%p1567_p12), %v2061_v32  ;;  %534 = vst [vmem:[#allocation2 + $0x58] sm:$0xff] (!%p1567_p12), %v2061_v32 }
  0x41   : > { %535 = vst [vmem:[#allocation2 + $0x60] sm:$0xff] (!%p1567_p12), %v2061_v32  ;;  %536 = vst [vmem:[#allocation2 + $0x68] sm:$0xff] (!%p1567_p12), %v2061_v32 }
  0x42   : > { %537 = vst [vmem:[#allocation2 + $0x70] sm:$0xff] (!%p1567_p12), %v2061_v32  ;;  %538 = vst [vmem:[#allocation2 + $0x78] sm:$0xff] (!%p1567_p12), %v2061_v32 }
  0x43   : > { %539 = vst [vmem:[#allocation2 + $0x80] sm:$0xff] %v2061_v32  ;;  %540 = vst [vmem:[#allocation2 + $0x88] sm:$0xff] %v2061_v32 }
  0x44   : > { %541 = vst [vmem:[#allocation2 + $0x90] sm:$0xff] %v2061_v32  ;;  %542 = vst [vmem:[#allocation2 + $0x98] sm:$0xff] %v2061_v32 }
  0x45   : > { %543 = vst [vmem:[#allocation2 + $0xa0] sm:$0xff] %v2061_v32  ;;  %544 = vst [vmem:[#allocation2 + $0xa8] sm:$0xff] %v2061_v32 }
  0x46   : > { %545 = vst [vmem:[#allocation2 + $0xb0] sm:$0xff] %v2061_v32  ;;  %546 = vst [vmem:[#allocation2 + $0xb8] sm:$0xff] %v2061_v32 }
  0x47   : > { %547 = vst [vmem:[#allocation2 + $0xc0] sm:$0xff] %v2061_v32  ;;  %548 = vst [vmem:[#allocation2 + $0xc8] sm:$0xff] %v2061_v32 }
  0x48   : > { %549 = vst [vmem:[#allocation2 + $0xd0] sm:$0xff] %v2061_v32  ;;  %550 = vst [vmem:[#allocation2 + $0xd8] sm:$0xff] %v2061_v32 }
  0x49   : > { %551 = vst [vmem:[#allocation2 + $0xe0] sm:$0xff] %v2061_v32  ;;  %552 = vst [vmem:[#allocation2 + $0xe8] sm:$0xff] %v2061_v32 }
  0x4a   : > { %553 = vst [vmem:[#allocation2 + $0xf0] sm:$0xff] %v2061_v32  ;;  %554 = vst [vmem:[#allocation2 + $0xf8] sm:$0xff] %v2061_v32 }
  0x4b PF: > { %v1981_v33 = vld [vmem:[%s2228_s8] sm:$0xff]   ;;  %v1982_v34 = vld [vmem:[%s2228_s8 + $0x8] sm:$0xff]   ;;  %v1983_v35 = vld [vmem:[%s2228_s8 + $0x10] sm:$0xff]   ;;  %p1592_p13 = scmp.ne.s32.totalorder %s2043_s20, 4 }
  0x4c   : > { %1859 = vmatprep.subr.bf16.mxu0 %v1981_v33  ;;  %1907 = vmatprep.subr.bf16.mxu1 %v1981_v33  ;;  %v1984_v36 = vld [vmem:[%s2228_s8 + $0x18] sm:$0xff]   ;;  %v1989_v37 = vld [vmem:[%s2240_s21] sm:$0xff]   ;;  %v1986_v40 = vld [vmem:[%s2228_s8 + $0x28] sm:$0xff]  }
  0x4d   : > { %1860 = vmatpush3.bf16.msra.mxu0 %v1981_v33  ;;  %1915 = vmatpush3.bf16.msra.mxu1 %v1981_v33  ;;  %v1990_v38 = vld [vmem:[%s2240_s21 + $0x40] sm:$0xff]   ;;  %v1987_v41 = vld [vmem:[%s2228_s8 + $0x30] sm:$0xff]   ;;  %v1988_v42 = vld [vmem:[%s2228_s8 + $0x38] sm:$0xff]  }
  0x4e   : > { %1861 = vmatprep.subr.bf16.mxu0 %v1982_v34  ;;  %1908 = vmatprep.subr.bf16.mxu1 %v1982_v34  ;;  %v1985_v39 = vld [vmem:[%s2228_s8 + $0x20] sm:$0xff]   ;;  %v1991_v43 = vld [vmem:[%s2240_s21 + $0x8] sm:$0xff]   ;;  %v1993_v45 = vld [vmem:[%s2240_s21 + $0x10] sm:$0xff]  }
  0x4f   : > { %1875 = vmatprep.mubr.bf16.mxu0 %v1989_v37  ;;  %1891 = vmatprep.mubr.bf16.mxu1 %v1990_v38  ;;  %v1992_v44 = vld [vmem:[%s2240_s21 + $0x48] sm:$0xff]   ;;  %v1994_v46 = vld [vmem:[%s2240_s21 + $0x50] sm:$0xff]   ;;  %v1995_v47 = vld [vmem:[%s2240_s21 + $0x18] sm:$0xff]  }
  0x50   : > { %v1996_v48 = vld [vmem:[%s2240_s21 + $0x58] sm:$0xff]   ;;  %v1997_v49 = vld [vmem:[%s2240_s21 + $0x20] sm:$0xff]   ;;  %v1999_v51 = vld [vmem:[%s2240_s21 + $0x28] sm:$0xff]  }
  0x51   : > { %1862 = vmatpush3.bf16.msra.mxu0 %v1982_v34  ;;  %1916 = vmatpush3.bf16.msra.mxu1 %v1982_v34  ;;  %v1998_v50 = vld [vmem:[%s2240_s21 + $0x60] sm:$0xff]   ;;  %v2000_v52 = vld [vmem:[%s2240_s21 + $0x68] sm:$0xff]   ;;  %v2001_v53 = vld [vmem:[%s2240_s21 + $0x30] sm:$0xff]  }
  0x52   : > { %1863 = vmatprep.subr.bf16.mxu0 %v1983_v35  ;;  %1909 = vmatprep.subr.bf16.mxu1 %v1983_v35  ;;  %v2002_v54 = vld [vmem:[%s2240_s21 + $0x70] sm:$0xff]   ;;  %v2003_v55 = vld [vmem:[%s2240_s21 + $0x38] sm:$0xff]   ;;  %v555_v59 = vld [vmem:[#allocation2] sm:$0xff] }
  0x53   : > { %v2004_v56 = vld [vmem:[%s2240_s21 + $0x78] sm:$0xff]   ;;  %v557_v57 = vld [vmem:[#allocation2 + $0x10] sm:$0xff]  ;;  %v571_v60 = vld [vmem:[#allocation2 + $0x80] sm:$0xff] }
  0x54   : > { %v573_v58 = vld [vmem:[#allocation2 + $0x90] sm:$0xff]  ;;  %v558_v63 = vld [vmem:[#allocation2 + $0x18] sm:$0xff]  ;;  %v556_v5 = vld [vmem:[#allocation2 + $0x8] sm:$0xff] }
  0x55   : > { %1864 = vmatpush3.bf16.msra.mxu0 %v1983_v35  ;;  %1917 = vmatpush3.bf16.msra.mxu1 %v1983_v35  ;;  %v574_v0 = vld [vmem:[#allocation2 + $0x98] sm:$0xff]  ;;  %v572_v6 = vld [vmem:[#allocation2 + $0x88] sm:$0xff]  ;;  %v561_v17 = vld [vmem:[#allocation2 + $0x30] sm:$0xff] }
  0x56   : > { %1865 = vmatprep.subr.bf16.mxu0 %v1984_v36  ;;  %1910 = vmatprep.subr.bf16.mxu1 %v1984_v36  ;;  %v577_v18 = vld [vmem:[#allocation2 + $0xb0] sm:$0xff]  ;;  %v559_v19 = vld [vmem:[#allocation2 + $0x20] sm:$0xff]  ;;  %v562_v23 = vld [vmem:[#allocation2 + $0x38] sm:$0xff] }
  0x57   : > { %v575_v20 = vld [vmem:[#allocation2 + $0xa0] sm:$0xff]  ;;  %v578_v24 = vld [vmem:[#allocation2 + $0xb8] sm:$0xff]  ;;  %v560_v29 = vld [vmem:[#allocation2 + $0x28] sm:$0xff] }
  0x58   : > { %v576_v30 = vld [vmem:[#allocation2 + $0xa8] sm:$0xff] }
  0x59   : > { %1866 = vmatpush3.bf16.msra.mxu0 %v1984_v36  ;;  %1918 = vmatpush3.bf16.msra.mxu1 %v1984_v36 }
  0x5a   : > { %1867 = vmatprep.subr.bf16.mxu0 %v1985_v39  ;;  %1911 = vmatprep.subr.bf16.mxu1 %v1985_v39 }
  0x5d   : > { %1868 = vmatpush3.bf16.msra.mxu0 %v1985_v39  ;;  %1919 = vmatpush3.bf16.msra.mxu1 %v1985_v39 }
  0x5e   : > { %1869 = vmatprep.subr.bf16.mxu0 %v1986_v40  ;;  %1912 = vmatprep.subr.bf16.mxu1 %v1986_v40 }
  0x61   : > { %1870 = vmatpush3.bf16.msra.mxu0 %v1986_v40  ;;  %1920 = vmatpush3.bf16.msra.mxu1 %v1986_v40 }
  0x62   : > { %1871 = vmatprep.subr.bf16.mxu0 %v1987_v41  ;;  %1913 = vmatprep.subr.bf16.mxu1 %v1987_v41 }
  0x65   : > { %1872 = vmatpush3.bf16.msra.mxu0 %v1987_v41  ;;  %1921 = vmatpush3.bf16.msra.mxu1 %v1987_v41  ;;  %v565_v41 = vld [vmem:[#allocation2 + $0x50] sm:$0xff] }
  0x66   : > { %1873 = vmatprep.subr.bf16.mxu0 %v1988_v42  ;;  %1914 = vmatprep.subr.bf16.mxu1 %v1988_v42 }
  0x69   : > { %1874 = vmatpush3.bf16.msra.mxu0 %v1988_v42  ;;  %1922 = vmatpush3.bf16.msra.mxu1 %v1988_v42  ;;  %v581_v42 = vld [vmem:[#allocation2 + $0xd0] sm:$0xff] }
  0x6c   : > { %1876 = vmatmul.mubr.bf16.vlgmr.msra.gmra.mrb[0].mxu0 %v1991_v43  ;;  %1892 = vmatmul.mubr.bf16.vlgmr.msra.gmra.mrb[0].mxu1 %v1992_v44  ;;  %v563_v43 = vld [vmem:[#allocation2 + $0x40] sm:$0xff] }
  0x6d   : > { %1879 = vmatprep.mubr.bf16.mxu0 %v1993_v45  ;;  %1895 = vmatprep.mubr.bf16.mxu1 %v1994_v46  ;;  %v579_v44 = vld [vmem:[#allocation2 + $0xc0] sm:$0xff] }
  0x74   : > { %1880 = vmatmul.mubr.bf16.gmra.mrb[4].mxu0 %v1995_v47  ;;  %1896 = vmatmul.mubr.bf16.gmra.mrb[4].mxu1 %v1996_v48  ;;  %v566_v47 = vld [vmem:[#allocation2 + $0x58] sm:$0xff] }
  0x75   : > { %1883 = vmatprep.mubr.bf16.mxu0 %v1997_v49  ;;  %1899 = vmatprep.mubr.bf16.mxu1 %v1998_v50  ;;  %v582_v48 = vld [vmem:[#allocation2 + $0xd8] sm:$0xff] }
  0x7c   : > { %1884 = vmatmul.mubr.bf16.gmra.mrb[8].mxu0 %v1999_v51  ;;  %1900 = vmatmul.mubr.bf16.gmra.mrb[8].mxu1 %v2000_v52 }
  0x7d   : > { %1887 = vmatprep.mubr.bf16.mxu0 %v2001_v53  ;;  %1903 = vmatprep.mubr.bf16.mxu1 %v2002_v54  ;;  %v564_v53 = vld [vmem:[#allocation2 + $0x48] sm:$0xff] }
  0x7e   : > { %v580_v54 = vld [vmem:[#allocation2 + $0xc8] sm:$0xff] }
  0x84   : > { %1888 = vmatmul.mubr.bf16.gmra.mrb[12].mxu0 %v2003_v55  ;;  %1904 = vmatmul.mubr.bf16.gmra.mrb[12].mxu1 %v2004_v56 }
 0x13f   : > { %v1877_v61 = vpop.f32.mrb[0].mxu0  ;;  %v1893_v62 = vpop.f32.mrb[0].mxu1 }
 0x140   : > { %v942_v1 = vadd.f32 %v1877_v61, %v557_v57  ;;  %v958_v2 = vadd.f32 %v1893_v62, %v573_v58  ;;  %v813_v3 = vpop.f32.mrb[1].mxu0  ;;  %v877_v4 = vpop.f32.mrb[1].mxu1 }
 0x141   : > { %v940_v7 = vadd.f32 %v813_v3, %v555_v59  ;;  %v956_v8 = vadd.f32 %v877_v4, %v571_v60  ;;  %v1878_v9 = vpop.f32.mrb[2].mxu0  ;;  %v1894_v10 = vpop.f32.mrb[2].mxu1  ;;  %v567_v3 = vld [vmem:[#allocation2 + $0x60] sm:$0xff] }
 0x142   : > { %974 = vst [vmem:[#allocation2 + $0x10] sm:$0xff] %v942_v1  ;;  %990 = vst [vmem:[#allocation2 + $0x90] sm:$0xff] %v958_v2  ;;  %v943_v11 = vadd.f32 %v1878_v9, %v558_v63  ;;  %v959_v12 = vadd.f32 %v1894_v10, %v574_v0  ;;  %v816_v13 = vpop.f32.mrb[3].mxu0  ;;  %v880_v14 = vpop.f32.mrb[3].mxu1  ;;  %v569_v1 = vld [vmem:[#allocation2 + $0x70] sm:$0xff]  ;;  %v583_v4 = vld [vmem:[#allocation2 + $0xe0] sm:$0xff] }
 0x143   : > { %972 = vst [vmem:[#allocation2] sm:$0xff] %v940_v7  ;;  %988 = vst [vmem:[#allocation2 + $0x80] sm:$0xff] %v956_v8  ;;  %v941_v15 = vadd.f32 %v816_v13, %v556_v5  ;;  %v957_v16 = vadd.f32 %v880_v14, %v572_v6  ;;  %v585_v2 = vld [vmem:[#allocation2 + $0xf0] sm:$0xff]  ;;  %v570_v7 = vld [vmem:[#allocation2 + $0x78] sm:$0xff] }
 0x144   : > { %975 = vst [vmem:[#allocation2 + $0x18] sm:$0xff] %v943_v11  ;;  %991 = vst [vmem:[#allocation2 + $0x98] sm:$0xff] %v959_v12  ;;  %v586_v8 = vld [vmem:[#allocation2 + $0xf8] sm:$0xff]  ;;  %v568_v13 = vld [vmem:[#allocation2 + $0x68] sm:$0xff] }
 0x145   : > { %973 = vst [vmem:[#allocation2 + $0x8] sm:$0xff] %v941_v15  ;;  %989 = vst [vmem:[#allocation2 + $0x88] sm:$0xff] %v957_v16  ;;  %v584_v14 = vld [vmem:[#allocation2 + $0xe8] sm:$0xff] }
 0x147   : > { %v1881_v21 = vpop.f32.mrb[4].mxu0  ;;  %v1897_v22 = vpop.f32.mrb[4].mxu1 }
 0x148   : > { %v946_v25 = vadd.f32 %v1881_v21, %v561_v17  ;;  %v962_v26 = vadd.f32 %v1897_v22, %v577_v18  ;;  %v829_v27 = vpop.f32.mrb[5].mxu0  ;;  %v893_v28 = vpop.f32.mrb[5].mxu1 }
 0x149   : > { %v944_v31 = vadd.f32 %v829_v27, %v559_v19  ;;  %v960_v32 = vadd.f32 %v893_v28, %v575_v20  ;;  %v1882_v33 = vpop.f32.mrb[6].mxu0  ;;  %v1898_v34 = vpop.f32.mrb[6].mxu1  ;;  %v2271_v27 = vld [vmem:[%s2397_s2] ss:$0 sm:$0xff] (!%p1592_p13) }
 0x14a   : > { %978 = vst [vmem:[#allocation2 + $0x30] sm:$0xff] %v946_v25  ;;  %994 = vst [vmem:[#allocation2 + $0xb0] sm:$0xff] %v962_v26  ;;  %v947_v35 = vadd.f32 %v1882_v33, %v562_v23  ;;  %v963_v36 = vadd.f32 %v1898_v34, %v578_v24  ;;  %v832_v37 = vpop.f32.mrb[7].mxu0  ;;  %v896_v38 = vpop.f32.mrb[7].mxu1  ;;  %v1008_v25 = vld [vmem:[#allocation2] sm:$0xff] (!%p1592_p13) }
 0x14b   : > { %976 = vst [vmem:[#allocation2 + $0x20] sm:$0xff] %v944_v31  ;;  %992 = vst [vmem:[#allocation2 + $0xa0] sm:$0xff] %v960_v32  ;;  %v945_v39 = vadd.f32 %v832_v37, %v560_v29  ;;  %v961_v40 = vadd.f32 %v896_v38, %v576_v30  ;;  %v1047_v28 = vmul.f32 (!%p1592_p13), %v2271_v27, %v1008_v25  ;;  %v2278_v30 = vld [vmem:[%s2398_s3] ss:$0 sm:$0xff] (!%p1592_p13)  ;;  %v1010_v32 = vld [vmem:[#allocation2 + $0x10] sm:$0xff] (!%p1592_p13) }
 0x14c   : > { %979 = vst [vmem:[#allocation2 + $0x38] sm:$0xff] %v947_v35  ;;  %995 = vst [vmem:[#allocation2 + $0xb8] sm:$0xff] %v963_v36  ;;  %v1009_v26 = vld [vmem:[#allocation2 + $0x8] sm:$0xff] (!%p1592_p13)  ;;  %v1662_v31 = vld [vmem:[%s2233_s12] sm:$0xff] (!%p1592_p13)   ;;  %v1049_v36 = vmul.f32 (!%p1592_p13), %v2271_v27, %v1010_v32 }
 0x14d   : > { %977 = vst [vmem:[#allocation2 + $0x28] sm:$0xff] %v945_v39  ;;  %993 = vst [vmem:[#allocation2 + $0xa8] sm:$0xff] %v961_v40  ;;  %v1048_v29 = vmul.f32 (!%p1592_p13), %v2271_v27, %v1009_v26  ;;  %v1663_v33 = vunpack.c.l.bf16 (!%p1592_p13), %v1662_v31  ;;  %v1664_v34 = vunpack.c.h.bf16 (!%p1592_p13), %v1662_v31  ;;  %v1011_v35 = vld [vmem:[#allocation2 + $0x18] sm:$0xff] (!%p1592_p13)  ;;  %v1805_v37 = vld [vmem:[%s2233_s12 + $0x8] sm:$0xff] (!%p1592_p13)   ;;  %v1086_v39 = vadd.f32 (!%p1592_p13), %v2278_v30, %v1047_v28 }
 0x14f   : > { %v1885_v45 = vpop.f32.mrb[8].mxu0  ;;  %v1901_v46 = vpop.f32.mrb[8].mxu1  ;;  %v1087_v40 = vadd.f32 (!%p1592_p13), %v2278_v30, %v1048_v29 }
 0x150   : > { %v950_v49 = vadd.f32 %v1885_v45, %v565_v41  ;;  %v966_v50 = vadd.f32 %v1901_v46, %v581_v42  ;;  %v845_v51 = vpop.f32.mrb[9].mxu0  ;;  %v909_v52 = vpop.f32.mrb[9].mxu1  ;;  %v1050_v41 = vmul.f32 (!%p1592_p13), %v2271_v27, %v1011_v35  ;;  %v1667_v42 = vunpack.c.l.bf16 (!%p1592_p13), %v1805_v37 }
 0x151   : > { %v948_v55 = vadd.f32 %v845_v51, %v563_v43  ;;  %v964_v56 = vadd.f32 %v909_v52, %v579_v44  ;;  %v1886_v57 = vpop.f32.mrb[10].mxu0  ;;  %v1902_v58 = vpop.f32.mrb[10].mxu1  ;;  %v1806_v44 = vld [vmem:[%s2233_s12 + $0x10] sm:$0xff] (!%p1592_p13)   ;;  %v1088_v45 = vadd.f32 (!%p1592_p13), %v2278_v30, %v1049_v36  ;;  %v1668_v46 = vunpack.c.h.bf16 (!%p1592_p13), %v1805_v37 }
 0x152   : > { %982 = vst [vmem:[#allocation2 + $0x50] sm:$0xff] %v950_v49  ;;  %998 = vst [vmem:[#allocation2 + $0xd0] sm:$0xff] %v966_v50  ;;  %v951_v59 = vadd.f32 %v1886_v57, %v566_v47  ;;  %v967_v60 = vadd.f32 %v1902_v58, %v582_v48  ;;  %v848_v61 = vpop.f32.mrb[11].mxu0  ;;  %v912_v62 = vpop.f32.mrb[11].mxu1  ;;  %v1012_v38 = vld [vmem:[#allocation2 + $0x20] sm:$0xff] (!%p1592_p13)  ;;  %v1014_v49 = vld [vmem:[#allocation2 + $0x30] sm:$0xff] (!%p1592_p13)  ;;  %v1182_v50 = vadd.f32 (!%p1592_p13), %v1663_v33, %v1086_v39  ;;  %v1672_v58 = vunpack.c.h.bf16 (!%p1592_p13), %v1806_v44 }
 0x153   : > { %980 = vst [vmem:[#allocation2 + $0x40] sm:$0xff] %v948_v55  ;;  %996 = vst [vmem:[#allocation2 + $0xc0] sm:$0xff] %v964_v56  ;;  %v949_v63 = vadd.f32 %v848_v61, %v564_v53  ;;  %v965_v0 = vadd.f32 %v912_v62, %v580_v54  ;;  %v1051_v47 = vmul.f32 (!%p1592_p13), %v2271_v27, %v1012_v38  ;;  %v1671_v53 = vunpack.c.l.bf16 (!%p1592_p13), %v1806_v44  ;;  %v1015_v54 = vld [vmem:[#allocation2 + $0x38] sm:$0xff] (!%p1592_p13) }
 0x154   : > { %983 = vst [vmem:[#allocation2 + $0x58] sm:$0xff] %v951_v59  ;;  %999 = vst [vmem:[#allocation2 + $0xd8] sm:$0xff] %v967_v60  ;;  %v1013_v43 = vld [vmem:[#allocation2 + $0x28] sm:$0xff] (!%p1592_p13)  ;;  %v1183_v51 = vadd.f32 (!%p1592_p13), %v1664_v34, %v1087_v40  ;;  %v1089_v52 = vadd.f32 (!%p1592_p13), %v2278_v30, %v1050_v41  ;;  %v1184_v55 = vadd.f32 (!%p1592_p13), %v1667_v42, %v1088_v45  ;;  %v1807_v59 = vld [vmem:[%s2233_s12 + $0x18] sm:$0xff] (!%p1592_p13)   ;;  %v1214_v60 = vmax.f32 (!%p1592_p13), %v1182_v50, 0.0 }
 0x155   : > { %981 = vst [vmem:[#allocation2 + $0x48] sm:$0xff] %v949_v63  ;;  %997 = vst [vmem:[#allocation2 + $0xc8] sm:$0xff] %v965_v0  ;;  %v1052_v48 = vmul.f32 (!%p1592_p13), %v2271_v27, %v1013_v43  ;;  %v1090_v56 = vadd.f32 (!%p1592_p13), %v2278_v30, %v1051_v47  ;;  %v1053_v63 = vmul.f32 (!%p1592_p13), %v2271_v27, %v1014_v49  ;;  %v1810_v34 = vld [vmem:[%s2233_s12 + $0x30] sm:$0xff] (!%p1592_p13)  }
 0x156   : > { %v1215_v61 = vmax.f32 (!%p1592_p13), %v1183_v51, 0.0  ;;  %v1185_v62 = vadd.f32 (!%p1592_p13), %v1668_v46, %v1089_v52  ;;  %v1216_v0 = vmax.f32 (!%p1592_p13), %v1184_v55, 0.0  ;;  %v1687_v47 = vunpack.c.l.bf16 (!%p1592_p13), %v1810_v34 }
 0x157   : > { %v1889_v5 = vpop.f32.mrb[12].mxu0  ;;  %v1905_v6 = vpop.f32.mrb[12].mxu1  ;;  %1007 = sbr.rel (%p1592_p13) target bundleno = 390 (0x186), region = 89  ;;  %v1091_v57 = vadd.f32 (!%p1592_p13), %v2278_v30, %v1052_v48 }
 0x158   : > { %v954_v9 = vadd.f32 %v1889_v5, %v569_v1  ;;  %v970_v10 = vadd.f32 %v1905_v6, %v585_v2  ;;  %v861_v11 = vpop.f32.mrb[13].mxu0  ;;  %v925_v12 = vpop.f32.mrb[13].mxu1  ;;  %v1186_v1 = vadd.f32 (!%p1592_p13), %v1671_v53, %v1090_v56  ;;  %v1728_v6 = vpack.c.bf16 (!%p1592_p13), %v1215_v61, %v1214_v60  ;;  %v1811_v53 = vld [vmem:[%s2233_s12 + $0x38] sm:$0xff] (!%p1592_p13)  }
 0x159   : > { %v952_v15 = vadd.f32 %v861_v11, %v567_v3  ;;  %v968_v16 = vadd.f32 %v925_v12, %v583_v4  ;;  %v1890_v17 = vpop.f32.mrb[14].mxu0  ;;  %v1906_v18 = vpop.f32.mrb[14].mxu1  ;;  %v1187_v2 = vadd.f32 (!%p1592_p13), %v1672_v58, %v1091_v57  ;;  %v1054_v3 = vmul.f32 (!%p1592_p13), %v2271_v27, %v1015_v54  ;;  %v1024_v58 = vld [vmem:[#allocation2 + $0x80] sm:$0xff] (!%p1592_p13) }
 0x15a   : > { %986 = vst [vmem:[#allocation2 + $0x70] sm:$0xff] %v954_v9  ;;  %1002 = vst [vmem:[#allocation2 + $0xf0] sm:$0xff] %v970_v10  ;;  %v955_v19 = vadd.f32 %v1890_v17, %v570_v7  ;;  %v971_v20 = vadd.f32 %v1906_v18, %v586_v8  ;;  %v864_v21 = vpop.f32.mrb[15].mxu0  ;;  %v928_v22 = vpop.f32.mrb[15].mxu1  ;;  %v1016_v4 = vld [vmem:[#allocation2 + $0x40] sm:$0xff] (!%p1592_p13)  ;;  %v1217_v7 = vmax.f32 (!%p1592_p13), %v1185_v62, 0.0  ;;  %v1092_v8 = vadd.f32 (!%p1592_p13), %v2278_v30, %v1053_v63 }
 0x15b   : > { %984 = vst [vmem:[#allocation2 + $0x60] sm:$0xff] %v952_v15  ;;  %1000 = vst [vmem:[#allocation2 + $0xe0] sm:$0xff] %v968_v16  ;;  %v953_v23 = vadd.f32 %v864_v21, %v568_v13  ;;  %v969_v24 = vadd.f32 %v928_v22, %v584_v14  ;;  %v1675_v9 = vunpack.c.l.bf16 (!%p1592_p13), %v1807_v59  ;;  %v1808_v10 = vld [vmem:[%s2233_s12 + $0x20] sm:$0xff] (!%p1592_p13)   ;;  %v1218_v11 = vmax.f32 (!%p1592_p13), %v1186_v1, 0.0  ;;  %v1018_v15 = vld [vmem:[#allocation2 + $0x50] sm:$0xff] (!%p1592_p13) }
 0x15c   : > { %987 = vst [vmem:[#allocation2 + $0x78] sm:$0xff] %v955_v19  ;;  %1003 = vst [vmem:[#allocation2 + $0xf8] sm:$0xff] %v971_v20  ;;  %v1017_v5 = vld [vmem:[#allocation2 + $0x48] sm:$0xff] (!%p1592_p13)  ;;  %v1219_v12 = vmax.f32 (!%p1592_p13), %v1187_v2, 0.0  ;;  %v1093_v13 = vadd.f32 (!%p1592_p13), %v2278_v30, %v1054_v3  ;;  %v1676_v14 = vunpack.c.h.bf16 (!%p1592_p13), %v1807_v59  ;;  %v1733_v16 = vpack.c.bf16 (!%p1592_p13), %v1217_v7, %v1216_v0  ;;  %v1019_v20 = vld [vmem:[#allocation2 + $0x58] sm:$0xff] (!%p1592_p13) }
 0x15d   : > { %985 = vst [vmem:[#allocation2 + $0x68] sm:$0xff] %v953_v23  ;;  %1001 = vst [vmem:[#allocation2 + $0xe8] sm:$0xff] %v969_v24  ;;  %v1188_v17 = vadd.f32 (!%p1592_p13), %v1675_v9, %v1092_v8  ;;  %v1055_v18 = vmul.f32 (!%p1592_p13), %v2271_v27, %v1016_v4  ;;  %v1056_v19 = vmul.f32 (!%p1592_p13), %v2271_v27, %v1017_v5  ;;  %v1809_v21 = vld [vmem:[%s2233_s12 + $0x28] sm:$0xff] (!%p1592_p13)   ;;  %v1679_v24 = vunpack.c.l.bf16 (!%p1592_p13), %v1808_v10  ;;  %v1812_v4 = vld [vmem:[%s2233_s12 + $0x40] sm:$0xff] (!%p1592_p13)  }
 0x15e   : > { %1729 = vst [vmem:[%s2238_s14] sm:$0xff] %v1728_v6   ;;  %v1738_v22 = vpack.c.bf16 %v1219_v12, %v1218_v11  ;;  %v1189_v23 = vadd.f32 %v1676_v14, %v1093_v13  ;;  %v1680_v25 = vunpack.c.h.bf16 %v1808_v10  ;;  %1820 = vst [vmem:[%s2238_s14 + $0x8] sm:$0xff] %v1733_v16   ;;  %v1057_v32 = vmul.f32 %v2271_v27, %v1018_v15  ;;  %v1025_v63 = vld [vmem:[#allocation2 + $0x88] sm:$0xff]  ;;  %v1026_v9 = vld [vmem:[#allocation2 + $0x90] sm:$0xff] }
 0x15f   : > { %v1220_v28 = vmax.f32 %v1188_v17, 0.0  ;;  %v1094_v29 = vadd.f32 %v2278_v30, %v1055_v18  ;;  %v1095_v31 = vadd.f32 %v2278_v30, %v1056_v19  ;;  %v1058_v36 = vmul.f32 %v2271_v27, %v1019_v20  ;;  %v1027_v14 = vld [vmem:[#allocation2 + $0x98] sm:$0xff]  ;;  %v1813_v15 = vld [vmem:[%s2233_s12 + $0x48] sm:$0xff]   ;;  %v1028_v20 = vld [vmem:[#allocation2 + $0xa0] sm:$0xff] }
 0x160   : > { %1821 = vst [vmem:[%s2238_s14 + $0x10] sm:$0xff] %v1738_v22   ;;  %v1221_v35 = vmax.f32 %v1189_v23, 0.0  ;;  %v1683_v37 = vunpack.c.l.bf16 %v1809_v21  ;;  %v1684_v38 = vunpack.c.h.bf16 %v1809_v21  ;;  %v1096_v41 = vadd.f32 %v2278_v30, %v1057_v32  ;;  %v1814_v32 = vld [vmem:[%s2233_s12 + $0x50] sm:$0xff]  }
 0x161   : > { %v1190_v39 = vadd.f32 %v1679_v24, %v1094_v29  ;;  %v1191_v40 = vadd.f32 %v1680_v25, %v1095_v31  ;;  %v1022_v43 = vld [vmem:[#allocation2 + $0x70] sm:$0xff]  ;;  %v1097_v45 = vadd.f32 %v2278_v30, %v1058_v36  ;;  %v1688_v56 = vunpack.c.h.bf16 %v1810_v34  ;;  %v1029_v25 = vld [vmem:[#allocation2 + $0xa8] sm:$0xff] }
 0x162   : > { %v1020_v26 = vld [vmem:[#allocation2 + $0x60] sm:$0xff]  ;;  %v1743_v44 = vpack.c.bf16 %v1221_v35, %v1220_v28  ;;  %v1192_v51 = vadd.f32 %v1683_v37, %v1096_v41  ;;  %v1061_v57 = vmul.f32 %v2271_v27, %v1022_v43  ;;  %v1691_v3 = vunpack.c.l.bf16 %v1811_v53  ;;  %v1030_v37 = vld [vmem:[#allocation2 + $0xb0] sm:$0xff] }
 0x163   : > { %v1059_v42 = vmul.f32 %v2271_v27, %v1020_v26  ;;  %v1023_v48 = vld [vmem:[#allocation2 + $0x78] sm:$0xff]  ;;  %v1222_v49 = vmax.f32 %v1190_v39, 0.0  ;;  %v1223_v50 = vmax.f32 %v1191_v40, 0.0  ;;  %v1193_v54 = vadd.f32 %v1684_v38, %v1097_v45 }
 0x164   : > { %v1021_v33 = vld [vmem:[#allocation2 + $0x68] sm:$0xff]  ;;  %1822 = vst [vmem:[%s2238_s14 + $0x18] sm:$0xff] %v1743_v44   ;;  %v1224_v60 = vmax.f32 %v1192_v51, 0.0  ;;  %v1062_v62 = vmul.f32 %v2271_v27, %v1023_v48  ;;  %v1100_v2 = vadd.f32 %v2278_v30, %v1061_v57  ;;  %v1692_v7 = vunpack.c.h.bf16 %v1811_v53 }
 0x165   : > { %v1060_v46 = vmul.f32 %v2271_v27, %v1021_v33  ;;  %v1098_v52 = vadd.f32 %v2278_v30, %v1059_v42  ;;  %v1748_v59 = vpack.c.bf16 %v1223_v50, %v1222_v49  ;;  %v1225_v0 = vmax.f32 %v1193_v54, 0.0  ;;  %v1031_v42 = vld [vmem:[#allocation2 + $0xb8] sm:$0xff]  ;;  %v1033_v57 = vld [vmem:[#allocation2 + $0xc8] sm:$0xff] }
 0x166   : > { %v1101_v6 = vadd.f32 %v2278_v30, %v1062_v62  ;;  %v1063_v8 = vmul.f32 %v2271_v27, %v1024_v58  ;;  %v1196_v12 = vadd.f32 %v1691_v3, %v1100_v2  ;;  %v1064_v13 = vmul.f32 %v2271_v27, %v1025_v63  ;;  %v1816_v62 = vld [vmem:[%s2233_s12 + $0x60] sm:$0xff]   ;;  %v1034_v3 = vld [vmem:[#allocation2 + $0xd0] sm:$0xff] }
 0x167   : > { %v1099_v55 = vadd.f32 %v2278_v30, %v1060_v46  ;;  %v1194_v61 = vadd.f32 %v1687_v47, %v1098_v52  ;;  %1823 = vst [vmem:[%s2238_s14 + $0x20] sm:$0xff] %v1748_v59   ;;  %v1753_v10 = vpack.c.bf16 %v1225_v0, %v1224_v60  ;;  %v1695_v18 = vunpack.c.l.bf16 %v1812_v4  ;;  %v1815_v47 = vld [vmem:[%s2233_s12 + $0x58] sm:$0xff]   ;;  %v1032_v52 = vld [vmem:[#allocation2 + $0xc0] sm:$0xff] }
 0x168   : > { %v1197_v16 = vadd.f32 %v1692_v7, %v1101_v6  ;;  %v1102_v17 = vadd.f32 %v2278_v30, %v1063_v8  ;;  %v1696_v19 = vunpack.c.h.bf16 %v1812_v4  ;;  %v1228_v22 = vmax.f32 %v1196_v12, 0.0  ;;  %v1035_v8 = vld [vmem:[#allocation2 + $0xd8] sm:$0xff] }
 0x169   : > { %v1195_v1 = vadd.f32 %v1688_v56, %v1099_v55  ;;  %v1226_v5 = vmax.f32 %v1194_v61, 0.0  ;;  %1824 = vst [vmem:[%s2238_s14 + $0x28] sm:$0xff] %v1753_v10   ;;  %v1103_v23 = vadd.f32 %v2278_v30, %v1064_v13  ;;  %v1065_v24 = vmul.f32 %v2271_v27, %v1026_v9  ;;  %v1817_v9 = vld [vmem:[%s2233_s12 + $0x68] sm:$0xff]  }
 0x16a   : > { %v1229_v26 = vmax.f32 %v1197_v16, 0.0  ;;  %v1198_v28 = vadd.f32 %v1695_v18, %v1102_v17  ;;  %v1066_v29 = vmul.f32 %v2271_v27, %v1027_v14  ;;  %v1699_v31 = vunpack.c.l.bf16 %v1813_v15  ;;  %v1036_v14 = vld [vmem:[#allocation2 + $0xe0] sm:$0xff] }
 0x16b   : > { %v1227_v11 = vmax.f32 %v1195_v1, 0.0  ;;  %v1199_v33 = vadd.f32 %v1696_v19, %v1103_v23  ;;  %v1104_v34 = vadd.f32 %v2278_v30, %v1065_v24  ;;  %v1700_v35 = vunpack.c.h.bf16 %v1813_v15  ;;  %v1037_v19 = vld [vmem:[#allocation2 + $0xe8] sm:$0xff]  ;;  %v1818_v24 = vld [vmem:[%s2233_s12 + $0x70] sm:$0xff]  }
 0x16c   : > { %v1067_v36 = vmul.f32 %v2271_v27, %v1028_v20  ;;  %v1763_v38 = vpack.c.bf16 %v1229_v26, %v1228_v22  ;;  %v1230_v39 = vmax.f32 %v1198_v28, 0.0  ;;  %v1105_v40 = vadd.f32 %v2278_v30, %v1066_v29 }
 0x16d   : > { %v1758_v21 = vpack.c.bf16 %v1227_v11, %v1226_v5  ;;  %v1068_v41 = vmul.f32 %v2271_v27, %v1029_v25  ;;  %v1231_v43 = vmax.f32 %v1199_v33, 0.0  ;;  %v1200_v44 = vadd.f32 %v1699_v31, %v1104_v34  ;;  %v1038_v31 = vld [vmem:[#allocation2 + $0xf0] sm:$0xff] }
 0x16e   : > { %v1106_v45 = vadd.f32 %v2278_v30, %v1067_v36  ;;  %v1703_v46 = vunpack.c.l.bf16 %v1814_v32  ;;  %1826 = vst [vmem:[%s2238_s14 + $0x38] sm:$0xff] %v1763_v38   ;;  %v1201_v48 = vadd.f32 %v1700_v35, %v1105_v40  ;;  %v1704_v50 = vunpack.c.h.bf16 %v1814_v32  ;;  %v1039_v36 = vld [vmem:[#allocation2 + $0xf8] sm:$0xff] }
 0x16f   : > { %1825 = vst [vmem:[%s2238_s14 + $0x30] sm:$0xff] %v1758_v21   ;;  %v1107_v49 = vadd.f32 %v2278_v30, %v1068_v41  ;;  %v1069_v51 = vmul.f32 %v2271_v27, %v1030_v37  ;;  %v1768_v53 = vpack.c.bf16 %v1231_v43, %v1230_v39  ;;  %v1232_v54 = vmax.f32 %v1200_v44, 0.0  ;;  %v1819_v41 = vld [vmem:[%s2233_s12 + $0x78] sm:$0xff]  }
 0x170   : > { %v1202_v55 = vadd.f32 %v1703_v46, %v1106_v45  ;;  %v1070_v56 = vmul.f32 %v2271_v27, %v1031_v42  ;;  %v1233_v58 = vmax.f32 %v1201_v48, 0.0  ;;  %v1707_v61 = vunpack.c.l.bf16 %v1815_v47 }
 0x171   : > { %v1203_v59 = vadd.f32 %v1704_v50, %v1107_v49  ;;  %v1108_v60 = vadd.f32 %v2278_v30, %v1069_v51  ;;  %1827 = vst [vmem:[%s2238_s14 + $0x40] sm:$0xff] %v1768_v53   ;;  %v1708_v1 = vunpack.c.h.bf16 %v1815_v47  ;;  %v1071_v2 = vmul.f32 %v2271_v27, %v1032_v52 }
 0x172   : > { %v1234_v63 = vmax.f32 %v1202_v55, 0.0  ;;  %v1109_v0 = vadd.f32 %v2278_v30, %v1070_v56  ;;  %v1773_v4 = vpack.c.bf16 %v1233_v58, %v1232_v54  ;;  %v1072_v7 = vmul.f32 %v2271_v27, %v1033_v57 }
 0x173   : > { %v1235_v5 = vmax.f32 %v1203_v59, 0.0  ;;  %v1204_v6 = vadd.f32 %v1707_v61, %v1108_v60  ;;  %v1110_v11 = vadd.f32 %v2278_v30, %v1071_v2  ;;  %v1711_v12 = vunpack.c.l.bf16 %v1816_v62 }
 0x174   : > { %v1205_v10 = vadd.f32 %v1708_v1, %v1109_v0  ;;  %v1712_v13 = vunpack.c.h.bf16 %v1816_v62  ;;  %1828 = vst [vmem:[%s2238_s14 + $0x48] sm:$0xff] %v1773_v4   ;;  %v1111_v17 = vadd.f32 %v2278_v30, %v1072_v7  ;;  %v1073_v18 = vmul.f32 %v2271_v27, %v1034_v3 }
 0x175   : > { %v1778_v15 = vpack.c.bf16 %v1235_v5, %v1234_v63  ;;  %v1236_v16 = vmax.f32 %v1204_v6, 0.0  ;;  %v1206_v21 = vadd.f32 %v1711_v12, %v1110_v11  ;;  %v1074_v22 = vmul.f32 %v2271_v27, %v1035_v8 }
 0x176   : > { %v1237_v20 = vmax.f32 %v1205_v10, 0.0  ;;  %v1715_v23 = vunpack.c.l.bf16 %v1817_v9  ;;  %v1207_v25 = vadd.f32 %v1712_v13, %v1111_v17  ;;  %v1112_v26 = vadd.f32 %v2278_v30, %v1073_v18 }
 0x177   : > { %1829 = vst [vmem:[%s2238_s14 + $0x50] sm:$0xff] %v1778_v15   ;;  %v1716_v28 = vunpack.c.h.bf16 %v1817_v9  ;;  %v1075_v29 = vmul.f32 %v2271_v27, %v1036_v14  ;;  %v1238_v33 = vmax.f32 %v1206_v21, 0.0  ;;  %v1113_v34 = vadd.f32 %v2278_v30, %v1074_v22 }
 0x178   : > { %v1783_v32 = vpack.c.bf16 %v1237_v20, %v1236_v16  ;;  %v1076_v35 = vmul.f32 %v2271_v27, %v1037_v19  ;;  %v1239_v37 = vmax.f32 %v1207_v25, 0.0  ;;  %v1208_v38 = vadd.f32 %v1715_v23, %v1112_v26 }
 0x179   : > { %v1114_v39 = vadd.f32 %v2278_v30, %v1075_v29  ;;  %v1719_v40 = vunpack.c.l.bf16 %v1818_v24  ;;  %v1209_v42 = vadd.f32 %v1716_v28, %v1113_v34  ;;  %v1720_v44 = vunpack.c.h.bf16 %v1818_v24 }
 0x17a   : > { %1830 = vst [vmem:[%s2238_s14 + $0x58] sm:$0xff] %v1783_v32   ;;  %v1115_v43 = vadd.f32 %v2278_v30, %v1076_v35  ;;  %v1077_v45 = vmul.f32 %v2271_v27, %v1038_v31  ;;  %v1788_v46 = vpack.c.bf16 %v1239_v37, %v1238_v33  ;;  %v1240_v47 = vmax.f32 %v1208_v38, 0.0 }
 0x17b   : > { %v1210_v48 = vadd.f32 %v1719_v40, %v1114_v39  ;;  %v1078_v49 = vmul.f32 %v2271_v27, %v1039_v36  ;;  %v1241_v50 = vmax.f32 %v1209_v42, 0.0  ;;  %v1723_v53 = vunpack.c.l.bf16 %v1819_v41 }
 0x17c   : > { %v1211_v51 = vadd.f32 %v1720_v44, %v1115_v43  ;;  %v1116_v52 = vadd.f32 %v2278_v30, %v1077_v45  ;;  %1831 = vst [vmem:[%s2238_s14 + $0x60] sm:$0xff] %v1788_v46   ;;  %v1724_v56 = vunpack.c.h.bf16 %v1819_v41 }
 0x17d   : > { %v1242_v54 = vmax.f32 %v1210_v48, 0.0  ;;  %v1117_v55 = vadd.f32 %v2278_v30, %v1078_v49  ;;  %v1793_v57 = vpack.c.bf16 %v1241_v50, %v1240_v47 }
 0x17e   : > { %v1243_v58 = vmax.f32 %v1211_v51, 0.0  ;;  %v1212_v59 = vadd.f32 %v1723_v53, %v1116_v52 }
 0x17f   : > { %v1213_v60 = vadd.f32 %v1724_v56, %v1117_v55  ;;  %1832 = vst [vmem:[%s2238_s14 + $0x68] sm:$0xff] %v1793_v57  }
 0x180   : > { %v1798_v61 = vpack.c.bf16 %v1243_v58, %v1242_v54  ;;  %v1244_v62 = vmax.f32 %v1212_v59, 0.0 }
 0x181   : > { %v1245_v27 = vmax.f32 %v1213_v60, 0.0 }
 0x182   : > { %1833 = vst [vmem:[%s2238_s14 + $0x70] sm:$0xff] %v1798_v61  }
 0x183   : > { %v1803_v63 = vpack.c.bf16 %v1245_v27, %v1244_v62 }
 0x185   : > { %1834 = vst [vmem:[%s2238_s14 + $0x78] sm:$0xff] %v1803_v63  }
 0x186 PF: > { %s15_s24 = sadd.s32 1, %s2059_s24   ;;  %s2401_s18 = smov %s2039_s19 }
 0x187   : > { %p12_p0 = scmp.ge.s32.totalorder %s15_s24, 12   ;;  %s2402_s19 = smov %s2143_s6 }
 0x188   : > { %s2403_s20 = smov %s2051_s22  ;;  %s2404_s21 = smov %s2055_s23 }
 0x189   : > { %s2405_s22 = smov %s2408_s25  ;;  %s2406_s23 = smov %s2412_s26 }
 0x18a   :  { %14 = sbr.rel (!%p12_p0) target bundleno = 4 (0x4), region = 136 }

// kernel: _lambda_.24
= control target key start
LH: loop header
LB: loop body
LE: loop exit
PB: predicated region body
PF: predicated region fallthrough
CT: control target
= control target key end

     0   :  { %s2066_s27 = smov 0   ;;  %s2068_s28 = smov 0   ;;  %s2316_s0 = inlined_call_operand.vmem [shape: bf16[128,640], index: 0, kind: input, shape index: {}]   ;;  %s2317_s1 = inlined_call_operand.vmem [shape: bf16[640,128], index: 1, kind: input, shape index: {}]   ;;  %s2318_s2 = inlined_call_operand.vmem [shape: f32[1,128], index: 2, kind: input, shape index: {}, may-alias: {2,5}]   ;;  %s2319_s3 = inlined_call_operand.vmem [shape: f32[1,128], index: 3, kind: input, shape index: {}, may-alias: {3,6}]   ;;  %s2320_s4 = inlined_call_operand.vmem [shape: bf16[640,128], index: 4, kind: input, shape index: {}]   ;;  %s2321_s5 = inlined_call_operand.vmem [shape: f32[1,128], index: 5, kind: input, shape index: {}, may-alias: {2,5}]   ;;  %s2322_s6 = inlined_call_operand.vmem [shape: f32[1,128], index: 6, kind: input, shape index: {}, may-alias: {3,6}]   ;;  %s2323_s7 = inlined_call_operand.vmem [shape: bf16[128,128], index: 7, kind: output, shape index: {0}]   ;;  %s2324_s8 = inlined_call_operand.vmem [shape: bf16[128,128], index: 8, kind: output, shape index: {1}]  }
   0x1   :  { %s2070_s29 = smov 0   ;;  %s2072_s30 = smov 0  }
   0x2   :  { %s2074_s9 = smov 0  }
   0x3 LB: > { %s31_s10 = sadd.s32 1, %s2014_s30  ;;  %p54_p1 = scmp.ne.s32.totalorder %s2006_s28, %s2002_s27  ;;  %s2018_s9 = sphi %s2074_s9, %s19_s9   ;;  %s2014_s30 = sphi %s2072_s30, %s2328_s30   ;;  %s2010_s29 = sphi %s2070_s29, %s2327_s29   ;;  %s2006_s28 = sphi %s2068_s28, %s2326_s28   ;;  %s2002_s27 = sphi %s2066_s27, %s2325_s27  }
   0x4   : > { %p32_p0 = scmp.ge.s32.totalorder %s31_s10, 5  ;;  %p55_p2 = scmp.eq.s32.totalorder %s2018_s9, 0 }
   0x5   : > { %s47_s12 = sadd.s32 1, %s2006_s28  ;;  %p1616_p5 = scmp.ge.s32.totalorder %s2018_s9, 5 }
   0x6   : > { %s2330_s10 = smov (%p32_p0, %s31_s10), 0  ;;  %p56_p3 = por %p55_p2, %p54_p1 }
   0x7   : > { %s43_s11 = ssub.s32 %s2014_s30, %s2330_s10  ;;  %320 = sbr.rel (%p1616_p5) target bundleno = 28 (0x1c), region = 32 }
   0x8   : > { %p45_p4 = scmp.eq.s32.totalorder %s43_s11, 0 }
   0xa   : > { %s2101_s13 = scalar_select %p45_p4, %s2006_s28, %s47_s12  }
   0xe   : > { %323 = sbr.rel (!%p56_p3) target bundleno = 28 (0x1c), region = 36  ;;  %s325_s14 = sand.u32 (%p56_p3), 1, %s2006_s28  }
   0xf   : > { %s1618_s15 = sshll.u32 (%p56_p3), %s2014_s30, 2  ;;  %s1617_s16 = sshll.u32 (%p56_p3), %s325_s14, 6 }
  0x10   : > { %s2109_s19 = scalar_lea.vmem (%p56_p3), %s2316_s0, %s1618_s15  ;;  %s327_s20 = scalar_lea.vmem (%p56_p3), [#allocation4], %s1617_s16 }
  0x11   : > { %v348_v0 = vld [vmem:[%s2109_s19] sm:$0xf] (%p56_p3)  ;;  %v350_v1 = vld [vmem:[%s2109_s19 + $0x14] sm:$0xf] (%p56_p3)  ;;  %v352_v2 = vld [vmem:[%s2109_s19 + $0x28] sm:$0xf] (%p56_p3) }
  0x12   : > { %349 = vst [vmem:[%s327_s20] sm:$0xf] (%p56_p3), %v348_v0  ;;  %351 = vst [vmem:[%s327_s20 + $0x4] sm:$0xf] (%p56_p3), %v350_v1  ;;  %v354_v3 = vld [vmem:[%s2109_s19 + $0x3c] sm:$0xf] (%p56_p3) }
  0x13   : > { %v356_v4 = vld [vmem:[%s2109_s19 + $0x50] sm:$0xf] (%p56_p3)  ;;  %353 = vst [vmem:[%s327_s20 + $0x8] sm:$0xf] (%p56_p3), %v352_v2  ;;  %355 = vst [vmem:[%s327_s20 + $0xc] sm:$0xf] (%p56_p3), %v354_v3 }
  0x14   : > { %357 = vst [vmem:[%s327_s20 + $0x10] sm:$0xf] (%p56_p3), %v356_v4  ;;  %v358_v5 = vld [vmem:[%s2109_s19 + $0x64] sm:$0xf] (%p56_p3)  ;;  %v360_v6 = vld [vmem:[%s2109_s19 + $0x78] sm:$0xf] (%p56_p3) }
  0x15   : > { %v362_v7 = vld [vmem:[%s2109_s19 + $0x8c] sm:$0xf]  ;;  %359 = vst [vmem:[%s327_s20 + $0x14] sm:$0xf] %v358_v5  ;;  %361 = vst [vmem:[%s327_s20 + $0x18] sm:$0xf] %v360_v6 }
  0x16   : > { %363 = vst [vmem:[%s327_s20 + $0x1c] sm:$0xf] %v362_v7  ;;  %v364_v8 = vld [vmem:[%s2109_s19 + $0xa0] sm:$0xf]  ;;  %v366_v9 = vld [vmem:[%s2109_s19 + $0xb4] sm:$0xf] }
  0x17   : > { %v368_v10 = vld [vmem:[%s2109_s19 + $0xc8] sm:$0xf]  ;;  %365 = vst [vmem:[%s327_s20 + $0x20] sm:$0xf] %v364_v8  ;;  %367 = vst [vmem:[%s327_s20 + $0x24] sm:$0xf] %v366_v9 }
  0x18   : > { %369 = vst [vmem:[%s327_s20 + $0x28] sm:$0xf] %v368_v10  ;;  %v370_v11 = vld [vmem:[%s2109_s19 + $0xdc] sm:$0xf]  ;;  %v372_v12 = vld [vmem:[%s2109_s19 + $0xf0] sm:$0xf] }
  0x19   : > { %v374_v13 = vld [vmem:[%s2109_s19 + $0x104] sm:$0xf]  ;;  %371 = vst [vmem:[%s327_s20 + $0x2c] sm:$0xf] %v370_v11  ;;  %373 = vst [vmem:[%s327_s20 + $0x30] sm:$0xf] %v372_v12 }
  0x1a   : > { %375 = vst [vmem:[%s327_s20 + $0x34] sm:$0xf] %v374_v13  ;;  %v376_v14 = vld [vmem:[%s2109_s19 + $0x118] sm:$0xf]  ;;  %v378_v15 = vld [vmem:[%s2109_s19 + $0x12c] sm:$0xf] }
  0x1b   : > { %377 = vst [vmem:[%s327_s20 + $0x38] sm:$0xf] %v376_v14  ;;  %379 = vst [vmem:[%s327_s20 + $0x3c] sm:$0xf] %v378_v15 }
  0x1c PF: > { %p1619_p6 = scmp.ge.s32.totalorder %s2018_s9, 1  ;;  %p457_p7 = scmp.lt.s32.totalorder %s2018_s9, 6 }
  0x1e   : > { %p458_p8 = pnand %p1619_p6, %p457_p7 }
  0x1f   : > { %s464_s21 = sand.u32 (!%p458_p8), 1, %s2002_s27   ;;  %s1621_s22 = sshll.u32 (!%p458_p8), %s2010_s29, 4 }
  0x20   : > { %461 = sbr.rel (%p458_p8) target bundleno = 354 (0x162), region = 85  ;;  %s1620_s23 = sshll.u32 (!%p458_p8), %s464_s21, 6 }
  0x21   : > { %p538_p9 = scmp.lt.s32.totalorder (!%p458_p8), %s1621_s22, 79  ;;  %s2141_s16 = scalar_lea.vmem (!%p458_p8), [#allocation4], %s1620_s23 }
  0x22   : > { %p1625_p10 = scmp.ne.s32.totalorder (!%p458_p8), %s2010_s29, 0 }
  0x27   : > { %s2332_s22 = smov (!%p538_p9, %s1621_s22), 79  ;;  %589 = sbr.rel (%p1625_p10) target bundleno = 57 (0x39), region = 93 }
  0x28   : > { %s1622_s24 = sshll.u32 %s2332_s22, 2  ;;  %v2020_v16 = vmov (!%p1625_p10), 0.0  }
  0x29   : > { %s2134_s11 = scalar_lea.vmem %s2317_s1, %s1622_s24  ;;  %s2139_s15 = scalar_lea.vmem %s2320_s4, %s1622_s24  ;;  %590 = vst [vmem:[#allocation2] sm:$0xff] (!%p1625_p10), %v2020_v16  ;;  %591 = vst [vmem:[#allocation2 + $0x8] sm:$0xff] (!%p1625_p10), %v2020_v16 }
  0x2a   : > { %592 = vst [vmem:[#allocation2 + $0x10] sm:$0xff] (!%p1625_p10), %v2020_v16  ;;  %593 = vst [vmem:[#allocation2 + $0x18] sm:$0xff] (!%p1625_p10), %v2020_v16 }
  0x2b   : > { %594 = vst [vmem:[#allocation2 + $0x20] sm:$0xff] (!%p1625_p10), %v2020_v16  ;;  %595 = vst [vmem:[#allocation2 + $0x28] sm:$0xff] (!%p1625_p10), %v2020_v16 }
  0x2c   : > { %596 = vst [vmem:[#allocation2 + $0x30] sm:$0xff] (!%p1625_p10), %v2020_v16  ;;  %597 = vst [vmem:[#allocation2 + $0x38] sm:$0xff] (!%p1625_p10), %v2020_v16 }
  0x2d   : > { %598 = vst [vmem:[#allocation2 + $0x40] sm:$0xff] (!%p1625_p10), %v2020_v16  ;;  %599 = vst [vmem:[#allocation2 + $0x48] sm:$0xff] (!%p1625_p10), %v2020_v16 }
  0x2e   : > { %600 = vst [vmem:[#allocation2 + $0x50] sm:$0xff] %v2020_v16  ;;  %601 = vst [vmem:[#allocation2 + $0x58] sm:$0xff] %v2020_v16 }
  0x2f   : > { %602 = vst [vmem:[#allocation2 + $0x60] sm:$0xff] %v2020_v16  ;;  %603 = vst [vmem:[#allocation2 + $0x68] sm:$0xff] %v2020_v16 }
  0x30   : > { %604 = vst [vmem:[#allocation2 + $0x70] sm:$0xff] %v2020_v16  ;;  %605 = vst [vmem:[#allocation2 + $0x78] sm:$0xff] %v2020_v16 }
  0x31   : > { %606 = vst [vmem:[#allocation3] sm:$0xff] %v2020_v16  ;;  %607 = vst [vmem:[#allocation3 + $0x8] sm:$0xff] %v2020_v16 }
  0x32   : > { %608 = vst [vmem:[#allocation3 + $0x10] sm:$0xff] %v2020_v16  ;;  %609 = vst [vmem:[#allocation3 + $0x18] sm:$0xff] %v2020_v16 }
  0x33   : > { %610 = vst [vmem:[#allocation3 + $0x20] sm:$0xff] %v2020_v16  ;;  %611 = vst [vmem:[#allocation3 + $0x28] sm:$0xff] %v2020_v16 }
  0x34   : > { %612 = vst [vmem:[#allocation3 + $0x30] sm:$0xff] %v2020_v16  ;;  %613 = vst [vmem:[#allocation3 + $0x38] sm:$0xff] %v2020_v16 }
  0x35   : > { %614 = vst [vmem:[#allocation3 + $0x40] sm:$0xff] %v2020_v16  ;;  %615 = vst [vmem:[#allocation3 + $0x48] sm:$0xff] %v2020_v16 }
  0x36   : > { %616 = vst [vmem:[#allocation3 + $0x50] sm:$0xff] %v2020_v16  ;;  %617 = vst [vmem:[#allocation3 + $0x58] sm:$0xff] %v2020_v16 }
  0x37   : > { %618 = vst [vmem:[#allocation3 + $0x60] sm:$0xff] %v2020_v16  ;;  %619 = vst [vmem:[#allocation3 + $0x68] sm:$0xff] %v2020_v16 }
  0x38   : > { %620 = vst [vmem:[#allocation3 + $0x70] sm:$0xff] %v2020_v16  ;;  %621 = vst [vmem:[#allocation3 + $0x78] sm:$0xff] %v2020_v16 }
  0x39 PF: > { %v1956_v17 = vld [vmem:[%s2134_s11] sm:$0xff]   ;;  %v1958_v19 = vld [vmem:[%s2134_s11 + $0x8] sm:$0xff]   ;;  %v1960_v21 = vld [vmem:[%s2134_s11 + $0x10] sm:$0xff]   ;;  %p1650_p11 = scmp.ne.s32.totalorder %s2010_s29, 4 }
  0x3a   : > { %v1957_v18 = vld [vmem:[%s2139_s15] sm:$0xff]   ;;  %1851 = vmatprep.subr.bf16.mxu0 %v1956_v17  ;;  %v1959_v20 = vld [vmem:[%s2139_s15 + $0x8] sm:$0xff]   ;;  %v1961_v22 = vld [vmem:[%s2139_s15 + $0x10] sm:$0xff]  }
  0x3b   : > { %1883 = vmatprep.subr.bf16.mxu1 %v1957_v18  ;;  %1852 = vmatpush3.bf16.msra.mxu0 %v1956_v17  ;;  %v1962_v23 = vld [vmem:[%s2134_s11 + $0x18] sm:$0xff]   ;;  %v1964_v25 = vld [vmem:[%s2134_s11 + $0x20] sm:$0xff]   ;;  %v1966_v27 = vld [vmem:[%s2134_s11 + $0x28] sm:$0xff]  }
  0x3c   : > { %1884 = vmatpush3.bf16.msra.mxu1 %v1957_v18  ;;  %1853 = vmatprep.subr.bf16.mxu0 %v1958_v19  ;;  %v1963_v24 = vld [vmem:[%s2139_s15 + $0x18] sm:$0xff]   ;;  %v1965_v26 = vld [vmem:[%s2139_s15 + $0x20] sm:$0xff]   ;;  %v1967_v29 = vld [vmem:[%s2139_s15 + $0x28] sm:$0xff]  }
  0x3d   : > { %1885 = vmatprep.subr.bf16.mxu1 %v1959_v20  ;;  %v1972_v28 = vld [vmem:[%s2141_s16] sm:$0xff]   ;;  %v1968_v30 = vld [vmem:[%s2134_s11 + $0x30] sm:$0xff]   ;;  %v1970_v32 = vld [vmem:[%s2134_s11 + $0x38] sm:$0xff]  }
  0x3e   : > { %1867 = vmatprep.mubr.bf16.mxu0 %v1972_v28  ;;  %1899 = vmatprep.mubr.bf16.mxu1 %v1972_v28  ;;  %v1969_v31 = vld [vmem:[%s2139_s15 + $0x30] sm:$0xff]   ;;  %v1971_v33 = vld [vmem:[%s2139_s15 + $0x38] sm:$0xff]   ;;  %v1973_v34 = vld [vmem:[%s2141_s16 + $0x8] sm:$0xff]  }
  0x3f   : > { %1854 = vmatpush3.bf16.msra.mxu0 %v1958_v19  ;;  %v1974_v35 = vld [vmem:[%s2141_s16 + $0x10] sm:$0xff]   ;;  %v1975_v36 = vld [vmem:[%s2141_s16 + $0x18] sm:$0xff]   ;;  %v1976_v37 = vld [vmem:[%s2141_s16 + $0x20] sm:$0xff]  }
  0x40   : > { %1886 = vmatpush3.bf16.msra.mxu1 %v1959_v20  ;;  %1855 = vmatprep.subr.bf16.mxu0 %v1960_v21  ;;  %v1977_v38 = vld [vmem:[%s2141_s16 + $0x28] sm:$0xff]   ;;  %v1978_v39 = vld [vmem:[%s2141_s16 + $0x30] sm:$0xff]   ;;  %v1979_v40 = vld [vmem:[%s2141_s16 + $0x38] sm:$0xff]  }
  0x41   : > { %1887 = vmatprep.subr.bf16.mxu1 %v1961_v22  ;;  %v640_v41 = vld [vmem:[#allocation2 + $0x10] sm:$0xff]  ;;  %v638_v43 = vld [vmem:[#allocation2] sm:$0xff]  ;;  %v641_v46 = vld [vmem:[#allocation2 + $0x18] sm:$0xff] }
  0x42   : > { %v897_v42 = vld [vmem:[#allocation3 + $0x10] sm:$0xff]  ;;  %v895_v45 = vld [vmem:[#allocation3] sm:$0xff]  ;;  %v898_v50 = vld [vmem:[#allocation3 + $0x18] sm:$0xff] }
  0x43   : > { %1856 = vmatpush3.bf16.msra.mxu0 %v1960_v21  ;;  %v639_v51 = vld [vmem:[#allocation2 + $0x8] sm:$0xff]  ;;  %v644_v1 = vld [vmem:[#allocation2 + $0x30] sm:$0xff]  ;;  %v642_v3 = vld [vmem:[#allocation2 + $0x20] sm:$0xff] }
  0x44   : > { %1888 = vmatpush3.bf16.msra.mxu1 %v1961_v22  ;;  %1857 = vmatprep.subr.bf16.mxu0 %v1962_v23  ;;  %v896_v56 = vld [vmem:[#allocation3 + $0x8] sm:$0xff]  ;;  %v901_v2 = vld [vmem:[#allocation3 + $0x30] sm:$0xff]  ;;  %v899_v5 = vld [vmem:[#allocation3 + $0x20] sm:$0xff] }
  0x45   : > { %1889 = vmatprep.subr.bf16.mxu1 %v1963_v24  ;;  %v645_v6 = vld [vmem:[#allocation2 + $0x38] sm:$0xff]  ;;  %v643_v11 = vld [vmem:[#allocation2 + $0x28] sm:$0xff] }
  0x46   : > { %v902_v10 = vld [vmem:[#allocation3 + $0x38] sm:$0xff]  ;;  %v900_v16 = vld [vmem:[#allocation3 + $0x28] sm:$0xff] }
  0x47   : > { %1858 = vmatpush3.bf16.msra.mxu0 %v1962_v23 }
  0x48   : > { %1890 = vmatpush3.bf16.msra.mxu1 %v1963_v24  ;;  %1859 = vmatprep.subr.bf16.mxu0 %v1964_v25 }
  0x49   : > { %1891 = vmatprep.subr.bf16.mxu1 %v1965_v26 }
  0x4b   : > { %1860 = vmatpush3.bf16.msra.mxu0 %v1964_v25  ;;  %v648_v25 = vld [vmem:[#allocation2 + $0x50] sm:$0xff] }
  0x4c   : > { %1892 = vmatpush3.bf16.msra.mxu1 %v1965_v26  ;;  %1861 = vmatprep.subr.bf16.mxu0 %v1966_v27  ;;  %v905_v26 = vld [vmem:[#allocation3 + $0x50] sm:$0xff] }
  0x4d   : > { %1893 = vmatprep.subr.bf16.mxu1 %v1967_v29 }
  0x4f   : > { %1862 = vmatpush3.bf16.msra.mxu0 %v1966_v27  ;;  %v646_v27 = vld [vmem:[#allocation2 + $0x40] sm:$0xff] }
  0x50   : > { %1894 = vmatpush3.bf16.msra.mxu1 %v1967_v29  ;;  %1863 = vmatprep.subr.bf16.mxu0 %v1968_v30  ;;  %v903_v29 = vld [vmem:[#allocation3 + $0x40] sm:$0xff] }
  0x51   : > { %1895 = vmatprep.subr.bf16.mxu1 %v1969_v31 }
  0x53   : > { %1864 = vmatpush3.bf16.msra.mxu0 %v1968_v30  ;;  %v649_v30 = vld [vmem:[#allocation2 + $0x58] sm:$0xff] }
  0x54   : > { %1896 = vmatpush3.bf16.msra.mxu1 %v1969_v31  ;;  %1865 = vmatprep.subr.bf16.mxu0 %v1970_v32 }
  0x55   : > { %1897 = vmatprep.subr.bf16.mxu1 %v1971_v33 }
  0x57   : > { %1866 = vmatpush3.bf16.msra.mxu0 %v1970_v32 }
  0x58   : > { %1898 = vmatpush3.bf16.msra.mxu1 %v1971_v33 }
  0x5a   : > { %1868 = vmatmul.mubr.bf16.vlgmr.msra.gmra.mrb[0].mxu0 %v1973_v34 }
  0x5b   : > { %1900 = vmatmul.mubr.bf16.vlgmr.msra.gmra.mrb[0].mxu1 %v1973_v34  ;;  %1871 = vmatprep.mubr.bf16.mxu0 %v1974_v35  ;;  %v906_v34 = vld [vmem:[#allocation3 + $0x58] sm:$0xff] }
  0x5c   : > { %1903 = vmatprep.mubr.bf16.mxu1 %v1974_v35  ;;  %v647_v35 = vld [vmem:[#allocation2 + $0x48] sm:$0xff] }
  0x62   : > { %1872 = vmatmul.mubr.bf16.gmra.mrb[4].mxu0 %v1975_v36 }
  0x63   : > { %1904 = vmatmul.mubr.bf16.gmra.mrb[4].mxu1 %v1975_v36  ;;  %1875 = vmatprep.mubr.bf16.mxu0 %v1976_v37 }
  0x64   : > { %1907 = vmatprep.mubr.bf16.mxu1 %v1976_v37 }
  0x6a   : > { %1876 = vmatmul.mubr.bf16.gmra.mrb[8].mxu0 %v1977_v38 }
  0x6b   : > { %1908 = vmatmul.mubr.bf16.gmra.mrb[8].mxu1 %v1977_v38  ;;  %1879 = vmatprep.mubr.bf16.mxu0 %v1978_v39 }
  0x6c   : > { %1911 = vmatprep.mubr.bf16.mxu1 %v1978_v39 }
  0x72   : > { %1880 = vmatmul.mubr.bf16.gmra.mrb[12].mxu0 %v1979_v40 }
  0x73   : > { %1912 = vmatmul.mubr.bf16.gmra.mrb[12].mxu1 %v1979_v40  ;;  %v904_v40 = vld [vmem:[#allocation3 + $0x48] sm:$0xff] }
 0x12d   : > { %v1869_v44 = vpop.f32.mrb[0].mxu0 }
 0x12e   : > { %v865_v47 = vadd.f32 %v1869_v44, %v640_v41  ;;  %v1901_v48 = vpop.f32.mrb[0].mxu1  ;;  %v800_v49 = vpop.f32.mrb[1].mxu0 }
 0x12f   : > { %v1074_v52 = vadd.f32 %v1901_v48, %v897_v42  ;;  %v863_v53 = vadd.f32 %v800_v49, %v638_v43  ;;  %v1009_v54 = vpop.f32.mrb[1].mxu1  ;;  %v1870_v55 = vpop.f32.mrb[2].mxu0  ;;  %v652_v49 = vld [vmem:[#allocation2 + $0x70] sm:$0xff] }
 0x130   : > { %881 = vst [vmem:[#allocation2 + $0x10] sm:$0xff] %v865_v47  ;;  %v1072_v57 = vadd.f32 %v1009_v54, %v895_v45  ;;  %v866_v58 = vadd.f32 %v1870_v55, %v641_v46  ;;  %v1902_v59 = vpop.f32.mrb[2].mxu1  ;;  %v803_v60 = vpop.f32.mrb[3].mxu0  ;;  %v653_v54 = vld [vmem:[#allocation2 + $0x78] sm:$0xff] }
 0x131   : > { %1090 = vst [vmem:[#allocation3 + $0x10] sm:$0xff] %v1074_v52  ;;  %879 = vst [vmem:[#allocation2] sm:$0xff] %v863_v53  ;;  %v1075_v61 = vadd.f32 %v1902_v59, %v898_v50  ;;  %v864_v62 = vadd.f32 %v803_v60, %v639_v51  ;;  %v1012_v63 = vpop.f32.mrb[3].mxu1  ;;  %v909_v50 = vld [vmem:[#allocation3 + $0x70] sm:$0xff]  ;;  %v650_v51 = vld [vmem:[#allocation2 + $0x60] sm:$0xff] }
 0x132   : > { %1088 = vst [vmem:[#allocation3] sm:$0xff] %v1072_v57  ;;  %882 = vst [vmem:[#allocation2 + $0x18] sm:$0xff] %v866_v58  ;;  %v1073_v0 = vadd.f32 %v1012_v63, %v896_v56  ;;  %v907_v53 = vld [vmem:[#allocation3 + $0x60] sm:$0xff]  ;;  %v910_v58 = vld [vmem:[#allocation3 + $0x78] sm:$0xff] }
 0x133   : > { %1091 = vst [vmem:[#allocation3 + $0x18] sm:$0xff] %v1075_v61  ;;  %880 = vst [vmem:[#allocation2 + $0x8] sm:$0xff] %v864_v62  ;;  %v651_v59 = vld [vmem:[#allocation2 + $0x68] sm:$0xff] }
 0x134   : > { %1089 = vst [vmem:[#allocation3 + $0x8] sm:$0xff] %v1073_v0  ;;  %v908_v0 = vld [vmem:[#allocation3 + $0x68] sm:$0xff] }
 0x135   : > { %v1873_v4 = vpop.f32.mrb[4].mxu0 }
 0x136   : > { %v869_v7 = vadd.f32 %v1873_v4, %v644_v1  ;;  %v1905_v8 = vpop.f32.mrb[4].mxu1  ;;  %v816_v9 = vpop.f32.mrb[5].mxu0 }
 0x137   : > { %v1078_v12 = vadd.f32 %v1905_v8, %v901_v2  ;;  %v867_v13 = vadd.f32 %v816_v9, %v642_v3  ;;  %v1025_v14 = vpop.f32.mrb[5].mxu1  ;;  %v1874_v15 = vpop.f32.mrb[6].mxu0 }
 0x138   : > { %885 = vst [vmem:[#allocation2 + $0x30] sm:$0xff] %v869_v7  ;;  %v1076_v17 = vadd.f32 %v1025_v14, %v899_v5  ;;  %v870_v18 = vadd.f32 %v1874_v15, %v645_v6  ;;  %v1906_v19 = vpop.f32.mrb[6].mxu1  ;;  %v819_v20 = vpop.f32.mrb[7].mxu0  ;;  %v1108_v9 = vld [vmem:[#allocation2] sm:$0xff] (!%p1650_p11)  ;;  %v1110_v15 = vld [vmem:[#allocation2 + $0x10] sm:$0xff] (!%p1650_p11) }
 0x139   : > { %1094 = vst [vmem:[#allocation3 + $0x30] sm:$0xff] %v1078_v12  ;;  %883 = vst [vmem:[#allocation2 + $0x20] sm:$0xff] %v867_v13  ;;  %v1079_v21 = vadd.f32 %v1906_v19, %v902_v10  ;;  %v868_v22 = vadd.f32 %v819_v20, %v643_v11  ;;  %v1028_v23 = vpop.f32.mrb[7].mxu1  ;;  %v2172_v11 = vld [vmem:[%s2318_s2] ss:$0 sm:$0xff] (!%p1650_p11) }
 0x13a   : > { %1092 = vst [vmem:[#allocation3 + $0x20] sm:$0xff] %v1076_v17  ;;  %886 = vst [vmem:[#allocation2 + $0x38] sm:$0xff] %v870_v18  ;;  %v1077_v24 = vadd.f32 %v1028_v23, %v900_v16  ;;  %v1109_v10 = vld [vmem:[#allocation2 + $0x8] sm:$0xff] (!%p1650_p11)  ;;  %v1131_v12 = vmul.f32 (!%p1650_p11), %v2172_v11, %v1108_v9  ;;  %v2179_v14 = vld [vmem:[%s2319_s3] ss:$0 sm:$0xff] (!%p1650_p11)  ;;  %v1133_v17 = vmul.f32 (!%p1650_p11), %v2172_v11, %v1110_v15 }
 0x13b   : > { %1095 = vst [vmem:[#allocation3 + $0x38] sm:$0xff] %v1079_v21  ;;  %884 = vst [vmem:[#allocation2 + $0x28] sm:$0xff] %v868_v22  ;;  %v1132_v13 = vmul.f32 (!%p1650_p11), %v2172_v11, %v1109_v10  ;;  %v1111_v16 = vld [vmem:[#allocation2 + $0x18] sm:$0xff] (!%p1650_p11)  ;;  %v1267_v9 = vld [vmem:[#allocation3 + $0x8] sm:$0xff] (!%p1650_p11) }
 0x13c   : > { %1093 = vst [vmem:[#allocation3 + $0x28] sm:$0xff] %v1077_v24  ;;  %v1134_v18 = vmul.f32 (!%p1650_p11), %v2172_v11, %v1111_v16  ;;  %v1154_v22 = vadd.f32 (!%p1650_p11), %v2179_v14, %v1131_v12  ;;  %v2229_v10 = vld [vmem:[%s2322_s6] ss:$0 sm:$0xff] (!%p1650_p11) }
 0x13d   : > { %v1877_v28 = vpop.f32.mrb[8].mxu0  ;;  %v1155_v23 = vadd.f32 (!%p1650_p11), %v2179_v14, %v1132_v13 }
 0x13e   : > { %v873_v31 = vadd.f32 %v1877_v28, %v648_v25  ;;  %v1909_v32 = vpop.f32.mrb[8].mxu1  ;;  %v832_v33 = vpop.f32.mrb[9].mxu0  ;;  %v1157_v28 = vadd.f32 (!%p1650_p11), %v2179_v14, %v1134_v18  ;;  %v1269_v18 = vld [vmem:[#allocation3 + $0x18] sm:$0xff] (!%p1650_p11) }
 0x13f   : > { %v1082_v36 = vadd.f32 %v1909_v32, %v905_v26  ;;  %v871_v37 = vadd.f32 %v832_v33, %v646_v27  ;;  %v1041_v38 = vpop.f32.mrb[9].mxu1  ;;  %v1878_v39 = vpop.f32.mrb[10].mxu0  ;;  %v1114_v21 = vld [vmem:[#allocation2 + $0x30] sm:$0xff] (!%p1650_p11)  ;;  %v1156_v27 = vadd.f32 (!%p1650_p11), %v2179_v14, %v1133_v17  ;;  %v1170_v32 = vmax.f32 (!%p1650_p11), %v1154_v22, 0.0 }
 0x140   : > { %889 = vst [vmem:[#allocation2 + $0x50] sm:$0xff] %v873_v31  ;;  %v1080_v41 = vadd.f32 %v1041_v38, %v903_v29  ;;  %v874_v42 = vadd.f32 %v1878_v39, %v649_v30  ;;  %v1910_v43 = vpop.f32.mrb[10].mxu1  ;;  %v835_v44 = vpop.f32.mrb[11].mxu0  ;;  %v1112_v19 = vld [vmem:[#allocation2 + $0x20] sm:$0xff] (!%p1650_p11)  ;;  %v1137_v29 = vmul.f32 (!%p1650_p11), %v2172_v11, %v1114_v21  ;;  %v1171_v33 = vmax.f32 (!%p1650_p11), %v1155_v23, 0.0  ;;  %v1268_v17 = vld [vmem:[#allocation3 + $0x10] sm:$0xff] (!%p1650_p11) }
 0x141   : > { %1098 = vst [vmem:[#allocation3 + $0x50] sm:$0xff] %v1082_v36  ;;  %887 = vst [vmem:[#allocation2 + $0x40] sm:$0xff] %v871_v37  ;;  %v1083_v45 = vadd.f32 %v1910_v43, %v906_v34  ;;  %v872_v46 = vadd.f32 %v835_v44, %v647_v35  ;;  %v1044_v47 = vpop.f32.mrb[11].mxu1  ;;  %v1135_v24 = vmul.f32 (!%p1650_p11), %v2172_v11, %v1112_v19  ;;  %v1115_v26 = vld [vmem:[#allocation2 + $0x38] sm:$0xff] (!%p1650_p11)  ;;  %v1172_v37 = vmax.f32 (!%p1650_p11), %v1156_v27, 0.0 }
 0x142   : > { %1096 = vst [vmem:[#allocation3 + $0x40] sm:$0xff] %v1080_v41  ;;  %890 = vst [vmem:[#allocation2 + $0x58] sm:$0xff] %v874_v42  ;;  %v1081_v48 = vadd.f32 %v1044_v47, %v904_v40  ;;  %v1113_v20 = vld [vmem:[#allocation2 + $0x28] sm:$0xff] (!%p1650_p11)  ;;  %v1138_v30 = vmul.f32 (!%p1650_p11), %v2172_v11, %v1115_v26  ;;  %v1173_v38 = vmax.f32 (!%p1650_p11), %v1157_v28, 0.0  ;;  %v1160_v39 = vadd.f32 (!%p1650_p11), %v2179_v14, %v1137_v29  ;;  %v1273_v29 = vld [vmem:[#allocation3 + $0x38] sm:$0xff] (!%p1650_p11) }
 0x143   : > { %1099 = vst [vmem:[#allocation3 + $0x58] sm:$0xff] %v1083_v45  ;;  %888 = vst [vmem:[#allocation2 + $0x48] sm:$0xff] %v872_v46  ;;  %v1136_v25 = vmul.f32 (!%p1650_p11), %v2172_v11, %v1113_v20  ;;  %v1158_v34 = vadd.f32 (!%p1650_p11), %v2179_v14, %v1135_v24  ;;  %v1728_v43 = vpack.c.bf16 (!%p1650_p11), %v1171_v33, %v1170_v32  ;;  %v1271_v23 = vld [vmem:[#allocation3 + $0x28] sm:$0xff] (!%p1650_p11)  ;;  %v1272_v24 = vld [vmem:[#allocation3 + $0x30] sm:$0xff] (!%p1650_p11) }
 0x144   : > { %1097 = vst [vmem:[#allocation3 + $0x48] sm:$0xff] %v1081_v48  ;;  %v1161_v40 = vadd.f32 (!%p1650_p11), %v2179_v14, %v1138_v30 }
 0x145   : > { %v1881_v52 = vpop.f32.mrb[12].mxu0  ;;  %v1159_v35 = vadd.f32 (!%p1650_p11), %v2179_v14, %v1136_v25  ;;  %v1174_v44 = vmax.f32 (!%p1650_p11), %v1158_v34, 0.0  ;;  %1729 = vst [vmem:[%s2323_s7] sm:$0xff] (!%p1650_p11), %v1728_v43  }
 0x146   : > { %v877_v55 = vadd.f32 %v1881_v52, %v652_v49  ;;  %v1913_v56 = vpop.f32.mrb[12].mxu1  ;;  %v848_v57 = vpop.f32.mrb[13].mxu0  ;;  %1107 = sbr.rel (%p1650_p11) target bundleno = 354 (0x162), region = 97  ;;  %v1733_v49 = vpack.c.bf16 (!%p1650_p11), %v1173_v38, %v1172_v37 }
 0x147   : > { %v1086_v60 = vadd.f32 %v1913_v56, %v909_v50  ;;  %v875_v61 = vadd.f32 %v848_v57, %v650_v51  ;;  %v1057_v62 = vpop.f32.mrb[13].mxu1  ;;  %v1882_v63 = vpop.f32.mrb[14].mxu0  ;;  %v1118_v41 = vld [vmem:[#allocation2 + $0x50] sm:$0xff] (!%p1650_p11)  ;;  %v1175_v45 = vmax.f32 (!%p1650_p11), %v1159_v35, 0.0  ;;  %v1176_v50 = vmax.f32 (!%p1650_p11), %v1160_v39, 0.0 }
 0x148   : > { %893 = vst [vmem:[#allocation2 + $0x70] sm:$0xff] %v877_v55  ;;  %v1084_v1 = vadd.f32 %v1057_v62, %v907_v53  ;;  %v878_v2 = vadd.f32 %v1882_v63, %v653_v54  ;;  %v1914_v3 = vpop.f32.mrb[14].mxu1  ;;  %v851_v4 = vpop.f32.mrb[15].mxu0  ;;  %v1116_v31 = vld [vmem:[#allocation2 + $0x40] sm:$0xff] (!%p1650_p11)  ;;  %v1177_v51 = vmax.f32 (!%p1650_p11), %v1161_v40, 0.0  ;;  %v1141_v56 = vmul.f32 (!%p1650_p11), %v2172_v11, %v1118_v41  ;;  %1805 = vst [vmem:[%s2323_s7 + $0x8] sm:$0xff] (!%p1650_p11), %v1733_v49  }
 0x149   : > { %1102 = vst [vmem:[#allocation3 + $0x70] sm:$0xff] %v1086_v60  ;;  %891 = vst [vmem:[#allocation2 + $0x60] sm:$0xff] %v875_v61  ;;  %v1087_v5 = vadd.f32 %v1914_v3, %v910_v58  ;;  %v876_v6 = vadd.f32 %v851_v4, %v651_v59  ;;  %v1060_v7 = vpop.f32.mrb[15].mxu1  ;;  %v1119_v42 = vld [vmem:[#allocation2 + $0x58] sm:$0xff] (!%p1650_p11)  ;;  %v1139_v46 = vmul.f32 (!%p1650_p11), %v2172_v11, %v1116_v31  ;;  %v1266_v63 = vld [vmem:[#allocation3] sm:$0xff] (!%p1650_p11) }
 0x14a   : > { %1100 = vst [vmem:[#allocation3 + $0x60] sm:$0xff] %v1084_v1  ;;  %894 = vst [vmem:[#allocation2 + $0x78] sm:$0xff] %v878_v2  ;;  %v1085_v8 = vadd.f32 %v1060_v7, %v908_v0  ;;  %v1117_v36 = vld [vmem:[#allocation2 + $0x48] sm:$0xff] (!%p1650_p11)  ;;  %v1738_v54 = vpack.c.bf16 (!%p1650_p11), %v1175_v45, %v1174_v44  ;;  %v1142_v57 = vmul.f32 (!%p1650_p11), %v2172_v11, %v1119_v42  ;;  %v2212_v0 = vld [vmem:[%s2321_s5] ss:$0 sm:$0xff] (!%p1650_p11) }
 0x14b   : > { %1103 = vst [vmem:[#allocation3 + $0x78] sm:$0xff] %v1087_v5  ;;  %892 = vst [vmem:[#allocation2 + $0x68] sm:$0xff] %v876_v6  ;;  %v1140_v52 = vmul.f32 (!%p1650_p11), %v2172_v11, %v1117_v36  ;;  %v1162_v55 = vadd.f32 (!%p1650_p11), %v2179_v14, %v1139_v46  ;;  %v1743_v59 = vpack.c.bf16 (!%p1650_p11), %v1177_v51, %v1176_v50  ;;  %v1274_v37 = vld [vmem:[#allocation3 + $0x40] sm:$0xff] (!%p1650_p11)  ;;  %v1275_v38 = vld [vmem:[#allocation3 + $0x48] sm:$0xff] (!%p1650_p11) }
 0x14c   : > { %1101 = vst [vmem:[#allocation3 + $0x68] sm:$0xff] %v1085_v8  ;;  %1806 = vst [vmem:[%s2323_s7 + $0x10] sm:$0xff] (!%p1650_p11), %v1738_v54   ;;  %v1164_v2 = vadd.f32 (!%p1650_p11), %v2179_v14, %v1141_v56  ;;  %v1165_v3 = vadd.f32 (!%p1650_p11), %v2179_v14, %v1142_v57  ;;  %v1289_v16 = vmul.f32 (!%p1650_p11), %v2212_v0, %v1266_v63  ;;  %v1276_v43 = vld [vmem:[#allocation3 + $0x50] sm:$0xff] (!%p1650_p11)  ;;  %v1277_v44 = vld [vmem:[#allocation3 + $0x58] sm:$0xff] (!%p1650_p11) }
 0x14d   : > { %v1163_v60 = vadd.f32 %v2179_v14, %v1140_v52  ;;  %v1178_v1 = vmax.f32 %v1162_v55, 0.0  ;;  %1807 = vst [vmem:[%s2323_s7 + $0x18] sm:$0xff] %v1743_v59   ;;  %v1290_v27 = vmul.f32 %v2212_v0, %v1267_v9  ;;  %v1291_v32 = vmul.f32 %v2212_v0, %v1268_v17 }
 0x14e   : > { %v1180_v12 = vmax.f32 %v1164_v2, 0.0  ;;  %v1181_v13 = vmax.f32 %v1165_v3, 0.0  ;;  %v1312_v28 = vadd.f32 %v2229_v10, %v1289_v16  ;;  %v1294_v35 = vmul.f32 %v2212_v0, %v1271_v23 }
 0x14f   : > { %v1122_v53 = vld [vmem:[#allocation2 + $0x70] sm:$0xff]  ;;  %v1179_v5 = vmax.f32 %v1163_v60, 0.0  ;;  %v1313_v33 = vadd.f32 %v2229_v10, %v1290_v27  ;;  %v1295_v36 = vmul.f32 %v2212_v0, %v1272_v24  ;;  %v1314_v40 = vadd.f32 %v2229_v10, %v1291_v32 }
 0x150   : > { %v1120_v47 = vld [vmem:[#allocation2 + $0x60] sm:$0xff]  ;;  %v1145_v4 = vmul.f32 %v2172_v11, %v1122_v53  ;;  %v1753_v25 = vpack.c.bf16 %v1181_v13, %v1180_v12  ;;  %v1296_v42 = vmul.f32 %v2212_v0, %v1273_v29  ;;  %v1297_v53 = vmul.f32 %v2212_v0, %v1274_v37  ;;  %v1280_v55 = vld [vmem:[#allocation3 + $0x70] sm:$0xff] }
 0x151   : > { %v1123_v58 = vld [vmem:[#allocation2 + $0x78] sm:$0xff]  ;;  %v1143_v61 = vmul.f32 %v2172_v11, %v1120_v47  ;;  %v1748_v19 = vpack.c.bf16 %v1179_v5, %v1178_v1  ;;  %v1278_v45 = vld [vmem:[#allocation3 + $0x60] sm:$0xff]  ;;  %v1768_v46 = vpack.c.bf16 %v1313_v33, %v1312_v28  ;;  %v1318_v49 = vadd.f32 %v2229_v10, %v1295_v36 }
 0x152   : > { %v1121_v48 = vld [vmem:[#allocation2 + $0x68] sm:$0xff]  ;;  %v1146_v8 = vmul.f32 %v2172_v11, %v1123_v58  ;;  %v1168_v15 = vadd.f32 %v2179_v14, %v1145_v4  ;;  %1809 = vst [vmem:[%s2323_s7 + $0x28] sm:$0xff] %v1753_v25   ;;  %v1319_v52 = vadd.f32 %v2229_v10, %v1296_v42  ;;  %v1298_v54 = vmul.f32 %v2212_v0, %v1275_v38  ;;  %v1281_v60 = vld [vmem:[#allocation3 + $0x78] sm:$0xff] }
 0x153   : > { %v1144_v62 = vmul.f32 %v2172_v11, %v1121_v48  ;;  %v1166_v6 = vadd.f32 %v2179_v14, %v1143_v61  ;;  %v1270_v11 = vld [vmem:[#allocation3 + $0x20] sm:$0xff]  ;;  %1808 = vst [vmem:[%s2323_s7 + $0x20] sm:$0xff] %v1748_v19   ;;  %v1317_v48 = vadd.f32 %v2229_v10, %v1294_v35  ;;  %v1279_v50 = vld [vmem:[#allocation3 + $0x68] sm:$0xff]  ;;  %1769 = vst [vmem:[%s2324_s8] sm:$0xff] %v1768_v46  }
 0x154   : > { %v1169_v22 = vadd.f32 %v2179_v14, %v1146_v8  ;;  %v1184_v26 = vmax.f32 %v1168_v15, 0.0  ;;  %v1293_v34 = vmul.f32 %v2212_v0, %v1270_v11  ;;  %v1299_v57 = vmul.f32 %v2212_v0, %v1276_v43 }
 0x155   : > { %v1167_v7 = vadd.f32 %v2179_v14, %v1144_v62  ;;  %v1182_v20 = vmax.f32 %v1166_v6, 0.0  ;;  %v1292_v14 = vmul.f32 %v2212_v0, %v1269_v18  ;;  %v1300_v58 = vmul.f32 %v2212_v0, %v1277_v44 }
 0x156   : > { %v1185_v31 = vmax.f32 %v1169_v22, 0.0  ;;  %v1316_v47 = vadd.f32 %v2229_v10, %v1293_v34  ;;  %v1301_v59 = vmul.f32 %v2212_v0, %v1278_v45  ;;  %v1783_v61 = vpack.c.bf16 %v1319_v52, %v1318_v49 }
 0x157   : > { %v1183_v21 = vmax.f32 %v1167_v7, 0.0  ;;  %v1315_v41 = vadd.f32 %v2229_v10, %v1292_v14  ;;  %v1320_v62 = vadd.f32 %v2229_v10, %v1297_v53  ;;  %v1321_v63 = vadd.f32 %v2229_v10, %v1298_v54 }
 0x158   : > { %v1763_v39 = vpack.c.bf16 %v1185_v31, %v1184_v26  ;;  %v1778_v56 = vpack.c.bf16 %v1317_v48, %v1316_v47  ;;  %v1302_v1 = vmul.f32 %v2212_v0, %v1279_v50  ;;  %v1322_v2 = vadd.f32 %v2229_v10, %v1299_v57  ;;  %1814 = vst [vmem:[%s2324_s8 + $0x18] sm:$0xff] %v1783_v61  }
 0x159   : > { %v1758_v30 = vpack.c.bf16 %v1183_v21, %v1182_v20  ;;  %v1773_v51 = vpack.c.bf16 %v1315_v41, %v1314_v40  ;;  %v1323_v3 = vadd.f32 %v2229_v10, %v1300_v58  ;;  %v1324_v4 = vadd.f32 %v2229_v10, %v1301_v59 }
 0x15a   : > { %1811 = vst [vmem:[%s2323_s7 + $0x38] sm:$0xff] %v1763_v39   ;;  %1813 = vst [vmem:[%s2324_s8 + $0x10] sm:$0xff] %v1778_v56   ;;  %v1303_v5 = vmul.f32 %v2212_v0, %v1280_v55  ;;  %v1788_v6 = vpack.c.bf16 %v1321_v63, %v1320_v62  ;;  %v1325_v7 = vadd.f32 %v2229_v10, %v1302_v1 }
 0x15b   : > { %1810 = vst [vmem:[%s2323_s7 + $0x30] sm:$0xff] %v1758_v30   ;;  %1812 = vst [vmem:[%s2324_s8 + $0x8] sm:$0xff] %v1773_v51   ;;  %v1304_v8 = vmul.f32 %v2212_v0, %v1281_v60  ;;  %v1793_v9 = vpack.c.bf16 %v1323_v3, %v1322_v2 }
 0x15c   : > { %v1326_v12 = vadd.f32 %v2229_v10, %v1303_v5  ;;  %1815 = vst [vmem:[%s2324_s8 + $0x20] sm:$0xff] %v1788_v6   ;;  %v1798_v13 = vpack.c.bf16 %v1325_v7, %v1324_v4 }
 0x15d   : > { %v1327_v15 = vadd.f32 %v2229_v10, %v1304_v8  ;;  %1816 = vst [vmem:[%s2324_s8 + $0x28] sm:$0xff] %v1793_v9  }
 0x15e   : > { %1817 = vst [vmem:[%s2324_s8 + $0x30] sm:$0xff] %v1798_v13  }
 0x15f   : > { %v1803_v16 = vpack.c.bf16 %v1327_v15, %v1326_v12 }
 0x161   : > { %1818 = vst [vmem:[%s2324_s8 + $0x38] sm:$0xff] %v1803_v16  }
 0x162 PF: > { %s19_s9 = sadd.s32 1, %s2018_s9   ;;  %s2325_s27 = smov %s2006_s28 }
 0x163   : > { %p16_p12 = scmp.ge.s32.totalorder %s19_s9, 7   ;;  %s2326_s28 = smov %s2101_s13 }
 0x164   : > { %s2327_s29 = smov %s2014_s30  ;;  %s2328_s30 = smov %s2330_s10 }
 0x165   :  { %18 = sbr.rel (!%p16_p12) target bundleno = 3 (0x3), region = 162 }

// kernel: _lambda_.25
= control target key start
LH: loop header
LB: loop body
LE: loop exit
PB: predicated region body
PF: predicated region fallthrough
CT: control target
= control target key end

     0   :  { %s1444_s18 = smov 0   ;;  %s1446_s19 = smov 0   ;;  %s1639_s0 = inlined_call_operand.vmem [shape: bf16[128,1152], index: 0, kind: input, shape index: {}]   ;;  %s1640_s1 = inlined_call_operand.vmem [shape: bf16[1152,128], index: 1, kind: input, shape index: {}]   ;;  %s1641_s2 = inlined_call_operand.vmem [shape: f32[1,128], index: 2, kind: input, shape index: {}]   ;;  %s1642_s3 = inlined_call_operand.vmem [shape: f32[1,128], index: 3, kind: input, shape index: {}]   ;;  %s1643_s4 = inlined_call_operand.vmem [shape: bf16[128,128], index: 4, kind: input, shape index: {}]   ;;  %s1644_s5 = inlined_call_operand.vmem [shape: bf16[128,128], index: 5, kind: output, shape index: {}]  }
   0x1   :  { %s1448_s20 = smov 0   ;;  %s1450_s21 = smov 0  }
   0x2   :  { %s1452_s22 = smov 0  }
   0x3 LB: > { %s27_s23 = sadd.s32 1, %s1407_s21  ;;  %p50_p1 = scmp.ne.s32.totalorder %s1399_s19, %s1395_s18  ;;  %s1411_s22 = sphi %s1452_s22, %s15_s22   ;;  %s1407_s21 = sphi %s1450_s21, %s1648_s21   ;;  %s1403_s20 = sphi %s1448_s20, %s1647_s20   ;;  %s1399_s19 = sphi %s1446_s19, %s1646_s19   ;;  %s1395_s18 = sphi %s1444_s18, %s1645_s18  }
   0x4   : > { %p28_p0 = scmp.ge.s32.totalorder %s27_s23, 9  ;;  %p51_p2 = scmp.eq.s32.totalorder %s1411_s22, 0 }
   0x5   : > { %s43_s25 = sadd.s32 1, %s1399_s19  ;;  %p1103_p5 = scmp.ge.s32.totalorder %s1411_s22, 9 }
   0x6   : > { %s1650_s23 = smov (%p28_p0, %s27_s23), 0  ;;  %p52_p3 = por %p51_p2, %p50_p1 }
   0x7   : > { %s39_s24 = ssub.s32 %s1407_s21, %s1650_s23  ;;  %236 = sbr.rel (%p1103_p5) target bundleno = 28 (0x1c), region = 28 }
   0x8   : > { %p41_p4 = scmp.eq.s32.totalorder %s39_s24, 0 }
   0xa   : > { %s1479_s26 = scalar_select %p41_p4, %s1399_s19, %s43_s25  }
   0xe   : > { %239 = sbr.rel (!%p52_p3) target bundleno = 28 (0x1c), region = 32  ;;  %s241_s27 = sand.u32 (%p52_p3), 1, %s1399_s19  }
   0xf   : > { %s1105_s28 = sshll.u32 (%p52_p3), %s1407_s21, 2  ;;  %s1104_s29 = sshll.u32 (%p52_p3), %s241_s27, 6 }
  0x10   : > { %s1487_s7 = scalar_lea.vmem (%p52_p3), %s1639_s0, %s1105_s28  ;;  %s243_s8 = scalar_lea.vmem (%p52_p3), [#allocation3], %s1104_s29 }
  0x11   : > { %v264_v0 = vld [vmem:[%s1487_s7] sm:$0xf] (%p52_p3)  ;;  %v266_v1 = vld [vmem:[%s1487_s7 + $0x24] sm:$0xf] (%p52_p3)  ;;  %v268_v2 = vld [vmem:[%s1487_s7 + $0x48] sm:$0xf] (%p52_p3) }
  0x12   : > { %265 = vst [vmem:[%s243_s8] sm:$0xf] (%p52_p3), %v264_v0  ;;  %267 = vst [vmem:[%s243_s8 + $0x4] sm:$0xf] (%p52_p3), %v266_v1  ;;  %v270_v3 = vld [vmem:[%s1487_s7 + $0x6c] sm:$0xf] (%p52_p3) }
  0x13   : > { %v272_v4 = vld [vmem:[%s1487_s7 + $0x90] sm:$0xf] (%p52_p3)  ;;  %269 = vst [vmem:[%s243_s8 + $0x8] sm:$0xf] (%p52_p3), %v268_v2  ;;  %271 = vst [vmem:[%s243_s8 + $0xc] sm:$0xf] (%p52_p3), %v270_v3 }
  0x14   : > { %273 = vst [vmem:[%s243_s8 + $0x10] sm:$0xf] (%p52_p3), %v272_v4  ;;  %v274_v5 = vld [vmem:[%s1487_s7 + $0xb4] sm:$0xf] (%p52_p3)  ;;  %v276_v6 = vld [vmem:[%s1487_s7 + $0xd8] sm:$0xf] (%p52_p3) }
  0x15   : > { %v278_v7 = vld [vmem:[%s1487_s7 + $0xfc] sm:$0xf]  ;;  %275 = vst [vmem:[%s243_s8 + $0x14] sm:$0xf] %v274_v5  ;;  %277 = vst [vmem:[%s243_s8 + $0x18] sm:$0xf] %v276_v6 }
  0x16   : > { %279 = vst [vmem:[%s243_s8 + $0x1c] sm:$0xf] %v278_v7  ;;  %v280_v8 = vld [vmem:[%s1487_s7 + $0x120] sm:$0xf]  ;;  %v282_v9 = vld [vmem:[%s1487_s7 + $0x144] sm:$0xf] }
  0x17   : > { %v284_v10 = vld [vmem:[%s1487_s7 + $0x168] sm:$0xf]  ;;  %281 = vst [vmem:[%s243_s8 + $0x20] sm:$0xf] %v280_v8  ;;  %283 = vst [vmem:[%s243_s8 + $0x24] sm:$0xf] %v282_v9 }
  0x18   : > { %285 = vst [vmem:[%s243_s8 + $0x28] sm:$0xf] %v284_v10  ;;  %v286_v11 = vld [vmem:[%s1487_s7 + $0x18c] sm:$0xf]  ;;  %v288_v12 = vld [vmem:[%s1487_s7 + $0x1b0] sm:$0xf] }
  0x19   : > { %v290_v13 = vld [vmem:[%s1487_s7 + $0x1d4] sm:$0xf]  ;;  %287 = vst [vmem:[%s243_s8 + $0x2c] sm:$0xf] %v286_v11  ;;  %289 = vst [vmem:[%s243_s8 + $0x30] sm:$0xf] %v288_v12 }
  0x1a   : > { %291 = vst [vmem:[%s243_s8 + $0x34] sm:$0xf] %v290_v13  ;;  %v292_v14 = vld [vmem:[%s1487_s7 + $0x1f8] sm:$0xf]  ;;  %v294_v15 = vld [vmem:[%s1487_s7 + $0x21c] sm:$0xf] }
  0x1b   : > { %293 = vst [vmem:[%s243_s8 + $0x38] sm:$0xf] %v292_v14  ;;  %295 = vst [vmem:[%s243_s8 + $0x3c] sm:$0xf] %v294_v15 }
  0x1c PF: > { %p1106_p6 = scmp.ge.s32.totalorder %s1411_s22, 1  ;;  %p361_p7 = scmp.lt.s32.totalorder %s1411_s22, 10 }
  0x1e   : > { %p362_p8 = pnand %p1106_p6, %p361_p7 }
  0x1f   : > { %s368_s9 = sand.u32 (!%p362_p8), 1, %s1395_s18   ;;  %s1108_s10 = sshll.u32 (!%p362_p8), %s1403_s20, 4 }
  0x20   : > { %365 = sbr.rel (%p362_p8) target bundleno = 332 (0x14c), region = 77  ;;  %s1107_s11 = sshll.u32 (!%p362_p8), %s368_s9, 6 }
  0x21   : > { %p422_p9 = scmp.lt.s32.totalorder (!%p362_p8), %s1108_s10, 143  ;;  %s1514_s16 = scalar_lea.vmem (!%p362_p8), [#allocation3], %s1107_s11 }
  0x22   : > { %p1110_p10 = scmp.ne.s32.totalorder (!%p362_p8), %s1403_s20, 0 }
  0x27   : > { %s1652_s10 = smov (!%p422_p9, %s1108_s10), 143  ;;  %458 = sbr.rel (%p1110_p10) target bundleno = 49 (0x31), region = 85 }
  0x28   : > { %s1109_s12 = sshll.u32 %s1652_s10, 2  ;;  %v1413_v16 = vmov (!%p1110_p10), 0.0  }
  0x29   : > { %s1512_s15 = scalar_lea.vmem %s1640_s1, %s1109_s12  ;;  %459 = vst [vmem:[#allocation2] sm:$0xff] (!%p1110_p10), %v1413_v16  ;;  %460 = vst [vmem:[#allocation2 + $0x8] sm:$0xff] (!%p1110_p10), %v1413_v16 }
  0x2a   : > { %461 = vst [vmem:[#allocation2 + $0x10] sm:$0xff] (!%p1110_p10), %v1413_v16  ;;  %462 = vst [vmem:[#allocation2 + $0x18] sm:$0xff] (!%p1110_p10), %v1413_v16 }
  0x2b   : > { %463 = vst [vmem:[#allocation2 + $0x20] sm:$0xff] (!%p1110_p10), %v1413_v16  ;;  %464 = vst [vmem:[#allocation2 + $0x28] sm:$0xff] (!%p1110_p10), %v1413_v16 }
  0x2c   : > { %465 = vst [vmem:[#allocation2 + $0x30] sm:$0xff] (!%p1110_p10), %v1413_v16  ;;  %466 = vst [vmem:[#allocation2 + $0x38] sm:$0xff] (!%p1110_p10), %v1413_v16 }
  0x2d   : > { %467 = vst [vmem:[#allocation2 + $0x40] sm:$0xff] (!%p1110_p10), %v1413_v16  ;;  %468 = vst [vmem:[#allocation2 + $0x48] sm:$0xff] (!%p1110_p10), %v1413_v16 }
  0x2e   : > { %469 = vst [vmem:[#allocation2 + $0x50] sm:$0xff] %v1413_v16  ;;  %470 = vst [vmem:[#allocation2 + $0x58] sm:$0xff] %v1413_v16 }
  0x2f   : > { %471 = vst [vmem:[#allocation2 + $0x60] sm:$0xff] %v1413_v16  ;;  %472 = vst [vmem:[#allocation2 + $0x68] sm:$0xff] %v1413_v16 }
  0x30   : > { %473 = vst [vmem:[#allocation2 + $0x70] sm:$0xff] %v1413_v16  ;;  %474 = vst [vmem:[#allocation2 + $0x78] sm:$0xff] %v1413_v16 }
  0x31 PF: > { %v1357_v17 = vld [vmem:[%s1512_s15] sm:$0xff]   ;;  %v1358_v18 = vld [vmem:[%s1512_s15 + $0x8] sm:$0xff]   ;;  %v1359_v19 = vld [vmem:[%s1512_s15 + $0x10] sm:$0xff]   ;;  %p1127_p11 = scmp.ne.s32.totalorder %s1403_s20, 8 }
  0x32   : > { %1268 = vmatprep.subr.bf16.mxu0 %v1357_v17  ;;  %1300 = vmatprep.subr.bf16.mxu1 %v1357_v17  ;;  %v1360_v20 = vld [vmem:[%s1512_s15 + $0x18] sm:$0xff]   ;;  %v1365_v21 = vld [vmem:[%s1514_s16] sm:$0xff]   ;;  %v1362_v24 = vld [vmem:[%s1512_s15 + $0x28] sm:$0xff]  }
  0x33   : > { %1269 = vmatpush3.bf16.msra.mxu0 %v1357_v17  ;;  %1308 = vmatpush3.bf16.msra.mxu1 %v1357_v17  ;;  %v1366_v22 = vld [vmem:[%s1514_s16 + $0x20] sm:$0xff]   ;;  %v1363_v25 = vld [vmem:[%s1512_s15 + $0x30] sm:$0xff]   ;;  %v1364_v26 = vld [vmem:[%s1512_s15 + $0x38] sm:$0xff]  }
  0x34   : > { %1270 = vmatprep.subr.bf16.mxu0 %v1358_v18  ;;  %1301 = vmatprep.subr.bf16.mxu1 %v1358_v18  ;;  %v1361_v23 = vld [vmem:[%s1512_s15 + $0x20] sm:$0xff]   ;;  %v1367_v27 = vld [vmem:[%s1514_s16 + $0x8] sm:$0xff]   ;;  %v1369_v29 = vld [vmem:[%s1514_s16 + $0x10] sm:$0xff]  }
  0x35   : > { %1284 = vmatprep.mubr.bf16.mxu0 %v1365_v21  ;;  %1292 = vmatprep.mubr.bf16.mxu1 %v1366_v22  ;;  %v1368_v28 = vld [vmem:[%s1514_s16 + $0x28] sm:$0xff]   ;;  %v1370_v30 = vld [vmem:[%s1514_s16 + $0x30] sm:$0xff]   ;;  %v1371_v31 = vld [vmem:[%s1514_s16 + $0x18] sm:$0xff]  }
  0x36   : > { %v1372_v32 = vld [vmem:[%s1514_s16 + $0x38] sm:$0xff]   ;;  %v477_v33 = vld [vmem:[#allocation2 + $0x10] sm:$0xff]  ;;  %v475_v35 = vld [vmem:[#allocation2] sm:$0xff] }
  0x37   : > { %1271 = vmatpush3.bf16.msra.mxu0 %v1358_v18  ;;  %1309 = vmatpush3.bf16.msra.mxu1 %v1358_v18  ;;  %v485_v34 = vld [vmem:[#allocation2 + $0x50] sm:$0xff]  ;;  %v483_v36 = vld [vmem:[#allocation2 + $0x40] sm:$0xff]  ;;  %v478_v39 = vld [vmem:[#allocation2 + $0x18] sm:$0xff] }
  0x38   : > { %1272 = vmatprep.subr.bf16.mxu0 %v1359_v19  ;;  %1302 = vmatprep.subr.bf16.mxu1 %v1359_v19  ;;  %v486_v40 = vld [vmem:[#allocation2 + $0x58] sm:$0xff]  ;;  %v476_v45 = vld [vmem:[#allocation2 + $0x8] sm:$0xff]  ;;  %v481_v57 = vld [vmem:[#allocation2 + $0x30] sm:$0xff] }
  0x39   : > { %v484_v46 = vld [vmem:[#allocation2 + $0x48] sm:$0xff]  ;;  %v489_v58 = vld [vmem:[#allocation2 + $0x70] sm:$0xff]  ;;  %v479_v59 = vld [vmem:[#allocation2 + $0x20] sm:$0xff] }
  0x3a   : > { %v487_v60 = vld [vmem:[#allocation2 + $0x60] sm:$0xff]  ;;  %v482_v63 = vld [vmem:[#allocation2 + $0x38] sm:$0xff]  ;;  %v480_v5 = vld [vmem:[#allocation2 + $0x28] sm:$0xff] }
  0x3b   : > { %1273 = vmatpush3.bf16.msra.mxu0 %v1359_v19  ;;  %1310 = vmatpush3.bf16.msra.mxu1 %v1359_v19  ;;  %v490_v0 = vld [vmem:[#allocation2 + $0x78] sm:$0xff]  ;;  %v488_v6 = vld [vmem:[#allocation2 + $0x68] sm:$0xff]  ;;  %v1537_v19 = vld [vmem:[%s1641_s2] ss:$0 sm:$0xff] (!%p1127_p11) }
  0x3c   : > { %1274 = vmatprep.subr.bf16.mxu0 %v1360_v20  ;;  %1303 = vmatprep.subr.bf16.mxu1 %v1360_v20  ;;  %v1544_v22 = vld [vmem:[%s1642_s3] ss:$0 sm:$0xff] (!%p1127_p11) }
  0x3f   : > { %1275 = vmatpush3.bf16.msra.mxu0 %v1360_v20  ;;  %1311 = vmatpush3.bf16.msra.mxu1 %v1360_v20 }
  0x40   : > { %1276 = vmatprep.subr.bf16.mxu0 %v1361_v23  ;;  %1304 = vmatprep.subr.bf16.mxu1 %v1361_v23 }
  0x43   : > { %1277 = vmatpush3.bf16.msra.mxu0 %v1361_v23  ;;  %1312 = vmatpush3.bf16.msra.mxu1 %v1361_v23  ;;  %v1167_v23 = vld [vmem:[%s1643_s4] sm:$0xff] (!%p1127_p11)  }
  0x44   : > { %1278 = vmatprep.subr.bf16.mxu0 %v1362_v24  ;;  %1305 = vmatprep.subr.bf16.mxu1 %v1362_v24 }
  0x47   : > { %1279 = vmatpush3.bf16.msra.mxu0 %v1362_v24  ;;  %1313 = vmatpush3.bf16.msra.mxu1 %v1362_v24 }
  0x48   : > { %1280 = vmatprep.subr.bf16.mxu0 %v1363_v25  ;;  %1306 = vmatprep.subr.bf16.mxu1 %v1363_v25 }
  0x4b   : > { %1281 = vmatpush3.bf16.msra.mxu0 %v1363_v25  ;;  %1314 = vmatpush3.bf16.msra.mxu1 %v1363_v25  ;;  %v1168_v25 = vunpack.c.l.bf16 (!%p1127_p11), %v1167_v23 }
  0x4c   : > { %1282 = vmatprep.subr.bf16.mxu0 %v1364_v26  ;;  %1307 = vmatprep.subr.bf16.mxu1 %v1364_v26 }
  0x4f   : > { %1283 = vmatpush3.bf16.msra.mxu0 %v1364_v26  ;;  %1315 = vmatpush3.bf16.msra.mxu1 %v1364_v26  ;;  %v1169_v26 = vunpack.c.h.bf16 (!%p1127_p11), %v1167_v23 }
  0x52   : > { %1285 = vmatmul.mubr.bf16.vlgmr.msra.gmra.mrb[0].mxu0 %v1367_v27  ;;  %1293 = vmatmul.mubr.bf16.vlgmr.msra.gmra.mrb[0].mxu1 %v1368_v28 }
  0x53   : > { %1288 = vmatprep.mubr.bf16.mxu0 %v1369_v29  ;;  %1296 = vmatprep.mubr.bf16.mxu1 %v1370_v30  ;;  %v1238_v29 = vld [vmem:[%s1643_s4 + $0x8] sm:$0xff] (!%p1127_p11)  }
  0x5a   : > { %1289 = vmatmul.mubr.bf16.gmra.mrb[4].mxu0 %v1371_v31  ;;  %1297 = vmatmul.mubr.bf16.gmra.mrb[4].mxu1 %v1372_v32 }
 0x125   : > { %v1286_v37 = vpop.f32.mrb[0].mxu0  ;;  %v1294_v38 = vpop.f32.mrb[0].mxu1 }
 0x126   : > { %v718_v41 = vadd.f32 %v1286_v37, %v477_v33  ;;  %v726_v42 = vadd.f32 %v1294_v38, %v485_v34  ;;  %v653_v43 = vpop.f32.mrb[1].mxu0  ;;  %v685_v44 = vpop.f32.mrb[1].mxu1  ;;  %v1172_v34 = vunpack.c.l.bf16 (!%p1127_p11), %v1238_v29  ;;  %v1173_v38 = vunpack.c.h.bf16 (!%p1127_p11), %v1238_v29 }
 0x127   : > { %v716_v47 = vadd.f32 %v653_v43, %v475_v35  ;;  %v724_v48 = vadd.f32 %v685_v44, %v483_v36  ;;  %v1287_v49 = vpop.f32.mrb[2].mxu0  ;;  %v1295_v50 = vpop.f32.mrb[2].mxu1  ;;  %v1239_v36 = vld [vmem:[%s1643_s4 + $0x10] sm:$0xff] (!%p1127_p11)  }
 0x128   : > { %734 = vst [vmem:[#allocation2 + $0x10] sm:$0xff] %v718_v41  ;;  %742 = vst [vmem:[#allocation2 + $0x50] sm:$0xff] %v726_v42  ;;  %v719_v51 = vadd.f32 %v1287_v49, %v478_v39  ;;  %v727_v52 = vadd.f32 %v1295_v50, %v486_v40  ;;  %v656_v53 = vpop.f32.mrb[3].mxu0  ;;  %v688_v54 = vpop.f32.mrb[3].mxu1  ;;  %v1177_v50 = vunpack.c.h.bf16 (!%p1127_p11), %v1239_v36 }
 0x129   : > { %732 = vst [vmem:[#allocation2] sm:$0xff] %v716_v47  ;;  %740 = vst [vmem:[#allocation2 + $0x40] sm:$0xff] %v724_v48  ;;  %v717_v55 = vadd.f32 %v656_v53, %v476_v45  ;;  %v725_v56 = vadd.f32 %v688_v54, %v484_v46  ;;  %v1176_v45 = vunpack.c.l.bf16 (!%p1127_p11), %v1239_v36 }
 0x12a   : > { %735 = vst [vmem:[#allocation2 + $0x18] sm:$0xff] %v719_v51  ;;  %743 = vst [vmem:[#allocation2 + $0x58] sm:$0xff] %v727_v52  ;;  %v1240_v51 = vld [vmem:[%s1643_s4 + $0x18] sm:$0xff] (!%p1127_p11)  }
 0x12b   : > { %733 = vst [vmem:[#allocation2 + $0x8] sm:$0xff] %v717_v55  ;;  %741 = vst [vmem:[#allocation2 + $0x48] sm:$0xff] %v725_v56 }
 0x12d   : > { %v1290_v61 = vpop.f32.mrb[4].mxu0  ;;  %v1298_v62 = vpop.f32.mrb[4].mxu1  ;;  %751 = sbr.rel (%p1127_p11) target bundleno = 332 (0x14c), region = 89 }
 0x12e   : > { %v722_v1 = vadd.f32 %v1290_v61, %v481_v57  ;;  %v730_v2 = vadd.f32 %v1298_v62, %v489_v58  ;;  %v669_v3 = vpop.f32.mrb[5].mxu0  ;;  %v701_v4 = vpop.f32.mrb[5].mxu1 }
 0x12f   : > { %v720_v7 = vadd.f32 %v669_v3, %v479_v59  ;;  %v728_v8 = vadd.f32 %v701_v4, %v487_v60  ;;  %v1291_v9 = vpop.f32.mrb[6].mxu0  ;;  %v1299_v10 = vpop.f32.mrb[6].mxu1  ;;  %v754_v24 = vld [vmem:[#allocation2 + $0x10] sm:$0xff] (!%p1127_p11) }
 0x130   : > { %738 = vst [vmem:[#allocation2 + $0x30] sm:$0xff] %v722_v1  ;;  %746 = vst [vmem:[#allocation2 + $0x70] sm:$0xff] %v730_v2  ;;  %v723_v11 = vadd.f32 %v1291_v9, %v482_v63  ;;  %v731_v12 = vadd.f32 %v1299_v10, %v490_v0  ;;  %v672_v13 = vpop.f32.mrb[7].mxu0  ;;  %v704_v14 = vpop.f32.mrb[7].mxu1  ;;  %v752_v17 = vld [vmem:[#allocation2] sm:$0xff] (!%p1127_p11)  ;;  %v777_v28 = vmul.f32 (!%p1127_p11), %v1537_v19, %v754_v24  ;;  %v1180_v1 = vunpack.c.l.bf16 (!%p1127_p11), %v1240_v51 }
 0x131   : > { %736 = vst [vmem:[#allocation2 + $0x20] sm:$0xff] %v720_v7  ;;  %744 = vst [vmem:[#allocation2 + $0x60] sm:$0xff] %v728_v8  ;;  %v721_v15 = vadd.f32 %v672_v13, %v480_v5  ;;  %v729_v16 = vadd.f32 %v704_v14, %v488_v6  ;;  %v775_v20 = vmul.f32 (!%p1127_p11), %v1537_v19, %v752_v17  ;;  %v755_v27 = vld [vmem:[#allocation2 + $0x18] sm:$0xff] (!%p1127_p11)  ;;  %v760_v60 = vld [vmem:[#allocation2 + $0x40] sm:$0xff] (!%p1127_p11)  ;;  %v1181_v6 = vunpack.c.h.bf16 (!%p1127_p11), %v1240_v51 }
 0x132   : > { %739 = vst [vmem:[#allocation2 + $0x38] sm:$0xff] %v723_v11  ;;  %747 = vst [vmem:[#allocation2 + $0x78] sm:$0xff] %v731_v12  ;;  %v753_v18 = vld [vmem:[#allocation2 + $0x8] sm:$0xff] (!%p1127_p11)  ;;  %v778_v33 = vmul.f32 (!%p1127_p11), %v1537_v19, %v755_v27  ;;  %v800_v37 = vadd.f32 (!%p1127_p11), %v1544_v22, %v777_v28  ;;  %v1241_v2 = vld [vmem:[%s1643_s4 + $0x20] sm:$0xff] (!%p1127_p11)   ;;  %v783_v10 = vmul.f32 (!%p1127_p11), %v1537_v19, %v760_v60 }
 0x133   : > { %737 = vst [vmem:[#allocation2 + $0x28] sm:$0xff] %v721_v15  ;;  %745 = vst [vmem:[#allocation2 + $0x68] sm:$0xff] %v729_v16  ;;  %v776_v21 = vmul.f32 (!%p1127_p11), %v1537_v19, %v753_v18  ;;  %v798_v31 = vadd.f32 (!%p1127_p11), %v1544_v22, %v775_v20  ;;  %v761_v61 = vld [vmem:[#allocation2 + $0x48] sm:$0xff] (!%p1127_p11)  ;;  %v762_v7 = vld [vmem:[#allocation2 + $0x50] sm:$0xff] (!%p1127_p11)  ;;  %v1184_v16 = vunpack.c.l.bf16 (!%p1127_p11), %v1241_v2  ;;  %v1185_v17 = vunpack.c.h.bf16 (!%p1127_p11), %v1241_v2 }
 0x134   : > { %v801_v44 = vadd.f32 %v1544_v22, %v778_v33  ;;  %v848_v47 = vadd.f32 %v1172_v34, %v800_v37  ;;  %v784_v11 = vmul.f32 %v1537_v19, %v761_v61  ;;  %v763_v12 = vld [vmem:[#allocation2 + $0x58] sm:$0xff]  ;;  %v1242_v13 = vld [vmem:[%s1643_s4 + $0x28] sm:$0xff]   ;;  %v785_v24 = vmul.f32 %v1537_v19, %v762_v7 }
 0x135   : > { %v799_v32 = vadd.f32 %v1544_v22, %v776_v21  ;;  %v846_v42 = vadd.f32 %v1168_v25, %v798_v31  ;;  %v806_v21 = vadd.f32 %v1544_v22, %v783_v10  ;;  %v786_v28 = vmul.f32 %v1537_v19, %v763_v12 }
 0x136   : > { %v849_v54 = vadd.f32 %v1173_v38, %v801_v44  ;;  %v864_v56 = vmax.f32 %v848_v47, 0.0  ;;  %v807_v23 = vadd.f32 %v1544_v22, %v784_v11  ;;  %v1188_v29 = vunpack.c.l.bf16 %v1242_v13 }
 0x137   : > { %v758_v41 = vld [vmem:[#allocation2 + $0x30] sm:$0xff]  ;;  %v847_v43 = vadd.f32 %v1169_v26, %v799_v32  ;;  %v862_v52 = vmax.f32 %v846_v42, 0.0  ;;  %v854_v31 = vadd.f32 %v1184_v16, %v806_v21  ;;  %v808_v33 = vadd.f32 %v1544_v22, %v785_v24 }
 0x138   : > { %v756_v30 = vld [vmem:[#allocation2 + $0x20] sm:$0xff]  ;;  %v781_v55 = vmul.f32 %v1537_v19, %v758_v41  ;;  %v865_v63 = vmax.f32 %v849_v54, 0.0  ;;  %v1243_v26 = vld [vmem:[%s1643_s4 + $0x30] sm:$0xff]   ;;  %v855_v32 = vadd.f32 %v1185_v17, %v807_v23  ;;  %v809_v37 = vadd.f32 %v1544_v22, %v786_v28 }
 0x139   : > { %v779_v39 = vmul.f32 %v1537_v19, %v756_v30  ;;  %v759_v46 = vld [vmem:[#allocation2 + $0x38] sm:$0xff]  ;;  %v863_v53 = vmax.f32 %v847_v43, 0.0  ;;  %v764_v18 = vld [vmem:[#allocation2 + $0x60] sm:$0xff]  ;;  %v1189_v30 = vunpack.c.h.bf16 %v1242_v13  ;;  %v870_v41 = vmax.f32 %v854_v31, 0.0 }
 0x13a   : > { %v757_v35 = vld [vmem:[#allocation2 + $0x28] sm:$0xff]  ;;  %v782_v59 = vmul.f32 %v1537_v19, %v759_v46  ;;  %v804_v0 = vadd.f32 %v1544_v22, %v781_v55  ;;  %v1206_v8 = vpack.c.bf16 %v865_v63, %v864_v56  ;;  %v787_v34 = vmul.f32 %v1537_v19, %v764_v18 }
 0x13b   : > { %v780_v40 = vmul.f32 %v1537_v19, %v757_v35  ;;  %v802_v48 = vadd.f32 %v1544_v22, %v779_v39  ;;  %v1201_v62 = vpack.c.bf16 %v863_v53, %v862_v52  ;;  %v765_v25 = vld [vmem:[#allocation2 + $0x68] sm:$0xff]  ;;  %v766_v35 = vld [vmem:[#allocation2 + $0x70] sm:$0xff]  ;;  %v1192_v39 = vunpack.c.l.bf16 %v1243_v26 }
 0x13c   : > { %v805_v5 = vadd.f32 %v1544_v22, %v782_v59  ;;  %v852_v9 = vadd.f32 %v1180_v1, %v804_v0  ;;  %1245 = vst [vmem:[%s1644_s5 + $0x8] sm:$0xff] %v1206_v8   ;;  %v788_v38 = vmul.f32 %v1537_v19, %v765_v25  ;;  %v871_v42 = vmax.f32 %v855_v32, 0.0 }
 0x13d   : > { %v803_v49 = vadd.f32 %v1544_v22, %v780_v40  ;;  %v850_v57 = vadd.f32 %v1176_v45, %v802_v48  ;;  %1202 = vst [vmem:[%s1644_s5] sm:$0xff] %v1201_v62   ;;  %v767_v40 = vld [vmem:[#allocation2 + $0x78] sm:$0xff]  ;;  %v856_v43 = vadd.f32 %v1188_v29, %v808_v33  ;;  %v810_v44 = vadd.f32 %v1544_v22, %v787_v34 }
 0x13e   : > { %v853_v15 = vadd.f32 %v1181_v6, %v805_v5  ;;  %v868_v20 = vmax.f32 %v852_v9, 0.0  ;;  %v1244_v45 = vld [vmem:[%s1643_s4 + $0x38] sm:$0xff]   ;;  %v857_v46 = vadd.f32 %v1189_v30, %v809_v37  ;;  %v811_v47 = vadd.f32 %v1544_v22, %v788_v38 }
 0x13f   : > { %v851_v58 = vadd.f32 %v1177_v50, %v803_v49  ;;  %v866_v3 = vmax.f32 %v850_v57, 0.0  ;;  %v1193_v48 = vunpack.c.h.bf16 %v1243_v26  ;;  %v789_v49 = vmul.f32 %v1537_v19, %v766_v35 }
 0x140   : > { %v869_v27 = vmax.f32 %v853_v15, 0.0  ;;  %v1221_v50 = vpack.c.bf16 %v871_v42, %v870_v41  ;;  %v872_v51 = vmax.f32 %v856_v43, 0.0  ;;  %v858_v52 = vadd.f32 %v1192_v39, %v810_v44 }
 0x141   : > { %v867_v4 = vmax.f32 %v851_v58, 0.0  ;;  %v790_v53 = vmul.f32 %v1537_v19, %v767_v40  ;;  %v873_v54 = vmax.f32 %v857_v46, 0.0  ;;  %v859_v55 = vadd.f32 %v1193_v48, %v811_v47 }
 0x142   : > { %v1216_v36 = vpack.c.bf16 %v869_v27, %v868_v20  ;;  %v812_v56 = vadd.f32 %v1544_v22, %v789_v49  ;;  %v1196_v57 = vunpack.c.l.bf16 %v1244_v45  ;;  %1248 = vst [vmem:[%s1644_s5 + $0x20] sm:$0xff] %v1221_v50   ;;  %v874_v58 = vmax.f32 %v858_v52, 0.0 }
 0x143   : > { %v1211_v14 = vpack.c.bf16 %v867_v4, %v866_v3  ;;  %v813_v59 = vadd.f32 %v1544_v22, %v790_v53  ;;  %v1197_v60 = vunpack.c.h.bf16 %v1244_v45  ;;  %v1226_v61 = vpack.c.bf16 %v873_v54, %v872_v51 }
 0x144   : > { %1247 = vst [vmem:[%s1644_s5 + $0x18] sm:$0xff] %v1216_v36   ;;  %v875_v62 = vmax.f32 %v859_v55, 0.0  ;;  %v860_v63 = vadd.f32 %v1196_v57, %v812_v56 }
 0x145   : > { %1246 = vst [vmem:[%s1644_s5 + $0x10] sm:$0xff] %v1211_v14   ;;  %v861_v0 = vadd.f32 %v1197_v60, %v813_v59  ;;  %1249 = vst [vmem:[%s1644_s5 + $0x28] sm:$0xff] %v1226_v61  }
 0x146   : > { %v1231_v19 = vpack.c.bf16 %v875_v62, %v874_v58  ;;  %v876_v1 = vmax.f32 %v860_v63, 0.0 }
 0x147   : > { %v877_v2 = vmax.f32 %v861_v0, 0.0 }
 0x148   : > { %1250 = vst [vmem:[%s1644_s5 + $0x30] sm:$0xff] %v1231_v19  }
 0x149   : > { %v1236_v3 = vpack.c.bf16 %v877_v2, %v876_v1 }
 0x14b   : > { %1251 = vst [vmem:[%s1644_s5 + $0x38] sm:$0xff] %v1236_v3  }
 0x14c PF: > { %s15_s22 = sadd.s32 1, %s1411_s22   ;;  %s1645_s18 = smov %s1399_s19 }
 0x14d   : > { %p12_p12 = scmp.ge.s32.totalorder %s15_s22, 11   ;;  %s1646_s19 = smov %s1479_s26 }
 0x14e   : > { %s1647_s20 = smov %s1407_s21  ;;  %s1648_s21 = smov %s1650_s23 }
 0x14f   :  { %14 = sbr.rel (!%p12_p12) target bundleno = 3 (0x3), region = 136 }

// kernel: _lambda_.26
= control target key start
LH: loop header
LB: loop body
LE: loop exit
PB: predicated region body
PF: predicated region fallthrough
CT: control target
= control target key end

     0   :  { %s1273_s15 = smov 0   ;;  %s1275_s16 = smov 0   ;;  %s1444_s0 = inlined_call_operand.vmem [shape: bf16[128,1152], index: 0, kind: input, shape index: {}]   ;;  %s1445_s1 = inlined_call_operand.vmem [shape: bf16[1152,128], index: 1, kind: input, shape index: {}]   ;;  %s1446_s2 = inlined_call_operand.vmem [shape: f32[1,128], index: 2, kind: input, shape index: {}]   ;;  %s1447_s3 = inlined_call_operand.vmem [shape: f32[1,128], index: 3, kind: input, shape index: {}]   ;;  %s1448_s4 = inlined_call_operand.vmem [shape: bf16[128,128], index: 4, kind: output, shape index: {}]  }
   0x1   :  { %s1277_s17 = smov 0   ;;  %s1279_s18 = smov 0  }
   0x2   :  { %s1281_s19 = smov 0  }
   0x3 LB: > { %s26_s20 = sadd.s32 1, %s1241_s18  ;;  %p49_p1 = scmp.ne.s32.totalorder %s1233_s16, %s1229_s15  ;;  %s1245_s19 = sphi %s1281_s19, %s14_s19   ;;  %s1241_s18 = sphi %s1279_s18, %s1452_s18   ;;  %s1237_s17 = sphi %s1277_s17, %s1451_s17   ;;  %s1233_s16 = sphi %s1275_s16, %s1450_s16   ;;  %s1229_s15 = sphi %s1273_s15, %s1449_s15  }
   0x4   : > { %p27_p0 = scmp.ge.s32.totalorder %s26_s20, 9  ;;  %p50_p2 = scmp.eq.s32.totalorder %s1245_s19, 0 }
   0x5   : > { %s42_s22 = sadd.s32 1, %s1233_s16  ;;  %p976_p5 = scmp.ge.s32.totalorder %s1245_s19, 9 }
   0x6   : > { %s1454_s20 = smov (%p27_p0, %s26_s20), 0  ;;  %p51_p3 = por %p50_p2, %p49_p1 }
   0x7   : > { %s38_s21 = ssub.s32 %s1241_s18, %s1454_s20  ;;  %195 = sbr.rel (%p976_p5) target bundleno = 28 (0x1c), region = 24 }
   0x8   : > { %p40_p4 = scmp.eq.s32.totalorder %s38_s21, 0 }
   0xa   : > { %s1308_s23 = scalar_select %p40_p4, %s1233_s16, %s42_s22  }
   0xe   : > { %198 = sbr.rel (!%p51_p3) target bundleno = 28 (0x1c), region = 28  ;;  %s200_s24 = sand.u32 (%p51_p3), 1, %s1233_s16  }
   0xf   : > { %s978_s25 = sshll.u32 (%p51_p3), %s1241_s18, 2  ;;  %s977_s26 = sshll.u32 (%p51_p3), %s200_s24, 6 }
  0x10   : > { %s1316_s29 = scalar_lea.vmem (%p51_p3), %s1444_s0, %s978_s25  ;;  %s202_s30 = scalar_lea.vmem (%p51_p3), [#allocation3], %s977_s26 }
  0x11   : > { %v223_v0 = vld [vmem:[%s1316_s29] sm:$0xf] (%p51_p3)  ;;  %v225_v1 = vld [vmem:[%s1316_s29 + $0x24] sm:$0xf] (%p51_p3)  ;;  %v227_v2 = vld [vmem:[%s1316_s29 + $0x48] sm:$0xf] (%p51_p3) }
  0x12   : > { %224 = vst [vmem:[%s202_s30] sm:$0xf] (%p51_p3), %v223_v0  ;;  %226 = vst [vmem:[%s202_s30 + $0x4] sm:$0xf] (%p51_p3), %v225_v1  ;;  %v229_v3 = vld [vmem:[%s1316_s29 + $0x6c] sm:$0xf] (%p51_p3) }
  0x13   : > { %v231_v4 = vld [vmem:[%s1316_s29 + $0x90] sm:$0xf] (%p51_p3)  ;;  %228 = vst [vmem:[%s202_s30 + $0x8] sm:$0xf] (%p51_p3), %v227_v2  ;;  %230 = vst [vmem:[%s202_s30 + $0xc] sm:$0xf] (%p51_p3), %v229_v3 }
  0x14   : > { %232 = vst [vmem:[%s202_s30 + $0x10] sm:$0xf] (%p51_p3), %v231_v4  ;;  %v233_v5 = vld [vmem:[%s1316_s29 + $0xb4] sm:$0xf] (%p51_p3)  ;;  %v235_v6 = vld [vmem:[%s1316_s29 + $0xd8] sm:$0xf] (%p51_p3) }
  0x15   : > { %v237_v7 = vld [vmem:[%s1316_s29 + $0xfc] sm:$0xf]  ;;  %234 = vst [vmem:[%s202_s30 + $0x14] sm:$0xf] %v233_v5  ;;  %236 = vst [vmem:[%s202_s30 + $0x18] sm:$0xf] %v235_v6 }
  0x16   : > { %238 = vst [vmem:[%s202_s30 + $0x1c] sm:$0xf] %v237_v7  ;;  %v239_v8 = vld [vmem:[%s1316_s29 + $0x120] sm:$0xf]  ;;  %v241_v9 = vld [vmem:[%s1316_s29 + $0x144] sm:$0xf] }
  0x17   : > { %v243_v10 = vld [vmem:[%s1316_s29 + $0x168] sm:$0xf]  ;;  %240 = vst [vmem:[%s202_s30 + $0x20] sm:$0xf] %v239_v8  ;;  %242 = vst [vmem:[%s202_s30 + $0x24] sm:$0xf] %v241_v9 }
  0x18   : > { %244 = vst [vmem:[%s202_s30 + $0x28] sm:$0xf] %v243_v10  ;;  %v245_v11 = vld [vmem:[%s1316_s29 + $0x18c] sm:$0xf]  ;;  %v247_v12 = vld [vmem:[%s1316_s29 + $0x1b0] sm:$0xf] }
  0x19   : > { %v249_v13 = vld [vmem:[%s1316_s29 + $0x1d4] sm:$0xf]  ;;  %246 = vst [vmem:[%s202_s30 + $0x2c] sm:$0xf] %v245_v11  ;;  %248 = vst [vmem:[%s202_s30 + $0x30] sm:$0xf] %v247_v12 }
  0x1a   : > { %250 = vst [vmem:[%s202_s30 + $0x34] sm:$0xf] %v249_v13  ;;  %v251_v14 = vld [vmem:[%s1316_s29 + $0x1f8] sm:$0xf]  ;;  %v253_v15 = vld [vmem:[%s1316_s29 + $0x21c] sm:$0xf] }
  0x1b   : > { %252 = vst [vmem:[%s202_s30 + $0x38] sm:$0xf] %v251_v14  ;;  %254 = vst [vmem:[%s202_s30 + $0x3c] sm:$0xf] %v253_v15 }
  0x1c PF: > { %p979_p6 = scmp.ge.s32.totalorder %s1245_s19, 1  ;;  %p320_p7 = scmp.lt.s32.totalorder %s1245_s19, 10 }
  0x1e   : > { %p321_p8 = pnand %p979_p6, %p320_p7 }
  0x1f   : > { %s327_s5 = sand.u32 (!%p321_p8), 1, %s1229_s15   ;;  %s981_s6 = sshll.u32 (!%p321_p8), %s1237_s17, 4 }
  0x20   : > { %324 = sbr.rel (%p321_p8) target bundleno = 325 (0x145), region = 73  ;;  %s980_s7 = sshll.u32 (!%p321_p8), %s327_s5, 6 }
  0x21   : > { %p371_p9 = scmp.lt.s32.totalorder (!%p321_p8), %s981_s6, 143  ;;  %s1343_s12 = scalar_lea.vmem (!%p321_p8), [#allocation3], %s980_s7 }
  0x22   : > { %p983_p10 = scmp.ne.s32.totalorder (!%p321_p8), %s1237_s17, 0 }
  0x27   : > { %s1456_s6 = smov (!%p371_p9, %s981_s6), 143  ;;  %398 = sbr.rel (%p983_p10) target bundleno = 49 (0x31), region = 81 }
  0x28   : > { %s982_s8 = sshll.u32 %s1456_s6, 2  ;;  %v1247_v16 = vmov (!%p983_p10), 0.0  }
  0x29   : > { %s1341_s11 = scalar_lea.vmem %s1445_s1, %s982_s8  ;;  %399 = vst [vmem:[#allocation2] sm:$0xff] (!%p983_p10), %v1247_v16  ;;  %400 = vst [vmem:[#allocation2 + $0x8] sm:$0xff] (!%p983_p10), %v1247_v16 }
  0x2a   : > { %401 = vst [vmem:[#allocation2 + $0x10] sm:$0xff] (!%p983_p10), %v1247_v16  ;;  %402 = vst [vmem:[#allocation2 + $0x18] sm:$0xff] (!%p983_p10), %v1247_v16 }
  0x2b   : > { %403 = vst [vmem:[#allocation2 + $0x20] sm:$0xff] (!%p983_p10), %v1247_v16  ;;  %404 = vst [vmem:[#allocation2 + $0x28] sm:$0xff] (!%p983_p10), %v1247_v16 }
  0x2c   : > { %405 = vst [vmem:[#allocation2 + $0x30] sm:$0xff] (!%p983_p10), %v1247_v16  ;;  %406 = vst [vmem:[#allocation2 + $0x38] sm:$0xff] (!%p983_p10), %v1247_v16 }
  0x2d   : > { %407 = vst [vmem:[#allocation2 + $0x40] sm:$0xff] (!%p983_p10), %v1247_v16  ;;  %408 = vst [vmem:[#allocation2 + $0x48] sm:$0xff] (!%p983_p10), %v1247_v16 }
  0x2e   : > { %409 = vst [vmem:[#allocation2 + $0x50] sm:$0xff] %v1247_v16  ;;  %410 = vst [vmem:[#allocation2 + $0x58] sm:$0xff] %v1247_v16 }
  0x2f   : > { %411 = vst [vmem:[#allocation2 + $0x60] sm:$0xff] %v1247_v16  ;;  %412 = vst [vmem:[#allocation2 + $0x68] sm:$0xff] %v1247_v16 }
  0x30   : > { %413 = vst [vmem:[#allocation2 + $0x70] sm:$0xff] %v1247_v16  ;;  %414 = vst [vmem:[#allocation2 + $0x78] sm:$0xff] %v1247_v16 }
  0x31 PF: > { %v1191_v17 = vld [vmem:[%s1341_s11] sm:$0xff]   ;;  %v1192_v18 = vld [vmem:[%s1341_s11 + $0x8] sm:$0xff]   ;;  %v1193_v19 = vld [vmem:[%s1341_s11 + $0x10] sm:$0xff]   ;;  %p1000_p11 = scmp.ne.s32.totalorder %s1237_s17, 8 }
  0x32   : > { %1102 = vmatprep.subr.bf16.mxu0 %v1191_v17  ;;  %1134 = vmatprep.subr.bf16.mxu1 %v1191_v17  ;;  %v1194_v20 = vld [vmem:[%s1341_s11 + $0x18] sm:$0xff]   ;;  %v1199_v21 = vld [vmem:[%s1343_s12] sm:$0xff]   ;;  %v1196_v24 = vld [vmem:[%s1341_s11 + $0x28] sm:$0xff]  }
  0x33   : > { %1103 = vmatpush3.bf16.msra.mxu0 %v1191_v17  ;;  %1142 = vmatpush3.bf16.msra.mxu1 %v1191_v17  ;;  %v1200_v22 = vld [vmem:[%s1343_s12 + $0x20] sm:$0xff]   ;;  %v1197_v25 = vld [vmem:[%s1341_s11 + $0x30] sm:$0xff]   ;;  %v1198_v26 = vld [vmem:[%s1341_s11 + $0x38] sm:$0xff]  }
  0x34   : > { %1104 = vmatprep.subr.bf16.mxu0 %v1192_v18  ;;  %1135 = vmatprep.subr.bf16.mxu1 %v1192_v18  ;;  %v1195_v23 = vld [vmem:[%s1341_s11 + $0x20] sm:$0xff]   ;;  %v1201_v27 = vld [vmem:[%s1343_s12 + $0x8] sm:$0xff]   ;;  %v1203_v29 = vld [vmem:[%s1343_s12 + $0x10] sm:$0xff]  }
  0x35   : > { %1118 = vmatprep.mubr.bf16.mxu0 %v1199_v21  ;;  %1126 = vmatprep.mubr.bf16.mxu1 %v1200_v22  ;;  %v1202_v28 = vld [vmem:[%s1343_s12 + $0x28] sm:$0xff]   ;;  %v1204_v30 = vld [vmem:[%s1343_s12 + $0x30] sm:$0xff]   ;;  %v1205_v31 = vld [vmem:[%s1343_s12 + $0x18] sm:$0xff]  }
  0x36   : > { %v1206_v32 = vld [vmem:[%s1343_s12 + $0x38] sm:$0xff]   ;;  %v417_v33 = vld [vmem:[#allocation2 + $0x10] sm:$0xff]  ;;  %v415_v35 = vld [vmem:[#allocation2] sm:$0xff] }
  0x37   : > { %1105 = vmatpush3.bf16.msra.mxu0 %v1192_v18  ;;  %1143 = vmatpush3.bf16.msra.mxu1 %v1192_v18  ;;  %v425_v34 = vld [vmem:[#allocation2 + $0x50] sm:$0xff]  ;;  %v423_v36 = vld [vmem:[#allocation2 + $0x40] sm:$0xff]  ;;  %v418_v39 = vld [vmem:[#allocation2 + $0x18] sm:$0xff] }
  0x38   : > { %1106 = vmatprep.subr.bf16.mxu0 %v1193_v19  ;;  %1136 = vmatprep.subr.bf16.mxu1 %v1193_v19  ;;  %v426_v40 = vld [vmem:[#allocation2 + $0x58] sm:$0xff]  ;;  %v416_v45 = vld [vmem:[#allocation2 + $0x8] sm:$0xff]  ;;  %v421_v57 = vld [vmem:[#allocation2 + $0x30] sm:$0xff] }
  0x39   : > { %v424_v46 = vld [vmem:[#allocation2 + $0x48] sm:$0xff]  ;;  %v429_v58 = vld [vmem:[#allocation2 + $0x70] sm:$0xff]  ;;  %v419_v59 = vld [vmem:[#allocation2 + $0x20] sm:$0xff] }
  0x3a   : > { %v427_v60 = vld [vmem:[#allocation2 + $0x60] sm:$0xff]  ;;  %v422_v63 = vld [vmem:[#allocation2 + $0x38] sm:$0xff]  ;;  %v420_v5 = vld [vmem:[#allocation2 + $0x28] sm:$0xff] }
  0x3b   : > { %1107 = vmatpush3.bf16.msra.mxu0 %v1193_v19  ;;  %1144 = vmatpush3.bf16.msra.mxu1 %v1193_v19  ;;  %v430_v0 = vld [vmem:[#allocation2 + $0x78] sm:$0xff]  ;;  %v428_v6 = vld [vmem:[#allocation2 + $0x68] sm:$0xff]  ;;  %v1366_v19 = vld [vmem:[%s1446_s2] ss:$0 sm:$0xff] (!%p1000_p11) }
  0x3c   : > { %1108 = vmatprep.subr.bf16.mxu0 %v1194_v20  ;;  %1137 = vmatprep.subr.bf16.mxu1 %v1194_v20  ;;  %v1373_v22 = vld [vmem:[%s1447_s3] ss:$0 sm:$0xff] (!%p1000_p11) }
  0x3f   : > { %1109 = vmatpush3.bf16.msra.mxu0 %v1194_v20  ;;  %1145 = vmatpush3.bf16.msra.mxu1 %v1194_v20 }
  0x40   : > { %1110 = vmatprep.subr.bf16.mxu0 %v1195_v23  ;;  %1138 = vmatprep.subr.bf16.mxu1 %v1195_v23 }
  0x43   : > { %1111 = vmatpush3.bf16.msra.mxu0 %v1195_v23  ;;  %1146 = vmatpush3.bf16.msra.mxu1 %v1195_v23 }
  0x44   : > { %1112 = vmatprep.subr.bf16.mxu0 %v1196_v24  ;;  %1139 = vmatprep.subr.bf16.mxu1 %v1196_v24 }
  0x47   : > { %1113 = vmatpush3.bf16.msra.mxu0 %v1196_v24  ;;  %1147 = vmatpush3.bf16.msra.mxu1 %v1196_v24 }
  0x48   : > { %1114 = vmatprep.subr.bf16.mxu0 %v1197_v25  ;;  %1140 = vmatprep.subr.bf16.mxu1 %v1197_v25 }
  0x4b   : > { %1115 = vmatpush3.bf16.msra.mxu0 %v1197_v25  ;;  %1148 = vmatpush3.bf16.msra.mxu1 %v1197_v25 }
  0x4c   : > { %1116 = vmatprep.subr.bf16.mxu0 %v1198_v26  ;;  %1141 = vmatprep.subr.bf16.mxu1 %v1198_v26 }
  0x4f   : > { %1117 = vmatpush3.bf16.msra.mxu0 %v1198_v26  ;;  %1149 = vmatpush3.bf16.msra.mxu1 %v1198_v26 }
  0x52   : > { %1119 = vmatmul.mubr.bf16.vlgmr.msra.gmra.mrb[0].mxu0 %v1201_v27  ;;  %1127 = vmatmul.mubr.bf16.vlgmr.msra.gmra.mrb[0].mxu1 %v1202_v28 }
  0x53   : > { %1122 = vmatprep.mubr.bf16.mxu0 %v1203_v29  ;;  %1130 = vmatprep.mubr.bf16.mxu1 %v1204_v30 }
  0x5a   : > { %1123 = vmatmul.mubr.bf16.gmra.mrb[4].mxu0 %v1205_v31  ;;  %1131 = vmatmul.mubr.bf16.gmra.mrb[4].mxu1 %v1206_v32 }
 0x125   : > { %v1120_v37 = vpop.f32.mrb[0].mxu0  ;;  %v1128_v38 = vpop.f32.mrb[0].mxu1 }
 0x126   : > { %v658_v41 = vadd.f32 %v1120_v37, %v417_v33  ;;  %v666_v42 = vadd.f32 %v1128_v38, %v425_v34  ;;  %v593_v43 = vpop.f32.mrb[1].mxu0  ;;  %v625_v44 = vpop.f32.mrb[1].mxu1 }
 0x127   : > { %v656_v47 = vadd.f32 %v593_v43, %v415_v35  ;;  %v664_v48 = vadd.f32 %v625_v44, %v423_v36  ;;  %v1121_v49 = vpop.f32.mrb[2].mxu0  ;;  %v1129_v50 = vpop.f32.mrb[2].mxu1 }
 0x128   : > { %674 = vst [vmem:[#allocation2 + $0x10] sm:$0xff] %v658_v41  ;;  %682 = vst [vmem:[#allocation2 + $0x50] sm:$0xff] %v666_v42  ;;  %v659_v51 = vadd.f32 %v1121_v49, %v418_v39  ;;  %v667_v52 = vadd.f32 %v1129_v50, %v426_v40  ;;  %v596_v53 = vpop.f32.mrb[3].mxu0  ;;  %v628_v54 = vpop.f32.mrb[3].mxu1 }
 0x129   : > { %672 = vst [vmem:[#allocation2] sm:$0xff] %v656_v47  ;;  %680 = vst [vmem:[#allocation2 + $0x40] sm:$0xff] %v664_v48  ;;  %v657_v55 = vadd.f32 %v596_v53, %v416_v45  ;;  %v665_v56 = vadd.f32 %v628_v54, %v424_v46 }
 0x12a   : > { %675 = vst [vmem:[#allocation2 + $0x18] sm:$0xff] %v659_v51  ;;  %683 = vst [vmem:[#allocation2 + $0x58] sm:$0xff] %v667_v52 }
 0x12b   : > { %673 = vst [vmem:[#allocation2 + $0x8] sm:$0xff] %v657_v55  ;;  %681 = vst [vmem:[#allocation2 + $0x48] sm:$0xff] %v665_v56 }
 0x12d   : > { %v1124_v61 = vpop.f32.mrb[4].mxu0  ;;  %v1132_v62 = vpop.f32.mrb[4].mxu1  ;;  %691 = sbr.rel (%p1000_p11) target bundleno = 325 (0x145), region = 85 }
 0x12e   : > { %v662_v1 = vadd.f32 %v1124_v61, %v421_v57  ;;  %v670_v2 = vadd.f32 %v1132_v62, %v429_v58  ;;  %v609_v3 = vpop.f32.mrb[5].mxu0  ;;  %v641_v4 = vpop.f32.mrb[5].mxu1 }
 0x12f   : > { %v660_v7 = vadd.f32 %v609_v3, %v419_v59  ;;  %v668_v8 = vadd.f32 %v641_v4, %v427_v60  ;;  %v1125_v9 = vpop.f32.mrb[6].mxu0  ;;  %v1133_v10 = vpop.f32.mrb[6].mxu1  ;;  %v694_v23 = vld [vmem:[#allocation2 + $0x10] sm:$0xff] (!%p1000_p11) }
 0x130   : > { %678 = vst [vmem:[#allocation2 + $0x30] sm:$0xff] %v662_v1  ;;  %686 = vst [vmem:[#allocation2 + $0x70] sm:$0xff] %v670_v2  ;;  %v663_v11 = vadd.f32 %v1125_v9, %v422_v63  ;;  %v671_v12 = vadd.f32 %v1133_v10, %v430_v0  ;;  %v612_v13 = vpop.f32.mrb[7].mxu0  ;;  %v644_v14 = vpop.f32.mrb[7].mxu1  ;;  %v692_v17 = vld [vmem:[#allocation2] sm:$0xff] (!%p1000_p11)  ;;  %v717_v25 = vmul.f32 (!%p1000_p11), %v1366_v19, %v694_v23  ;;  %v702_v49 = vld [vmem:[#allocation2 + $0x50] sm:$0xff] (!%p1000_p11) }
 0x131   : > { %676 = vst [vmem:[#allocation2 + $0x20] sm:$0xff] %v660_v7  ;;  %684 = vst [vmem:[#allocation2 + $0x60] sm:$0xff] %v668_v8  ;;  %v661_v15 = vadd.f32 %v612_v13, %v420_v5  ;;  %v669_v16 = vadd.f32 %v644_v14, %v428_v6  ;;  %v715_v20 = vmul.f32 (!%p1000_p11), %v1366_v19, %v692_v17  ;;  %v695_v24 = vld [vmem:[#allocation2 + $0x18] sm:$0xff] (!%p1000_p11)  ;;  %v700_v39 = vld [vmem:[#allocation2 + $0x40] sm:$0xff] (!%p1000_p11) }
 0x132   : > { %679 = vst [vmem:[#allocation2 + $0x38] sm:$0xff] %v663_v11  ;;  %687 = vst [vmem:[#allocation2 + $0x78] sm:$0xff] %v671_v12  ;;  %v693_v18 = vld [vmem:[#allocation2 + $0x8] sm:$0xff] (!%p1000_p11)  ;;  %v718_v26 = vmul.f32 (!%p1000_p11), %v1366_v19, %v695_v24  ;;  %v740_v35 = vadd.f32 (!%p1000_p11), %v1373_v22, %v717_v25  ;;  %v703_v50 = vld [vmem:[#allocation2 + $0x58] sm:$0xff] (!%p1000_p11)  ;;  %v723_v54 = vmul.f32 (!%p1000_p11), %v1366_v19, %v700_v39 }
 0x133   : > { %677 = vst [vmem:[#allocation2 + $0x28] sm:$0xff] %v661_v15  ;;  %685 = vst [vmem:[#allocation2 + $0x68] sm:$0xff] %v669_v16  ;;  %v716_v21 = vmul.f32 (!%p1000_p11), %v1366_v19, %v693_v18  ;;  %v738_v30 = vadd.f32 (!%p1000_p11), %v1373_v22, %v715_v20  ;;  %v701_v44 = vld [vmem:[#allocation2 + $0x48] sm:$0xff] (!%p1000_p11)  ;;  %v725_v0 = vmul.f32 (!%p1000_p11), %v1366_v19, %v702_v49 }
 0x134   : > { %v741_v36 = vadd.f32 %v1373_v22, %v718_v26  ;;  %v756_v45 = vmax.f32 %v740_v35, 0.0  ;;  %v724_v60 = vmul.f32 %v1366_v19, %v701_v44  ;;  %v746_v63 = vadd.f32 %v1373_v22, %v723_v54 }
 0x135   : > { %v739_v31 = vadd.f32 %v1373_v22, %v716_v21  ;;  %v754_v40 = vmax.f32 %v738_v30, 0.0  ;;  %v726_v1 = vmul.f32 %v1366_v19, %v703_v50  ;;  %v748_v8 = vadd.f32 %v1373_v22, %v725_v0 }
 0x136   : > { %v757_v46 = vmax.f32 %v741_v36, 0.0  ;;  %v747_v4 = vadd.f32 %v1373_v22, %v724_v60  ;;  %v762_v7 = vmax.f32 %v746_v63, 0.0 }
 0x137   : > { %v698_v29 = vld [vmem:[#allocation2 + $0x30] sm:$0xff]  ;;  %v755_v41 = vmax.f32 %v739_v31, 0.0  ;;  %v749_v9 = vadd.f32 %v1373_v22, %v726_v1  ;;  %v764_v15 = vmax.f32 %v748_v8, 0.0 }
 0x138   : > { %v696_v27 = vld [vmem:[#allocation2 + $0x20] sm:$0xff]  ;;  %v721_v37 = vmul.f32 %v1366_v19, %v698_v29  ;;  %v1047_v57 = vpack.c.bf16 %v757_v46, %v756_v45  ;;  %v706_v61 = vld [vmem:[#allocation2 + $0x70] sm:$0xff]  ;;  %v763_v11 = vmax.f32 %v747_v4, 0.0 }
 0x139   : > { %v719_v32 = vmul.f32 %v1366_v19, %v696_v27  ;;  %v699_v34 = vld [vmem:[#allocation2 + $0x38] sm:$0xff]  ;;  %v1042_v51 = vpack.c.bf16 %v755_v41, %v754_v40  ;;  %v704_v55 = vld [vmem:[#allocation2 + $0x60] sm:$0xff]  ;;  %v729_v10 = vmul.f32 %v1366_v19, %v706_v61  ;;  %v765_v16 = vmax.f32 %v749_v9, 0.0 }
 0x13a   : > { %v697_v28 = vld [vmem:[#allocation2 + $0x28] sm:$0xff]  ;;  %v722_v38 = vmul.f32 %v1366_v19, %v699_v34  ;;  %v744_v47 = vadd.f32 %v1373_v22, %v721_v37  ;;  %v707_v2 = vld [vmem:[#allocation2 + $0x78] sm:$0xff]  ;;  %1079 = vst [vmem:[%s1448_s4 + $0x8] sm:$0xff] %v1047_v57   ;;  %v727_v5 = vmul.f32 %v1366_v19, %v704_v55  ;;  %v1062_v18 = vpack.c.bf16 %v763_v11, %v762_v7 }
 0x13b   : > { %v720_v33 = vmul.f32 %v1366_v19, %v697_v28  ;;  %v742_v42 = vadd.f32 %v1373_v22, %v719_v32  ;;  %v705_v56 = vld [vmem:[#allocation2 + $0x68] sm:$0xff]  ;;  %1043 = vst [vmem:[%s1448_s4] sm:$0xff] %v1042_v51   ;;  %v730_v14 = vmul.f32 %v1366_v19, %v707_v2  ;;  %v752_v17 = vadd.f32 %v1373_v22, %v729_v10 }
 0x13c   : > { %v745_v48 = vadd.f32 %v1373_v22, %v722_v38  ;;  %v760_v58 = vmax.f32 %v744_v47, 0.0  ;;  %v728_v6 = vmul.f32 %v1366_v19, %v705_v56  ;;  %v750_v12 = vadd.f32 %v1373_v22, %v727_v5  ;;  %1082 = vst [vmem:[%s1448_s4 + $0x20] sm:$0xff] %v1062_v18  }
 0x13d   : > { %v743_v43 = vadd.f32 %v1373_v22, %v720_v33  ;;  %v758_v52 = vmax.f32 %v742_v42, 0.0  ;;  %v753_v23 = vadd.f32 %v1373_v22, %v730_v14  ;;  %v1067_v24 = vpack.c.bf16 %v765_v16, %v764_v15 }
 0x13e   : > { %v761_v59 = vmax.f32 %v745_v48, 0.0  ;;  %v751_v13 = vadd.f32 %v1373_v22, %v728_v6  ;;  %v766_v20 = vmax.f32 %v750_v12, 0.0  ;;  %v768_v25 = vmax.f32 %v752_v17, 0.0 }
 0x13f   : > { %v759_v53 = vmax.f32 %v743_v43, 0.0  ;;  %v769_v27 = vmax.f32 %v753_v23, 0.0  ;;  %1083 = vst [vmem:[%s1448_s4 + $0x28] sm:$0xff] %v1067_v24  }
 0x140   : > { %v1057_v3 = vpack.c.bf16 %v761_v59, %v760_v58  ;;  %v767_v21 = vmax.f32 %v751_v13, 0.0 }
 0x141   : > { %v1052_v62 = vpack.c.bf16 %v759_v53, %v758_v52  ;;  %v1077_v19 = vpack.c.bf16 %v769_v27, %v768_v25 }
 0x142   : > { %1081 = vst [vmem:[%s1448_s4 + $0x18] sm:$0xff] %v1057_v3   ;;  %v1072_v26 = vpack.c.bf16 %v767_v21, %v766_v20 }
 0x143   : > { %1080 = vst [vmem:[%s1448_s4 + $0x10] sm:$0xff] %v1052_v62   ;;  %1085 = vst [vmem:[%s1448_s4 + $0x38] sm:$0xff] %v1077_v19  }
 0x144   : > { %1084 = vst [vmem:[%s1448_s4 + $0x30] sm:$0xff] %v1072_v26  }
 0x145 PF: > { %s14_s19 = sadd.s32 1, %s1245_s19   ;;  %s1449_s15 = smov %s1233_s16 }
 0x146   : > { %p11_p12 = scmp.ge.s32.totalorder %s14_s19, 11   ;;  %s1450_s16 = smov %s1308_s23 }
 0x147   : > { %s1451_s17 = smov %s1241_s18  ;;  %s1452_s18 = smov %s1454_s20 }
 0x148   :  { %13 = sbr.rel (!%p11_p12) target bundleno = 3 (0x3), region = 129 }

// kernel: _lambda_.28
= control target key start
LH: loop header
LB: loop body
LE: loop exit
PB: predicated region body
PF: predicated region fallthrough
CT: control target
= control target key end

     0   :  { %s1612_s27 = smov 0   ;;  %s1614_s28 = smov 0   ;;  %s1765_s0 = inlined_call_operand.vmem [shape: bf16[32,1152], index: 0, kind: input, shape index: {}]   ;;  %s1766_s1 = inlined_call_operand.vmem [shape: bf16[1152,256], index: 1, kind: input, shape index: {}]   ;;  %s1767_s2 = inlined_call_operand.vmem [shape: f32[1,256], index: 2, kind: input, shape index: {}, may-alias: {2,5}]   ;;  %s1768_s3 = inlined_call_operand.vmem [shape: f32[1,256], index: 3, kind: input, shape index: {}, may-alias: {3,6}]   ;;  %s1769_s4 = inlined_call_operand.vmem [shape: bf16[1152,256], index: 4, kind: input, shape index: {}]   ;;  %s1770_s5 = inlined_call_operand.vmem [shape: f32[1,256], index: 5, kind: input, shape index: {}, may-alias: {2,5}]   ;;  %s1771_s6 = inlined_call_operand.vmem [shape: f32[1,256], index: 6, kind: input, shape index: {}, may-alias: {3,6}]   ;;  %s1772_s7 = inlined_call_operand.vmem [shape: bf16[32,256], index: 7, kind: output, shape index: {0}]   ;;  %s1773_s8 = inlined_call_operand.vmem [shape: bf16[32,256], index: 8, kind: output, shape index: {1}]  }
   0x1   :  { %s1616_s29 = smov 0   ;;  %s1618_s30 = smov 0  }
   0x2   :  { %s1620_s9 = smov 0  }
   0x3 LB: > { %s31_s10 = sadd.s32 1, %s1559_s30  ;;  %p54_p1 = scmp.ne.s32.totalorder %s1551_s28, %s1547_s27  ;;  %s1563_s9 = sphi %s1620_s9, %s19_s9   ;;  %s1559_s30 = sphi %s1618_s30, %s1777_s30   ;;  %s1555_s29 = sphi %s1616_s29, %s1776_s29   ;;  %s1551_s28 = sphi %s1614_s28, %s1775_s28   ;;  %s1547_s27 = sphi %s1612_s27, %s1774_s27  }
   0x4   : > { %p32_p0 = scmp.ge.s32.totalorder %s31_s10, 9  ;;  %p55_p2 = scmp.eq.s32.totalorder %s1563_s9, 0 }
   0x5   : > { %s47_s12 = sadd.s32 1, %s1551_s28  ;;  %p1362_p5 = scmp.ge.s32.totalorder %s1563_s9, 9 }
   0x6   : > { %s1779_s10 = smov (%p32_p0, %s31_s10), 0  ;;  %p56_p3 = por %p55_p2, %p54_p1 }
   0x7   : > { %s43_s11 = ssub.s32 %s1559_s30, %s1779_s10  ;;  %328 = sbr.rel (%p1362_p5) target bundleno = 21 (0x15), region = 32 }
   0x8   : > { %p45_p4 = scmp.eq.s32.totalorder %s43_s11, 0 }
   0xa   : > { %s1647_s13 = scalar_select %p45_p4, %s1551_s28, %s47_s12  }
   0xe   : > { %331 = sbr.rel (!%p56_p3) target bundleno = 21 (0x15), region = 36  ;;  %s333_s14 = sand.u32 (%p56_p3), 1, %s1551_s28  }
   0xf   : > { %s1364_s15 = sshll.u32 (%p56_p3), %s1559_s30, 2  ;;  %s1363_s16 = sshll.u32 (%p56_p3), %s333_s14, 4 }
  0x10   : > { %s340_s19 = scalar_lea.vmem (%p56_p3), %s1765_s0, %s1364_s15  ;;  %s335_s20 = scalar_lea.vmem (%p56_p3), [#allocation4], %s1363_s16 }
  0x11   : > { %v356_v0 = vld [vmem:[%s340_s19] sm:$0xf] (%p56_p3)  ;;  %v358_v1 = vld [vmem:[%s340_s19 + $0x24] sm:$0xf] (%p56_p3)  ;;  %v360_v2 = vld [vmem:[%s340_s19 + $0x48] sm:$0xf] (%p56_p3) }
  0x12   : > { %357 = vst [vmem:[%s335_s20] sm:$0xf] (%p56_p3), %v356_v0  ;;  %359 = vst [vmem:[%s335_s20 + $0x4] sm:$0xf] (%p56_p3), %v358_v1  ;;  %v362_v3 = vld [vmem:[%s340_s19 + $0x6c] sm:$0xf] (%p56_p3) }
  0x13   : > { %361 = vst [vmem:[%s335_s20 + $0x8] sm:$0xf] (%p56_p3), %v360_v2  ;;  %363 = vst [vmem:[%s335_s20 + $0xc] sm:$0xf] (%p56_p3), %v362_v3 }
  0x15 PF: > { %p1365_p6 = scmp.ge.s32.totalorder %s1563_s9, 1  ;;  %p423_p7 = scmp.lt.s32.totalorder %s1563_s9, 10 }
  0x17   : > { %p424_p8 = pnand %p1365_p6, %p423_p7 }
  0x18   : > { %s430_s21 = sand.u32 (!%p424_p8), 1, %s1547_s27   ;;  %s1367_s22 = sshll.u32 (!%p424_p8), %s1555_s29, 4 }
  0x19   : > { %427 = sbr.rel (%p424_p8) target bundleno = 318 (0x13e), region = 85  ;;  %s1659_s23 = sshll.u32 (!%p424_p8), %s430_s21, 4 }
  0x1a   : > { %p517_p9 = scmp.lt.s32.totalorder (!%p424_p8), %s1367_s22, 143  ;;  %s432_s16 = scalar_lea.vmem (!%p424_p8), [#allocation4], %s1659_s23 }
  0x1b   : > { %p1373_p10 = scmp.ne.s32.totalorder (!%p424_p8), %s1555_s29, 0 }
  0x20   : > { %s1781_s22 = smov (!%p517_p9, %s1367_s22), 143  ;;  %587 = sbr.rel (%p1373_p10) target bundleno = 42 (0x2a), region = 93 }
  0x21   : > { %s1423_s24 = sshll.u32 %s1781_s22, 3  ;;  %v1565_v4 = vmov (!%p1373_p10), 0.0  }
  0x22   : > { %s1664_s11 = scalar_lea.vmem %s1766_s1, %s1423_s24  ;;  %s1669_s15 = scalar_lea.vmem %s1769_s4, %s1423_s24  ;;  %588 = vst [vmem:[#allocation2] sm:$0xff] (!%p1373_p10), %v1565_v4  ;;  %589 = vst [vmem:[#allocation2 + $0x8] sm:$0xff] (!%p1373_p10), %v1565_v4 }
  0x23   : > { %590 = vst [vmem:[#allocation2 + $0x10] sm:$0xff] (!%p1373_p10), %v1565_v4  ;;  %591 = vst [vmem:[#allocation2 + $0x18] sm:$0xff] (!%p1373_p10), %v1565_v4 }
  0x24   : > { %592 = vst [vmem:[#allocation2 + $0x20] sm:$0xff] (!%p1373_p10), %v1565_v4  ;;  %593 = vst [vmem:[#allocation2 + $0x28] sm:$0xff] (!%p1373_p10), %v1565_v4 }
  0x25   : > { %594 = vst [vmem:[#allocation2 + $0x30] sm:$0xff] (!%p1373_p10), %v1565_v4  ;;  %595 = vst [vmem:[#allocation2 + $0x38] sm:$0xff] (!%p1373_p10), %v1565_v4 }
  0x26   : > { %596 = vst [vmem:[#allocation3] sm:$0xff] (!%p1373_p10), %v1565_v4  ;;  %597 = vst [vmem:[#allocation3 + $0x8] sm:$0xff] (!%p1373_p10), %v1565_v4 }
  0x27   : > { %598 = vst [vmem:[#allocation3 + $0x10] sm:$0xff] %v1565_v4  ;;  %599 = vst [vmem:[#allocation3 + $0x18] sm:$0xff] %v1565_v4 }
  0x28   : > { %600 = vst [vmem:[#allocation3 + $0x20] sm:$0xff] %v1565_v4  ;;  %601 = vst [vmem:[#allocation3 + $0x28] sm:$0xff] %v1565_v4 }
  0x29   : > { %602 = vst [vmem:[#allocation3 + $0x30] sm:$0xff] %v1565_v4  ;;  %603 = vst [vmem:[#allocation3 + $0x38] sm:$0xff] %v1565_v4 }
  0x2a PF: > { %v1475_v5 = vld [vmem:[%s1664_s11 + $0x4] ss:$8 sps:$4 sm:$0xff]   ;;  %v1566_v7 = vmov 0   ;;  %v1479_v8 = vld [vmem:[%s1664_s11] ss:$8 sps:$4 sm:$0xff]   ;;  %p1408_p11 = scmp.ne.s32.totalorder %s1555_s29, 8 }
  0x2b   : > { %v1477_v6 = vld [vmem:[%s1669_s15 + $0x4] ss:$8 sps:$4 sm:$0xff]   ;;  %756 = vmatprep.mubr.bf16.mxu0 %v1566_v7  ;;  %929 = vmatprep.mubr.bf16.mxu1 %v1566_v7  ;;  %v1480_v9 = vld [vmem:[%s1669_s15] ss:$8 sps:$4 sm:$0xff]   ;;  %v1481_v10 = vld [vmem:[%s1664_s11 + $0x14] ss:$8 sps:$4 sm:$0xff]  }
  0x2c   : > { %724 = vmatprep.subr.bf16.mxu0 %v1475_v5  ;;  %897 = vmatprep.subr.bf16.mxu1 %v1477_v6  ;;  %v1483_v11 = vld [vmem:[%s1669_s15 + $0x14] ss:$8 sps:$4 sm:$0xff]   ;;  %v1485_v12 = vld [vmem:[%s1664_s11 + $0x10] ss:$8 sps:$4 sm:$0xff]   ;;  %v1487_v14 = vld [vmem:[%s1664_s11 + $0x24] ss:$8 sps:$4 sm:$0xff]  }
  0x2d   : > { %725 = vmatpush1.bf16.msra.mxu0 %v1479_v8  ;;  %898 = vmatpush1.bf16.msra.mxu1 %v1480_v9  ;;  %v1486_v13 = vld [vmem:[%s1669_s15 + $0x10] ss:$8 sps:$4 sm:$0xff]   ;;  %v1489_v15 = vld [vmem:[%s1669_s15 + $0x24] ss:$8 sps:$4 sm:$0xff]   ;;  %v1491_v16 = vld [vmem:[%s1664_s11 + $0x20] ss:$8 sps:$4 sm:$0xff]  }
  0x2e   : > { %726 = vmatprep.subr.bf16.mxu0 %v1481_v10  ;;  %899 = vmatprep.subr.bf16.mxu1 %v1483_v11  ;;  %v1492_v17 = vld [vmem:[%s1669_s15 + $0x20] ss:$8 sps:$4 sm:$0xff]   ;;  %v1493_v18 = vld [vmem:[%s1664_s11 + $0x34] ss:$8 sps:$4 sm:$0xff]   ;;  %v1497_v20 = vld [vmem:[%s1664_s11 + $0x30] ss:$8 sps:$4 sm:$0xff]  }
  0x2f   : > { %v1495_v19 = vld [vmem:[%s1669_s15 + $0x34] ss:$8 sps:$4 sm:$0xff]   ;;  %v1498_v21 = vld [vmem:[%s1669_s15 + $0x30] ss:$8 sps:$4 sm:$0xff]   ;;  %v1499_v22 = vld [vmem:[%s1664_s11 + $0x44] ss:$8 sps:$4 sm:$0xff]  }
  0x30   : > { %v1501_v23 = vld [vmem:[%s1669_s15 + $0x44] ss:$8 sps:$4 sm:$0xff]   ;;  %v1503_v24 = vld [vmem:[%s1664_s11 + $0x40] ss:$8 sps:$4 sm:$0xff]   ;;  %v1505_v26 = vld [vmem:[%s1664_s11 + $0x54] ss:$8 sps:$4 sm:$0xff]  }
  0x31   : > { %727 = vmatpush1.bf16.msra.mxu0 %v1485_v12  ;;  %900 = vmatpush1.bf16.msra.mxu1 %v1486_v13  ;;  %v1504_v25 = vld [vmem:[%s1669_s15 + $0x40] ss:$8 sps:$4 sm:$0xff]   ;;  %v1507_v27 = vld [vmem:[%s1669_s15 + $0x54] ss:$8 sps:$4 sm:$0xff]   ;;  %v1509_v28 = vld [vmem:[%s1664_s11 + $0x50] ss:$8 sps:$4 sm:$0xff]  }
  0x32   : > { %728 = vmatprep.subr.bf16.mxu0 %v1487_v14  ;;  %901 = vmatprep.subr.bf16.mxu1 %v1489_v15  ;;  %v1510_v29 = vld [vmem:[%s1669_s15 + $0x50] ss:$8 sps:$4 sm:$0xff]   ;;  %v1511_v30 = vld [vmem:[%s1664_s11 + $0x64] ss:$8 sps:$4 sm:$0xff]   ;;  %v1515_v32 = vld [vmem:[%s1664_s11 + $0x60] ss:$8 sps:$4 sm:$0xff]  }
  0x33   : > { %v1513_v31 = vld [vmem:[%s1669_s15 + $0x64] ss:$8 sps:$4 sm:$0xff]   ;;  %v1516_v33 = vld [vmem:[%s1669_s15 + $0x60] ss:$8 sps:$4 sm:$0xff]   ;;  %v1517_v34 = vld [vmem:[%s1664_s11 + $0x74] ss:$8 sps:$4 sm:$0xff]  }
  0x34   : > { %v1519_v35 = vld [vmem:[%s1669_s15 + $0x74] ss:$8 sps:$4 sm:$0xff]   ;;  %v1521_v36 = vld [vmem:[%s1664_s11 + $0x70] ss:$8 sps:$4 sm:$0xff]   ;;  %v608_v40 = vld [vmem:[#allocation2] sm:$0xff] }
  0x35   : > { %729 = vmatpush1.bf16.msra.mxu0 %v1491_v16  ;;  %902 = vmatpush1.bf16.msra.mxu1 %v1492_v17  ;;  %v1522_v37 = vld [vmem:[%s1669_s15 + $0x70] ss:$8 sps:$4 sm:$0xff]   ;;  %v793_v41 = vld [vmem:[#allocation3] sm:$0xff]  ;;  %v609_v42 = vld [vmem:[#allocation2 + $0x8] sm:$0xff] }
  0x36   : > { %730 = vmatprep.subr.bf16.mxu0 %v1493_v18  ;;  %903 = vmatprep.subr.bf16.mxu1 %v1495_v19  ;;  %v1523_v38 = vld [vmem:[%s432_s16] sm:$0xff]   ;;  %v1524_v39 = vld [vmem:[%s432_s16 + $0x8] sm:$0xff]  }
  0x37   : > { %v794_v43 = vld [vmem:[#allocation3 + $0x8] sm:$0xff]  ;;  %v610_v46 = vld [vmem:[#allocation2 + $0x10] sm:$0xff]  ;;  %v611_v52 = vld [vmem:[#allocation2 + $0x18] sm:$0xff] }
  0x38   : > { %v795_v47 = vld [vmem:[#allocation3 + $0x10] sm:$0xff]  ;;  %v796_v53 = vld [vmem:[#allocation3 + $0x18] sm:$0xff]  ;;  %v612_v0 = vld [vmem:[#allocation2 + $0x20] sm:$0xff] }
  0x39   : > { %731 = vmatpush1.bf16.msra.mxu0 %v1497_v20  ;;  %904 = vmatpush1.bf16.msra.mxu1 %v1498_v21  ;;  %v797_v1 = vld [vmem:[#allocation3 + $0x20] sm:$0xff]  ;;  %v613_v2 = vld [vmem:[#allocation2 + $0x28] sm:$0xff]  ;;  %v614_v6 = vld [vmem:[#allocation2 + $0x30] sm:$0xff] }
  0x3a   : > { %732 = vmatprep.subr.bf16.mxu0 %v1499_v22  ;;  %905 = vmatprep.subr.bf16.mxu1 %v1501_v23  ;;  %v798_v3 = vld [vmem:[#allocation3 + $0x28] sm:$0xff]  ;;  %v615_v12 = vld [vmem:[#allocation2 + $0x38] sm:$0xff] }
  0x3b   : > { %v800_v13 = vld [vmem:[#allocation3 + $0x38] sm:$0xff] }
  0x3d   : > { %733 = vmatpush1.bf16.msra.mxu0 %v1503_v24  ;;  %906 = vmatpush1.bf16.msra.mxu1 %v1504_v25  ;;  %v980_v24 = vlaneseq (!%p1408_p11) }
  0x3e   : > { %734 = vmatprep.subr.bf16.mxu0 %v1505_v26  ;;  %907 = vmatprep.subr.bf16.mxu1 %v1507_v27 }
  0x3f   : > { %v981_v25 = vshrl.u32 (!%p1408_p11), %v980_v24, 7 }
  0x41   : > { %735 = vmatpush1.bf16.msra.mxu0 %v1509_v28  ;;  %908 = vmatpush1.bf16.msra.mxu1 %v1510_v29  ;;  %v978_v28 = vld [vmem:[%s1767_s2] sm:$0x3] (!%p1408_p11) }
  0x42   : > { %736 = vmatprep.subr.bf16.mxu0 %v1511_v30  ;;  %909 = vmatprep.subr.bf16.mxu1 %v1513_v31  ;;  %v998_v29 = vld [vmem:[%s1768_s3] sm:$0x3] (!%p1408_p11)  ;;  %v982_v30 = vsub.s32 (!%p1408_p11), 0, %v981_v25  ;;  %v986_v31 = vsub.s32 (!%p1408_p11), 1, %v981_v25 }
  0x45   : > { %737 = vmatpush1.bf16.msra.mxu0 %v1515_v32  ;;  %910 = vmatpush1.bf16.msra.mxu1 %v1516_v33  ;;  %v1062_v32 = vld [vmem:[%s1770_s5] sm:$0x3] (!%p1408_p11) }
  0x46   : > { %738 = vmatprep.subr.bf16.mxu0 %v1517_v34  ;;  %911 = vmatprep.subr.bf16.mxu1 %v1519_v35  ;;  %v1082_v33 = vld [vmem:[%s1771_s6] sm:$0x3] (!%p1408_p11) }
  0x49   : > { %739 = vmatpush1.bf16.msra.mxu0 %v1521_v36  ;;  %912 = vmatpush1.bf16.msra.mxu1 %v1522_v37  ;;  %v983_v37 = vrot.slane (!%p1408_p11), %v978_v28, %v982_v30 }
  0x4c   : > { %757 = vmatmul.mubr.bf16.vlgmr.msra.gmra.mrb[0].mxu0 %v1523_v38  ;;  %930 = vmatmul.mubr.bf16.vlgmr.msra.gmra.mrb[0].mxu1 %v1523_v38  ;;  %v987_v38 = vrot.slane (!%p1408_p11), %v978_v28, %v986_v31 }
  0x4d   : > { %766 = vmatprep.mubr.bf16.mxu0 %v1566_v7  ;;  %939 = vmatprep.mubr.bf16.mxu1 %v1566_v7  ;;  %v799_v7 = vld [vmem:[#allocation3 + $0x30] sm:$0xff] }
  0x54   : > { %767 = vmatmul.mubr.bf16.gmra.mrb[4].mxu0 %v1524_v39  ;;  %940 = vmatmul.mubr.bf16.gmra.mrb[4].mxu1 %v1524_v39  ;;  %v1003_v39 = vrot.slane (!%p1408_p11), %v998_v29, %v982_v30 }
 0x11f   : > { %v758_v44 = vpop.f32.mrb[0].mxu0  ;;  %v931_v45 = vpop.f32.mrb[0].mxu1 }
 0x120   : > { %v777_v48 = vadd.f32 %v758_v44, %v608_v40  ;;  %v950_v49 = vadd.f32 %v931_v45, %v793_v41  ;;  %v760_v50 = vpop.f32.mrb[1].mxu0  ;;  %v933_v51 = vpop.f32.mrb[1].mxu1  ;;  %v1007_v40 = vrot.slane (!%p1408_p11), %v998_v29, %v986_v31  ;;  %v1067_v44 = vrot.slane (!%p1408_p11), %v1062_v32, %v982_v30 }
 0x121   : > { %v778_v54 = vadd.f32 %v760_v50, %v609_v42  ;;  %v951_v55 = vadd.f32 %v933_v51, %v794_v43  ;;  %v762_v56 = vpop.f32.mrb[2].mxu0  ;;  %v935_v57 = vpop.f32.mrb[2].mxu1  ;;  %v1071_v45 = vrot.slane (!%p1408_p11), %v1062_v32, %v986_v31 }
 0x122   : > { %785 = vst [vmem:[#allocation2] sm:$0xff] %v777_v48  ;;  %958 = vst [vmem:[#allocation3] sm:$0xff] %v950_v49  ;;  %v779_v58 = vadd.f32 %v762_v56, %v610_v46  ;;  %v952_v59 = vadd.f32 %v935_v57, %v795_v47  ;;  %v764_v60 = vpop.f32.mrb[3].mxu0  ;;  %v937_v61 = vpop.f32.mrb[3].mxu1  ;;  %v1087_v46 = vrot.slane (!%p1408_p11), %v1082_v33, %v982_v30 }
 0x123   : > { %786 = vst [vmem:[#allocation2 + $0x8] sm:$0xff] %v778_v54  ;;  %959 = vst [vmem:[#allocation3 + $0x8] sm:$0xff] %v951_v55  ;;  %v780_v62 = vadd.f32 %v764_v60, %v611_v52  ;;  %v953_v63 = vadd.f32 %v937_v61, %v796_v53  ;;  %v1091_v47 = vrot.slane (!%p1408_p11), %v1082_v33, %v986_v31 }
 0x124   : > { %787 = vst [vmem:[#allocation2 + $0x10] sm:$0xff] %v779_v58  ;;  %960 = vst [vmem:[#allocation3 + $0x10] sm:$0xff] %v952_v59 }
 0x125   : > { %788 = vst [vmem:[#allocation2 + $0x18] sm:$0xff] %v780_v62  ;;  %961 = vst [vmem:[#allocation3 + $0x18] sm:$0xff] %v953_v63 }
 0x127   : > { %v768_v4 = vpop.f32.mrb[4].mxu0  ;;  %v941_v5 = vpop.f32.mrb[4].mxu1  ;;  %969 = sbr.rel (%p1408_p11) target bundleno = 318 (0x13e), region = 97 }
 0x128   : > { %v781_v8 = vadd.f32 %v768_v4, %v612_v0  ;;  %v954_v9 = vadd.f32 %v941_v5, %v797_v1  ;;  %v770_v10 = vpop.f32.mrb[5].mxu0  ;;  %v943_v11 = vpop.f32.mrb[5].mxu1 }
 0x129   : > { %v782_v14 = vadd.f32 %v770_v10, %v613_v2  ;;  %v955_v15 = vadd.f32 %v943_v11, %v798_v3  ;;  %v772_v16 = vpop.f32.mrb[6].mxu0  ;;  %v945_v17 = vpop.f32.mrb[6].mxu1  ;;  %v970_v26 = vld [vmem:[#allocation2] sm:$0xff] (!%p1408_p11) }
 0x12a   : > { %789 = vst [vmem:[#allocation2 + $0x20] sm:$0xff] %v781_v8  ;;  %962 = vst [vmem:[#allocation3 + $0x20] sm:$0xff] %v954_v9  ;;  %v783_v18 = vadd.f32 %v772_v16, %v614_v6  ;;  %v956_v19 = vadd.f32 %v945_v17, %v799_v7  ;;  %v774_v20 = vpop.f32.mrb[7].mxu0  ;;  %v947_v21 = vpop.f32.mrb[7].mxu1  ;;  %v971_v27 = vld [vmem:[#allocation2 + $0x8] sm:$0xff] (!%p1408_p11)  ;;  %v990_v48 = vmul.f32 (!%p1408_p11), %v983_v37, %v970_v26  ;;  %v1054_v0 = vld [vmem:[#allocation3] sm:$0xff] (!%p1408_p11) }
 0x12b   : > { %790 = vst [vmem:[#allocation2 + $0x28] sm:$0xff] %v782_v14  ;;  %963 = vst [vmem:[#allocation3 + $0x28] sm:$0xff] %v955_v15  ;;  %v784_v22 = vadd.f32 %v774_v20, %v615_v12  ;;  %v957_v23 = vadd.f32 %v947_v21, %v800_v13  ;;  %v972_v34 = vld [vmem:[#allocation2 + $0x10] sm:$0xff] (!%p1408_p11)  ;;  %v991_v49 = vmul.f32 (!%p1408_p11), %v987_v38, %v971_v27  ;;  %v1055_v1 = vld [vmem:[#allocation3 + $0x8] sm:$0xff] (!%p1408_p11) }
 0x12c   : > { %791 = vst [vmem:[#allocation2 + $0x30] sm:$0xff] %v783_v18  ;;  %964 = vst [vmem:[#allocation3 + $0x30] sm:$0xff] %v956_v19  ;;  %v973_v35 = vld [vmem:[#allocation2 + $0x18] sm:$0xff] (!%p1408_p11)  ;;  %v992_v50 = vmul.f32 (!%p1408_p11), %v983_v37, %v972_v34  ;;  %v1010_v56 = vadd.f32 (!%p1408_p11), %v1003_v39, %v990_v48  ;;  %v1056_v6 = vld [vmem:[#allocation3 + $0x10] sm:$0xff] (!%p1408_p11)  ;;  %v1074_v16 = vmul.f32 (!%p1408_p11), %v1067_v44, %v1054_v0 }
 0x12d   : > { %792 = vst [vmem:[#allocation2 + $0x38] sm:$0xff] %v784_v22  ;;  %965 = vst [vmem:[#allocation3 + $0x38] sm:$0xff] %v957_v23  ;;  %v993_v51 = vmul.f32 (!%p1408_p11), %v987_v38, %v973_v35  ;;  %v1011_v57 = vadd.f32 (!%p1408_p11), %v1007_v40, %v991_v49  ;;  %v1057_v7 = vld [vmem:[#allocation3 + $0x18] sm:$0xff] (!%p1408_p11)  ;;  %v1075_v17 = vmul.f32 (!%p1408_p11), %v1071_v45, %v1055_v1 }
 0x12e   : > { %v1012_v58 = vadd.f32 %v1003_v39, %v992_v50  ;;  %v1018_v2 = vmax.f32 %v1010_v56, 0.0  ;;  %v1076_v22 = vmul.f32 %v1067_v44, %v1056_v6  ;;  %v1077_v23 = vmul.f32 %v1071_v45, %v1057_v7 }
 0x12f   : > { %v1013_v59 = vadd.f32 %v1007_v40, %v993_v51  ;;  %v1019_v3 = vmax.f32 %v1011_v57, 0.0  ;;  %v1094_v24 = vadd.f32 %v1087_v46, %v1074_v16  ;;  %v1095_v25 = vadd.f32 %v1091_v47, %v1075_v17 }
 0x130   : > { %v1020_v4 = vmax.f32 %v1012_v58, 0.0  ;;  %v1096_v28 = vadd.f32 %v1087_v46, %v1076_v22  ;;  %v1097_v29 = vadd.f32 %v1091_v47, %v1077_v23 }
 0x131   : > { %v974_v36 = vld [vmem:[#allocation2 + $0x20] sm:$0xff]  ;;  %v1021_v5 = vmax.f32 %v1013_v59, 0.0  ;;  %v1425_v14 = vpack.c.bf16 %v1019_v3, %v1018_v2  ;;  %v1429_v32 = vpack.c.bf16 %v1095_v25, %v1094_v24 }
 0x132   : > { %v975_v41 = vld [vmem:[#allocation2 + $0x28] sm:$0xff]  ;;  %v994_v52 = vmul.f32 %v983_v37, %v974_v36  ;;  %v1058_v12 = vld [vmem:[#allocation3 + $0x20] sm:$0xff]  ;;  %v1430_v35 = vpack.c.bf16 %v1097_v29, %v1096_v28 }
 0x133   : > { %v976_v42 = vld [vmem:[#allocation2 + $0x30] sm:$0xff]  ;;  %v995_v53 = vmul.f32 %v987_v38, %v975_v41  ;;  %v1059_v13 = vld [vmem:[#allocation3 + $0x28] sm:$0xff]  ;;  %v1426_v15 = vpack.c.bf16 %v1021_v5, %v1020_v4  ;;  %1050 = vst [vmem:[%s1772_s7] sm:$0xff] %v1425_v14  ;;  %v1078_v26 = vmul.f32 %v1067_v44, %v1058_v12  ;;  %1126 = vst [vmem:[%s1773_s8] sm:$0xff] %v1429_v32 }
 0x134   : > { %v977_v43 = vld [vmem:[#allocation2 + $0x38] sm:$0xff]  ;;  %v996_v54 = vmul.f32 %v983_v37, %v976_v42  ;;  %v1014_v60 = vadd.f32 %v1003_v39, %v994_v52  ;;  %v1060_v18 = vld [vmem:[#allocation3 + $0x30] sm:$0xff]  ;;  %v1079_v27 = vmul.f32 %v1071_v45, %v1059_v13  ;;  %1127 = vst [vmem:[%s1773_s8 + $0x8] sm:$0xff] %v1430_v35 }
 0x135   : > { %v997_v55 = vmul.f32 %v987_v38, %v977_v43  ;;  %v1015_v61 = vadd.f32 %v1007_v40, %v995_v53  ;;  %v1061_v19 = vld [vmem:[#allocation3 + $0x38] sm:$0xff]  ;;  %1051 = vst [vmem:[%s1772_s7 + $0x8] sm:$0xff] %v1426_v15  ;;  %v1080_v30 = vmul.f32 %v1067_v44, %v1060_v18  ;;  %v1098_v33 = vadd.f32 %v1087_v46, %v1078_v26 }
 0x136   : > { %v1016_v62 = vadd.f32 %v1003_v39, %v996_v54  ;;  %v1022_v8 = vmax.f32 %v1014_v60, 0.0  ;;  %v1081_v31 = vmul.f32 %v1071_v45, %v1061_v19  ;;  %v1099_v34 = vadd.f32 %v1091_v47, %v1079_v27 }
 0x137   : > { %v1017_v63 = vadd.f32 %v1007_v40, %v997_v55  ;;  %v1023_v9 = vmax.f32 %v1015_v61, 0.0  ;;  %v1100_v36 = vadd.f32 %v1087_v46, %v1080_v30 }
 0x138   : > { %v1024_v10 = vmax.f32 %v1016_v62, 0.0  ;;  %v1101_v37 = vadd.f32 %v1091_v47, %v1081_v31  ;;  %v1431_v38 = vpack.c.bf16 %v1099_v34, %v1098_v33 }
 0x139   : > { %v1025_v11 = vmax.f32 %v1017_v63, 0.0  ;;  %v1427_v20 = vpack.c.bf16 %v1023_v9, %v1022_v8 }
 0x13a   : > { %v1432_v39 = vpack.c.bf16 %v1101_v37, %v1100_v36  ;;  %1128 = vst [vmem:[%s1773_s8 + $0x10] sm:$0xff] %v1431_v38 }
 0x13b   : > { %v1428_v21 = vpack.c.bf16 %v1025_v11, %v1024_v10  ;;  %1052 = vst [vmem:[%s1772_s7 + $0x10] sm:$0xff] %v1427_v20 }
 0x13c   : > { %1129 = vst [vmem:[%s1773_s8 + $0x18] sm:$0xff] %v1432_v39 }
 0x13d   : > { %1053 = vst [vmem:[%s1772_s7 + $0x18] sm:$0xff] %v1428_v21 }
 0x13e PF: > { %s19_s9 = sadd.s32 1, %s1563_s9   ;;  %s1774_s27 = smov %s1551_s28 }
 0x13f   : > { %p16_p12 = scmp.ge.s32.totalorder %s19_s9, 11   ;;  %s1775_s28 = smov %s1647_s13 }
 0x140   : > { %s1776_s29 = smov %s1559_s30  ;;  %s1777_s30 = smov %s1779_s10 }
 0x141   :  { %18 = sbr.rel (!%p16_p12) target bundleno = 3 (0x3), region = 162 }

// kernel: _lambda_.29
= control target key start
LH: loop header
LB: loop body
LE: loop exit
PB: predicated region body
PF: predicated region fallthrough
CT: control target
= control target key end

     0   :  { %s1265_s18 = smov 0   ;;  %s1267_s19 = smov 0   ;;  %s1402_s0 = inlined_call_operand.vmem [shape: bf16[32,2304], index: 0, kind: input, shape index: {}]   ;;  %s1403_s1 = inlined_call_operand.vmem [shape: bf16[2304,256], index: 1, kind: input, shape index: {}]   ;;  %s1404_s2 = inlined_call_operand.vmem [shape: f32[1,256], index: 2, kind: input, shape index: {}]   ;;  %s1405_s3 = inlined_call_operand.vmem [shape: f32[1,256], index: 3, kind: input, shape index: {}]   ;;  %s1406_s4 = inlined_call_operand.vmem [shape: bf16[32,256], index: 4, kind: input, shape index: {}]   ;;  %s1407_s5 = inlined_call_operand.vmem [shape: bf16[32,256], index: 5, kind: output, shape index: {}]  }
   0x1   :  { %s1269_s20 = smov 0   ;;  %s1271_s21 = smov 0  }
   0x2   :  { %s1273_s22 = smov 0  }
   0x3 LB: > { %s27_s23 = sadd.s32 1, %s1228_s21  ;;  %p50_p1 = scmp.ne.s32.totalorder %s1220_s19, %s1216_s18  ;;  %s1232_s22 = sphi %s1273_s22, %s15_s22   ;;  %s1228_s21 = sphi %s1271_s21, %s1411_s21   ;;  %s1224_s20 = sphi %s1269_s20, %s1410_s20   ;;  %s1220_s19 = sphi %s1267_s19, %s1409_s19   ;;  %s1216_s18 = sphi %s1265_s18, %s1408_s18  }
   0x4   : > { %p28_p0 = scmp.ge.s32.totalorder %s27_s23, 9  ;;  %p51_p2 = scmp.eq.s32.totalorder %s1232_s22, 0 }
   0x5   : > { %s43_s25 = sadd.s32 1, %s1220_s19  ;;  %p1006_p5 = scmp.ge.s32.totalorder %s1232_s22, 9 }
   0x6   : > { %s1413_s23 = smov (%p28_p0, %s27_s23), 0  ;;  %p52_p3 = por %p51_p2, %p50_p1 }
   0x7   : > { %s39_s24 = ssub.s32 %s1228_s21, %s1413_s23  ;;  %243 = sbr.rel (%p1006_p5) target bundleno = 21 (0x15), region = 28 }
   0x8   : > { %p41_p4 = scmp.eq.s32.totalorder %s39_s24, 0 }
   0xa   : > { %s1300_s26 = scalar_select %p41_p4, %s1220_s19, %s43_s25  }
   0xe   : > { %246 = sbr.rel (!%p52_p3) target bundleno = 21 (0x15), region = 32  ;;  %s248_s27 = sand.u32 (%p52_p3), 1, %s1220_s19  }
   0xf   : > { %s1061_s28 = sshll.u32 (%p52_p3), %s1228_s21, 3  ;;  %s1007_s29 = sshll.u32 (%p52_p3), %s248_s27, 5 }
  0x10   : > { %s256_s7 = scalar_lea.vmem (%p52_p3), %s1402_s0, %s1061_s28  ;;  %s250_s8 = scalar_lea.vmem (%p52_p3), [#allocation3], %s1007_s29 }
  0x11   : > { %v290_v0 = vld [vmem:[%s256_s7] sm:$0xff] (%p52_p3)  ;;  %v292_v1 = vld [vmem:[%s256_s7 + $0x48] sm:$0xff] (%p52_p3)  ;;  %v294_v2 = vld [vmem:[%s256_s7 + $0x90] sm:$0xff] (%p52_p3) }
  0x12   : > { %291 = vst [vmem:[%s250_s8] sm:$0xff] (%p52_p3), %v290_v0  ;;  %293 = vst [vmem:[%s250_s8 + $0x8] sm:$0xff] (%p52_p3), %v292_v1  ;;  %v296_v3 = vld [vmem:[%s256_s7 + $0xd8] sm:$0xff] (%p52_p3) }
  0x13   : > { %295 = vst [vmem:[%s250_s8 + $0x10] sm:$0xff] (%p52_p3), %v294_v2  ;;  %297 = vst [vmem:[%s250_s8 + $0x18] sm:$0xff] (%p52_p3), %v296_v3 }
  0x15 PF: > { %p1010_p6 = scmp.ge.s32.totalorder %s1232_s22, 1  ;;  %p317_p7 = scmp.lt.s32.totalorder %s1232_s22, 10 }
  0x17   : > { %p318_p8 = pnand %p1010_p6, %p317_p7 }
  0x18   : > { %s324_s9 = sand.u32 (!%p318_p8), 1, %s1216_s18   ;;  %s1012_s10 = sshll.u32 (!%p318_p8), %s1224_s20, 5 }
  0x19   : > { %321 = sbr.rel (%p318_p8) target bundleno = 341 (0x155), region = 74  ;;  %s1011_s11 = sshll.u32 (!%p318_p8), %s324_s9, 5 }
  0x1a   : > { %p388_p9 = scmp.lt.s32.totalorder (!%p318_p8), %s1012_s10, 287  ;;  %s1317_s16 = scalar_lea.vmem (!%p318_p8), [#allocation3], %s1011_s11 }
  0x1b   : > { %p1015_p10 = scmp.ne.s32.totalorder (!%p318_p8), %s1224_s20, 0 }
  0x20   : > { %s1415_s10 = smov (!%p388_p9, %s1012_s10), 287  ;;  %435 = sbr.rel (%p1015_p10) target bundleno = 39 (0x27), region = 82 }
  0x21   : > { %s1062_s12 = sshll.u32 %s1415_s10, 3  ;;  %v1234_v4 = vmov (!%p1015_p10), 0.0  }
  0x22   : > { %s1315_s15 = scalar_lea.vmem %s1403_s1, %s1062_s12  ;;  %436 = vst [vmem:[#allocation2] sm:$0xff] (!%p1015_p10), %v1234_v4  ;;  %437 = vst [vmem:[#allocation2 + $0x8] sm:$0xff] (!%p1015_p10), %v1234_v4 }
  0x23   : > { %438 = vst [vmem:[#allocation2 + $0x10] sm:$0xff] (!%p1015_p10), %v1234_v4  ;;  %439 = vst [vmem:[#allocation2 + $0x18] sm:$0xff] (!%p1015_p10), %v1234_v4 }
  0x24   : > { %440 = vst [vmem:[#allocation2 + $0x20] sm:$0xff] (!%p1015_p10), %v1234_v4  ;;  %441 = vst [vmem:[#allocation2 + $0x28] sm:$0xff] (!%p1015_p10), %v1234_v4 }
  0x25   : > { %442 = vst [vmem:[#allocation2 + $0x30] sm:$0xff] (!%p1015_p10), %v1234_v4  ;;  %443 = vst [vmem:[#allocation2 + $0x38] sm:$0xff] (!%p1015_p10), %v1234_v4 }
  0x27 PF: > { %v1140_v5 = vld [vmem:[%s1315_s15 + $0x4] ss:$8 sps:$4 sm:$0xff]   ;;  %v1142_v6 = vld [vmem:[%s1315_s15] ss:$8 sps:$4 sm:$0xff]   ;;  %v1143_v7 = vld [vmem:[%s1315_s15 + $0x14] ss:$8 sps:$4 sm:$0xff]  }
  0x28   : > { %668 = vmatprep.subr.bf16.mxu0 %v1140_v5  ;;  %1067 = vmatprep.subr.bf16.mxu1 %v1140_v5  ;;  %v1145_v8 = vld [vmem:[%s1315_s15 + $0x10] ss:$8 sps:$4 sm:$0xff]   ;;  %v1146_v9 = vld [vmem:[%s1315_s15 + $0x24] ss:$8 sps:$4 sm:$0xff]   ;;  %v1148_v10 = vld [vmem:[%s1315_s15 + $0x20] ss:$8 sps:$4 sm:$0xff]  }
  0x29   : > { %669 = vmatpush1.bf16.msra.mxu0 %v1142_v6  ;;  %1083 = vmatpush1.bf16.msra.mxu1 %v1142_v6  ;;  %v1149_v11 = vld [vmem:[%s1315_s15 + $0x34] ss:$8 sps:$4 sm:$0xff]   ;;  %v1151_v12 = vld [vmem:[%s1315_s15 + $0x30] ss:$8 sps:$4 sm:$0xff]   ;;  %v1152_v13 = vld [vmem:[%s1315_s15 + $0x44] ss:$8 sps:$4 sm:$0xff]  }
  0x2a   : > { %670 = vmatprep.subr.bf16.mxu0 %v1143_v7  ;;  %1068 = vmatprep.subr.bf16.mxu1 %v1143_v7  ;;  %v1154_v14 = vld [vmem:[%s1315_s15 + $0x40] ss:$8 sps:$4 sm:$0xff]   ;;  %v1155_v15 = vld [vmem:[%s1315_s15 + $0x54] ss:$8 sps:$4 sm:$0xff]   ;;  %v1157_v16 = vld [vmem:[%s1315_s15 + $0x50] ss:$8 sps:$4 sm:$0xff]  }
  0x2b   : > { %v1158_v17 = vld [vmem:[%s1315_s15 + $0x64] ss:$8 sps:$4 sm:$0xff]   ;;  %v1160_v19 = vld [vmem:[%s1315_s15 + $0x60] ss:$8 sps:$4 sm:$0xff]   ;;  %v1193_v20 = vld [vmem:[%s1317_s16 + $0x14] ss:$8 sps:$4 sm:$0xff]  }
  0x2c   : > { %v1190_v18 = vld [vmem:[%s1317_s16 + $0x4] ss:$8 sps:$4 sm:$0xff]   ;;  %v1161_v21 = vld [vmem:[%s1315_s15 + $0x74] ss:$8 sps:$4 sm:$0xff]   ;;  %710 = vmatprep.mubr.bf16.mxu1 %v1193_v20  ;;  %v1163_v22 = vld [vmem:[%s1315_s15 + $0x70] ss:$8 sps:$4 sm:$0xff]  }
  0x2d   : > { %671 = vmatpush1.bf16.msra.mxu0 %v1145_v8  ;;  %1084 = vmatpush1.bf16.msra.mxu1 %v1145_v8  ;;  %v1164_v23 = vld [vmem:[%s1315_s15 + $0x84] ss:$8 sps:$4 sm:$0xff]   ;;  %v1166_v24 = vld [vmem:[%s1315_s15 + $0x80] ss:$8 sps:$4 sm:$0xff]   ;;  %v1167_v25 = vld [vmem:[%s1315_s15 + $0x94] ss:$8 sps:$4 sm:$0xff]  }
  0x2e   : > { %672 = vmatprep.subr.bf16.mxu0 %v1146_v9  ;;  %1069 = vmatprep.subr.bf16.mxu1 %v1146_v9  ;;  %v1169_v26 = vld [vmem:[%s1315_s15 + $0x90] ss:$8 sps:$4 sm:$0xff]   ;;  %v1170_v27 = vld [vmem:[%s1315_s15 + $0xa4] ss:$8 sps:$4 sm:$0xff]   ;;  %v1172_v28 = vld [vmem:[%s1315_s15 + $0xa0] ss:$8 sps:$4 sm:$0xff]  }
  0x2f   : > { %700 = vmatprep.mubr.bf16.mxu0 %v1190_v18  ;;  %v1173_v29 = vld [vmem:[%s1315_s15 + $0xb4] ss:$8 sps:$4 sm:$0xff]   ;;  %v1175_v30 = vld [vmem:[%s1315_s15 + $0xb0] ss:$8 sps:$4 sm:$0xff]   ;;  %v1176_v31 = vld [vmem:[%s1315_s15 + $0xc4] ss:$8 sps:$4 sm:$0xff]  }
  0x30   : > { %v1178_v32 = vld [vmem:[%s1315_s15 + $0xc0] ss:$8 sps:$4 sm:$0xff]   ;;  %v1179_v33 = vld [vmem:[%s1315_s15 + $0xd4] ss:$8 sps:$4 sm:$0xff]   ;;  %v1181_v34 = vld [vmem:[%s1315_s15 + $0xd0] ss:$8 sps:$4 sm:$0xff]  }
  0x31   : > { %673 = vmatpush1.bf16.msra.mxu0 %v1148_v10  ;;  %1085 = vmatpush1.bf16.msra.mxu1 %v1148_v10  ;;  %v1182_v35 = vld [vmem:[%s1315_s15 + $0xe4] ss:$8 sps:$4 sm:$0xff]   ;;  %v1184_v36 = vld [vmem:[%s1315_s15 + $0xe0] ss:$8 sps:$4 sm:$0xff]   ;;  %v1185_v37 = vld [vmem:[%s1315_s15 + $0xf4] ss:$8 sps:$4 sm:$0xff]  }
  0x32   : > { %674 = vmatprep.subr.bf16.mxu0 %v1149_v11  ;;  %1070 = vmatprep.subr.bf16.mxu1 %v1149_v11  ;;  %v1187_v38 = vld [vmem:[%s1315_s15 + $0xf0] ss:$8 sps:$4 sm:$0xff]   ;;  %v1188_v39 = vld [vmem:[%s1317_s16] ss:$8 sps:$4 sm:$0xff]   ;;  %p1052_p11 = scmp.ne.s32.totalorder %s1224_s20, 8 }
  0x33   : > { %v1191_v40 = vld [vmem:[%s1317_s16 + $0x10] ss:$8 sps:$4 sm:$0xff]   ;;  %v444_v41 = vld [vmem:[#allocation2] sm:$0xff]  ;;  %v445_v43 = vld [vmem:[#allocation2 + $0x8] sm:$0xff]  ;;  %v751_v1 = vlaneseq (!%p1052_p11) }
  0x34   : > { %v448_v42 = vld [vmem:[#allocation2 + $0x20] sm:$0xff]  ;;  %v449_v44 = vld [vmem:[#allocation2 + $0x28] sm:$0xff]  ;;  %v446_v47 = vld [vmem:[#allocation2 + $0x10] sm:$0xff] }
  0x35   : > { %675 = vmatpush1.bf16.msra.mxu0 %v1151_v12  ;;  %1086 = vmatpush1.bf16.msra.mxu1 %v1151_v12  ;;  %v450_v48 = vld [vmem:[#allocation2 + $0x30] sm:$0xff]  ;;  %v447_v53 = vld [vmem:[#allocation2 + $0x18] sm:$0xff]  ;;  %v752_v2 = vshrl.u32 (!%p1052_p11), %v751_v1, 7  ;;  %v789_v3 = vld [vmem:[%s1406_s4] sm:$0xff] (!%p1052_p11) }
  0x36   : > { %676 = vmatprep.subr.bf16.mxu0 %v1152_v13  ;;  %1071 = vmatprep.subr.bf16.mxu1 %v1152_v13  ;;  %v451_v54 = vld [vmem:[#allocation2 + $0x38] sm:$0xff]  ;;  %v790_v4 = vld [vmem:[%s1406_s4 + $0x8] sm:$0xff] (!%p1052_p11)  ;;  %v749_v6 = vld [vmem:[%s1404_s2] sm:$0x3] (!%p1052_p11)  ;;  %v793_v13 = vunpack.c.l.bf16 (!%p1052_p11), %v789_v3 }
  0x37   : > { %v769_v7 = vld [vmem:[%s1405_s3] sm:$0x3] (!%p1052_p11)  ;;  %v753_v9 = vsub.s32 (!%p1052_p11), 0, %v752_v2  ;;  %v757_v10 = vsub.s32 (!%p1052_p11), 1, %v752_v2  ;;  %v791_v11 = vld [vmem:[%s1406_s4 + $0x10] sm:$0xff] (!%p1052_p11)  ;;  %v792_v12 = vld [vmem:[%s1406_s4 + $0x18] sm:$0xff] (!%p1052_p11)  ;;  %v796_v18 = vunpack.c.h.bf16 (!%p1052_p11), %v790_v4 }
  0x39   : > { %677 = vmatpush1.bf16.msra.mxu0 %v1154_v14  ;;  %1087 = vmatpush1.bf16.msra.mxu1 %v1154_v14  ;;  %v794_v14 = vunpack.c.h.bf16 (!%p1052_p11), %v789_v3  ;;  %v754_v20 = vrot.slane (!%p1052_p11), %v749_v6, %v753_v9 }
  0x3a   : > { %678 = vmatprep.subr.bf16.mxu0 %v1155_v15  ;;  %1072 = vmatprep.subr.bf16.mxu1 %v1155_v15 }
  0x3d   : > { %679 = vmatpush1.bf16.msra.mxu0 %v1157_v16  ;;  %1088 = vmatpush1.bf16.msra.mxu1 %v1157_v16 }
  0x3e   : > { %680 = vmatprep.subr.bf16.mxu0 %v1158_v17  ;;  %1073 = vmatprep.subr.bf16.mxu1 %v1158_v17  ;;  %v795_v17 = vunpack.c.l.bf16 (!%p1052_p11), %v790_v4 }
  0x41   : > { %681 = vmatpush1.bf16.msra.mxu0 %v1160_v19  ;;  %1089 = vmatpush1.bf16.msra.mxu1 %v1160_v19 }
  0x42   : > { %682 = vmatprep.subr.bf16.mxu0 %v1161_v21  ;;  %1074 = vmatprep.subr.bf16.mxu1 %v1161_v21  ;;  %v758_v21 = vrot.slane (!%p1052_p11), %v749_v6, %v757_v10 }
  0x45   : > { %683 = vmatpush1.bf16.msra.mxu0 %v1163_v22  ;;  %1090 = vmatpush1.bf16.msra.mxu1 %v1163_v22  ;;  %v774_v22 = vrot.slane (!%p1052_p11), %v769_v7, %v753_v9 }
  0x46   : > { %684 = vmatprep.subr.bf16.mxu0 %v1164_v23  ;;  %1075 = vmatprep.subr.bf16.mxu1 %v1164_v23  ;;  %v778_v23 = vrot.slane (!%p1052_p11), %v769_v7, %v757_v10 }
  0x49   : > { %685 = vmatpush1.bf16.msra.mxu0 %v1166_v24  ;;  %1091 = vmatpush1.bf16.msra.mxu1 %v1166_v24 }
  0x4a   : > { %686 = vmatprep.subr.bf16.mxu0 %v1167_v25  ;;  %1076 = vmatprep.subr.bf16.mxu1 %v1167_v25 }
  0x4d   : > { %687 = vmatpush1.bf16.msra.mxu0 %v1169_v26  ;;  %1092 = vmatpush1.bf16.msra.mxu1 %v1169_v26 }
  0x4e   : > { %688 = vmatprep.subr.bf16.mxu0 %v1170_v27  ;;  %1077 = vmatprep.subr.bf16.mxu1 %v1170_v27  ;;  %v797_v27 = vunpack.c.l.bf16 (!%p1052_p11), %v791_v11 }
  0x51   : > { %689 = vmatpush1.bf16.msra.mxu0 %v1172_v28  ;;  %1093 = vmatpush1.bf16.msra.mxu1 %v1172_v28  ;;  %v798_v28 = vunpack.c.h.bf16 (!%p1052_p11), %v791_v11 }
  0x52   : > { %690 = vmatprep.subr.bf16.mxu0 %v1173_v29  ;;  %1078 = vmatprep.subr.bf16.mxu1 %v1173_v29  ;;  %v799_v29 = vunpack.c.l.bf16 (!%p1052_p11), %v792_v12 }
  0x55   : > { %691 = vmatpush1.bf16.msra.mxu0 %v1175_v30  ;;  %1094 = vmatpush1.bf16.msra.mxu1 %v1175_v30  ;;  %v800_v30 = vunpack.c.h.bf16 (!%p1052_p11), %v792_v12 }
  0x56   : > { %692 = vmatprep.subr.bf16.mxu0 %v1176_v31  ;;  %1079 = vmatprep.subr.bf16.mxu1 %v1176_v31 }
  0x59   : > { %693 = vmatpush1.bf16.msra.mxu0 %v1178_v32  ;;  %1095 = vmatpush1.bf16.msra.mxu1 %v1178_v32 }
  0x5a   : > { %694 = vmatprep.subr.bf16.mxu0 %v1179_v33  ;;  %1080 = vmatprep.subr.bf16.mxu1 %v1179_v33 }
  0x5d   : > { %695 = vmatpush1.bf16.msra.mxu0 %v1181_v34  ;;  %1096 = vmatpush1.bf16.msra.mxu1 %v1181_v34 }
  0x5e   : > { %696 = vmatprep.subr.bf16.mxu0 %v1182_v35  ;;  %1081 = vmatprep.subr.bf16.mxu1 %v1182_v35 }
  0x61   : > { %697 = vmatpush1.bf16.msra.mxu0 %v1184_v36  ;;  %1097 = vmatpush1.bf16.msra.mxu1 %v1184_v36 }
  0x62   : > { %698 = vmatprep.subr.bf16.mxu0 %v1185_v37  ;;  %1082 = vmatprep.subr.bf16.mxu1 %v1185_v37 }
  0x65   : > { %699 = vmatpush1.bf16.msra.mxu0 %v1187_v38  ;;  %1098 = vmatpush1.bf16.msra.mxu1 %v1187_v38 }
  0x68   : > { %701 = vmatmul.mubr.bf16.vlgmr.msra.gmra.mrb[0].mxu0 %v1188_v39  ;;  %711 = vmatmul.mubr.bf16.vlgmr.msra.gmra.mrb[0].mxu1 %v1191_v40 }
 0x13b   : > { %v702_v45 = vpop.f32.mrb[0].mxu0  ;;  %v712_v46 = vpop.f32.mrb[0].mxu1  ;;  %740 = sbr.rel (%p1052_p11) target bundleno = 341 (0x155), region = 86 }
 0x13c   : > { %v721_v49 = vadd.f32 %v702_v45, %v444_v41  ;;  %v725_v50 = vadd.f32 %v712_v46, %v448_v42  ;;  %v704_v51 = vpop.f32.mrb[1].mxu0  ;;  %v714_v52 = vpop.f32.mrb[1].mxu1 }
 0x13d   : > { %v722_v55 = vadd.f32 %v704_v51, %v445_v43  ;;  %v726_v56 = vadd.f32 %v714_v52, %v449_v44  ;;  %v706_v57 = vpop.f32.mrb[2].mxu0  ;;  %v716_v58 = vpop.f32.mrb[2].mxu1 }
 0x13e   : > { %729 = vst [vmem:[#allocation2] sm:$0xff] %v721_v49  ;;  %733 = vst [vmem:[#allocation2 + $0x20] sm:$0xff] %v725_v50  ;;  %v723_v59 = vadd.f32 %v706_v57, %v446_v47  ;;  %v727_v60 = vadd.f32 %v716_v58, %v450_v48  ;;  %v708_v61 = vpop.f32.mrb[3].mxu0  ;;  %v718_v62 = vpop.f32.mrb[3].mxu1 }
 0x13f   : > { %730 = vst [vmem:[#allocation2 + $0x8] sm:$0xff] %v722_v55  ;;  %734 = vst [vmem:[#allocation2 + $0x28] sm:$0xff] %v726_v56  ;;  %v724_v63 = vadd.f32 %v708_v61, %v447_v53  ;;  %v728_v0 = vadd.f32 %v718_v62, %v451_v54 }
 0x140   : > { %731 = vst [vmem:[#allocation2 + $0x10] sm:$0xff] %v723_v59  ;;  %735 = vst [vmem:[#allocation2 + $0x30] sm:$0xff] %v727_v60 }
 0x141   : > { %732 = vst [vmem:[#allocation2 + $0x18] sm:$0xff] %v724_v63  ;;  %736 = vst [vmem:[#allocation2 + $0x38] sm:$0xff] %v728_v0 }
 0x145   : > { %v741_v5 = vld [vmem:[#allocation2] sm:$0xff] }
 0x146   : > { %v742_v8 = vld [vmem:[#allocation2 + $0x8] sm:$0xff]  ;;  %v745_v19 = vld [vmem:[#allocation2 + $0x20] sm:$0xff]  ;;  %v761_v31 = vmul.f32 %v754_v20, %v741_v5 }
 0x147   : > { %v743_v15 = vld [vmem:[#allocation2 + $0x10] sm:$0xff]  ;;  %v746_v24 = vld [vmem:[#allocation2 + $0x28] sm:$0xff]  ;;  %v762_v32 = vmul.f32 %v758_v21, %v742_v8  ;;  %v765_v35 = vmul.f32 %v754_v20, %v745_v19 }
 0x148   : > { %v744_v16 = vld [vmem:[#allocation2 + $0x18] sm:$0xff]  ;;  %v747_v25 = vld [vmem:[#allocation2 + $0x30] sm:$0xff]  ;;  %v763_v33 = vmul.f32 %v754_v20, %v743_v15  ;;  %v766_v36 = vmul.f32 %v758_v21, %v746_v24  ;;  %v781_v39 = vadd.f32 %v774_v22, %v761_v31 }
 0x149   : > { %v748_v26 = vld [vmem:[#allocation2 + $0x38] sm:$0xff]  ;;  %v764_v34 = vmul.f32 %v758_v21, %v744_v16  ;;  %v767_v37 = vmul.f32 %v754_v20, %v747_v25  ;;  %v782_v40 = vadd.f32 %v778_v23, %v762_v32  ;;  %v785_v43 = vadd.f32 %v774_v22, %v765_v35 }
 0x14a   : > { %v768_v38 = vmul.f32 %v758_v21, %v748_v26  ;;  %v783_v41 = vadd.f32 %v774_v22, %v763_v33  ;;  %v786_v44 = vadd.f32 %v778_v23, %v766_v36  ;;  %v801_v47 = vadd.f32 %v793_v13, %v781_v39 }
 0x14b   : > { %v784_v42 = vadd.f32 %v778_v23, %v764_v34  ;;  %v787_v45 = vadd.f32 %v774_v22, %v767_v37  ;;  %v802_v48 = vadd.f32 %v794_v14, %v782_v40  ;;  %v805_v51 = vadd.f32 %v797_v27, %v785_v43 }
 0x14c   : > { %v788_v46 = vadd.f32 %v778_v23, %v768_v38  ;;  %v803_v49 = vadd.f32 %v795_v17, %v783_v41  ;;  %v806_v52 = vadd.f32 %v798_v28, %v786_v44  ;;  %v809_v55 = vmax.f32 %v801_v47, 0.0 }
 0x14d   : > { %v804_v50 = vadd.f32 %v796_v18, %v784_v42  ;;  %v807_v53 = vadd.f32 %v799_v29, %v787_v45  ;;  %v810_v56 = vmax.f32 %v802_v48, 0.0  ;;  %v813_v59 = vmax.f32 %v805_v51, 0.0 }
 0x14e   : > { %v808_v54 = vadd.f32 %v800_v30, %v788_v46  ;;  %v811_v57 = vmax.f32 %v803_v49, 0.0  ;;  %v814_v60 = vmax.f32 %v806_v52, 0.0 }
 0x14f   : > { %v812_v58 = vmax.f32 %v804_v50, 0.0  ;;  %v815_v61 = vmax.f32 %v807_v53, 0.0  ;;  %v1063_v63 = vpack.c.bf16 %v810_v56, %v809_v55 }
 0x150   : > { %v816_v62 = vmax.f32 %v808_v54, 0.0  ;;  %v1065_v1 = vpack.c.bf16 %v814_v60, %v813_v59 }
 0x151   : > { %v1064_v0 = vpack.c.bf16 %v812_v58, %v811_v57  ;;  %841 = vst [vmem:[%s1407_s5] sm:$0xff] %v1063_v63 }
 0x152   : > { %v1066_v2 = vpack.c.bf16 %v816_v62, %v815_v61  ;;  %843 = vst [vmem:[%s1407_s5 + $0x10] sm:$0xff] %v1065_v1 }
 0x153   : > { %842 = vst [vmem:[%s1407_s5 + $0x8] sm:$0xff] %v1064_v0 }
 0x154   : > { %844 = vst [vmem:[%s1407_s5 + $0x18] sm:$0xff] %v1066_v2 }
 0x155 PF: > { %s15_s22 = sadd.s32 1, %s1232_s22   ;;  %s1408_s18 = smov %s1220_s19 }
 0x156   : > { %p12_p12 = scmp.ge.s32.totalorder %s15_s22, 11   ;;  %s1409_s19 = smov %s1300_s26 }
 0x157   : > { %s1410_s20 = smov %s1228_s21  ;;  %s1411_s21 = smov %s1413_s23 }
 0x158   :  { %14 = sbr.rel (!%p12_p12) target bundleno = 3 (0x3), region = 133 }

// kernel: _lambda_.30
= control target key start
LH: loop header
LB: loop body
LE: loop exit
PB: predicated region body
PF: predicated region fallthrough
CT: control target
= control target key end

     0   :  { %s1150_s15 = smov 0   ;;  %s1152_s16 = smov 0   ;;  %s1275_s0 = inlined_call_operand.vmem [shape: bf16[32,2304], index: 0, kind: input, shape index: {}]   ;;  %s1276_s1 = inlined_call_operand.vmem [shape: bf16[2304,256], index: 1, kind: input, shape index: {}]   ;;  %s1277_s2 = inlined_call_operand.vmem [shape: f32[1,256], index: 2, kind: input, shape index: {}]   ;;  %s1278_s3 = inlined_call_operand.vmem [shape: f32[1,256], index: 3, kind: input, shape index: {}]   ;;  %s1279_s4 = inlined_call_operand.vmem [shape: bf16[32,256], index: 4, kind: output, shape index: {}]  }
   0x1   :  { %s1154_s17 = smov 0   ;;  %s1156_s18 = smov 0  }
   0x2   :  { %s1158_s19 = smov 0  }
   0x3 LB: > { %s26_s20 = sadd.s32 1, %s1118_s18  ;;  %p49_p1 = scmp.ne.s32.totalorder %s1110_s16, %s1106_s15  ;;  %s1122_s19 = sphi %s1158_s19, %s14_s19   ;;  %s1118_s18 = sphi %s1156_s18, %s1283_s18   ;;  %s1114_s17 = sphi %s1154_s17, %s1282_s17   ;;  %s1110_s16 = sphi %s1152_s16, %s1281_s16   ;;  %s1106_s15 = sphi %s1150_s15, %s1280_s15  }
   0x4   : > { %p27_p0 = scmp.ge.s32.totalorder %s26_s20, 9  ;;  %p50_p2 = scmp.eq.s32.totalorder %s1122_s19, 0 }
   0x5   : > { %s42_s22 = sadd.s32 1, %s1110_s16  ;;  %p896_p5 = scmp.ge.s32.totalorder %s1122_s19, 9 }
   0x6   : > { %s1285_s20 = smov (%p27_p0, %s26_s20), 0  ;;  %p51_p3 = por %p50_p2, %p49_p1 }
   0x7   : > { %s38_s21 = ssub.s32 %s1118_s18, %s1285_s20  ;;  %199 = sbr.rel (%p896_p5) target bundleno = 21 (0x15), region = 24 }
   0x8   : > { %p40_p4 = scmp.eq.s32.totalorder %s38_s21, 0 }
   0xa   : > { %s1185_s23 = scalar_select %p40_p4, %s1110_s16, %s42_s22  }
   0xe   : > { %202 = sbr.rel (!%p51_p3) target bundleno = 21 (0x15), region = 28  ;;  %s204_s24 = sand.u32 (%p51_p3), 1, %s1110_s16  }
   0xf   : > { %s951_s25 = sshll.u32 (%p51_p3), %s1118_s18, 3  ;;  %s897_s26 = sshll.u32 (%p51_p3), %s204_s24, 5 }
  0x10   : > { %s212_s29 = scalar_lea.vmem (%p51_p3), %s1275_s0, %s951_s25  ;;  %s206_s30 = scalar_lea.vmem (%p51_p3), [#allocation3], %s897_s26 }
  0x11   : > { %v246_v0 = vld [vmem:[%s212_s29] sm:$0xff] (%p51_p3)  ;;  %v248_v1 = vld [vmem:[%s212_s29 + $0x48] sm:$0xff] (%p51_p3)  ;;  %v250_v2 = vld [vmem:[%s212_s29 + $0x90] sm:$0xff] (%p51_p3) }
  0x12   : > { %247 = vst [vmem:[%s206_s30] sm:$0xff] (%p51_p3), %v246_v0  ;;  %249 = vst [vmem:[%s206_s30 + $0x8] sm:$0xff] (%p51_p3), %v248_v1  ;;  %v252_v3 = vld [vmem:[%s212_s29 + $0xd8] sm:$0xff] (%p51_p3) }
  0x13   : > { %251 = vst [vmem:[%s206_s30 + $0x10] sm:$0xff] (%p51_p3), %v250_v2  ;;  %253 = vst [vmem:[%s206_s30 + $0x18] sm:$0xff] (%p51_p3), %v252_v3 }
  0x15 PF: > { %p900_p6 = scmp.ge.s32.totalorder %s1122_s19, 1  ;;  %p273_p7 = scmp.lt.s32.totalorder %s1122_s19, 10 }
  0x17   : > { %p274_p8 = pnand %p900_p6, %p273_p7 }
  0x18   : > { %s280_s5 = sand.u32 (!%p274_p8), 1, %s1106_s15   ;;  %s902_s6 = sshll.u32 (!%p274_p8), %s1114_s17, 5 }
  0x19   : > { %277 = sbr.rel (%p274_p8) target bundleno = 339 (0x153), region = 70  ;;  %s901_s7 = sshll.u32 (!%p274_p8), %s280_s5, 5 }
  0x1a   : > { %p332_p9 = scmp.lt.s32.totalorder (!%p274_p8), %s902_s6, 287  ;;  %s1202_s12 = scalar_lea.vmem (!%p274_p8), [#allocation3], %s901_s7 }
  0x1b   : > { %p905_p10 = scmp.ne.s32.totalorder (!%p274_p8), %s1114_s17, 0 }
  0x20   : > { %s1287_s6 = smov (!%p332_p9, %s902_s6), 287  ;;  %367 = sbr.rel (%p905_p10) target bundleno = 39 (0x27), region = 78 }
  0x21   : > { %s952_s8 = sshll.u32 %s1287_s6, 3  ;;  %v1124_v4 = vmov (!%p905_p10), 0.0  }
  0x22   : > { %s1200_s11 = scalar_lea.vmem %s1276_s1, %s952_s8  ;;  %368 = vst [vmem:[#allocation2] sm:$0xff] (!%p905_p10), %v1124_v4  ;;  %369 = vst [vmem:[#allocation2 + $0x8] sm:$0xff] (!%p905_p10), %v1124_v4 }
  0x23   : > { %370 = vst [vmem:[#allocation2 + $0x10] sm:$0xff] (!%p905_p10), %v1124_v4  ;;  %371 = vst [vmem:[#allocation2 + $0x18] sm:$0xff] (!%p905_p10), %v1124_v4 }
  0x24   : > { %372 = vst [vmem:[#allocation2 + $0x20] sm:$0xff] (!%p905_p10), %v1124_v4  ;;  %373 = vst [vmem:[#allocation2 + $0x28] sm:$0xff] (!%p905_p10), %v1124_v4 }
  0x25   : > { %374 = vst [vmem:[#allocation2 + $0x30] sm:$0xff] (!%p905_p10), %v1124_v4  ;;  %375 = vst [vmem:[#allocation2 + $0x38] sm:$0xff] (!%p905_p10), %v1124_v4 }
  0x27 PF: > { %v1030_v5 = vld [vmem:[%s1200_s11 + $0x4] ss:$8 sps:$4 sm:$0xff]   ;;  %v1032_v6 = vld [vmem:[%s1200_s11] ss:$8 sps:$4 sm:$0xff]   ;;  %v1033_v7 = vld [vmem:[%s1200_s11 + $0x14] ss:$8 sps:$4 sm:$0xff]  }
  0x28   : > { %600 = vmatprep.subr.bf16.mxu0 %v1030_v5  ;;  %957 = vmatprep.subr.bf16.mxu1 %v1030_v5  ;;  %v1035_v8 = vld [vmem:[%s1200_s11 + $0x10] ss:$8 sps:$4 sm:$0xff]   ;;  %v1036_v9 = vld [vmem:[%s1200_s11 + $0x24] ss:$8 sps:$4 sm:$0xff]   ;;  %v1038_v10 = vld [vmem:[%s1200_s11 + $0x20] ss:$8 sps:$4 sm:$0xff]  }
  0x29   : > { %601 = vmatpush1.bf16.msra.mxu0 %v1032_v6  ;;  %973 = vmatpush1.bf16.msra.mxu1 %v1032_v6  ;;  %v1039_v11 = vld [vmem:[%s1200_s11 + $0x34] ss:$8 sps:$4 sm:$0xff]   ;;  %v1041_v12 = vld [vmem:[%s1200_s11 + $0x30] ss:$8 sps:$4 sm:$0xff]   ;;  %v1042_v13 = vld [vmem:[%s1200_s11 + $0x44] ss:$8 sps:$4 sm:$0xff]  }
  0x2a   : > { %602 = vmatprep.subr.bf16.mxu0 %v1033_v7  ;;  %958 = vmatprep.subr.bf16.mxu1 %v1033_v7  ;;  %v1044_v14 = vld [vmem:[%s1200_s11 + $0x40] ss:$8 sps:$4 sm:$0xff]   ;;  %v1045_v15 = vld [vmem:[%s1200_s11 + $0x54] ss:$8 sps:$4 sm:$0xff]   ;;  %v1047_v16 = vld [vmem:[%s1200_s11 + $0x50] ss:$8 sps:$4 sm:$0xff]  }
  0x2b   : > { %v1048_v17 = vld [vmem:[%s1200_s11 + $0x64] ss:$8 sps:$4 sm:$0xff]   ;;  %v1050_v19 = vld [vmem:[%s1200_s11 + $0x60] ss:$8 sps:$4 sm:$0xff]   ;;  %v1083_v20 = vld [vmem:[%s1202_s12 + $0x14] ss:$8 sps:$4 sm:$0xff]  }
  0x2c   : > { %v1080_v18 = vld [vmem:[%s1202_s12 + $0x4] ss:$8 sps:$4 sm:$0xff]   ;;  %v1051_v21 = vld [vmem:[%s1200_s11 + $0x74] ss:$8 sps:$4 sm:$0xff]   ;;  %642 = vmatprep.mubr.bf16.mxu1 %v1083_v20  ;;  %v1053_v22 = vld [vmem:[%s1200_s11 + $0x70] ss:$8 sps:$4 sm:$0xff]  }
  0x2d   : > { %603 = vmatpush1.bf16.msra.mxu0 %v1035_v8  ;;  %974 = vmatpush1.bf16.msra.mxu1 %v1035_v8  ;;  %v1054_v23 = vld [vmem:[%s1200_s11 + $0x84] ss:$8 sps:$4 sm:$0xff]   ;;  %v1056_v24 = vld [vmem:[%s1200_s11 + $0x80] ss:$8 sps:$4 sm:$0xff]   ;;  %v1057_v25 = vld [vmem:[%s1200_s11 + $0x94] ss:$8 sps:$4 sm:$0xff]  }
  0x2e   : > { %604 = vmatprep.subr.bf16.mxu0 %v1036_v9  ;;  %959 = vmatprep.subr.bf16.mxu1 %v1036_v9  ;;  %v1059_v26 = vld [vmem:[%s1200_s11 + $0x90] ss:$8 sps:$4 sm:$0xff]   ;;  %v1060_v27 = vld [vmem:[%s1200_s11 + $0xa4] ss:$8 sps:$4 sm:$0xff]   ;;  %v1062_v28 = vld [vmem:[%s1200_s11 + $0xa0] ss:$8 sps:$4 sm:$0xff]  }
  0x2f   : > { %632 = vmatprep.mubr.bf16.mxu0 %v1080_v18  ;;  %v1063_v29 = vld [vmem:[%s1200_s11 + $0xb4] ss:$8 sps:$4 sm:$0xff]   ;;  %v1065_v30 = vld [vmem:[%s1200_s11 + $0xb0] ss:$8 sps:$4 sm:$0xff]   ;;  %v1066_v31 = vld [vmem:[%s1200_s11 + $0xc4] ss:$8 sps:$4 sm:$0xff]  }
  0x30   : > { %v1068_v32 = vld [vmem:[%s1200_s11 + $0xc0] ss:$8 sps:$4 sm:$0xff]   ;;  %v1069_v33 = vld [vmem:[%s1200_s11 + $0xd4] ss:$8 sps:$4 sm:$0xff]   ;;  %v1071_v34 = vld [vmem:[%s1200_s11 + $0xd0] ss:$8 sps:$4 sm:$0xff]  }
  0x31   : > { %605 = vmatpush1.bf16.msra.mxu0 %v1038_v10  ;;  %975 = vmatpush1.bf16.msra.mxu1 %v1038_v10  ;;  %v1072_v35 = vld [vmem:[%s1200_s11 + $0xe4] ss:$8 sps:$4 sm:$0xff]   ;;  %v1074_v36 = vld [vmem:[%s1200_s11 + $0xe0] ss:$8 sps:$4 sm:$0xff]   ;;  %v1075_v37 = vld [vmem:[%s1200_s11 + $0xf4] ss:$8 sps:$4 sm:$0xff]  }
  0x32   : > { %606 = vmatprep.subr.bf16.mxu0 %v1039_v11  ;;  %960 = vmatprep.subr.bf16.mxu1 %v1039_v11  ;;  %v1077_v38 = vld [vmem:[%s1200_s11 + $0xf0] ss:$8 sps:$4 sm:$0xff]   ;;  %v1078_v39 = vld [vmem:[%s1202_s12] ss:$8 sps:$4 sm:$0xff]   ;;  %p942_p11 = scmp.ne.s32.totalorder %s1114_s17, 8 }
  0x33   : > { %v1081_v40 = vld [vmem:[%s1202_s12 + $0x10] ss:$8 sps:$4 sm:$0xff]   ;;  %v376_v41 = vld [vmem:[#allocation2] sm:$0xff]  ;;  %v377_v43 = vld [vmem:[#allocation2 + $0x8] sm:$0xff]  ;;  %v683_v1 = vlaneseq (!%p942_p11) }
  0x34   : > { %v380_v42 = vld [vmem:[#allocation2 + $0x20] sm:$0xff]  ;;  %v381_v44 = vld [vmem:[#allocation2 + $0x28] sm:$0xff]  ;;  %v378_v47 = vld [vmem:[#allocation2 + $0x10] sm:$0xff] }
  0x35   : > { %607 = vmatpush1.bf16.msra.mxu0 %v1041_v12  ;;  %976 = vmatpush1.bf16.msra.mxu1 %v1041_v12  ;;  %v382_v48 = vld [vmem:[#allocation2 + $0x30] sm:$0xff]  ;;  %v379_v53 = vld [vmem:[#allocation2 + $0x18] sm:$0xff]  ;;  %v684_v2 = vshrl.u32 (!%p942_p11), %v683_v1, 7  ;;  %v681_v3 = vld [vmem:[%s1277_s2] sm:$0x3] (!%p942_p11) }
  0x36   : > { %608 = vmatprep.subr.bf16.mxu0 %v1042_v13  ;;  %961 = vmatprep.subr.bf16.mxu1 %v1042_v13  ;;  %v383_v54 = vld [vmem:[#allocation2 + $0x38] sm:$0xff]  ;;  %v701_v4 = vld [vmem:[%s1278_s3] sm:$0x3] (!%p942_p11) }
  0x37   : > { %v685_v7 = vsub.s32 (!%p942_p11), 0, %v684_v2  ;;  %v689_v8 = vsub.s32 (!%p942_p11), 1, %v684_v2 }
  0x39   : > { %609 = vmatpush1.bf16.msra.mxu0 %v1044_v14  ;;  %977 = vmatpush1.bf16.msra.mxu1 %v1044_v14  ;;  %v686_v12 = vrot.slane (!%p942_p11), %v681_v3, %v685_v7  ;;  %v690_v13 = vrot.slane (!%p942_p11), %v681_v3, %v689_v8  ;;  %v706_v14 = vrot.slane (!%p942_p11), %v701_v4, %v685_v7 }
  0x3a   : > { %610 = vmatprep.subr.bf16.mxu0 %v1045_v15  ;;  %962 = vmatprep.subr.bf16.mxu1 %v1045_v15  ;;  %v710_v15 = vrot.slane (!%p942_p11), %v701_v4, %v689_v8 }
  0x3d   : > { %611 = vmatpush1.bf16.msra.mxu0 %v1047_v16  ;;  %978 = vmatpush1.bf16.msra.mxu1 %v1047_v16 }
  0x3e   : > { %612 = vmatprep.subr.bf16.mxu0 %v1048_v17  ;;  %963 = vmatprep.subr.bf16.mxu1 %v1048_v17 }
  0x41   : > { %613 = vmatpush1.bf16.msra.mxu0 %v1050_v19  ;;  %979 = vmatpush1.bf16.msra.mxu1 %v1050_v19 }
  0x42   : > { %614 = vmatprep.subr.bf16.mxu0 %v1051_v21  ;;  %964 = vmatprep.subr.bf16.mxu1 %v1051_v21 }
  0x45   : > { %615 = vmatpush1.bf16.msra.mxu0 %v1053_v22  ;;  %980 = vmatpush1.bf16.msra.mxu1 %v1053_v22 }
  0x46   : > { %616 = vmatprep.subr.bf16.mxu0 %v1054_v23  ;;  %965 = vmatprep.subr.bf16.mxu1 %v1054_v23 }
  0x49   : > { %617 = vmatpush1.bf16.msra.mxu0 %v1056_v24  ;;  %981 = vmatpush1.bf16.msra.mxu1 %v1056_v24 }
  0x4a   : > { %618 = vmatprep.subr.bf16.mxu0 %v1057_v25  ;;  %966 = vmatprep.subr.bf16.mxu1 %v1057_v25 }
  0x4d   : > { %619 = vmatpush1.bf16.msra.mxu0 %v1059_v26  ;;  %982 = vmatpush1.bf16.msra.mxu1 %v1059_v26 }
  0x4e   : > { %620 = vmatprep.subr.bf16.mxu0 %v1060_v27  ;;  %967 = vmatprep.subr.bf16.mxu1 %v1060_v27 }
  0x51   : > { %621 = vmatpush1.bf16.msra.mxu0 %v1062_v28  ;;  %983 = vmatpush1.bf16.msra.mxu1 %v1062_v28 }
  0x52   : > { %622 = vmatprep.subr.bf16.mxu0 %v1063_v29  ;;  %968 = vmatprep.subr.bf16.mxu1 %v1063_v29 }
  0x55   : > { %623 = vmatpush1.bf16.msra.mxu0 %v1065_v30  ;;  %984 = vmatpush1.bf16.msra.mxu1 %v1065_v30 }
  0x56   : > { %624 = vmatprep.subr.bf16.mxu0 %v1066_v31  ;;  %969 = vmatprep.subr.bf16.mxu1 %v1066_v31 }
  0x59   : > { %625 = vmatpush1.bf16.msra.mxu0 %v1068_v32  ;;  %985 = vmatpush1.bf16.msra.mxu1 %v1068_v32 }
  0x5a   : > { %626 = vmatprep.subr.bf16.mxu0 %v1069_v33  ;;  %970 = vmatprep.subr.bf16.mxu1 %v1069_v33 }
  0x5d   : > { %627 = vmatpush1.bf16.msra.mxu0 %v1071_v34  ;;  %986 = vmatpush1.bf16.msra.mxu1 %v1071_v34 }
  0x5e   : > { %628 = vmatprep.subr.bf16.mxu0 %v1072_v35  ;;  %971 = vmatprep.subr.bf16.mxu1 %v1072_v35 }
  0x61   : > { %629 = vmatpush1.bf16.msra.mxu0 %v1074_v36  ;;  %987 = vmatpush1.bf16.msra.mxu1 %v1074_v36 }
  0x62   : > { %630 = vmatprep.subr.bf16.mxu0 %v1075_v37  ;;  %972 = vmatprep.subr.bf16.mxu1 %v1075_v37 }
  0x65   : > { %631 = vmatpush1.bf16.msra.mxu0 %v1077_v38  ;;  %988 = vmatpush1.bf16.msra.mxu1 %v1077_v38 }
  0x68   : > { %633 = vmatmul.mubr.bf16.vlgmr.msra.gmra.mrb[0].mxu0 %v1078_v39  ;;  %643 = vmatmul.mubr.bf16.vlgmr.msra.gmra.mrb[0].mxu1 %v1081_v40 }
 0x13b   : > { %v634_v45 = vpop.f32.mrb[0].mxu0  ;;  %v644_v46 = vpop.f32.mrb[0].mxu1  ;;  %672 = sbr.rel (%p942_p11) target bundleno = 339 (0x153), region = 82 }
 0x13c   : > { %v653_v49 = vadd.f32 %v634_v45, %v376_v41  ;;  %v657_v50 = vadd.f32 %v644_v46, %v380_v42  ;;  %v636_v51 = vpop.f32.mrb[1].mxu0  ;;  %v646_v52 = vpop.f32.mrb[1].mxu1 }
 0x13d   : > { %v654_v55 = vadd.f32 %v636_v51, %v377_v43  ;;  %v658_v56 = vadd.f32 %v646_v52, %v381_v44  ;;  %v638_v57 = vpop.f32.mrb[2].mxu0  ;;  %v648_v58 = vpop.f32.mrb[2].mxu1 }
 0x13e   : > { %661 = vst [vmem:[#allocation2] sm:$0xff] %v653_v49  ;;  %665 = vst [vmem:[#allocation2 + $0x20] sm:$0xff] %v657_v50  ;;  %v655_v59 = vadd.f32 %v638_v57, %v378_v47  ;;  %v659_v60 = vadd.f32 %v648_v58, %v382_v48  ;;  %v640_v61 = vpop.f32.mrb[3].mxu0  ;;  %v650_v62 = vpop.f32.mrb[3].mxu1 }
 0x13f   : > { %662 = vst [vmem:[#allocation2 + $0x8] sm:$0xff] %v654_v55  ;;  %666 = vst [vmem:[#allocation2 + $0x28] sm:$0xff] %v658_v56  ;;  %v656_v63 = vadd.f32 %v640_v61, %v379_v53  ;;  %v660_v0 = vadd.f32 %v650_v62, %v383_v54 }
 0x140   : > { %663 = vst [vmem:[#allocation2 + $0x10] sm:$0xff] %v655_v59  ;;  %667 = vst [vmem:[#allocation2 + $0x30] sm:$0xff] %v659_v60 }
 0x141   : > { %664 = vst [vmem:[#allocation2 + $0x18] sm:$0xff] %v656_v63  ;;  %668 = vst [vmem:[#allocation2 + $0x38] sm:$0xff] %v660_v0 }
 0x145   : > { %v673_v5 = vld [vmem:[#allocation2] sm:$0xff] }
 0x146   : > { %v674_v6 = vld [vmem:[#allocation2 + $0x8] sm:$0xff]  ;;  %v677_v11 = vld [vmem:[#allocation2 + $0x20] sm:$0xff]  ;;  %v693_v19 = vmul.f32 %v686_v12, %v673_v5 }
 0x147   : > { %v675_v9 = vld [vmem:[#allocation2 + $0x10] sm:$0xff]  ;;  %v678_v16 = vld [vmem:[#allocation2 + $0x28] sm:$0xff]  ;;  %v694_v20 = vmul.f32 %v690_v13, %v674_v6  ;;  %v697_v23 = vmul.f32 %v686_v12, %v677_v11 }
 0x148   : > { %v676_v10 = vld [vmem:[#allocation2 + $0x18] sm:$0xff]  ;;  %v679_v17 = vld [vmem:[#allocation2 + $0x30] sm:$0xff]  ;;  %v695_v21 = vmul.f32 %v686_v12, %v675_v9  ;;  %v698_v24 = vmul.f32 %v690_v13, %v678_v16  ;;  %v713_v27 = vadd.f32 %v706_v14, %v693_v19 }
 0x149   : > { %v680_v18 = vld [vmem:[#allocation2 + $0x38] sm:$0xff]  ;;  %v696_v22 = vmul.f32 %v690_v13, %v676_v10  ;;  %v699_v25 = vmul.f32 %v686_v12, %v679_v17  ;;  %v714_v28 = vadd.f32 %v710_v15, %v694_v20  ;;  %v717_v31 = vadd.f32 %v706_v14, %v697_v23 }
 0x14a   : > { %v700_v26 = vmul.f32 %v690_v13, %v680_v18  ;;  %v715_v29 = vadd.f32 %v706_v14, %v695_v21  ;;  %v718_v32 = vadd.f32 %v710_v15, %v698_v24  ;;  %v721_v35 = vmax.f32 %v713_v27, 0.0 }
 0x14b   : > { %v716_v30 = vadd.f32 %v710_v15, %v696_v22  ;;  %v719_v33 = vadd.f32 %v706_v14, %v699_v25  ;;  %v722_v36 = vmax.f32 %v714_v28, 0.0  ;;  %v725_v39 = vmax.f32 %v717_v31, 0.0 }
 0x14c   : > { %v720_v34 = vadd.f32 %v710_v15, %v700_v26  ;;  %v723_v37 = vmax.f32 %v715_v29, 0.0  ;;  %v726_v40 = vmax.f32 %v718_v32, 0.0 }
 0x14d   : > { %v724_v38 = vmax.f32 %v716_v30, 0.0  ;;  %v727_v41 = vmax.f32 %v719_v33, 0.0  ;;  %v953_v43 = vpack.c.bf16 %v722_v36, %v721_v35 }
 0x14e   : > { %v728_v42 = vmax.f32 %v720_v34, 0.0  ;;  %v955_v45 = vpack.c.bf16 %v726_v40, %v725_v39 }
 0x14f   : > { %v954_v44 = vpack.c.bf16 %v724_v38, %v723_v37  ;;  %753 = vst [vmem:[%s1279_s4] sm:$0xff] %v953_v43 }
 0x150   : > { %v956_v46 = vpack.c.bf16 %v728_v42, %v727_v41  ;;  %755 = vst [vmem:[%s1279_s4 + $0x10] sm:$0xff] %v955_v45 }
 0x151   : > { %754 = vst [vmem:[%s1279_s4 + $0x8] sm:$0xff] %v954_v44 }
 0x152   : > { %756 = vst [vmem:[%s1279_s4 + $0x18] sm:$0xff] %v956_v46 }
 0x153 PF: > { %s14_s19 = sadd.s32 1, %s1122_s19   ;;  %s1280_s15 = smov %s1110_s16 }
 0x154   : > { %p11_p12 = scmp.ge.s32.totalorder %s14_s19, 11   ;;  %s1281_s16 = smov %s1185_s23 }
 0x155   : > { %s1282_s17 = smov %s1118_s18  ;;  %s1283_s18 = smov %s1285_s20 }
 0x156   :  { %13 = sbr.rel (!%p11_p12) target bundleno = 3 (0x3), region = 126 }

// kernel: _lambda_.32
= control target key start
LH: loop header
LB: loop body
LE: loop exit
PB: predicated region body
PF: predicated region fallthrough
CT: control target
= control target key end

     0   :  { %s2346_s0 = inlined_call_operand.vmem [shape: bf16[8,2304], index: 0, kind: input, shape index: {}]   ;;  %s2347_s1 = inlined_call_operand.vmem [shape: bf16[2304,512], index: 1, kind: input, shape index: {}]   ;;  %s2348_s2 = inlined_call_operand.vmem [shape: f32[1,512], index: 2, kind: input, shape index: {}, may-alias: {2,5}]   ;;  %s2349_s3 = inlined_call_operand.vmem [shape: f32[1,512], index: 3, kind: input, shape index: {}, may-alias: {3,6}]   ;;  %s2350_s4 = inlined_call_operand.vmem [shape: bf16[2304,512], index: 4, kind: input, shape index: {}]   ;;  %s2351_s5 = inlined_call_operand.vmem [shape: f32[1,512], index: 5, kind: input, shape index: {}, may-alias: {2,5}]   ;;  %s2352_s6 = inlined_call_operand.vmem [shape: f32[1,512], index: 6, kind: input, shape index: {}, may-alias: {3,6}]   ;;  %s2353_s7 = inlined_call_operand.vmem [shape: bf16[8,512], index: 7, kind: output, shape index: {0}]   ;;  %s2354_s8 = inlined_call_operand.vmem [shape: bf16[8,512], index: 8, kind: output, shape index: {1}]  }
   0x1   :  { %2357 = sst [smem:[#allocation8_spill]] %s2346_s0 }
   0x2   :  { %2358 = sst [smem:[#allocation9_spill]] %s2347_s1 }
   0x3   :  { %2359 = sst [smem:[#allocation10_spill]] %s2350_s4 }
   0x4   :  { %s1983_s27 = smov 0   ;;  %s1985_s28 = smov 0  }
   0x5   :  { %s1987_s29 = smov 0   ;;  %s1989_s30 = smov 0  }
   0x6   :  { %s1991_s9 = smov 0   ;;  %s1993_s10 = smov 0  }
   0x7   :  { %s1995_s11 = smov 0  }
   0x8 LB: > { %s31_s12 = sadd.s32 1, %s1927_s9  ;;  %s34_s13 = sadd.s32 1, %s1931_s10  ;;  %s1935_s11 = sphi %s1995_s11, %s19_s11   ;;  %s1931_s10 = sphi %s1993_s10, %s2374_s10   ;;  %s1927_s9 = sphi %s1991_s9, %s2373_s9   ;;  %s1923_s30 = sphi %s1989_s30, %s2372_s30   ;;  %s1919_s29 = sphi %s1987_s29, %s2371_s29   ;;  %s1915_s28 = sphi %s1985_s28, %s2370_s28   ;;  %s1911_s27 = sphi %s1983_s27, %s2369_s27  }
   0x9   : > { %p32_p0 = scmp.ge.s32.totalorder %s31_s12, 9  ;;  %p82_p1 = scmp.ne.s32.totalorder %s1915_s28, %s1911_s27 }
   0xa   : > { %p83_p2 = scmp.eq.s32.totalorder %s1935_s11, 0  ;;  %s75_s18 = sadd.s32 1, %s1915_s28 }
   0xb   : > { %s2376_s12 = smov (%p32_p0, %s31_s12), 0  ;;  %s2378_s13 = smov (!%p32_p0, %s34_s13), %s1931_s10 }
   0xc   : > { %2360 = sst [smem:[#allocation6_spill]] %s2376_s12  ;;  %p2026_p3 = por %p83_p2, %p82_p1 }
   0xd   : > { %p36_p4 = scmp.ge.s32.totalorder %s2378_s13, 2  ;;  %s70_s15 = ssub.s32 %s1927_s9, %s2376_s12 }
   0xe   : > { %p1626_p6 = scmp.ge.s32.totalorder %s1935_s11, 18 }
   0xf   : > { %s2380_s13 = smov (%p36_p4, %s2378_s13), 0 }
  0x10   : > { %2362 = sst [smem:[#allocation7_spill]] %s2380_s13  ;;  %s71_s16 = ssub.s32 %s1931_s10, %s2380_s13 }
  0x11   : > { %s72_s17 = sor.u32 %s71_s16, %s70_s15  ;;  %296 = sbr.rel (%p1626_p6) target bundleno = 76 (0x4c), region = 16 }
  0x12   : > { %p73_p5 = scmp.eq.s32.totalorder %s72_s17, 0 }
  0x14   : > { %s2038_s19 = scalar_select %p73_p5, %s1915_s28, %s75_s18  }
  0x18   : > { %312 = sbr.rel (!%p2026_p3) target bundleno = 50 (0x32), region = 24  ;;  %s314_s20 = sand.u32 (%p2026_p3), 1, %s1915_s28  }
  0x19   : > { %s1629_s21 = sshll.u32 (%p2026_p3), %s1931_s10, 1  ;;  %s1627_s22 = sshll.u32 (%p2026_p3), %s314_s20, 8 }
  0x1a   : > { %s1722_s23 = sshll.u32 (%p2026_p3), %s1927_s9, 7  ;;  %s2363_s1 = sld [smem:[#allocation9_spill]] (%p2026_p3) }
  0x1b   : > { %s320_s24 = sadd.s32 (%p2026_p3), %s1722_s23, %s1629_s21  ;;  %s2054_s17 = scalar_lea.vmem (%p2026_p3), [#allocation4], %s1627_s22 }
  0x1c   : > { %s1631_s25 = sshll.u32 (%p2026_p3), %s320_s24, 2 }
  0x20   : > { %s2049_s16 = scalar_lea.vmem %s2363_s1, %s1631_s25 }
  0x21   : > { %v412_v0 = vld [vmem:[%s2049_s16] sm:$0xff]  ;;  %v414_v1 = vld [vmem:[%s2049_s16 + $0x10] sm:$0xff] }
  0x22   : > { %v416_v2 = vld [vmem:[%s2049_s16 + $0x20] sm:$0xff]  ;;  %413 = vst [vmem:[%s2054_s17] sm:$0xff] %v412_v0  ;;  %415 = vst [vmem:[%s2054_s17 + $0x8] sm:$0xff] %v414_v1  ;;  %v418_v3 = vld [vmem:[%s2049_s16 + $0x30] sm:$0xff] }
  0x23   : > { %417 = vst [vmem:[%s2054_s17 + $0x10] sm:$0xff] %v416_v2  ;;  %v420_v4 = vld [vmem:[%s2049_s16 + $0x40] sm:$0xff]  ;;  %v422_v5 = vld [vmem:[%s2049_s16 + $0x50] sm:$0xff]  ;;  %419 = vst [vmem:[%s2054_s17 + $0x18] sm:$0xff] %v418_v3 }
  0x24   : > { %421 = vst [vmem:[%s2054_s17 + $0x20] sm:$0xff] %v420_v4  ;;  %423 = vst [vmem:[%s2054_s17 + $0x28] sm:$0xff] %v422_v5  ;;  %v424_v6 = vld [vmem:[%s2049_s16 + $0x60] sm:$0xff]  ;;  %v426_v7 = vld [vmem:[%s2049_s16 + $0x70] sm:$0xff] }
  0x25   : > { %v428_v8 = vld [vmem:[%s2049_s16 + $0x80] sm:$0xff]  ;;  %425 = vst [vmem:[%s2054_s17 + $0x30] sm:$0xff] %v424_v6  ;;  %427 = vst [vmem:[%s2054_s17 + $0x38] sm:$0xff] %v426_v7  ;;  %v430_v9 = vld [vmem:[%s2049_s16 + $0x90] sm:$0xff] }
  0x26   : > { %429 = vst [vmem:[%s2054_s17 + $0x40] sm:$0xff] %v428_v8  ;;  %v432_v10 = vld [vmem:[%s2049_s16 + $0xa0] sm:$0xff]  ;;  %v434_v11 = vld [vmem:[%s2049_s16 + $0xb0] sm:$0xff]  ;;  %431 = vst [vmem:[%s2054_s17 + $0x48] sm:$0xff] %v430_v9 }
  0x27   : > { %433 = vst [vmem:[%s2054_s17 + $0x50] sm:$0xff] %v432_v10  ;;  %435 = vst [vmem:[%s2054_s17 + $0x58] sm:$0xff] %v434_v11  ;;  %v436_v12 = vld [vmem:[%s2049_s16 + $0xc0] sm:$0xff]  ;;  %v438_v13 = vld [vmem:[%s2049_s16 + $0xd0] sm:$0xff] }
  0x28   : > { %v440_v14 = vld [vmem:[%s2049_s16 + $0xe0] sm:$0xff]  ;;  %437 = vst [vmem:[%s2054_s17 + $0x60] sm:$0xff] %v436_v12  ;;  %439 = vst [vmem:[%s2054_s17 + $0x68] sm:$0xff] %v438_v13  ;;  %v442_v15 = vld [vmem:[%s2049_s16 + $0xf0] sm:$0xff] }
  0x29   : > { %441 = vst [vmem:[%s2054_s17 + $0x70] sm:$0xff] %v440_v14  ;;  %v444_v16 = vld [vmem:[%s2049_s16 + $0x100] sm:$0xff]  ;;  %v446_v17 = vld [vmem:[%s2049_s16 + $0x110] sm:$0xff]  ;;  %443 = vst [vmem:[%s2054_s17 + $0x78] sm:$0xff] %v442_v15 }
  0x2a   : > { %445 = vst [vmem:[%s2054_s17 + $0x80] sm:$0xff] %v444_v16  ;;  %447 = vst [vmem:[%s2054_s17 + $0x88] sm:$0xff] %v446_v17  ;;  %v448_v18 = vld [vmem:[%s2049_s16 + $0x120] sm:$0xff]  ;;  %v450_v19 = vld [vmem:[%s2049_s16 + $0x130] sm:$0xff] }
  0x2b   : > { %v452_v20 = vld [vmem:[%s2049_s16 + $0x140] sm:$0xff]  ;;  %449 = vst [vmem:[%s2054_s17 + $0x90] sm:$0xff] %v448_v18  ;;  %451 = vst [vmem:[%s2054_s17 + $0x98] sm:$0xff] %v450_v19  ;;  %v454_v21 = vld [vmem:[%s2049_s16 + $0x150] sm:$0xff] }
  0x2c   : > { %453 = vst [vmem:[%s2054_s17 + $0xa0] sm:$0xff] %v452_v20  ;;  %v456_v22 = vld [vmem:[%s2049_s16 + $0x160] sm:$0xff]  ;;  %v458_v23 = vld [vmem:[%s2049_s16 + $0x170] sm:$0xff]  ;;  %455 = vst [vmem:[%s2054_s17 + $0xa8] sm:$0xff] %v454_v21 }
  0x2d   : > { %457 = vst [vmem:[%s2054_s17 + $0xb0] sm:$0xff] %v456_v22  ;;  %459 = vst [vmem:[%s2054_s17 + $0xb8] sm:$0xff] %v458_v23  ;;  %v460_v24 = vld [vmem:[%s2049_s16 + $0x180] sm:$0xff]  ;;  %v462_v25 = vld [vmem:[%s2049_s16 + $0x190] sm:$0xff] }
  0x2e   : > { %v464_v26 = vld [vmem:[%s2049_s16 + $0x1a0] sm:$0xff]  ;;  %461 = vst [vmem:[%s2054_s17 + $0xc0] sm:$0xff] %v460_v24  ;;  %463 = vst [vmem:[%s2054_s17 + $0xc8] sm:$0xff] %v462_v25  ;;  %v466_v27 = vld [vmem:[%s2049_s16 + $0x1b0] sm:$0xff] }
  0x2f   : > { %465 = vst [vmem:[%s2054_s17 + $0xd0] sm:$0xff] %v464_v26  ;;  %v468_v28 = vld [vmem:[%s2049_s16 + $0x1c0] sm:$0xff]  ;;  %v470_v29 = vld [vmem:[%s2049_s16 + $0x1d0] sm:$0xff]  ;;  %467 = vst [vmem:[%s2054_s17 + $0xd8] sm:$0xff] %v466_v27 }
  0x30   : > { %469 = vst [vmem:[%s2054_s17 + $0xe0] sm:$0xff] %v468_v28  ;;  %471 = vst [vmem:[%s2054_s17 + $0xe8] sm:$0xff] %v470_v29  ;;  %v472_v30 = vld [vmem:[%s2049_s16 + $0x1e0] sm:$0xff]  ;;  %v474_v31 = vld [vmem:[%s2049_s16 + $0x1f0] sm:$0xff] }
  0x31   : > { %473 = vst [vmem:[%s2054_s17 + $0xf0] sm:$0xff] %v472_v30  ;;  %475 = vst [vmem:[%s2054_s17 + $0xf8] sm:$0xff] %v474_v31 }
  0x32 PF: > { %497 = sbr.rel (!%p2026_p3) target bundleno = 76 (0x4c), region = 70  ;;  %s499_s18 = sand.u32 (%p2026_p3), 1, %s1915_s28  }
  0x33   : > { %s1634_s20 = sshll.u32 (%p2026_p3), %s1931_s10, 1  ;;  %s1632_s21 = sshll.u32 (%p2026_p3), %s499_s18, 8 }
  0x34   : > { %s1723_s22 = sshll.u32 (%p2026_p3), %s1927_s9, 7  ;;  %s2364_s4 = sld [smem:[#allocation10_spill]] (%p2026_p3) }
  0x35   : > { %s505_s23 = sadd.s32 (%p2026_p3), %s1723_s22, %s1634_s20  ;;  %s2130_s14 = scalar_lea.vmem (%p2026_p3), [#allocation5], %s1632_s21 }
  0x36   : > { %s1636_s24 = sshll.u32 (%p2026_p3), %s505_s23, 2 }
  0x3a   : > { %s2125_s15 = scalar_lea.vmem %s2364_s4, %s1636_s24 }
  0x3b   : > { %v597_v32 = vld [vmem:[%s2125_s15] sm:$0xff]  ;;  %v599_v33 = vld [vmem:[%s2125_s15 + $0x10] sm:$0xff] }
  0x3c   : > { %v601_v34 = vld [vmem:[%s2125_s15 + $0x20] sm:$0xff]  ;;  %598 = vst [vmem:[%s2130_s14] sm:$0xff] %v597_v32  ;;  %600 = vst [vmem:[%s2130_s14 + $0x8] sm:$0xff] %v599_v33  ;;  %v603_v35 = vld [vmem:[%s2125_s15 + $0x30] sm:$0xff] }
  0x3d   : > { %602 = vst [vmem:[%s2130_s14 + $0x10] sm:$0xff] %v601_v34  ;;  %v605_v36 = vld [vmem:[%s2125_s15 + $0x40] sm:$0xff]  ;;  %v607_v37 = vld [vmem:[%s2125_s15 + $0x50] sm:$0xff]  ;;  %604 = vst [vmem:[%s2130_s14 + $0x18] sm:$0xff] %v603_v35 }
  0x3e   : > { %606 = vst [vmem:[%s2130_s14 + $0x20] sm:$0xff] %v605_v36  ;;  %608 = vst [vmem:[%s2130_s14 + $0x28] sm:$0xff] %v607_v37  ;;  %v609_v38 = vld [vmem:[%s2125_s15 + $0x60] sm:$0xff]  ;;  %v611_v39 = vld [vmem:[%s2125_s15 + $0x70] sm:$0xff] }
  0x3f   : > { %v613_v40 = vld [vmem:[%s2125_s15 + $0x80] sm:$0xff]  ;;  %610 = vst [vmem:[%s2130_s14 + $0x30] sm:$0xff] %v609_v38  ;;  %612 = vst [vmem:[%s2130_s14 + $0x38] sm:$0xff] %v611_v39  ;;  %v615_v41 = vld [vmem:[%s2125_s15 + $0x90] sm:$0xff] }
  0x40   : > { %614 = vst [vmem:[%s2130_s14 + $0x40] sm:$0xff] %v613_v40  ;;  %v617_v42 = vld [vmem:[%s2125_s15 + $0xa0] sm:$0xff]  ;;  %v619_v43 = vld [vmem:[%s2125_s15 + $0xb0] sm:$0xff]  ;;  %616 = vst [vmem:[%s2130_s14 + $0x48] sm:$0xff] %v615_v41 }
  0x41   : > { %618 = vst [vmem:[%s2130_s14 + $0x50] sm:$0xff] %v617_v42  ;;  %620 = vst [vmem:[%s2130_s14 + $0x58] sm:$0xff] %v619_v43  ;;  %v621_v44 = vld [vmem:[%s2125_s15 + $0xc0] sm:$0xff]  ;;  %v623_v45 = vld [vmem:[%s2125_s15 + $0xd0] sm:$0xff] }
  0x42   : > { %v625_v46 = vld [vmem:[%s2125_s15 + $0xe0] sm:$0xff]  ;;  %622 = vst [vmem:[%s2130_s14 + $0x60] sm:$0xff] %v621_v44  ;;  %624 = vst [vmem:[%s2130_s14 + $0x68] sm:$0xff] %v623_v45  ;;  %v627_v47 = vld [vmem:[%s2125_s15 + $0xf0] sm:$0xff] }
  0x43   : > { %626 = vst [vmem:[%s2130_s14 + $0x70] sm:$0xff] %v625_v46  ;;  %v629_v48 = vld [vmem:[%s2125_s15 + $0x100] sm:$0xff]  ;;  %v631_v49 = vld [vmem:[%s2125_s15 + $0x110] sm:$0xff]  ;;  %628 = vst [vmem:[%s2130_s14 + $0x78] sm:$0xff] %v627_v47 }
  0x44   : > { %630 = vst [vmem:[%s2130_s14 + $0x80] sm:$0xff] %v629_v48  ;;  %632 = vst [vmem:[%s2130_s14 + $0x88] sm:$0xff] %v631_v49  ;;  %v633_v50 = vld [vmem:[%s2125_s15 + $0x120] sm:$0xff]  ;;  %v635_v51 = vld [vmem:[%s2125_s15 + $0x130] sm:$0xff] }
  0x45   : > { %v637_v52 = vld [vmem:[%s2125_s15 + $0x140] sm:$0xff]  ;;  %634 = vst [vmem:[%s2130_s14 + $0x90] sm:$0xff] %v633_v50  ;;  %636 = vst [vmem:[%s2130_s14 + $0x98] sm:$0xff] %v635_v51  ;;  %v639_v53 = vld [vmem:[%s2125_s15 + $0x150] sm:$0xff] }
  0x46   : > { %638 = vst [vmem:[%s2130_s14 + $0xa0] sm:$0xff] %v637_v52  ;;  %v641_v54 = vld [vmem:[%s2125_s15 + $0x160] sm:$0xff]  ;;  %v643_v55 = vld [vmem:[%s2125_s15 + $0x170] sm:$0xff]  ;;  %640 = vst [vmem:[%s2130_s14 + $0xa8] sm:$0xff] %v639_v53 }
  0x47   : > { %642 = vst [vmem:[%s2130_s14 + $0xb0] sm:$0xff] %v641_v54  ;;  %644 = vst [vmem:[%s2130_s14 + $0xb8] sm:$0xff] %v643_v55  ;;  %v645_v56 = vld [vmem:[%s2125_s15 + $0x180] sm:$0xff]  ;;  %v647_v57 = vld [vmem:[%s2125_s15 + $0x190] sm:$0xff] }
  0x48   : > { %v649_v58 = vld [vmem:[%s2125_s15 + $0x1a0] sm:$0xff]  ;;  %646 = vst [vmem:[%s2130_s14 + $0xc0] sm:$0xff] %v645_v56  ;;  %648 = vst [vmem:[%s2130_s14 + $0xc8] sm:$0xff] %v647_v57  ;;  %v651_v59 = vld [vmem:[%s2125_s15 + $0x1b0] sm:$0xff] }
  0x49   : > { %650 = vst [vmem:[%s2130_s14 + $0xd0] sm:$0xff] %v649_v58  ;;  %v653_v60 = vld [vmem:[%s2125_s15 + $0x1c0] sm:$0xff]  ;;  %v655_v61 = vld [vmem:[%s2125_s15 + $0x1d0] sm:$0xff]  ;;  %652 = vst [vmem:[%s2130_s14 + $0xd8] sm:$0xff] %v651_v59 }
  0x4a   : > { %654 = vst [vmem:[%s2130_s14 + $0xe0] sm:$0xff] %v653_v60  ;;  %656 = vst [vmem:[%s2130_s14 + $0xe8] sm:$0xff] %v655_v61  ;;  %v657_v62 = vld [vmem:[%s2125_s15 + $0x1e0] sm:$0xff]  ;;  %v659_v63 = vld [vmem:[%s2125_s15 + $0x1f0] sm:$0xff] }
  0x4b   : > { %658 = vst [vmem:[%s2130_s14 + $0xf0] sm:$0xff] %v657_v62  ;;  %660 = vst [vmem:[%s2130_s14 + $0xf8] sm:$0xff] %v659_v63 }
  0x4c PF: > { %p1637_p7 = scmp.ge.s32.totalorder %s1935_s11, 1  ;;  %p681_p8 = scmp.lt.s32.totalorder %s1935_s11, 19 }
  0x4e   : > { %p682_p9 = pnand %p1637_p7, %p681_p8 }
  0x4f   : > { %s688_s16 = sand.u32 (!%p682_p9), 1, %s1911_s27   ;;  %s1640_s17 = sshll.u32 (!%p682_p9), %s1919_s29, 1 }
  0x50   : > { %685 = sbr.rel (%p682_p9) target bundleno = 396 (0x18c), region = 116  ;;  %s1638_s18 = sshll.u32 (!%p682_p9), %s688_s16, 8 }
  0x51   : > { %p773_p10 = scmp.lt.s32.totalorder (!%p682_p9), %s1640_s17, 17  ;;  %s1642_s20 = sshll.u32 (!%p682_p9), %s1923_s30, 1 }
  0x52   : > { %p783_p11 = scmp.lt.s32.totalorder (!%p682_p9), %s1642_s20, 3  ;;  %s2365_s0 = sld [smem:[#allocation8_spill]] (!%p682_p9) }
  0x53   : > { %s2232_s15 = scalar_lea.vmem (!%p682_p9), [#allocation4], %s1638_s18  ;;  %s2234_s30 = scalar_lea.vmem (!%p682_p9), [#allocation5], %s1638_s18 }
  0x54   : > { %p1650_p12 = scmp.ne.s32.totalorder (!%p682_p9), %s1919_s29, 0 }
  0x57   : > { %s2382_s17 = smov (!%p773_p10, %s1640_s17), 17  ;;  %s2384_s20 = smov (!%p783_p11, %s1642_s20), 3 }
  0x58   : > { %s1641_s21 = sshll.u32 %s2382_s17, 2  ;;  %s790_s14 = scalar_lea.vmem %s2349_s3, %s2384_s20  ;;  %v1937_v0 = vmov (!%p1650_p12), 0.0  }
  0x59   : > { %s2201_s24 = scalar_lea.vmem %s2365_s0, %s1641_s21  ;;  %s797_s21 = scalar_lea.vmem %s2351_s5, %s2384_s20  ;;  %828 = vst [vmem:[#allocation2] sm:$0xff] (!%p1650_p12), %v1937_v0  ;;  %829 = vst [vmem:[#allocation2 + $0x8] sm:$0xff] (!%p1650_p12), %v1937_v0 }
  0x5a   : > { %s802_s0 = scalar_lea.vmem %s2352_s6, %s2384_s20  ;;  %s1647_s1 = sshll.u32 %s2384_s20, 2  ;;  %830 = vst [vmem:[#allocation3] sm:$0xff] (!%p1650_p12), %v1937_v0  ;;  %831 = vst [vmem:[#allocation3 + $0x8] sm:$0xff] (!%p1650_p12), %v1937_v0 }
  0x5b   : > { %s2225_s26 = scalar_lea.vmem %s2353_s7, %s1647_s1  ;;  %s2230_s12 = scalar_lea.vmem %s2354_s8, %s1647_s1 }
  0x5c   : > { %827 = sbr.rel (%p1650_p12) target bundleno = 99 (0x63), region = 128 }
  0x63 PF: > { %v1783_v1 = vld [vmem:[%s2232_s15 + $0x4] ss:$8 sps:$4 sm:$0xff]   ;;  %v1787_v3 = vld [vmem:[%s2232_s15] ss:$8 sps:$4 sm:$0xff]   ;;  %v1789_v5 = vld [vmem:[%s2232_s15 + $0x14] ss:$8 sps:$4 sm:$0xff]  }
  0x64   : > { %v1785_v2 = vld [vmem:[%s2234_s30 + $0x4] ss:$8 sps:$4 sm:$0xff]   ;;  %1034 = vmatprep.subr.bf16.mxu0 %v1783_v1  ;;  %v1788_v4 = vld [vmem:[%s2234_s30] ss:$8 sps:$4 sm:$0xff]   ;;  %v1791_v6 = vld [vmem:[%s2234_s30 + $0x14] ss:$8 sps:$4 sm:$0xff]  }
  0x65   : > { %1273 = vmatprep.subr.bf16.mxu1 %v1785_v2  ;;  %1035 = vmatpush1.bf16.msra.mxu0 %v1787_v3  ;;  %v1793_v7 = vld [vmem:[%s2232_s15 + $0x10] ss:$8 sps:$4 sm:$0xff]   ;;  %v1795_v9 = vld [vmem:[%s2232_s15 + $0x24] ss:$8 sps:$4 sm:$0xff]   ;;  %v1799_v11 = vld [vmem:[%s2232_s15 + $0x20] ss:$8 sps:$4 sm:$0xff]  }
  0x66   : > { %1274 = vmatpush1.bf16.msra.mxu1 %v1788_v4  ;;  %1036 = vmatprep.subr.bf16.mxu0 %v1789_v5  ;;  %v1794_v8 = vld [vmem:[%s2234_s30 + $0x10] ss:$8 sps:$4 sm:$0xff]   ;;  %v1797_v10 = vld [vmem:[%s2234_s30 + $0x24] ss:$8 sps:$4 sm:$0xff]   ;;  %v1800_v12 = vld [vmem:[%s2234_s30 + $0x20] ss:$8 sps:$4 sm:$0xff]  }
  0x67   : > { %1275 = vmatprep.subr.bf16.mxu1 %v1791_v6  ;;  %v1801_v13 = vld [vmem:[%s2232_s15 + $0x34] ss:$8 sps:$4 sm:$0xff]   ;;  %v1805_v15 = vld [vmem:[%s2232_s15 + $0x30] ss:$8 sps:$4 sm:$0xff]   ;;  %v1807_v17 = vld [vmem:[%s2232_s15 + $0x44] ss:$8 sps:$4 sm:$0xff]  }
  0x68   : > { %v1803_v14 = vld [vmem:[%s2234_s30 + $0x34] ss:$8 sps:$4 sm:$0xff]   ;;  %v1806_v16 = vld [vmem:[%s2234_s30 + $0x30] ss:$8 sps:$4 sm:$0xff]   ;;  %v1809_v18 = vld [vmem:[%s2234_s30 + $0x44] ss:$8 sps:$4 sm:$0xff]  }
  0x69   : > { %1037 = vmatpush1.bf16.msra.mxu0 %v1793_v7  ;;  %v1811_v19 = vld [vmem:[%s2232_s15 + $0x40] ss:$8 sps:$4 sm:$0xff]   ;;  %v1813_v21 = vld [vmem:[%s2232_s15 + $0x54] ss:$8 sps:$4 sm:$0xff]   ;;  %v1817_v23 = vld [vmem:[%s2232_s15 + $0x50] ss:$8 sps:$4 sm:$0xff]  }
  0x6a   : > { %1276 = vmatpush1.bf16.msra.mxu1 %v1794_v8  ;;  %1038 = vmatprep.subr.bf16.mxu0 %v1795_v9  ;;  %v1812_v20 = vld [vmem:[%s2234_s30 + $0x40] ss:$8 sps:$4 sm:$0xff]   ;;  %v1815_v22 = vld [vmem:[%s2234_s30 + $0x54] ss:$8 sps:$4 sm:$0xff]   ;;  %v1818_v24 = vld [vmem:[%s2234_s30 + $0x50] ss:$8 sps:$4 sm:$0xff]  }
  0x6b   : > { %1277 = vmatprep.subr.bf16.mxu1 %v1797_v10  ;;  %v1819_v25 = vld [vmem:[%s2232_s15 + $0x64] ss:$8 sps:$4 sm:$0xff]   ;;  %v1823_v27 = vld [vmem:[%s2232_s15 + $0x60] ss:$8 sps:$4 sm:$0xff]   ;;  %v1825_v29 = vld [vmem:[%s2232_s15 + $0x74] ss:$8 sps:$4 sm:$0xff]  }
  0x6c   : > { %v1821_v26 = vld [vmem:[%s2234_s30 + $0x64] ss:$8 sps:$4 sm:$0xff]   ;;  %v1824_v28 = vld [vmem:[%s2234_s30 + $0x60] ss:$8 sps:$4 sm:$0xff]   ;;  %v1827_v30 = vld [vmem:[%s2234_s30 + $0x74] ss:$8 sps:$4 sm:$0xff]  }
  0x6d   : > { %1039 = vmatpush1.bf16.msra.mxu0 %v1799_v11  ;;  %v1829_v31 = vld [vmem:[%s2232_s15 + $0x70] ss:$8 sps:$4 sm:$0xff]   ;;  %v1831_v33 = vld [vmem:[%s2232_s15 + $0x84] ss:$8 sps:$4 sm:$0xff]   ;;  %v1835_v35 = vld [vmem:[%s2232_s15 + $0x80] ss:$8 sps:$4 sm:$0xff]  }
  0x6e   : > { %1278 = vmatpush1.bf16.msra.mxu1 %v1800_v12  ;;  %1040 = vmatprep.subr.bf16.mxu0 %v1801_v13  ;;  %v1830_v32 = vld [vmem:[%s2234_s30 + $0x70] ss:$8 sps:$4 sm:$0xff]   ;;  %v1833_v34 = vld [vmem:[%s2234_s30 + $0x84] ss:$8 sps:$4 sm:$0xff]   ;;  %v1836_v36 = vld [vmem:[%s2234_s30 + $0x80] ss:$8 sps:$4 sm:$0xff]  }
  0x6f   : > { %1279 = vmatprep.subr.bf16.mxu1 %v1803_v14  ;;  %v1837_v37 = vld [vmem:[%s2232_s15 + $0x94] ss:$8 sps:$4 sm:$0xff]   ;;  %v1841_v39 = vld [vmem:[%s2232_s15 + $0x90] ss:$8 sps:$4 sm:$0xff]   ;;  %v1843_v41 = vld [vmem:[%s2232_s15 + $0xa4] ss:$8 sps:$4 sm:$0xff]  }
  0x70   : > { %v1839_v38 = vld [vmem:[%s2234_s30 + $0x94] ss:$8 sps:$4 sm:$0xff]   ;;  %v1842_v40 = vld [vmem:[%s2234_s30 + $0x90] ss:$8 sps:$4 sm:$0xff]   ;;  %v1845_v42 = vld [vmem:[%s2234_s30 + $0xa4] ss:$8 sps:$4 sm:$0xff]  }
  0x71   : > { %1041 = vmatpush1.bf16.msra.mxu0 %v1805_v15  ;;  %v1847_v43 = vld [vmem:[%s2232_s15 + $0xa0] ss:$8 sps:$4 sm:$0xff]   ;;  %v1849_v45 = vld [vmem:[%s2232_s15 + $0xb4] ss:$8 sps:$4 sm:$0xff]   ;;  %v1853_v49 = vld [vmem:[%s2232_s15 + $0xb0] ss:$8 sps:$4 sm:$0xff]  }
  0x72   : > { %1280 = vmatpush1.bf16.msra.mxu1 %v1806_v16  ;;  %1042 = vmatprep.subr.bf16.mxu0 %v1807_v17  ;;  %v1848_v44 = vld [vmem:[%s2234_s30 + $0xa0] ss:$8 sps:$4 sm:$0xff]   ;;  %v1851_v46 = vld [vmem:[%s2234_s30 + $0xb4] ss:$8 sps:$4 sm:$0xff]   ;;  %v1854_v50 = vld [vmem:[%s2234_s30 + $0xb0] ss:$8 sps:$4 sm:$0xff]  }
  0x73   : > { %1281 = vmatprep.subr.bf16.mxu1 %v1809_v18  ;;  %v832_v47 = vld [vmem:[%s2201_s24] sm:$0xff]  ;;  %v1861_v55 = vld [vmem:[%s2232_s15 + $0xd4] ss:$8 sps:$4 sm:$0xff]   ;;  %v1865_v57 = vld [vmem:[%s2232_s15 + $0xd0] ss:$8 sps:$4 sm:$0xff]   ;;  %p1717_p13 = scmp.ne.s32.totalorder %s1919_s29, 8 }
  0x74   : > { %v1652_v48 = vcombine.high %v832_v47, %v832_v47  ;;  %v1855_v51 = vld [vmem:[%s2232_s15 + $0xc4] ss:$8 sps:$4 sm:$0xff]   ;;  %v1859_v53 = vld [vmem:[%s2232_s15 + $0xc0] ss:$8 sps:$4 sm:$0xff]   ;;  %v1863_v56 = vld [vmem:[%s2234_s30 + $0xd4] ss:$8 sps:$4 sm:$0xff]   ;;  %v1651_v3 = vcombine.low %v832_v47, %v832_v47  ;;  %s2366_s13 = scalar_lea.vmem (!%p1717_p13), %s2348_s2, %s2384_s20 }
  0x75   : > { %1043 = vmatpush1.bf16.msra.mxu0 %v1811_v19  ;;  %v1857_v52 = vld [vmem:[%s2234_s30 + $0xc4] ss:$8 sps:$4 sm:$0xff]   ;;  %v1860_v54 = vld [vmem:[%s2234_s30 + $0xc0] ss:$8 sps:$4 sm:$0xff]   ;;  %v1866_v58 = vld [vmem:[%s2234_s30 + $0xd0] ss:$8 sps:$4 sm:$0xff]  }
  0x76   : > { %1282 = vmatpush1.bf16.msra.mxu1 %v1812_v20  ;;  %1044 = vmatprep.subr.bf16.mxu0 %v1813_v21  ;;  %v1867_v59 = vld [vmem:[%s2232_s15 + $0xe4] ss:$8 sps:$4 sm:$0xff]   ;;  %v1871_v61 = vld [vmem:[%s2232_s15 + $0xe0] ss:$8 sps:$4 sm:$0xff]   ;;  %v1873_v63 = vld [vmem:[%s2232_s15 + $0xf4] ss:$8 sps:$4 sm:$0xff]   ;;  %v1326_v20 = vlaneseq (!%p1717_p13) }
  0x77   : > { %1283 = vmatprep.subr.bf16.mxu1 %v1815_v22  ;;  %1066 = vmatprep.mubr.bf16.mxu0 %v1652_v48  ;;  %v1869_v60 = vld [vmem:[%s2234_s30 + $0xe4] ss:$8 sps:$4 sm:$0xff]   ;;  %v1872_v62 = vld [vmem:[%s2234_s30 + $0xe0] ss:$8 sps:$4 sm:$0xff]   ;;  %v1875_v0 = vld [vmem:[%s2234_s30 + $0xf4] ss:$8 sps:$4 sm:$0xff]  }
  0x78   : > { %1305 = vmatprep.mubr.bf16.mxu1 %v1652_v48  ;;  %v1877_v1 = vld [vmem:[%s2232_s15 + $0xf0] ss:$8 sps:$4 sm:$0xff]   ;;  %v833_v4 = vld [vmem:[#allocation2] sm:$0xff]  ;;  %v834_v6 = vld [vmem:[#allocation2 + $0x8] sm:$0xff]  ;;  %v1327_v21 = vshrl.u32 (!%p1717_p13), %v1326_v20, 7 }
  0x79   : > { %1045 = vmatpush1.bf16.msra.mxu0 %v1817_v23  ;;  %v1878_v2 = vld [vmem:[%s2234_s30 + $0xf0] ss:$8 sps:$4 sm:$0xff]   ;;  %v1324_v22 = vld [vmem:[%s2366_s13] sm:$0x3] (!%p1717_p13) }
  0x7a   : > { %1284 = vmatpush1.bf16.msra.mxu1 %v1818_v24  ;;  %1046 = vmatprep.subr.bf16.mxu0 %v1819_v25  ;;  %v1079_v5 = vld [vmem:[#allocation3] sm:$0xff]  ;;  %v1080_v7 = vld [vmem:[#allocation3 + $0x8] sm:$0xff]  ;;  %v1338_v23 = vld [vmem:[%s790_s14] sm:$0x3] (!%p1717_p13)  ;;  %v1328_v24 = vsub.s32 (!%p1717_p13), 0, %v1327_v21  ;;  %v1332_v25 = vsub.s32 (!%p1717_p13), 1, %v1327_v21 }
  0x7b   : > { %1285 = vmatprep.subr.bf16.mxu1 %v1821_v26  ;;  %v1365_v26 = vld [vmem:[%s797_s21] sm:$0x3] (!%p1717_p13) }
  0x7d   : > { %1047 = vmatpush1.bf16.msra.mxu0 %v1823_v27  ;;  %v1379_v27 = vld [vmem:[%s802_s0] sm:$0x3] (!%p1717_p13) }
  0x7e   : > { %1286 = vmatpush1.bf16.msra.mxu1 %v1824_v28  ;;  %1048 = vmatprep.subr.bf16.mxu0 %v1825_v29 }
  0x7f   : > { %1287 = vmatprep.subr.bf16.mxu1 %v1827_v30  ;;  %v1329_v30 = vrot.slane (!%p1717_p13), %v1324_v22, %v1328_v24 }
  0x81   : > { %1049 = vmatpush1.bf16.msra.mxu0 %v1829_v31  ;;  %v1333_v31 = vrot.slane (!%p1717_p13), %v1324_v22, %v1332_v25 }
  0x82   : > { %1288 = vmatpush1.bf16.msra.mxu1 %v1830_v32  ;;  %1050 = vmatprep.subr.bf16.mxu0 %v1831_v33  ;;  %v1343_v32 = vrot.slane (!%p1717_p13), %v1338_v23, %v1328_v24  ;;  %v1347_v33 = vrot.slane (!%p1717_p13), %v1338_v23, %v1332_v25 }
  0x83   : > { %1289 = vmatprep.subr.bf16.mxu1 %v1833_v34 }
  0x85   : > { %1051 = vmatpush1.bf16.msra.mxu0 %v1835_v35 }
  0x86   : > { %1290 = vmatpush1.bf16.msra.mxu1 %v1836_v36  ;;  %1052 = vmatprep.subr.bf16.mxu0 %v1837_v37  ;;  %v1370_v36 = vrot.slane (!%p1717_p13), %v1365_v26, %v1328_v24  ;;  %v1374_v37 = vrot.slane (!%p1717_p13), %v1365_v26, %v1332_v25 }
  0x87   : > { %1291 = vmatprep.subr.bf16.mxu1 %v1839_v38  ;;  %v1384_v38 = vrot.slane (!%p1717_p13), %v1379_v27, %v1328_v24 }
  0x89   : > { %1053 = vmatpush1.bf16.msra.mxu0 %v1841_v39  ;;  %v1388_v39 = vrot.slane (!%p1717_p13), %v1379_v27, %v1332_v25 }
  0x8a   : > { %1292 = vmatpush1.bf16.msra.mxu1 %v1842_v40  ;;  %1054 = vmatprep.subr.bf16.mxu0 %v1843_v41 }
  0x8b   : > { %1293 = vmatprep.subr.bf16.mxu1 %v1845_v42 }
  0x8d   : > { %1055 = vmatpush1.bf16.msra.mxu0 %v1847_v43 }
  0x8e   : > { %1294 = vmatpush1.bf16.msra.mxu1 %v1848_v44  ;;  %1056 = vmatprep.subr.bf16.mxu0 %v1849_v45 }
  0x8f   : > { %1295 = vmatprep.subr.bf16.mxu1 %v1851_v46 }
  0x91   : > { %1057 = vmatpush1.bf16.msra.mxu0 %v1853_v49 }
  0x92   : > { %1296 = vmatpush1.bf16.msra.mxu1 %v1854_v50  ;;  %1058 = vmatprep.subr.bf16.mxu0 %v1855_v51 }
  0x93   : > { %1297 = vmatprep.subr.bf16.mxu1 %v1857_v52 }
  0x95   : > { %1059 = vmatpush1.bf16.msra.mxu0 %v1859_v53 }
  0x96   : > { %1298 = vmatpush1.bf16.msra.mxu1 %v1860_v54  ;;  %1060 = vmatprep.subr.bf16.mxu0 %v1861_v55 }
  0x97   : > { %1299 = vmatprep.subr.bf16.mxu1 %v1863_v56 }
  0x99   : > { %1061 = vmatpush1.bf16.msra.mxu0 %v1865_v57 }
  0x9a   : > { %1300 = vmatpush1.bf16.msra.mxu1 %v1866_v58  ;;  %1062 = vmatprep.subr.bf16.mxu0 %v1867_v59 }
  0x9b   : > { %1301 = vmatprep.subr.bf16.mxu1 %v1869_v60 }
  0x9d   : > { %1063 = vmatpush1.bf16.msra.mxu0 %v1871_v61 }
  0x9e   : > { %1302 = vmatpush1.bf16.msra.mxu1 %v1872_v62  ;;  %1064 = vmatprep.subr.bf16.mxu0 %v1873_v63 }
  0x9f   : > { %1303 = vmatprep.subr.bf16.mxu1 %v1875_v0 }
  0xa1   : > { %1065 = vmatpush1.bf16.msra.mxu0 %v1877_v1 }
  0xa2   : > { %1304 = vmatpush1.bf16.msra.mxu1 %v1878_v2 }
  0xa4   : > { %1067 = vmatmul.mubr.bf16.vlgmr.msra.gmra.mrb[0].mxu0 %v1651_v3 }
  0xa5   : > { %1306 = vmatmul.mubr.bf16.vlgmr.msra.gmra.mrb[0].mxu1 %v1651_v3 }
 0x176   : > { %1321 = sbr.rel (%p1717_p13) target bundleno = 396 (0x18c), region = 132 }
 0x177   : > { %v1068_v8 = vpop.f32.mrb[0].mxu0 }
 0x178   : > { %v1307_v9 = vpop.f32.mrb[0].mxu1  ;;  %v1075_v10 = vadd.f32 %v1068_v8, %v833_v4  ;;  %v1070_v12 = vpop.f32.mrb[1].mxu0 }
 0x179   : > { %v1314_v11 = vadd.f32 %v1307_v9, %v1079_v5  ;;  %v1309_v13 = vpop.f32.mrb[1].mxu1  ;;  %v1076_v14 = vadd.f32 %v1070_v12, %v834_v6  ;;  %v1072_v16 = vpop.f32.mrb[2].mxu0 }
 0x17a   : > { %v1315_v15 = vadd.f32 %v1309_v13, %v1080_v7  ;;  %v1311_v17 = vpop.f32.mrb[2].mxu1  ;;  %1077 = vst [vmem:[#allocation2] sm:$0xff] %v1075_v10  ;;  %v1073_v18 = vpop.f32.mrb[3].mxu0 }
 0x17b   : > { %1316 = vst [vmem:[#allocation3] sm:$0xff] %v1314_v11  ;;  %v1312_v19 = vpop.f32.mrb[3].mxu1  ;;  %1078 = vst [vmem:[#allocation2 + $0x8] sm:$0xff] %v1076_v14 }
 0x17c   : > { %1317 = vst [vmem:[#allocation3 + $0x8] sm:$0xff] %v1315_v15 }
 0x181   : > { %v1322_v28 = vld [vmem:[#allocation2] sm:$0xff] }
 0x182   : > { %v1323_v29 = vld [vmem:[#allocation2 + $0x8] sm:$0xff]  ;;  %v1363_v34 = vld [vmem:[#allocation3] sm:$0xff]  ;;  %v1336_v40 = vmul.f32 %v1329_v30, %v1322_v28 }
 0x183   : > { %v1364_v35 = vld [vmem:[#allocation3 + $0x8] sm:$0xff]  ;;  %v1337_v41 = vmul.f32 %v1333_v31, %v1323_v29  ;;  %v1377_v42 = vmul.f32 %v1370_v36, %v1363_v34 }
 0x184   : > { %v1378_v43 = vmul.f32 %v1374_v37, %v1364_v35  ;;  %v1350_v44 = vadd.f32 %v1343_v32, %v1336_v40 }
 0x185   : > { %v1351_v45 = vadd.f32 %v1347_v33, %v1337_v41  ;;  %v1391_v46 = vadd.f32 %v1384_v38, %v1377_v42 }
 0x186   : > { %v1392_v47 = vadd.f32 %v1388_v39, %v1378_v43  ;;  %v1352_v48 = vmax.f32 %v1350_v44, 0.0 }
 0x187   : > { %v1353_v49 = vmax.f32 %v1351_v45, 0.0 }
 0x188   : > { %v1725_v50 = vpack.c.bf16 %v1392_v47, %v1391_v46 }
 0x189   : > { %v1724_v51 = vpack.c.bf16 %v1353_v49, %v1352_v48 }
 0x18a   : > { %1401 = vst [vmem:[%s2230_s12] sm:$0xff] %v1725_v50 }
 0x18b   : > { %1362 = vst [vmem:[%s2225_s26] sm:$0xff] %v1724_v51 }
 0x18c PF: > { %s19_s11 = sadd.s32 1, %s1935_s11   ;;  %s2367_s0 = sld [smem:[#allocation6_spill]] }
 0x18d   : > { %p16_p0 = scmp.ge.s32.totalorder %s19_s11, 20   ;;  %s2368_s20 = sld [smem:[#allocation7_spill]] }
 0x18e   : > { %s2369_s27 = smov %s1915_s28  ;;  %s2370_s28 = smov %s2038_s19 }
 0x18f   : > { %s2371_s29 = smov %s1927_s9  ;;  %s2372_s30 = smov %s1931_s10 }
 0x190   :  { %18 = sbr.rel (!%p16_p0) target bundleno = 8 (0x8), region = 202 }
 0x192   : > { %s2373_s9 = smov %s2367_s0 }
 0x193   : > { %s2374_s10 = smov %s2368_s20 }

// kernel: _lambda_.33
= control target key start
LH: loop header
LB: loop body
LE: loop exit
PB: predicated region body
PF: predicated region fallthrough
CT: control target
= control target key end

     0   :  { %s1238_s18 = smov 0   ;;  %s1240_s19 = smov 0   ;;  %s1467_s0 = inlined_call_operand.vmem [shape: bf16[8,4608], index: 0, kind: input, shape index: {}]   ;;  %s1468_s1 = inlined_call_operand.vmem [shape: bf16[4608,512], index: 1, kind: input, shape index: {}]   ;;  %s1469_s2 = inlined_call_operand.vmem [shape: f32[1,512], index: 2, kind: input, shape index: {}]   ;;  %s1470_s3 = inlined_call_operand.vmem [shape: f32[1,512], index: 3, kind: input, shape index: {}]   ;;  %s1471_s4 = inlined_call_operand.vmem [shape: bf16[8,512], index: 4, kind: input, shape index: {}]   ;;  %s1472_s5 = inlined_call_operand.vmem [shape: bf16[8,512], index: 5, kind: output, shape index: {}]  }
   0x1   :  { %s1242_s20 = smov 0   ;;  %s1244_s21 = smov 0  }
   0x2   :  { %s1246_s22 = smov 0   ;;  %s1248_s23 = smov 0  }
   0x3   :  { %s1250_s24 = smov 0  }
   0x4 LB: > { %s27_s25 = sadd.s32 1, %s1197_s22  ;;  %s30_s26 = sadd.s32 1, %s1201_s23  ;;  %s1205_s24 = sphi %s1250_s24, %s15_s24   ;;  %s1201_s23 = sphi %s1248_s23, %s1478_s23   ;;  %s1197_s22 = sphi %s1246_s22, %s1477_s22   ;;  %s1193_s21 = sphi %s1244_s21, %s1476_s21   ;;  %s1189_s20 = sphi %s1242_s20, %s1475_s20   ;;  %s1185_s19 = sphi %s1240_s19, %s1474_s19   ;;  %s1181_s18 = sphi %s1238_s18, %s1473_s18  }
   0x5   : > { %p28_p0 = scmp.ge.s32.totalorder %s27_s25, 18  ;;  %p78_p1 = scmp.ne.s32.totalorder %s1185_s19, %s1181_s18 }
   0x6   : > { %p79_p2 = scmp.eq.s32.totalorder %s1205_s24, 0  ;;  %s71_s30 = sadd.s32 1, %s1185_s19 }
   0x7   : > { %s1480_s25 = smov (%p28_p0, %s27_s25), 0  ;;  %s1482_s26 = smov (!%p28_p0, %s30_s26), %s1201_s23 }
   0x8   : > { %p80_p3 = por %p79_p2, %p78_p1  ;;  %p32_p4 = scmp.ge.s32.totalorder %s1482_s26, 2 }
   0x9   : > { %s66_s27 = ssub.s32 %s1197_s22, %s1480_s25  ;;  %p987_p6 = scmp.ge.s32.totalorder %s1205_s24, 36 }
   0xa   : > { %s1484_s26 = smov (%p32_p4, %s1482_s26), 0 }
   0xb   : > { %s67_s28 = ssub.s32 %s1201_s23, %s1484_s26  ;;  %212 = sbr.rel (%p987_p6) target bundleno = 41 (0x29), region = 16 }
   0xc   : > { %s68_s29 = sor.u32 %s67_s28, %s66_s27 }
   0xd   : > { %p69_p5 = scmp.eq.s32.totalorder %s68_s29, 0 }
   0xf   : > { %s1289_s6 = scalar_select %p69_p5, %s1185_s19, %s71_s30  }
  0x12   : > { %228 = sbr.rel (!%p80_p3) target bundleno = 41 (0x29), region = 24  ;;  %s230_s7 = sand.u32 (%p80_p3), 1, %s1185_s19  }
  0x13   : > { %s990_s8 = sshll.u32 (%p80_p3), %s1201_s23, 1  ;;  %s988_s9 = sshll.u32 (%p80_p3), %s230_s7, 8 }
  0x14   : > { %s1042_s10 = sshll.u32 (%p80_p3), %s1197_s22, 7  ;;  %s1303_s16 = scalar_lea.vmem (%p80_p3), [#allocation3], %s988_s9 }
  0x15   : > { %s236_s11 = sadd.s32 (%p80_p3), %s1042_s10, %s990_s8 }
  0x16   : > { %s992_s12 = sshll.u32 (%p80_p3), %s236_s11, 2 }
  0x17   : > { %s1298_s15 = scalar_lea.vmem (%p80_p3), %s1468_s1, %s992_s12 }
  0x18   : > { %v328_v0 = vld [vmem:[%s1298_s15] sm:$0xff] (%p80_p3)  ;;  %v330_v1 = vld [vmem:[%s1298_s15 + $0x10] sm:$0xff] (%p80_p3) }
  0x19   : > { %v332_v2 = vld [vmem:[%s1298_s15 + $0x20] sm:$0xff]  ;;  %329 = vst [vmem:[%s1303_s16] sm:$0xff] %v328_v0  ;;  %331 = vst [vmem:[%s1303_s16 + $0x8] sm:$0xff] %v330_v1  ;;  %v334_v3 = vld [vmem:[%s1298_s15 + $0x30] sm:$0xff] }
  0x1a   : > { %333 = vst [vmem:[%s1303_s16 + $0x10] sm:$0xff] %v332_v2  ;;  %v336_v4 = vld [vmem:[%s1298_s15 + $0x40] sm:$0xff]  ;;  %v338_v5 = vld [vmem:[%s1298_s15 + $0x50] sm:$0xff]  ;;  %335 = vst [vmem:[%s1303_s16 + $0x18] sm:$0xff] %v334_v3 }
  0x1b   : > { %337 = vst [vmem:[%s1303_s16 + $0x20] sm:$0xff] %v336_v4  ;;  %339 = vst [vmem:[%s1303_s16 + $0x28] sm:$0xff] %v338_v5  ;;  %v340_v6 = vld [vmem:[%s1298_s15 + $0x60] sm:$0xff]  ;;  %v342_v7 = vld [vmem:[%s1298_s15 + $0x70] sm:$0xff] }
  0x1c   : > { %v344_v8 = vld [vmem:[%s1298_s15 + $0x80] sm:$0xff]  ;;  %341 = vst [vmem:[%s1303_s16 + $0x30] sm:$0xff] %v340_v6  ;;  %343 = vst [vmem:[%s1303_s16 + $0x38] sm:$0xff] %v342_v7  ;;  %v346_v9 = vld [vmem:[%s1298_s15 + $0x90] sm:$0xff] }
  0x1d   : > { %345 = vst [vmem:[%s1303_s16 + $0x40] sm:$0xff] %v344_v8  ;;  %v348_v10 = vld [vmem:[%s1298_s15 + $0xa0] sm:$0xff]  ;;  %v350_v11 = vld [vmem:[%s1298_s15 + $0xb0] sm:$0xff]  ;;  %347 = vst [vmem:[%s1303_s16 + $0x48] sm:$0xff] %v346_v9 }
  0x1e   : > { %349 = vst [vmem:[%s1303_s16 + $0x50] sm:$0xff] %v348_v10  ;;  %351 = vst [vmem:[%s1303_s16 + $0x58] sm:$0xff] %v350_v11  ;;  %v352_v12 = vld [vmem:[%s1298_s15 + $0xc0] sm:$0xff]  ;;  %v354_v13 = vld [vmem:[%s1298_s15 + $0xd0] sm:$0xff] }
  0x1f   : > { %v356_v14 = vld [vmem:[%s1298_s15 + $0xe0] sm:$0xff]  ;;  %353 = vst [vmem:[%s1303_s16 + $0x60] sm:$0xff] %v352_v12  ;;  %355 = vst [vmem:[%s1303_s16 + $0x68] sm:$0xff] %v354_v13  ;;  %v358_v15 = vld [vmem:[%s1298_s15 + $0xf0] sm:$0xff] }
  0x20   : > { %357 = vst [vmem:[%s1303_s16 + $0x70] sm:$0xff] %v356_v14  ;;  %v360_v16 = vld [vmem:[%s1298_s15 + $0x100] sm:$0xff]  ;;  %v362_v17 = vld [vmem:[%s1298_s15 + $0x110] sm:$0xff]  ;;  %359 = vst [vmem:[%s1303_s16 + $0x78] sm:$0xff] %v358_v15 }
  0x21   : > { %361 = vst [vmem:[%s1303_s16 + $0x80] sm:$0xff] %v360_v16  ;;  %363 = vst [vmem:[%s1303_s16 + $0x88] sm:$0xff] %v362_v17  ;;  %v364_v18 = vld [vmem:[%s1298_s15 + $0x120] sm:$0xff]  ;;  %v366_v19 = vld [vmem:[%s1298_s15 + $0x130] sm:$0xff] }
  0x22   : > { %v368_v20 = vld [vmem:[%s1298_s15 + $0x140] sm:$0xff]  ;;  %365 = vst [vmem:[%s1303_s16 + $0x90] sm:$0xff] %v364_v18  ;;  %367 = vst [vmem:[%s1303_s16 + $0x98] sm:$0xff] %v366_v19  ;;  %v370_v21 = vld [vmem:[%s1298_s15 + $0x150] sm:$0xff] }
  0x23   : > { %369 = vst [vmem:[%s1303_s16 + $0xa0] sm:$0xff] %v368_v20  ;;  %v372_v22 = vld [vmem:[%s1298_s15 + $0x160] sm:$0xff]  ;;  %v374_v23 = vld [vmem:[%s1298_s15 + $0x170] sm:$0xff]  ;;  %371 = vst [vmem:[%s1303_s16 + $0xa8] sm:$0xff] %v370_v21 }
  0x24   : > { %373 = vst [vmem:[%s1303_s16 + $0xb0] sm:$0xff] %v372_v22  ;;  %375 = vst [vmem:[%s1303_s16 + $0xb8] sm:$0xff] %v374_v23  ;;  %v376_v24 = vld [vmem:[%s1298_s15 + $0x180] sm:$0xff]  ;;  %v378_v25 = vld [vmem:[%s1298_s15 + $0x190] sm:$0xff] }
  0x25   : > { %v380_v26 = vld [vmem:[%s1298_s15 + $0x1a0] sm:$0xff]  ;;  %377 = vst [vmem:[%s1303_s16 + $0xc0] sm:$0xff] %v376_v24  ;;  %379 = vst [vmem:[%s1303_s16 + $0xc8] sm:$0xff] %v378_v25  ;;  %v382_v27 = vld [vmem:[%s1298_s15 + $0x1b0] sm:$0xff] }
  0x26   : > { %381 = vst [vmem:[%s1303_s16 + $0xd0] sm:$0xff] %v380_v26  ;;  %v384_v28 = vld [vmem:[%s1298_s15 + $0x1c0] sm:$0xff]  ;;  %v386_v29 = vld [vmem:[%s1298_s15 + $0x1d0] sm:$0xff]  ;;  %383 = vst [vmem:[%s1303_s16 + $0xd8] sm:$0xff] %v382_v27 }
  0x27   : > { %385 = vst [vmem:[%s1303_s16 + $0xe0] sm:$0xff] %v384_v28  ;;  %387 = vst [vmem:[%s1303_s16 + $0xe8] sm:$0xff] %v386_v29  ;;  %v388_v30 = vld [vmem:[%s1298_s15 + $0x1e0] sm:$0xff]  ;;  %v390_v31 = vld [vmem:[%s1298_s15 + $0x1f0] sm:$0xff] }
  0x28   : > { %389 = vst [vmem:[%s1303_s16 + $0xf0] sm:$0xff] %v388_v30  ;;  %391 = vst [vmem:[%s1303_s16 + $0xf8] sm:$0xff] %v390_v31 }
  0x29 PF: > { %p993_p7 = scmp.ge.s32.totalorder %s1205_s24, 1  ;;  %p425_p8 = scmp.lt.s32.totalorder %s1205_s24, 37 }
  0x2b   : > { %p426_p9 = pnand %p993_p7, %p425_p8 }
  0x2c   : > { %s432_s17 = sand.u32 (!%p426_p9), 1, %s1181_s18   ;;  %s995_s27 = sshll.u32 (!%p426_p9), %s1189_s20, 1 }
  0x2d   : > { %429 = sbr.rel (%p426_p9) target bundleno = 361 (0x169), region = 74  ;;  %s994_s28 = sshll.u32 (!%p426_p9), %s432_s17, 8 }
  0x2e   : > { %p492_p10 = scmp.lt.s32.totalorder (!%p426_p9), %s995_s27, 35  ;;  %s997_s29 = sshll.u32 (!%p426_p9), %s1193_s21, 1 }
  0x2f   : > { %p502_p11 = scmp.lt.s32.totalorder (!%p426_p9), %s997_s29, 3  ;;  %s1397_s8 = scalar_lea.vmem (!%p426_p9), [#allocation3], %s994_s28 }
  0x30   : > { %p1003_p12 = scmp.ne.s32.totalorder (!%p426_p9), %s1189_s20, 0 }
  0x34   : > { %s1486_s27 = smov (!%p492_p10, %s995_s27), 35  ;;  %s1488_s29 = smov (!%p502_p11, %s997_s29), 3 }
  0x35   : > { %s996_s30 = sshll.u32 %s1486_s27, 2  ;;  %s504_s18 = scalar_lea.vmem %s1469_s2, %s1488_s29  ;;  %v1207_v32 = vmov (!%p1003_p12), 0.0  }
  0x36   : > { %s1374_s9 = scalar_lea.vmem %s1467_s0, %s996_s30  ;;  %s509_s21 = scalar_lea.vmem %s1470_s3, %s1488_s29  ;;  %535 = vst [vmem:[#allocation2] sm:$0xff] (!%p1003_p12), %v1207_v32  ;;  %536 = vst [vmem:[#allocation2 + $0x8] sm:$0xff] (!%p1003_p12), %v1207_v32 }
  0x37   : > { %s1000_s14 = sshll.u32 %s1488_s29, 2  ;;  %534 = sbr.rel (%p1003_p12) target bundleno = 62 (0x3e), region = 82 }
  0x38   : > { %s1390_s17 = scalar_lea.vmem %s1471_s4, %s1000_s14  ;;  %s1395_s7 = scalar_lea.vmem %s1472_s5, %s1000_s14 }
  0x3e PF: > { %v1101_v33 = vld [vmem:[%s1397_s8 + $0x4] ss:$8 sps:$4 sm:$0xff]   ;;  %v1103_v34 = vld [vmem:[%s1397_s8] ss:$8 sps:$4 sm:$0xff]   ;;  %v1104_v35 = vld [vmem:[%s1397_s8 + $0x14] ss:$8 sps:$4 sm:$0xff]  }
  0x3f   : > { %739 = vmatprep.subr.bf16.mxu0 %v1101_v33  ;;  %v1106_v36 = vld [vmem:[%s1397_s8 + $0x10] ss:$8 sps:$4 sm:$0xff]   ;;  %v1107_v37 = vld [vmem:[%s1397_s8 + $0x24] ss:$8 sps:$4 sm:$0xff]   ;;  %v1109_v38 = vld [vmem:[%s1397_s8 + $0x20] ss:$8 sps:$4 sm:$0xff]  }
  0x40   : > { %740 = vmatpush1.bf16.msra.mxu0 %v1103_v34  ;;  %v1110_v39 = vld [vmem:[%s1397_s8 + $0x34] ss:$8 sps:$4 sm:$0xff]   ;;  %v1112_v40 = vld [vmem:[%s1397_s8 + $0x30] ss:$8 sps:$4 sm:$0xff]   ;;  %v1113_v41 = vld [vmem:[%s1397_s8 + $0x44] ss:$8 sps:$4 sm:$0xff]  }
  0x41   : > { %741 = vmatprep.subr.bf16.mxu0 %v1104_v35  ;;  %v1115_v42 = vld [vmem:[%s1397_s8 + $0x40] ss:$8 sps:$4 sm:$0xff]   ;;  %v1116_v43 = vld [vmem:[%s1397_s8 + $0x54] ss:$8 sps:$4 sm:$0xff]   ;;  %v1118_v44 = vld [vmem:[%s1397_s8 + $0x50] ss:$8 sps:$4 sm:$0xff]  }
  0x42   : > { %v1119_v45 = vld [vmem:[%s1397_s8 + $0x64] ss:$8 sps:$4 sm:$0xff]   ;;  %v539_v46 = vld [vmem:[%s1374_s9] sm:$0xff]  ;;  %v1121_v48 = vld [vmem:[%s1397_s8 + $0x60] ss:$8 sps:$4 sm:$0xff]   ;;  %p1038_p13 = scmp.ne.s32.totalorder %s1189_s20, 17 }
  0x43   : > { %v1005_v47 = vcombine.high %v539_v46, %v539_v46  ;;  %v1122_v49 = vld [vmem:[%s1397_s8 + $0x74] ss:$8 sps:$4 sm:$0xff]   ;;  %v1124_v50 = vld [vmem:[%s1397_s8 + $0x70] ss:$8 sps:$4 sm:$0xff]   ;;  %v1125_v51 = vld [vmem:[%s1397_s8 + $0x84] ss:$8 sps:$4 sm:$0xff]   ;;  %v1004_v3 = vcombine.low %v539_v46, %v539_v46  ;;  %v792_v12 = vlaneseq (!%p1038_p13) }
  0x44   : > { %742 = vmatpush1.bf16.msra.mxu0 %v1106_v36  ;;  %v1127_v52 = vld [vmem:[%s1397_s8 + $0x80] ss:$8 sps:$4 sm:$0xff]   ;;  %v1128_v53 = vld [vmem:[%s1397_s8 + $0x94] ss:$8 sps:$4 sm:$0xff]   ;;  %v1130_v54 = vld [vmem:[%s1397_s8 + $0x90] ss:$8 sps:$4 sm:$0xff]  }
  0x45   : > { %743 = vmatprep.subr.bf16.mxu0 %v1107_v37  ;;  %771 = vmatprep.mubr.bf16.mxu0 %v1005_v47  ;;  %v1131_v55 = vld [vmem:[%s1397_s8 + $0xa4] ss:$8 sps:$4 sm:$0xff]   ;;  %v1133_v56 = vld [vmem:[%s1397_s8 + $0xa0] ss:$8 sps:$4 sm:$0xff]   ;;  %v1134_v57 = vld [vmem:[%s1397_s8 + $0xb4] ss:$8 sps:$4 sm:$0xff]  }
  0x46   : > { %v1136_v58 = vld [vmem:[%s1397_s8 + $0xb0] ss:$8 sps:$4 sm:$0xff]   ;;  %v1137_v59 = vld [vmem:[%s1397_s8 + $0xc4] ss:$8 sps:$4 sm:$0xff]   ;;  %v1139_v60 = vld [vmem:[%s1397_s8 + $0xc0] ss:$8 sps:$4 sm:$0xff]  }
  0x47   : > { %v1140_v61 = vld [vmem:[%s1397_s8 + $0xd4] ss:$8 sps:$4 sm:$0xff]   ;;  %v1142_v62 = vld [vmem:[%s1397_s8 + $0xd0] ss:$8 sps:$4 sm:$0xff]   ;;  %v1143_v63 = vld [vmem:[%s1397_s8 + $0xe4] ss:$8 sps:$4 sm:$0xff]  }
  0x48   : > { %744 = vmatpush1.bf16.msra.mxu0 %v1109_v38  ;;  %v1145_v0 = vld [vmem:[%s1397_s8 + $0xe0] ss:$8 sps:$4 sm:$0xff]   ;;  %v1146_v1 = vld [vmem:[%s1397_s8 + $0xf4] ss:$8 sps:$4 sm:$0xff]   ;;  %v1148_v2 = vld [vmem:[%s1397_s8 + $0xf0] ss:$8 sps:$4 sm:$0xff]  }
  0x49   : > { %745 = vmatprep.subr.bf16.mxu0 %v1110_v39  ;;  %v537_v4 = vld [vmem:[#allocation2] sm:$0xff]  ;;  %v538_v5 = vld [vmem:[#allocation2 + $0x8] sm:$0xff]  ;;  %v793_v13 = vshrl.u32 (!%p1038_p13), %v792_v12, 7 }
  0x4a   : > { %v790_v14 = vld [vmem:[%s504_s18] sm:$0x3] (!%p1038_p13) }
  0x4b   : > { %v804_v15 = vld [vmem:[%s509_s21] sm:$0x3] (!%p1038_p13)  ;;  %v794_v16 = vsub.s32 (!%p1038_p13), 0, %v793_v13  ;;  %v798_v17 = vsub.s32 (!%p1038_p13), 1, %v793_v13 }
  0x4c   : > { %746 = vmatpush1.bf16.msra.mxu0 %v1112_v40  ;;  %v818_v20 = vld [vmem:[%s1390_s17] sm:$0xff] (!%p1038_p13) }
  0x4d   : > { %747 = vmatprep.subr.bf16.mxu0 %v1113_v41  ;;  %v795_v21 = vrot.slane (!%p1038_p13), %v790_v14, %v794_v16  ;;  %v799_v22 = vrot.slane (!%p1038_p13), %v790_v14, %v798_v17  ;;  %v809_v23 = vrot.slane (!%p1038_p13), %v804_v15, %v794_v16  ;;  %v813_v24 = vrot.slane (!%p1038_p13), %v804_v15, %v798_v17 }
  0x4e   : > { %v819_v27 = vunpack.c.l.bf16 (!%p1038_p13), %v818_v20  ;;  %v820_v28 = vunpack.c.h.bf16 (!%p1038_p13), %v818_v20 }
  0x50   : > { %748 = vmatpush1.bf16.msra.mxu0 %v1115_v42 }
  0x51   : > { %749 = vmatprep.subr.bf16.mxu0 %v1116_v43 }
  0x54   : > { %750 = vmatpush1.bf16.msra.mxu0 %v1118_v44 }
  0x55   : > { %751 = vmatprep.subr.bf16.mxu0 %v1119_v45 }
  0x58   : > { %752 = vmatpush1.bf16.msra.mxu0 %v1121_v48 }
  0x59   : > { %753 = vmatprep.subr.bf16.mxu0 %v1122_v49 }
  0x5c   : > { %754 = vmatpush1.bf16.msra.mxu0 %v1124_v50 }
  0x5d   : > { %755 = vmatprep.subr.bf16.mxu0 %v1125_v51 }
  0x60   : > { %756 = vmatpush1.bf16.msra.mxu0 %v1127_v52 }
  0x61   : > { %757 = vmatprep.subr.bf16.mxu0 %v1128_v53 }
  0x64   : > { %758 = vmatpush1.bf16.msra.mxu0 %v1130_v54 }
  0x65   : > { %759 = vmatprep.subr.bf16.mxu0 %v1131_v55 }
  0x68   : > { %760 = vmatpush1.bf16.msra.mxu0 %v1133_v56 }
  0x69   : > { %761 = vmatprep.subr.bf16.mxu0 %v1134_v57 }
  0x6c   : > { %762 = vmatpush1.bf16.msra.mxu0 %v1136_v58 }
  0x6d   : > { %763 = vmatprep.subr.bf16.mxu0 %v1137_v59 }
  0x70   : > { %764 = vmatpush1.bf16.msra.mxu0 %v1139_v60 }
  0x71   : > { %765 = vmatprep.subr.bf16.mxu0 %v1140_v61 }
  0x74   : > { %766 = vmatpush1.bf16.msra.mxu0 %v1142_v62 }
  0x75   : > { %767 = vmatprep.subr.bf16.mxu0 %v1143_v63 }
  0x78   : > { %768 = vmatpush1.bf16.msra.mxu0 %v1145_v0 }
  0x79   : > { %769 = vmatprep.subr.bf16.mxu0 %v1146_v1 }
  0x7c   : > { %770 = vmatpush1.bf16.msra.mxu0 %v1148_v2 }
  0x7f   : > { %772 = vmatmul.mubr.bf16.vlgmr.msra.gmra.mrb[0].mxu0 %v1004_v3 }
 0x150   : > { %787 = sbr.rel (%p1038_p13) target bundleno = 361 (0x169), region = 86 }
 0x152   : > { %v773_v6 = vpop.f32.mrb[0].mxu0 }
 0x153   : > { %v780_v7 = vadd.f32 %v773_v6, %v537_v4  ;;  %v775_v8 = vpop.f32.mrb[1].mxu0 }
 0x154   : > { %v781_v9 = vadd.f32 %v775_v8, %v538_v5  ;;  %v777_v10 = vpop.f32.mrb[2].mxu0 }
 0x155   : > { %782 = vst [vmem:[#allocation2] sm:$0xff] %v780_v7  ;;  %v778_v11 = vpop.f32.mrb[3].mxu0 }
 0x156   : > { %783 = vst [vmem:[#allocation2 + $0x8] sm:$0xff] %v781_v9 }
 0x15c   : > { %v788_v18 = vld [vmem:[#allocation2] sm:$0xff] }
 0x15d   : > { %v789_v19 = vld [vmem:[#allocation2 + $0x8] sm:$0xff]  ;;  %v802_v25 = vmul.f32 %v795_v21, %v788_v18 }
 0x15e   : > { %v803_v26 = vmul.f32 %v799_v22, %v789_v19 }
 0x15f   : > { %v816_v29 = vadd.f32 %v809_v23, %v802_v25 }
 0x160   : > { %v817_v30 = vadd.f32 %v813_v24, %v803_v26 }
 0x161   : > { %v821_v31 = vadd.f32 %v819_v27, %v816_v29 }
 0x162   : > { %v822_v32 = vadd.f32 %v820_v28, %v817_v30 }
 0x163   : > { %v823_v33 = vmax.f32 %v821_v31, 0.0 }
 0x164   : > { %v824_v34 = vmax.f32 %v822_v32, 0.0 }
 0x166   : > { %v1043_v35 = vpack.c.bf16 %v824_v34, %v823_v33 }
 0x168   : > { %833 = vst [vmem:[%s1395_s7] sm:$0xff] %v1043_v35 }
 0x169 PF: > { %s15_s24 = sadd.s32 1, %s1205_s24   ;;  %s1473_s18 = smov %s1185_s19 }
 0x16a   : > { %p12_p0 = scmp.ge.s32.totalorder %s15_s24, 38   ;;  %s1474_s19 = smov %s1289_s6 }
 0x16b   : > { %s1475_s20 = smov %s1197_s22  ;;  %s1476_s21 = smov %s1201_s23 }
 0x16c   : > { %s1477_s22 = smov %s1480_s25  ;;  %s1478_s23 = smov %s1484_s26 }
 0x16d   :  { %14 = sbr.rel (!%p12_p0) target bundleno = 4 (0x4), region = 133 }

// kernel: _lambda_.34
= control target key start
LH: loop header
LB: loop body
LE: loop exit
PB: predicated region body
PF: predicated region fallthrough
CT: control target
= control target key end

     0   :  { %s1145_s15 = smov 0   ;;  %s1147_s16 = smov 0   ;;  %s1368_s0 = inlined_call_operand.vmem [shape: bf16[8,4608], index: 0, kind: input, shape index: {}]   ;;  %s1369_s1 = inlined_call_operand.vmem [shape: bf16[4608,512], index: 1, kind: input, shape index: {}]   ;;  %s1370_s2 = inlined_call_operand.vmem [shape: f32[1,512], index: 2, kind: input, shape index: {}]   ;;  %s1371_s3 = inlined_call_operand.vmem [shape: f32[1,512], index: 3, kind: input, shape index: {}]   ;;  %s1372_s4 = inlined_call_operand.vmem [shape: bf16[8,512], index: 4, kind: output, shape index: {}]  }
   0x1   :  { %s1149_s17 = smov 0   ;;  %s1151_s18 = smov 0  }
   0x2   :  { %s1153_s19 = smov 0   ;;  %s1155_s20 = smov 0  }
   0x3   :  { %s1157_s21 = smov 0  }
   0x4 LB: > { %s26_s22 = sadd.s32 1, %s1109_s19  ;;  %s29_s23 = sadd.s32 1, %s1113_s20  ;;  %s1117_s21 = sphi %s1157_s21, %s14_s21   ;;  %s1113_s20 = sphi %s1155_s20, %s1378_s20   ;;  %s1109_s19 = sphi %s1153_s19, %s1377_s19   ;;  %s1105_s18 = sphi %s1151_s18, %s1376_s18   ;;  %s1101_s17 = sphi %s1149_s17, %s1375_s17   ;;  %s1097_s16 = sphi %s1147_s16, %s1374_s16   ;;  %s1093_s15 = sphi %s1145_s15, %s1373_s15  }
   0x5   : > { %p27_p0 = scmp.ge.s32.totalorder %s26_s22, 18  ;;  %p77_p1 = scmp.ne.s32.totalorder %s1097_s16, %s1093_s15 }
   0x6   : > { %p78_p2 = scmp.eq.s32.totalorder %s1117_s21, 0  ;;  %s70_s27 = sadd.s32 1, %s1097_s16 }
   0x7   : > { %s1380_s22 = smov (%p27_p0, %s26_s22), 0  ;;  %s1382_s23 = smov (!%p27_p0, %s29_s23), %s1113_s20 }
   0x8   : > { %p79_p3 = por %p78_p2, %p77_p1  ;;  %p31_p4 = scmp.ge.s32.totalorder %s1382_s23, 2 }
   0x9   : > { %s65_s24 = ssub.s32 %s1109_s19, %s1380_s22  ;;  %p901_p6 = scmp.ge.s32.totalorder %s1117_s21, 36 }
   0xa   : > { %s1384_s23 = smov (%p31_p4, %s1382_s23), 0 }
   0xb   : > { %s66_s25 = ssub.s32 %s1113_s20, %s1384_s23  ;;  %183 = sbr.rel (%p901_p6) target bundleno = 41 (0x29), region = 16 }
   0xc   : > { %s67_s26 = sor.u32 %s66_s25, %s65_s24 }
   0xd   : > { %p68_p5 = scmp.eq.s32.totalorder %s67_s26, 0 }
   0xf   : > { %s1196_s28 = scalar_select %p68_p5, %s1097_s16, %s70_s27  }
  0x12   : > { %199 = sbr.rel (!%p79_p3) target bundleno = 41 (0x29), region = 24  ;;  %s201_s29 = sand.u32 (%p79_p3), 1, %s1097_s16  }
  0x13   : > { %s904_s30 = sshll.u32 (%p79_p3), %s1113_s20, 1  ;;  %s902_s5 = sshll.u32 (%p79_p3), %s201_s29, 8 }
  0x14   : > { %s954_s6 = sshll.u32 (%p79_p3), %s1109_s19, 7  ;;  %s1210_s12 = scalar_lea.vmem (%p79_p3), [#allocation3], %s902_s5 }
  0x15   : > { %s207_s7 = sadd.s32 (%p79_p3), %s954_s6, %s904_s30 }
  0x16   : > { %s906_s8 = sshll.u32 (%p79_p3), %s207_s7, 2 }
  0x17   : > { %s1205_s11 = scalar_lea.vmem (%p79_p3), %s1369_s1, %s906_s8 }
  0x18   : > { %v299_v0 = vld [vmem:[%s1205_s11] sm:$0xff] (%p79_p3)  ;;  %v301_v1 = vld [vmem:[%s1205_s11 + $0x10] sm:$0xff] (%p79_p3) }
  0x19   : > { %v303_v2 = vld [vmem:[%s1205_s11 + $0x20] sm:$0xff]  ;;  %300 = vst [vmem:[%s1210_s12] sm:$0xff] %v299_v0  ;;  %302 = vst [vmem:[%s1210_s12 + $0x8] sm:$0xff] %v301_v1  ;;  %v305_v3 = vld [vmem:[%s1205_s11 + $0x30] sm:$0xff] }
  0x1a   : > { %304 = vst [vmem:[%s1210_s12 + $0x10] sm:$0xff] %v303_v2  ;;  %v307_v4 = vld [vmem:[%s1205_s11 + $0x40] sm:$0xff]  ;;  %v309_v5 = vld [vmem:[%s1205_s11 + $0x50] sm:$0xff]  ;;  %306 = vst [vmem:[%s1210_s12 + $0x18] sm:$0xff] %v305_v3 }
  0x1b   : > { %308 = vst [vmem:[%s1210_s12 + $0x20] sm:$0xff] %v307_v4  ;;  %310 = vst [vmem:[%s1210_s12 + $0x28] sm:$0xff] %v309_v5  ;;  %v311_v6 = vld [vmem:[%s1205_s11 + $0x60] sm:$0xff]  ;;  %v313_v7 = vld [vmem:[%s1205_s11 + $0x70] sm:$0xff] }
  0x1c   : > { %v315_v8 = vld [vmem:[%s1205_s11 + $0x80] sm:$0xff]  ;;  %312 = vst [vmem:[%s1210_s12 + $0x30] sm:$0xff] %v311_v6  ;;  %314 = vst [vmem:[%s1210_s12 + $0x38] sm:$0xff] %v313_v7  ;;  %v317_v9 = vld [vmem:[%s1205_s11 + $0x90] sm:$0xff] }
  0x1d   : > { %316 = vst [vmem:[%s1210_s12 + $0x40] sm:$0xff] %v315_v8  ;;  %v319_v10 = vld [vmem:[%s1205_s11 + $0xa0] sm:$0xff]  ;;  %v321_v11 = vld [vmem:[%s1205_s11 + $0xb0] sm:$0xff]  ;;  %318 = vst [vmem:[%s1210_s12 + $0x48] sm:$0xff] %v317_v9 }
  0x1e   : > { %320 = vst [vmem:[%s1210_s12 + $0x50] sm:$0xff] %v319_v10  ;;  %322 = vst [vmem:[%s1210_s12 + $0x58] sm:$0xff] %v321_v11  ;;  %v323_v12 = vld [vmem:[%s1205_s11 + $0xc0] sm:$0xff]  ;;  %v325_v13 = vld [vmem:[%s1205_s11 + $0xd0] sm:$0xff] }
  0x1f   : > { %v327_v14 = vld [vmem:[%s1205_s11 + $0xe0] sm:$0xff]  ;;  %324 = vst [vmem:[%s1210_s12 + $0x60] sm:$0xff] %v323_v12  ;;  %326 = vst [vmem:[%s1210_s12 + $0x68] sm:$0xff] %v325_v13  ;;  %v329_v15 = vld [vmem:[%s1205_s11 + $0xf0] sm:$0xff] }
  0x20   : > { %328 = vst [vmem:[%s1210_s12 + $0x70] sm:$0xff] %v327_v14  ;;  %v331_v16 = vld [vmem:[%s1205_s11 + $0x100] sm:$0xff]  ;;  %v333_v17 = vld [vmem:[%s1205_s11 + $0x110] sm:$0xff]  ;;  %330 = vst [vmem:[%s1210_s12 + $0x78] sm:$0xff] %v329_v15 }
  0x21   : > { %332 = vst [vmem:[%s1210_s12 + $0x80] sm:$0xff] %v331_v16  ;;  %334 = vst [vmem:[%s1210_s12 + $0x88] sm:$0xff] %v333_v17  ;;  %v335_v18 = vld [vmem:[%s1205_s11 + $0x120] sm:$0xff]  ;;  %v337_v19 = vld [vmem:[%s1205_s11 + $0x130] sm:$0xff] }
  0x22   : > { %v339_v20 = vld [vmem:[%s1205_s11 + $0x140] sm:$0xff]  ;;  %336 = vst [vmem:[%s1210_s12 + $0x90] sm:$0xff] %v335_v18  ;;  %338 = vst [vmem:[%s1210_s12 + $0x98] sm:$0xff] %v337_v19  ;;  %v341_v21 = vld [vmem:[%s1205_s11 + $0x150] sm:$0xff] }
  0x23   : > { %340 = vst [vmem:[%s1210_s12 + $0xa0] sm:$0xff] %v339_v20  ;;  %v343_v22 = vld [vmem:[%s1205_s11 + $0x160] sm:$0xff]  ;;  %v345_v23 = vld [vmem:[%s1205_s11 + $0x170] sm:$0xff]  ;;  %342 = vst [vmem:[%s1210_s12 + $0xa8] sm:$0xff] %v341_v21 }
  0x24   : > { %344 = vst [vmem:[%s1210_s12 + $0xb0] sm:$0xff] %v343_v22  ;;  %346 = vst [vmem:[%s1210_s12 + $0xb8] sm:$0xff] %v345_v23  ;;  %v347_v24 = vld [vmem:[%s1205_s11 + $0x180] sm:$0xff]  ;;  %v349_v25 = vld [vmem:[%s1205_s11 + $0x190] sm:$0xff] }
  0x25   : > { %v351_v26 = vld [vmem:[%s1205_s11 + $0x1a0] sm:$0xff]  ;;  %348 = vst [vmem:[%s1210_s12 + $0xc0] sm:$0xff] %v347_v24  ;;  %350 = vst [vmem:[%s1210_s12 + $0xc8] sm:$0xff] %v349_v25  ;;  %v353_v27 = vld [vmem:[%s1205_s11 + $0x1b0] sm:$0xff] }
  0x26   : > { %352 = vst [vmem:[%s1210_s12 + $0xd0] sm:$0xff] %v351_v26  ;;  %v355_v28 = vld [vmem:[%s1205_s11 + $0x1c0] sm:$0xff]  ;;  %v357_v29 = vld [vmem:[%s1205_s11 + $0x1d0] sm:$0xff]  ;;  %354 = vst [vmem:[%s1210_s12 + $0xd8] sm:$0xff] %v353_v27 }
  0x27   : > { %356 = vst [vmem:[%s1210_s12 + $0xe0] sm:$0xff] %v355_v28  ;;  %358 = vst [vmem:[%s1210_s12 + $0xe8] sm:$0xff] %v357_v29  ;;  %v359_v30 = vld [vmem:[%s1205_s11 + $0x1e0] sm:$0xff]  ;;  %v361_v31 = vld [vmem:[%s1205_s11 + $0x1f0] sm:$0xff] }
  0x28   : > { %360 = vst [vmem:[%s1210_s12 + $0xf0] sm:$0xff] %v359_v30  ;;  %362 = vst [vmem:[%s1210_s12 + $0xf8] sm:$0xff] %v361_v31 }
  0x29 PF: > { %p907_p7 = scmp.ge.s32.totalorder %s1117_s21, 1  ;;  %p383_p8 = scmp.lt.s32.totalorder %s1117_s21, 37 }
  0x2b   : > { %p384_p9 = pnand %p907_p7, %p383_p8 }
  0x2c   : > { %s390_s13 = sand.u32 (!%p384_p9), 1, %s1093_s15   ;;  %s909_s14 = sshll.u32 (!%p384_p9), %s1101_s17, 1 }
  0x2d   : > { %387 = sbr.rel (%p384_p9) target bundleno = 359 (0x167), region = 70  ;;  %s908_s24 = sshll.u32 (!%p384_p9), %s390_s13, 8 }
  0x2e   : > { %p439_p10 = scmp.lt.s32.totalorder (!%p384_p9), %s909_s14, 35  ;;  %s911_s25 = sshll.u32 (!%p384_p9), %s1105_s18, 1 }
  0x2f   : > { %p449_p11 = scmp.lt.s32.totalorder (!%p384_p9), %s911_s25, 3  ;;  %s1299_s13 = scalar_lea.vmem (!%p384_p9), [#allocation3], %s908_s24 }
  0x30   : > { %p915_p12 = scmp.ne.s32.totalorder (!%p384_p9), %s1101_s17, 0 }
  0x34   : > { %s1386_s14 = smov (!%p439_p10, %s909_s14), 35  ;;  %s1388_s25 = smov (!%p449_p11, %s911_s25), 3 }
  0x35   : > { %s910_s26 = sshll.u32 %s1386_s14, 2  ;;  %s451_s15 = scalar_lea.vmem %s1370_s2, %s1388_s25  ;;  %v1119_v32 = vmov (!%p915_p12), 0.0  }
  0x36   : > { %s1281_s30 = scalar_lea.vmem %s1368_s0, %s910_s26  ;;  %s456_s18 = scalar_lea.vmem %s1371_s3, %s1388_s25  ;;  %472 = vst [vmem:[#allocation2] sm:$0xff] (!%p915_p12), %v1119_v32  ;;  %473 = vst [vmem:[#allocation2 + $0x8] sm:$0xff] (!%p915_p12), %v1119_v32 }
  0x37   : > { %s914_s9 = sshll.u32 %s1388_s25, 2  ;;  %471 = sbr.rel (%p915_p12) target bundleno = 62 (0x3e), region = 78 }
  0x38   : > { %s1297_s12 = scalar_lea.vmem %s1372_s4, %s914_s9 }
  0x3e PF: > { %v1013_v33 = vld [vmem:[%s1299_s13 + $0x4] ss:$8 sps:$4 sm:$0xff]   ;;  %v1015_v34 = vld [vmem:[%s1299_s13] ss:$8 sps:$4 sm:$0xff]   ;;  %v1016_v35 = vld [vmem:[%s1299_s13 + $0x14] ss:$8 sps:$4 sm:$0xff]  }
  0x3f   : > { %676 = vmatprep.subr.bf16.mxu0 %v1013_v33  ;;  %v1018_v36 = vld [vmem:[%s1299_s13 + $0x10] ss:$8 sps:$4 sm:$0xff]   ;;  %v1019_v37 = vld [vmem:[%s1299_s13 + $0x24] ss:$8 sps:$4 sm:$0xff]   ;;  %v1021_v38 = vld [vmem:[%s1299_s13 + $0x20] ss:$8 sps:$4 sm:$0xff]  }
  0x40   : > { %677 = vmatpush1.bf16.msra.mxu0 %v1015_v34  ;;  %v1022_v39 = vld [vmem:[%s1299_s13 + $0x34] ss:$8 sps:$4 sm:$0xff]   ;;  %v1024_v40 = vld [vmem:[%s1299_s13 + $0x30] ss:$8 sps:$4 sm:$0xff]   ;;  %v1025_v41 = vld [vmem:[%s1299_s13 + $0x44] ss:$8 sps:$4 sm:$0xff]  }
  0x41   : > { %678 = vmatprep.subr.bf16.mxu0 %v1016_v35  ;;  %v1027_v42 = vld [vmem:[%s1299_s13 + $0x40] ss:$8 sps:$4 sm:$0xff]   ;;  %v1028_v43 = vld [vmem:[%s1299_s13 + $0x54] ss:$8 sps:$4 sm:$0xff]   ;;  %v1030_v44 = vld [vmem:[%s1299_s13 + $0x50] ss:$8 sps:$4 sm:$0xff]  }
  0x42   : > { %v1031_v45 = vld [vmem:[%s1299_s13 + $0x64] ss:$8 sps:$4 sm:$0xff]   ;;  %v476_v46 = vld [vmem:[%s1281_s30] sm:$0xff]  ;;  %v1033_v48 = vld [vmem:[%s1299_s13 + $0x60] ss:$8 sps:$4 sm:$0xff]   ;;  %p950_p13 = scmp.ne.s32.totalorder %s1101_s17, 17 }
  0x43   : > { %v917_v47 = vcombine.high %v476_v46, %v476_v46  ;;  %v1034_v49 = vld [vmem:[%s1299_s13 + $0x74] ss:$8 sps:$4 sm:$0xff]   ;;  %v1036_v50 = vld [vmem:[%s1299_s13 + $0x70] ss:$8 sps:$4 sm:$0xff]   ;;  %v1037_v51 = vld [vmem:[%s1299_s13 + $0x84] ss:$8 sps:$4 sm:$0xff]   ;;  %v916_v3 = vcombine.low %v476_v46, %v476_v46  ;;  %v729_v12 = vlaneseq (!%p950_p13) }
  0x44   : > { %679 = vmatpush1.bf16.msra.mxu0 %v1018_v36  ;;  %v1039_v52 = vld [vmem:[%s1299_s13 + $0x80] ss:$8 sps:$4 sm:$0xff]   ;;  %v1040_v53 = vld [vmem:[%s1299_s13 + $0x94] ss:$8 sps:$4 sm:$0xff]   ;;  %v1042_v54 = vld [vmem:[%s1299_s13 + $0x90] ss:$8 sps:$4 sm:$0xff]  }
  0x45   : > { %680 = vmatprep.subr.bf16.mxu0 %v1019_v37  ;;  %708 = vmatprep.mubr.bf16.mxu0 %v917_v47  ;;  %v1043_v55 = vld [vmem:[%s1299_s13 + $0xa4] ss:$8 sps:$4 sm:$0xff]   ;;  %v1045_v56 = vld [vmem:[%s1299_s13 + $0xa0] ss:$8 sps:$4 sm:$0xff]   ;;  %v1046_v57 = vld [vmem:[%s1299_s13 + $0xb4] ss:$8 sps:$4 sm:$0xff]  }
  0x46   : > { %v1048_v58 = vld [vmem:[%s1299_s13 + $0xb0] ss:$8 sps:$4 sm:$0xff]   ;;  %v1049_v59 = vld [vmem:[%s1299_s13 + $0xc4] ss:$8 sps:$4 sm:$0xff]   ;;  %v1051_v60 = vld [vmem:[%s1299_s13 + $0xc0] ss:$8 sps:$4 sm:$0xff]  }
  0x47   : > { %v1052_v61 = vld [vmem:[%s1299_s13 + $0xd4] ss:$8 sps:$4 sm:$0xff]   ;;  %v1054_v62 = vld [vmem:[%s1299_s13 + $0xd0] ss:$8 sps:$4 sm:$0xff]   ;;  %v1055_v63 = vld [vmem:[%s1299_s13 + $0xe4] ss:$8 sps:$4 sm:$0xff]  }
  0x48   : > { %681 = vmatpush1.bf16.msra.mxu0 %v1021_v38  ;;  %v1057_v0 = vld [vmem:[%s1299_s13 + $0xe0] ss:$8 sps:$4 sm:$0xff]   ;;  %v1058_v1 = vld [vmem:[%s1299_s13 + $0xf4] ss:$8 sps:$4 sm:$0xff]   ;;  %v1060_v2 = vld [vmem:[%s1299_s13 + $0xf0] ss:$8 sps:$4 sm:$0xff]  }
  0x49   : > { %682 = vmatprep.subr.bf16.mxu0 %v1022_v39  ;;  %v474_v4 = vld [vmem:[#allocation2] sm:$0xff]  ;;  %v475_v5 = vld [vmem:[#allocation2 + $0x8] sm:$0xff]  ;;  %v730_v13 = vshrl.u32 (!%p950_p13), %v729_v12, 7 }
  0x4a   : > { %v727_v14 = vld [vmem:[%s451_s15] sm:$0x3] (!%p950_p13) }
  0x4b   : > { %v741_v15 = vld [vmem:[%s456_s18] sm:$0x3] (!%p950_p13)  ;;  %v731_v16 = vsub.s32 (!%p950_p13), 0, %v730_v13  ;;  %v735_v17 = vsub.s32 (!%p950_p13), 1, %v730_v13 }
  0x4c   : > { %683 = vmatpush1.bf16.msra.mxu0 %v1024_v40 }
  0x4d   : > { %684 = vmatprep.subr.bf16.mxu0 %v1025_v41  ;;  %v732_v20 = vrot.slane (!%p950_p13), %v727_v14, %v731_v16  ;;  %v736_v21 = vrot.slane (!%p950_p13), %v727_v14, %v735_v17  ;;  %v746_v22 = vrot.slane (!%p950_p13), %v741_v15, %v731_v16  ;;  %v750_v23 = vrot.slane (!%p950_p13), %v741_v15, %v735_v17 }
  0x50   : > { %685 = vmatpush1.bf16.msra.mxu0 %v1027_v42 }
  0x51   : > { %686 = vmatprep.subr.bf16.mxu0 %v1028_v43 }
  0x54   : > { %687 = vmatpush1.bf16.msra.mxu0 %v1030_v44 }
  0x55   : > { %688 = vmatprep.subr.bf16.mxu0 %v1031_v45 }
  0x58   : > { %689 = vmatpush1.bf16.msra.mxu0 %v1033_v48 }
  0x59   : > { %690 = vmatprep.subr.bf16.mxu0 %v1034_v49 }
  0x5c   : > { %691 = vmatpush1.bf16.msra.mxu0 %v1036_v50 }
  0x5d   : > { %692 = vmatprep.subr.bf16.mxu0 %v1037_v51 }
  0x60   : > { %693 = vmatpush1.bf16.msra.mxu0 %v1039_v52 }
  0x61   : > { %694 = vmatprep.subr.bf16.mxu0 %v1040_v53 }
  0x64   : > { %695 = vmatpush1.bf16.msra.mxu0 %v1042_v54 }
  0x65   : > { %696 = vmatprep.subr.bf16.mxu0 %v1043_v55 }
  0x68   : > { %697 = vmatpush1.bf16.msra.mxu0 %v1045_v56 }
  0x69   : > { %698 = vmatprep.subr.bf16.mxu0 %v1046_v57 }
  0x6c   : > { %699 = vmatpush1.bf16.msra.mxu0 %v1048_v58 }
  0x6d   : > { %700 = vmatprep.subr.bf16.mxu0 %v1049_v59 }
  0x70   : > { %701 = vmatpush1.bf16.msra.mxu0 %v1051_v60 }
  0x71   : > { %702 = vmatprep.subr.bf16.mxu0 %v1052_v61 }
  0x74   : > { %703 = vmatpush1.bf16.msra.mxu0 %v1054_v62 }
  0x75   : > { %704 = vmatprep.subr.bf16.mxu0 %v1055_v63 }
  0x78   : > { %705 = vmatpush1.bf16.msra.mxu0 %v1057_v0 }
  0x79   : > { %706 = vmatprep.subr.bf16.mxu0 %v1058_v1 }
  0x7c   : > { %707 = vmatpush1.bf16.msra.mxu0 %v1060_v2 }
  0x7f   : > { %709 = vmatmul.mubr.bf16.vlgmr.msra.gmra.mrb[0].mxu0 %v916_v3 }
 0x150   : > { %724 = sbr.rel (%p950_p13) target bundleno = 359 (0x167), region = 82 }
 0x152   : > { %v710_v6 = vpop.f32.mrb[0].mxu0 }
 0x153   : > { %v717_v7 = vadd.f32 %v710_v6, %v474_v4  ;;  %v712_v8 = vpop.f32.mrb[1].mxu0 }
 0x154   : > { %v718_v9 = vadd.f32 %v712_v8, %v475_v5  ;;  %v714_v10 = vpop.f32.mrb[2].mxu0 }
 0x155   : > { %719 = vst [vmem:[#allocation2] sm:$0xff] %v717_v7  ;;  %v715_v11 = vpop.f32.mrb[3].mxu0 }
 0x156   : > { %720 = vst [vmem:[#allocation2 + $0x8] sm:$0xff] %v718_v9 }
 0x15c   : > { %v725_v18 = vld [vmem:[#allocation2] sm:$0xff] }
 0x15d   : > { %v726_v19 = vld [vmem:[#allocation2 + $0x8] sm:$0xff]  ;;  %v739_v24 = vmul.f32 %v732_v20, %v725_v18 }
 0x15e   : > { %v740_v25 = vmul.f32 %v736_v21, %v726_v19 }
 0x15f   : > { %v753_v26 = vadd.f32 %v746_v22, %v739_v24 }
 0x160   : > { %v754_v27 = vadd.f32 %v750_v23, %v740_v25 }
 0x161   : > { %v755_v28 = vmax.f32 %v753_v26, 0.0 }
 0x162   : > { %v756_v29 = vmax.f32 %v754_v27, 0.0 }
 0x164   : > { %v955_v30 = vpack.c.bf16 %v756_v29, %v755_v28 }
 0x166   : > { %765 = vst [vmem:[%s1297_s12] sm:$0xff] %v955_v30 }
 0x167 PF: > { %s14_s21 = sadd.s32 1, %s1117_s21   ;;  %s1373_s15 = smov %s1097_s16 }
 0x168   : > { %p11_p0 = scmp.ge.s32.totalorder %s14_s21, 38   ;;  %s1374_s16 = smov %s1196_s28 }
 0x169   : > { %s1375_s17 = smov %s1109_s19  ;;  %s1376_s18 = smov %s1113_s20 }
 0x16a   : > { %s1377_s19 = smov %s1380_s22  ;;  %s1378_s20 = smov %s1384_s23 }
 0x16b   :  { %13 = sbr.rel (!%p11_p0) target bundleno = 4 (0x4), region = 126 }

</bundles_post_ra>
